<compile_context>
chip_gen: v7x
topology: tpu7x:2x2x1
jax: 0.10.0
libtpu: 0.0.40
codegen_flags: <defaults>
</compile_context>

<pallas_src>
import functools
import math

import jax
import jax.numpy as jnp
from jax import lax
from jax.experimental import pallas as pl
from jax.experimental.pallas import tpu as pltpu

NEG_BIG = -9e15
F32_BIG = 3.0e38


def rohe_gat_kernel(feat_ref, w_ref, adjt_ref, trans_ref, w1_ref, b1_ref,
                    z_ref, psum_ref, x_all_ref, *,
                    num_heads, out_feats, top_t, tile_d):
    """One (metapath, dst-row-tile) step of RoHeGATConv + semantic-score partials."""
    t = pl.program_id(1)

    # ---- per-metapath prologue: packed projection (one K=Fin matmul, lane-dense) ----
    @pl.when(t == 0)
    def _():
        x_all_ref[...] = jnp.dot(feat_ref[...], w_ref[0],
                                 preferred_element_type=jnp.float32)       # (N, H*D)
        psum_ref[...] = jnp.zeros_like(psum_ref)

    x_all = x_all_ref[...]                                                  # (N, H*D) f32
    row0 = pl.multiple_of(t * tile_d, tile_d)
    x_dst = x_all_ref[pl.ds(row0, tile_d), :]                               # (Td, H*D)

    adjt = adjt_ref[0]                   # (Td, N)  adjt[d, s] = adj[s, d]  (dst-major)
    trans = trans_ref[0]                 # (Td, N)  natural-layout rows d:  trans[d, s]

    # Full-K Gram rows for the gated attention score.  f32 end-to-end so the discrete
    # top-T gating matches the f32 reference ( <X[d],X[s]> == sum_h <x_h[d],x_h[s]> ).
    gram = lax.dot_general(x_dst, x_all, (((1,), (1,)), ((), ())),
                           preferred_element_type=jnp.float32)              # (Td, N)
    attn = gram * trans                                                     # attn[d, s]

    # Per-dst-row T-th largest value (tie handling identical to torch.topk[..., -1]):
    # top_t max-extract passes, O(T * Td * N).
    # kth = max{ v in row : count(row >= v) >= T }, then clamp at 0.
    kth = jnp.full((tile_d, 1), -F32_BIG, jnp.float32)
    work = attn
    for _ in range(top_t):
        m = jnp.max(work, axis=1, keepdims=True)                            # (Td, 1)
        cnt = jnp.sum((attn >= m).astype(jnp.float32), axis=1, keepdims=True)
        kth = jnp.maximum(kth, jnp.where(cnt >= float(top_t), m, -F32_BIG))
        work = jnp.where(attn >= m, -F32_BIG, attn)
    thr = jnp.maximum(kth, 0.0)                  # torch.clamp(topk[..., -1], min=0)

    # Edge s->d survives iff adj[s, d] != 0 and attn[d, s] >= thr[d].
    keep = (adjt > 0.0) & (attn >= thr)                                     # (Td, N)

    head_outs = []
    for h in range(num_heads):
        sl = slice(h * out_feats, (h + 1) * out_feats)
        xh_all = x_all[:, sl]                                               # (N, D)
        xh_dst = x_dst[:, sl]                                               # (Td, D)
        # Per-head logits Gram, computed where it dies (no H live (N,N) arrays).
        # Kept f32 so softmax weights track the reference within tolerance.
        sh = lax.dot_general(xh_dst, xh_all, (((1,), (1,)), ((), ())),
                             preferred_element_type=jnp.float32)            # (Td, N)
        # Overwrite (not add) the gated entries: fully-gated destination rows then
        # reduce to a uniform distribution over adjacency edges, same as the reference.
        logit = jnp.where(keep, sh, NEG_BIG)
        mx = jnp.max(logit, axis=-1, keepdims=True)                         # (Td, 1)
        p = jnp.exp(logit - mx) * adjt
        denom = jnp.maximum(jnp.sum(p, axis=-1, keepdims=True), 1e-30)
        a = p * (1.0 / denom)
        # rst[d] = sum_s a[d, s] * x_h[s]: bf16 operands, f32 accumulate (continuous
        # aggregation only; the gating path above stays f32).
        oh = jnp.dot(a.astype(jnp.bfloat16), xh_all.astype(jnp.bfloat16),
                     preferred_element_type=jnp.float32)                    # (Td, D)
        head_outs.append(oh)

    z = jnp.concatenate(head_outs, axis=1)                                  # (Td, H*D)
    z = jnp.where(z > 0.0, z, jnp.exp(z) - 1.0)                             # ELU
    z_ref[0] = z   # single lane-dense (Td, H*D) store
    # TODO(synk): for very large N, emit z in bfloat16 (f32 accumulate in the combine
    # kernel) to halve the M*N*H*D HBM traffic between the two kernels.

    # SemanticAttention partial, computed while the z tile is still in VMEM:
    # accumulate sum_d tanh(z[d] @ w1 + b1); the (@ q) / N and softmax happen later.
    proj = jnp.tanh(jnp.dot(z, w1_ref[...], preferred_element_type=jnp.float32)
                    + b1_ref[...])                                          # (Td, Hid)
    part = jnp.sum(proj, axis=0, keepdims=True)                             # (1, Hid)
    psum_ref[...] = psum_ref[...] + part[None]                              # (1, 1, Hid)


def semantic_combine_kernel(z_ref, psum_ref, q_ref, out_ref, *, num_meta, n_total):
    """M-way semantic softmax + weighted combine of the metapath outputs."""
    q = q_ref[...]                                                          # (Hid, 1)
    scores = []
    for m in range(num_meta):
        s = jnp.dot(psum_ref[m], q, preferred_element_type=jnp.float32)     # (1, 1)
        scores.append(s * (1.0 / float(n_total)))                           # mean over N
    mx = scores[0]
    for s in scores[1:]:
        mx = jnp.maximum(mx, s)
    exps = [jnp.exp(s - mx) for s in scores]
    denom = exps[0]
    for e in exps[1:]:
        denom = denom + e
    inv = 1.0 / denom
    out = (exps[0] * inv) * z_ref[0]
    for m in range(1, num_meta):
        out = out + (exps[m] * inv) * z_ref[m]
    out_ref[...] = out


def han_layer_forward(feat, w_stack, adj_stack, trans_stack, sem_w1, sem_b1, sem_q,
                      *, num_heads, out_feats, top_t, tile_d=None):
    M, N, _ = adj_stack.shape
    fin = feat.shape[1]
    hd = num_heads * out_feats
    hid = sem_w1.shape[1]
    if tile_d is None:
        tile_d = min(N, 128)
    assert N % tile_d == 0, "N must be a multiple of the dst-row tile"
    n_tiles = N // tile_d

    # Host-side layout plumbing (free): dst-major adjacency. TransM stays natural
    # (the gate and threshold only read rows d of the natural matrix).
    adj_t = jnp.transpose(adj_stack, (0, 2, 1))

    # VMEM budget per step ~ 2(dbl-buf) * 2(adjt,trans) * Td*N*4  +  ~5 * Td*N*4 temps
    #                        + N*H*D*4 (X scratch) + Td*H*D*4 (z block)  -> fits 32 MiB
    # comfortably for Td=128 up to N ~ 8k; re-derive vmem_limit_bytes for bigger tiles.
    z, psum = pl.pallas_call(
        functools.partial(rohe_gat_kernel, num_heads=num_heads, out_feats=out_feats,
                          top_t=top_t, tile_d=tile_d),
        out_shape=(jax.ShapeDtypeStruct((M, N, hd), jnp.float32),
                   jax.ShapeDtypeStruct((M, 1, hid), jnp.float32)),
        grid_spec=pltpu.PrefetchScalarGridSpec(
            num_scalar_prefetch=0,
            grid=(M, n_tiles),
            in_specs=[
                pl.BlockSpec((N, fin), lambda m, t: (0, 0)),              # feat (resident)
                pl.BlockSpec((1, fin, hd), lambda m, t: (m, 0, 0)),       # packed fc weight
                pl.BlockSpec((1, tile_d, N), lambda m, t: (m, t, 0)),     # adj (dst-major rows)
                pl.BlockSpec((1, tile_d, N), lambda m, t: (m, t, 0)),     # TransM (natural rows)
                pl.BlockSpec((hd, hid), lambda m, t: (0, 0)),             # semantic W1
                pl.BlockSpec((1, hid), lambda m, t: (0, 0)),              # semantic b1
            ],
            out_specs=(
                pl.BlockSpec((1, tile_d, hd), lambda m, t: (m, t, 0)),    # z tile (lane-dense)
                pl.BlockSpec((1, 1, hid), lambda m, t: (m, 0, 0)),        # tanh-sum accumulator
            ),
            scratch_shapes=[pltpu.VMEM((N, hd), jnp.float32)],            # X, persists over tiles
        ),
        compiler_params=pltpu.CompilerParams(
            # metapaths are fully independent -> shard across v7x's 2 TensorCores;
            # the dst-row tile axis carries the X scratch / psum accumulator.
            dimension_semantics=("parallel", "arbitrary"),
            vmem_limit_bytes=32 * 1024 * 1024,
        ),
    )(feat, w_stack, adj_t, trans_stack, sem_w1, sem_b1)

    out = pl.pallas_call(
        functools.partial(semantic_combine_kernel, num_meta=M, n_total=N),
        out_shape=jax.ShapeDtypeStruct((N, hd), jnp.float32),
        grid=(n_tiles,),
        in_specs=[
            pl.BlockSpec((M, tile_d, hd), lambda i: (0, i, 0)),
            pl.BlockSpec((M, 1, hid), lambda i: (0, 0, 0)),
            pl.BlockSpec((hid, 1), lambda i: (0, 0)),
        ],
        out_specs=pl.BlockSpec((tile_d, hd), lambda i: (i, 0)),
        compiler_params=pltpu.CompilerParams(dimension_semantics=("parallel",)),
    )(z, psum, sem_q)
    return out   # HANLayer returns {ntype: out}; single ntype -> just the array


def reference(feat, w_stack, adj_stack, trans_stack, sem_w1, sem_b1, sem_q,
              *, num_heads, out_feats, top_t):
    """Pure-JAX reference mirroring the torch forward (dense reformulation, f32)."""
    M = adj_stack.shape[0]
    outs = []
    for m in range(M):
        X = feat @ w_stack[m]
        attn = (X @ X.T) * trans_stack[m]
        kth = -jnp.sort(-attn, axis=1)[:, top_t - 1:top_t]
        thr = jnp.maximum(kth, 0.0)
        masked = jnp.where(attn < thr, NEG_BIG, attn)
        bad = masked.T < -100.0
        adj = adj_stack[m]
        heads = []
        for h in range(num_heads):
            Xh = X[:, h * out_feats:(h + 1) * out_feats]
            Sh = Xh @ Xh.T
            logit = jnp.where(bad, NEG_BIG, Sh)
            logit = jnp.where(adj > 0.0, logit, NEG_BIG)
            mx = jnp.max(logit, axis=0, keepdims=True)
            p = jnp.exp(logit - mx) * adj
            a = p / jnp.sum(p, axis=0, keepdims=True)
            oh = a.T @ Xh
            heads.append(jnp.where(oh > 0.0, oh, jnp.exp(oh) - 1.0))
        outs.append(jnp.concatenate(heads, axis=1))
    z = jnp.stack(outs, axis=0)                                   # (M, N, H*D)
    w = jnp.stack([jnp.mean(jnp.tanh(z[m] @ sem_w1 + sem_b1) @ sem_q) for m in range(M)])
    beta = jax.nn.softmax(w)
    return jnp.einsum('m,mnf->nf', beta, z)


if __name__ == "__main__":
    import numpy as np

    # Small shapes: N nodes, Fin in_dim, 8 heads (hardcoded 8 in the torch code),
    # D out_dim per head, M metapaths, T = top-T mask, HID semantic hidden.
    N, FIN, HEADS, D, M, T, HID = 128, 64, 8, 16, 2, 8, 128
    HD = HEADS * D

    key = jax.random.PRNGKey(0)
    ks = jax.random.split(key, 8)

    feat = jax.random.normal(ks[0], (N, FIN), jnp.float32)

    # xavier_normal_(fc.weight, gain=sqrt(2)); stored pre-transposed (Fin, H*D), one per metapath
    gain = math.sqrt(2.0)
    std = gain * math.sqrt(2.0 / (FIN + HD))
    w_stack = std * jax.random.normal(ks[1], (M, FIN, HD), jnp.float32)

    # metapath-reachable graphs: random sparse adjacency + self loops
    adj = (jax.random.uniform(ks[2], (M, N, N)) < 0.08).astype(jnp.float32)
    adj = jnp.maximum(adj, jnp.broadcast_to(jnp.eye(N, dtype=jnp.float32)[None], (M, N, N)))
    # dense TransM (settings['TransM']); positive on edges, exactly 0 off-edge
    trans = adj * jax.random.uniform(ks[3], (M, N, N), minval=0.1, maxval=1.0,
                                     dtype=jnp.float32)

    # SemanticAttention params (deterministic synthetic init)
    sem_w1 = 0.1 * jax.random.normal(ks[4], (HD, HID), jnp.float32)
    sem_b1 = 0.1 * jax.random.normal(ks[5], (1, HID), jnp.float32)
    sem_q = 0.1 * jax.random.normal(ks[6], (HID, 1), jnp.float32)

    # TODO(synk): attn_l / attn_r params of RoHeGATConv are initialized but unused in its
    # forward, and dropout layers act as identity at inference; both are omitted here.

    out = han_layer_forward(feat, w_stack, adj, trans, sem_w1, sem_b1, sem_q,
                            num_heads=HEADS, out_feats=D, top_t=T)
    out = jax.block_until_ready(out)

    ref = reference(feat, w_stack, adj, trans, sem_w1, sem_b1, sem_q,
                    num_heads=HEADS, out_feats=D, top_t=T)
    ref = jax.block_until_ready(ref)

    out_np = np.asarray(out)
    assert np.all(np.isfinite(out_np)), "non-finite values in kernel output"
    np.testing.assert_allclose(out_np, np.asarray(ref), rtol=1e-2, atol=1e-2)
    print("KERNEL_OK")
</pallas_src>

<mosaic_0001>
module attributes {stable_mosaic.version = 11 : i64} {
  func.func @rohe_gat_kernel(%arg0: i32, %arg1: i32, %arg2: memref<128x64xf32, #tpu.memory_space<vmem>>, %arg3: memref<1x64x128xf32, #tpu.memory_space<vmem>>, %arg4: memref<1x128x128xf32, #tpu.memory_space<vmem>>, %arg5: memref<1x128x128xf32, #tpu.memory_space<vmem>>, %arg6: memref<128x128xf32, #tpu.memory_space<vmem>>, %arg7: memref<1x128xf32, #tpu.memory_space<vmem>>, %arg8: memref<1x128x128xf32, #tpu.memory_space<vmem>>, %arg9: memref<1x1x128xf32, #tpu.memory_space<vmem>>, %arg10: memref<128x128xf32, #tpu.memory_space<vmem>>) attributes {dimension_semantics = [#tpu.dimension_semantics<parallel>, #tpu.dimension_semantics<arbitrary>], iteration_bounds = array<i64: 2, 1>, scalar_prefetch = 0 : i64, scratch_operands = 1 : i64, tpu.core_type = #tpu.core_type<tc>, window_params = [{pipeline_mode = #tpu.pipeline_mode<synchronous>, transform_indices = @transform_0, window_bounds = array<i64: 128, 64>}, {transform_indices = @transform_1, window_bounds = array<i64: 1, 64, 128>}, {transform_indices = @transform_2, window_bounds = array<i64: 1, 128, 128>}, {transform_indices = @transform_3, window_bounds = array<i64: 1, 128, 128>}, {pipeline_mode = #tpu.pipeline_mode<synchronous>, transform_indices = @transform_4, window_bounds = array<i64: 128, 128>}, {pipeline_mode = #tpu.pipeline_mode<synchronous>, transform_indices = @transform_5, window_bounds = array<i64: 1, 128>}, {transform_indices = @transform_6, window_bounds = array<i64: 1, 128, 128>}, {transform_indices = @transform_7, window_bounds = array<i64: 1, 1, 128>}]} {
    %c0_i32 = arith.constant 0 : i32
    %0 = arith.cmpi eq, %arg1, %c0_i32 : i32
    %1 = arith.extui %0 : i1 to i32
    %c0_i32_0 = arith.constant 0 : i32
    %2 = arith.cmpi ne, %1, %c0_i32_0 : i32
    scf.if %2 {
      %c0_124 = arith.constant 0 : index
      %c0_125 = arith.constant 0 : index
      %352 = vector.load %arg2[%c0_124, %c0_125] : memref<128x64xf32, #tpu.memory_space<vmem>>, vector<128x64xf32>
      %c0_126 = arith.constant 0 : index
      %c0_127 = arith.constant 0 : index
      %c0_128 = arith.constant 0 : index
      %353 = vector.load %arg3[%c0_126, %c0_127, %c0_128] : memref<1x64x128xf32, #tpu.memory_space<vmem>>, vector<1x64x128xf32>
      %354 = vector.shape_cast %353 : vector<1x64x128xf32> to vector<64x128xf32>
      %cst_129 = arith.constant dense<0.000000e+00> : vector<128x128xf32>
      %355 = tpu.matmul %352, %354, %cst_129 {dimension_numbers = #tpu.dot_dimension_numbers<[1], [0], [0], [1], [0, 0, 1, 1], [], []>} : vector<128x64xf32>, vector<64x128xf32>, vector<128x128xf32> -> vector<128x128xf32>
      %c0_130 = arith.constant 0 : index
      %c0_131 = arith.constant 0 : index
      %356 = vector.load %arg10[%c0_130, %c0_131] : memref<128x128xf32, #tpu.memory_space<vmem>>, vector<128x128xf32>
      tpu.vector_store %arg10[%c0_130, %c0_131], %355 {strides = array<i32>} : memref<128x128xf32, #tpu.memory_space<vmem>>, vector<128x128xf32>,
      %cst_132 = arith.constant 0.000000e+00 : f32
      %357 = vector.broadcast %cst_132 : f32 to vector<1x1x128xf32>
      %c0_133 = arith.constant 0 : index
      %c0_134 = arith.constant 0 : index
      %c0_135 = arith.constant 0 : index
      %358 = vector.load %arg9[%c0_133, %c0_134, %c0_135] : memref<1x1x128xf32, #tpu.memory_space<vmem>>, vector<1x1x128xf32>
      tpu.vector_store %arg9[%c0_133, %c0_134, %c0_135], %357 {strides = array<i32>} : memref<1x1x128xf32, #tpu.memory_space<vmem>>, vector<1x1x128xf32>,
    } else {
    }
    %c0 = arith.constant 0 : index
    %c0_1 = arith.constant 0 : index
    %3 = vector.load %arg10[%c0, %c0_1] : memref<128x128xf32, #tpu.memory_space<vmem>>, vector<128x128xf32>
    %c128_i32 = arith.constant 128 : i32
    %4 = arith.muli %arg1, %c128_i32 : i32
    %5 = tpu.assume_multiple %4, 128 : i32
    %6 = arith.index_cast %5 : i32 to index
    %c0_2 = arith.constant 0 : index
    %7 = vector.load %arg10[%6, %c0_2] : memref<128x128xf32, #tpu.memory_space<vmem>>, vector<128x128xf32>
    %c0_3 = arith.constant 0 : index
    %c0_4 = arith.constant 0 : index
    %c0_5 = arith.constant 0 : index
    %8 = vector.load %arg4[%c0_3, %c0_4, %c0_5] : memref<1x128x128xf32, #tpu.memory_space<vmem>>, vector<1x128x128xf32>
    %9 = vector.shape_cast %8 : vector<1x128x128xf32> to vector<128x128xf32>
    %c0_6 = arith.constant 0 : index
    %c0_7 = arith.constant 0 : index
    %c0_8 = arith.constant 0 : index
    %10 = vector.load %arg5[%c0_6, %c0_7, %c0_8] : memref<1x128x128xf32, #tpu.memory_space<vmem>>, vector<1x128x128xf32>
    %11 = vector.shape_cast %10 : vector<1x128x128xf32> to vector<128x128xf32>
    %cst = arith.constant dense<0.000000e+00> : vector<128x128xf32>
    %12 = tpu.matmul %7, %3, %cst {dimension_numbers = #tpu.dot_dimension_numbers<[1], [1], [0], [0], [0, 0, 1, 0], [], []>} : vector<128x128xf32>, vector<128x128xf32>, vector<128x128xf32> -> vector<128x128xf32>
    %13 = arith.mulf %12, %11 : vector<128x128xf32>
    %cst_9 = arith.constant -3.000000e+38 : f32
    %14 = vector.broadcast %cst_9 : f32 to vector<128x1xf32>
    %cst_10 = arith.constant dense<0xFF800000> : vector<128xf32>
    %15 = vector.multi_reduction <maximumf>, %13, %cst_10 [1] : vector<128x128xf32> to vector<128xf32>
    %16 = vector.shape_cast %15 : vector<128xf32> to vector<128x1xf32>
    %17 = vector.broadcast %16 : vector<128x1xf32> to vector<128x128xf32>
    %18 = arith.cmpf oge, %13, %17 : vector<128x128xf32>
    %19 = arith.extui %18 : vector<128x128xi1> to vector<128x128xi32>
    %20 = arith.sitofp %19 : vector<128x128xi32> to vector<128x128xf32>
    %cst_11 = arith.constant dense<0.000000e+00> : vector<128xf32>
    %21 = vector.multi_reduction <add>, %20, %cst_11 [1] : vector<128x128xf32> to vector<128xf32>
    %22 = vector.shape_cast %21 : vector<128xf32> to vector<128x1xf32>
    %cst_12 = arith.constant 8.000000e+00 : f32
    %23 = vector.broadcast %cst_12 : f32 to vector<128x1xf32>
    %24 = arith.cmpf oge, %22, %23 : vector<128x1xf32>
    %cst_13 = arith.constant -3.000000e+38 : f32
    %25 = vector.broadcast %cst_13 : f32 to vector<128x1xf32>
    %26 = arith.select %24, %16, %25 : vector<128x1xi1>, vector<128x1xf32>
    %27 = arith.maximumf %14, %26 : vector<128x1xf32>
    %28 = vector.broadcast %16 : vector<128x1xf32> to vector<128x128xf32>
    %29 = arith.cmpf oge, %13, %28 : vector<128x128xf32>
    %cst_14 = arith.constant -3.000000e+38 : f32
    %30 = vector.broadcast %cst_14 : f32 to vector<128x128xf32>
    %31 = arith.select %29, %30, %13 : vector<128x128xi1>, vector<128x128xf32>
    %cst_15 = arith.constant dense<0xFF800000> : vector<128xf32>
    %32 = vector.multi_reduction <maximumf>, %31, %cst_15 [1] : vector<128x128xf32> to vector<128xf32>
    %33 = vector.shape_cast %32 : vector<128xf32> to vector<128x1xf32>
    %34 = vector.broadcast %33 : vector<128x1xf32> to vector<128x128xf32>
    %35 = arith.cmpf oge, %13, %34 : vector<128x128xf32>
    %36 = arith.extui %35 : vector<128x128xi1> to vector<128x128xi32>
    %37 = arith.sitofp %36 : vector<128x128xi32> to vector<128x128xf32>
    %cst_16 = arith.constant dense<0.000000e+00> : vector<128xf32>
    %38 = vector.multi_reduction <add>, %37, %cst_16 [1] : vector<128x128xf32> to vector<128xf32>
    %39 = vector.shape_cast %38 : vector<128xf32> to vector<128x1xf32>
    %cst_17 = arith.constant 8.000000e+00 : f32
    %40 = vector.broadcast %cst_17 : f32 to vector<128x1xf32>
    %41 = arith.cmpf oge, %39, %40 : vector<128x1xf32>
    %cst_18 = arith.constant -3.000000e+38 : f32
    %42 = vector.broadcast %cst_18 : f32 to vector<128x1xf32>
    %43 = arith.select %41, %33, %42 : vector<128x1xi1>, vector<128x1xf32>
    %44 = arith.maximumf %27, %43 : vector<128x1xf32>
    %45 = vector.broadcast %33 : vector<128x1xf32> to vector<128x128xf32>
    %46 = arith.cmpf oge, %13, %45 : vector<128x128xf32>
    %cst_19 = arith.constant -3.000000e+38 : f32
    %47 = vector.broadcast %cst_19 : f32 to vector<128x128xf32>
    %48 = arith.select %46, %47, %13 : vector<128x128xi1>, vector<128x128xf32>
    %cst_20 = arith.constant dense<0xFF800000> : vector<128xf32>
    %49 = vector.multi_reduction <maximumf>, %48, %cst_20 [1] : vector<128x128xf32> to vector<128xf32>
    %50 = vector.shape_cast %49 : vector<128xf32> to vector<128x1xf32>
    %51 = vector.broadcast %50 : vector<128x1xf32> to vector<128x128xf32>
    %52 = arith.cmpf oge, %13, %51 : vector<128x128xf32>
    %53 = arith.extui %52 : vector<128x128xi1> to vector<128x128xi32>
    %54 = arith.sitofp %53 : vector<128x128xi32> to vector<128x128xf32>
    %cst_21 = arith.constant dense<0.000000e+00> : vector<128xf32>
    %55 = vector.multi_reduction <add>, %54, %cst_21 [1] : vector<128x128xf32> to vector<128xf32>
    %56 = vector.shape_cast %55 : vector<128xf32> to vector<128x1xf32>
    %cst_22 = arith.constant 8.000000e+00 : f32
    %57 = vector.broadcast %cst_22 : f32 to vector<128x1xf32>
    %58 = arith.cmpf oge, %56, %57 : vector<128x1xf32>
    %cst_23 = arith.constant -3.000000e+38 : f32
    %59 = vector.broadcast %cst_23 : f32 to vector<128x1xf32>
    %60 = arith.select %58, %50, %59 : vector<128x1xi1>, vector<128x1xf32>
    %61 = arith.maximumf %44, %60 : vector<128x1xf32>
    %62 = vector.broadcast %50 : vector<128x1xf32> to vector<128x128xf32>
    %63 = arith.cmpf oge, %13, %62 : vector<128x128xf32>
    %cst_24 = arith.constant -3.000000e+38 : f32
    %64 = vector.broadcast %cst_24 : f32 to vector<128x128xf32>
    %65 = arith.select %63, %64, %13 : vector<128x128xi1>, vector<128x128xf32>
    %cst_25 = arith.constant dense<0xFF800000> : vector<128xf32>
    %66 = vector.multi_reduction <maximumf>, %65, %cst_25 [1] : vector<128x128xf32> to vector<128xf32>
    %67 = vector.shape_cast %66 : vector<128xf32> to vector<128x1xf32>
    %68 = vector.broadcast %67 : vector<128x1xf32> to vector<128x128xf32>
    %69 = arith.cmpf oge, %13, %68 : vector<128x128xf32>
    %70 = arith.extui %69 : vector<128x128xi1> to vector<128x128xi32>
    %71 = arith.sitofp %70 : vector<128x128xi32> to vector<128x128xf32>
    %cst_26 = arith.constant dense<0.000000e+00> : vector<128xf32>
    %72 = vector.multi_reduction <add>, %71, %cst_26 [1] : vector<128x128xf32> to vector<128xf32>
    %73 = vector.shape_cast %72 : vector<128xf32> to vector<128x1xf32>
    %cst_27 = arith.constant 8.000000e+00 : f32
    %74 = vector.broadcast %cst_27 : f32 to vector<128x1xf32>
    %75 = arith.cmpf oge, %73, %74 : vector<128x1xf32>
    %cst_28 = arith.constant -3.000000e+38 : f32
    %76 = vector.broadcast %cst_28 : f32 to vector<128x1xf32>
    %77 = arith.select %75, %67, %76 : vector<128x1xi1>, vector<128x1xf32>
    %78 = arith.maximumf %61, %77 : vector<128x1xf32>
    %79 = vector.broadcast %67 : vector<128x1xf32> to vector<128x128xf32>
    %80 = arith.cmpf oge, %13, %79 : vector<128x128xf32>
    %cst_29 = arith.constant -3.000000e+38 : f32
    %81 = vector.broadcast %cst_29 : f32 to vector<128x128xf32>
    %82 = arith.select %80, %81, %13 : vector<128x128xi1>, vector<128x128xf32>
    %cst_30 = arith.constant dense<0xFF800000> : vector<128xf32>
    %83 = vector.multi_reduction <maximumf>, %82, %cst_30 [1] : vector<128x128xf32> to vector<128xf32>
    %84 = vector.shape_cast %83 : vector<128xf32> to vector<128x1xf32>
    %85 = vector.broadcast %84 : vector<128x1xf32> to vector<128x128xf32>
    %86 = arith.cmpf oge, %13, %85 : vector<128x128xf32>
    %87 = arith.extui %86 : vector<128x128xi1> to vector<128x128xi32>
    %88 = arith.sitofp %87 : vector<128x128xi32> to vector<128x128xf32>
    %cst_31 = arith.constant dense<0.000000e+00> : vector<128xf32>
    %89 = vector.multi_reduction <add>, %88, %cst_31 [1] : vector<128x128xf32> to vector<128xf32>
    %90 = vector.shape_cast %89 : vector<128xf32> to vector<128x1xf32>
    %cst_32 = arith.constant 8.000000e+00 : f32
    %91 = vector.broadcast %cst_32 : f32 to vector<128x1xf32>
    %92 = arith.cmpf oge, %90, %91 : vector<128x1xf32>
    %cst_33 = arith.constant -3.000000e+38 : f32
    %93 = vector.broadcast %cst_33 : f32 to vector<128x1xf32>
    %94 = arith.select %92, %84, %93 : vector<128x1xi1>, vector<128x1xf32>
    %95 = arith.maximumf %78, %94 : vector<128x1xf32>
    %96 = vector.broadcast %84 : vector<128x1xf32> to vector<128x128xf32>
    %97 = arith.cmpf oge, %13, %96 : vector<128x128xf32>
    %cst_34 = arith.constant -3.000000e+38 : f32
    %98 = vector.broadcast %cst_34 : f32 to vector<128x128xf32>
    %99 = arith.select %97, %98, %13 : vector<128x128xi1>, vector<128x128xf32>
    %cst_35 = arith.constant dense<0xFF800000> : vector<128xf32>
    %100 = vector.multi_reduction <maximumf>, %99, %cst_35 [1] : vector<128x128xf32> to vector<128xf32>
    %101 = vector.shape_cast %100 : vector<128xf32> to vector<128x1xf32>
    %102 = vector.broadcast %101 : vector<128x1xf32> to vector<128x128xf32>
    %103 = arith.cmpf oge, %13, %102 : vector<128x128xf32>
    %104 = arith.extui %103 : vector<128x128xi1> to vector<128x128xi32>
    %105 = arith.sitofp %104 : vector<128x128xi32> to vector<128x128xf32>
    %cst_36 = arith.constant dense<0.000000e+00> : vector<128xf32>
    %106 = vector.multi_reduction <add>, %105, %cst_36 [1] : vector<128x128xf32> to vector<128xf32>
    %107 = vector.shape_cast %106 : vector<128xf32> to vector<128x1xf32>
    %cst_37 = arith.constant 8.000000e+00 : f32
    %108 = vector.broadcast %cst_37 : f32 to vector<128x1xf32>
    %109 = arith.cmpf oge, %107, %108 : vector<128x1xf32>
    %cst_38 = arith.constant -3.000000e+38 : f32
    %110 = vector.broadcast %cst_38 : f32 to vector<128x1xf32>
    %111 = arith.select %109, %101, %110 : vector<128x1xi1>, vector<128x1xf32>
    %112 = arith.maximumf %95, %111 : vector<128x1xf32>
    %113 = vector.broadcast %101 : vector<128x1xf32> to vector<128x128xf32>
    %114 = arith.cmpf oge, %13, %113 : vector<128x128xf32>
    %cst_39 = arith.constant -3.000000e+38 : f32
    %115 = vector.broadcast %cst_39 : f32 to vector<128x128xf32>
    %116 = arith.select %114, %115, %13 : vector<128x128xi1>, vector<128x128xf32>
    %cst_40 = arith.constant dense<0xFF800000> : vector<128xf32>
    %117 = vector.multi_reduction <maximumf>, %116, %cst_40 [1] : vector<128x128xf32> to vector<128xf32>
    %118 = vector.shape_cast %117 : vector<128xf32> to vector<128x1xf32>
    %119 = vector.broadcast %118 : vector<128x1xf32> to vector<128x128xf32>
    %120 = arith.cmpf oge, %13, %119 : vector<128x128xf32>
    %121 = arith.extui %120 : vector<128x128xi1> to vector<128x128xi32>
    %122 = arith.sitofp %121 : vector<128x128xi32> to vector<128x128xf32>
    %cst_41 = arith.constant dense<0.000000e+00> : vector<128xf32>
    %123 = vector.multi_reduction <add>, %122, %cst_41 [1] : vector<128x128xf32> to vector<128xf32>
    %124 = vector.shape_cast %123 : vector<128xf32> to vector<128x1xf32>
    %cst_42 = arith.constant 8.000000e+00 : f32
    %125 = vector.broadcast %cst_42 : f32 to vector<128x1xf32>
    %126 = arith.cmpf oge, %124, %125 : vector<128x1xf32>
    %cst_43 = arith.constant -3.000000e+38 : f32
    %127 = vector.broadcast %cst_43 : f32 to vector<128x1xf32>
    %128 = arith.select %126, %118, %127 : vector<128x1xi1>, vector<128x1xf32>
    %129 = arith.maximumf %112, %128 : vector<128x1xf32>
    %130 = vector.broadcast %118 : vector<128x1xf32> to vector<128x128xf32>
    %131 = arith.cmpf oge, %13, %130 : vector<128x128xf32>
    %cst_44 = arith.constant -3.000000e+38 : f32
    %132 = vector.broadcast %cst_44 : f32 to vector<128x128xf32>
    %133 = arith.select %131, %132, %13 : vector<128x128xi1>, vector<128x128xf32>
    %cst_45 = arith.constant dense<0xFF800000> : vector<128xf32>
    %134 = vector.multi_reduction <maximumf>, %133, %cst_45 [1] : vector<128x128xf32> to vector<128xf32>
    %135 = vector.shape_cast %134 : vector<128xf32> to vector<128x1xf32>
    %136 = vector.broadcast %135 : vector<128x1xf32> to vector<128x128xf32>
    %137 = arith.cmpf oge, %13, %136 : vector<128x128xf32>
    %138 = arith.extui %137 : vector<128x128xi1> to vector<128x128xi32>
    %139 = arith.sitofp %138 : vector<128x128xi32> to vector<128x128xf32>
    %cst_46 = arith.constant dense<0.000000e+00> : vector<128xf32>
    %140 = vector.multi_reduction <add>, %139, %cst_46 [1] : vector<128x128xf32> to vector<128xf32>
    %141 = vector.shape_cast %140 : vector<128xf32> to vector<128x1xf32>
    %cst_47 = arith.constant 8.000000e+00 : f32
    %142 = vector.broadcast %cst_47 : f32 to vector<128x1xf32>
    %143 = arith.cmpf oge, %141, %142 : vector<128x1xf32>
    %cst_48 = arith.constant -3.000000e+38 : f32
    %144 = vector.broadcast %cst_48 : f32 to vector<128x1xf32>
    %145 = arith.select %143, %135, %144 : vector<128x1xi1>, vector<128x1xf32>
    %146 = arith.maximumf %129, %145 : vector<128x1xf32>
    %cst_49 = arith.constant 0.000000e+00 : f32
    %147 = vector.broadcast %cst_49 : f32 to vector<128x1xf32>
    %148 = arith.maximumf %146, %147 : vector<128x1xf32>
    %cst_50 = arith.constant 0.000000e+00 : f32
    %149 = vector.broadcast %cst_50 : f32 to vector<128x128xf32>
    %150 = arith.cmpf ogt, %9, %149 : vector<128x128xf32>
    %151 = vector.broadcast %148 : vector<128x1xf32> to vector<128x128xf32>
    %152 = arith.cmpf oge, %13, %151 : vector<128x128xf32>
    %153 = arith.andi %150, %152 : vector<128x128xi1>
    %154 = vector.extract_strided_slice %3 {offsets = [0, 0], sizes = [128, 16], strides = [1, 1]} : vector<128x128xf32> to vector<128x16xf32>
    %155 = vector.extract_strided_slice %7 {offsets = [0, 0], sizes = [128, 16], strides = [1, 1]} : vector<128x128xf32> to vector<128x16xf32>
    %cst_51 = arith.constant dense<0.000000e+00> : vector<128x128xf32>
    %156 = tpu.matmul %155, %154, %cst_51 {dimension_numbers = #tpu.dot_dimension_numbers<[1], [1], [0], [0], [0, 0, 1, 0], [], []>} : vector<128x16xf32>, vector<128x16xf32>, vector<128x128xf32> -> vector<128x128xf32>
    %cst_52 = arith.constant -9.000000e+15 : f32
    %157 = vector.broadcast %cst_52 : f32 to vector<128x128xf32>
    %158 = arith.select %153, %156, %157 : vector<128x128xi1>, vector<128x128xf32>
    %cst_53 = arith.constant dense<0xFF800000> : vector<128xf32>
    %159 = vector.multi_reduction <maximumf>, %158, %cst_53 [1] : vector<128x128xf32> to vector<128xf32>
    %160 = vector.shape_cast %159 : vector<128xf32> to vector<128x1xf32>
    %161 = vector.broadcast %160 : vector<128x1xf32> to vector<128x128xf32>
    %162 = arith.subf %158, %161 : vector<128x128xf32>
    %163 = math.exp %162 : vector<128x128xf32>
    %164 = arith.mulf %163, %9 : vector<128x128xf32>
    %cst_54 = arith.constant dense<0.000000e+00> : vector<128xf32>
    %165 = vector.multi_reduction <add>, %164, %cst_54 [1] : vector<128x128xf32> to vector<128xf32>
    %166 = vector.shape_cast %165 : vector<128xf32> to vector<128x1xf32>
    %cst_55 = arith.constant 1.000000e-30 : f32
    %167 = vector.broadcast %cst_55 : f32 to vector<128x1xf32>
    %168 = arith.maximumf %166, %167 : vector<128x1xf32>
    %cst_56 = arith.constant 1.000000e+00 : f32
    %169 = vector.broadcast %cst_56 : f32 to vector<128x1xf32>
    %170 = arith.divf %169, %168 : vector<128x1xf32>
    %171 = vector.broadcast %170 : vector<128x1xf32> to vector<128x128xf32>
    %172 = arith.mulf %164, %171 : vector<128x128xf32>
    %173 = arith.truncf %172 : vector<128x128xf32> to vector<128x128xbf16>
    %174 = arith.truncf %154 : vector<128x16xf32> to vector<128x16xbf16>
    %cst_57 = arith.constant dense<0.000000e+00> : vector<128x16xf32>
    %175 = tpu.matmul %173, %174, %cst_57 {dimension_numbers = #tpu.dot_dimension_numbers<[1], [0], [0], [1], [0, 0, 1, 1], [], []>} : vector<128x128xbf16>, vector<128x16xbf16>, vector<128x16xf32> -> vector<128x16xf32>
    %176 = vector.extract_strided_slice %3 {offsets = [0, 16], sizes = [128, 16], strides = [1, 1]} : vector<128x128xf32> to vector<128x16xf32>
    %177 = vector.extract_strided_slice %7 {offsets = [0, 16], sizes = [128, 16], strides = [1, 1]} : vector<128x128xf32> to vector<128x16xf32>
    %cst_58 = arith.constant dense<0.000000e+00> : vector<128x128xf32>
    %178 = tpu.matmul %177, %176, %cst_58 {dimension_numbers = #tpu.dot_dimension_numbers<[1], [1], [0], [0], [0, 0, 1, 0], [], []>} : vector<128x16xf32>, vector<128x16xf32>, vector<128x128xf32> -> vector<128x128xf32>
    %cst_59 = arith.constant -9.000000e+15 : f32
    %179 = vector.broadcast %cst_59 : f32 to vector<128x128xf32>
    %180 = arith.select %153, %178, %179 : vector<128x128xi1>, vector<128x128xf32>
    %cst_60 = arith.constant dense<0xFF800000> : vector<128xf32>
    %181 = vector.multi_reduction <maximumf>, %180, %cst_60 [1] : vector<128x128xf32> to vector<128xf32>
    %182 = vector.shape_cast %181 : vector<128xf32> to vector<128x1xf32>
    %183 = vector.broadcast %182 : vector<128x1xf32> to vector<128x128xf32>
    %184 = arith.subf %180, %183 : vector<128x128xf32>
    %185 = math.exp %184 : vector<128x128xf32>
    %186 = arith.mulf %185, %9 : vector<128x128xf32>
    %cst_61 = arith.constant dense<0.000000e+00> : vector<128xf32>
    %187 = vector.multi_reduction <add>, %186, %cst_61 [1] : vector<128x128xf32> to vector<128xf32>
    %188 = vector.shape_cast %187 : vector<128xf32> to vector<128x1xf32>
    %cst_62 = arith.constant 1.000000e-30 : f32
    %189 = vector.broadcast %cst_62 : f32 to vector<128x1xf32>
    %190 = arith.maximumf %188, %189 : vector<128x1xf32>
    %cst_63 = arith.constant 1.000000e+00 : f32
    %191 = vector.broadcast %cst_63 : f32 to vector<128x1xf32>
    %192 = arith.divf %191, %190 : vector<128x1xf32>
    %193 = vector.broadcast %192 : vector<128x1xf32> to vector<128x128xf32>
    %194 = arith.mulf %186, %193 : vector<128x128xf32>
    %195 = arith.truncf %194 : vector<128x128xf32> to vector<128x128xbf16>
    %196 = arith.truncf %176 : vector<128x16xf32> to vector<128x16xbf16>
    %cst_64 = arith.constant dense<0.000000e+00> : vector<128x16xf32>
    %197 = tpu.matmul %195, %196, %cst_64 {dimension_numbers = #tpu.dot_dimension_numbers<[1], [0], [0], [1], [0, 0, 1, 1], [], []>} : vector<128x128xbf16>, vector<128x16xbf16>, vector<128x16xf32> -> vector<128x16xf32>
    %198 = vector.extract_strided_slice %3 {offsets = [0, 32], sizes = [128, 16], strides = [1, 1]} : vector<128x128xf32> to vector<128x16xf32>
    %199 = vector.extract_strided_slice %7 {offsets = [0, 32], sizes = [128, 16], strides = [1, 1]} : vector<128x128xf32> to vector<128x16xf32>
    %cst_65 = arith.constant dense<0.000000e+00> : vector<128x128xf32>
    %200 = tpu.matmul %199, %198, %cst_65 {dimension_numbers = #tpu.dot_dimension_numbers<[1], [1], [0], [0], [0, 0, 1, 0], [], []>} : vector<128x16xf32>, vector<128x16xf32>, vector<128x128xf32> -> vector<128x128xf32>
    %cst_66 = arith.constant -9.000000e+15 : f32
    %201 = vector.broadcast %cst_66 : f32 to vector<128x128xf32>
    %202 = arith.select %153, %200, %201 : vector<128x128xi1>, vector<128x128xf32>
    %cst_67 = arith.constant dense<0xFF800000> : vector<128xf32>
    %203 = vector.multi_reduction <maximumf>, %202, %cst_67 [1] : vector<128x128xf32> to vector<128xf32>
    %204 = vector.shape_cast %203 : vector<128xf32> to vector<128x1xf32>
    %205 = vector.broadcast %204 : vector<128x1xf32> to vector<128x128xf32>
    %206 = arith.subf %202, %205 : vector<128x128xf32>
    %207 = math.exp %206 : vector<128x128xf32>
    %208 = arith.mulf %207, %9 : vector<128x128xf32>
    %cst_68 = arith.constant dense<0.000000e+00> : vector<128xf32>
    %209 = vector.multi_reduction <add>, %208, %cst_68 [1] : vector<128x128xf32> to vector<128xf32>
    %210 = vector.shape_cast %209 : vector<128xf32> to vector<128x1xf32>
    %cst_69 = arith.constant 1.000000e-30 : f32
    %211 = vector.broadcast %cst_69 : f32 to vector<128x1xf32>
    %212 = arith.maximumf %210, %211 : vector<128x1xf32>
    %cst_70 = arith.constant 1.000000e+00 : f32
    %213 = vector.broadcast %cst_70 : f32 to vector<128x1xf32>
    %214 = arith.divf %213, %212 : vector<128x1xf32>
    %215 = vector.broadcast %214 : vector<128x1xf32> to vector<128x128xf32>
    %216 = arith.mulf %208, %215 : vector<128x128xf32>
    %217 = arith.truncf %216 : vector<128x128xf32> to vector<128x128xbf16>
    %218 = arith.truncf %198 : vector<128x16xf32> to vector<128x16xbf16>
    %cst_71 = arith.constant dense<0.000000e+00> : vector<128x16xf32>
    %219 = tpu.matmul %217, %218, %cst_71 {dimension_numbers = #tpu.dot_dimension_numbers<[1], [0], [0], [1], [0, 0, 1, 1], [], []>} : vector<128x128xbf16>, vector<128x16xbf16>, vector<128x16xf32> -> vector<128x16xf32>
    %220 = vector.extract_strided_slice %3 {offsets = [0, 48], sizes = [128, 16], strides = [1, 1]} : vector<128x128xf32> to vector<128x16xf32>
    %221 = vector.extract_strided_slice %7 {offsets = [0, 48], sizes = [128, 16], strides = [1, 1]} : vector<128x128xf32> to vector<128x16xf32>
    %cst_72 = arith.constant dense<0.000000e+00> : vector<128x128xf32>
    %222 = tpu.matmul %221, %220, %cst_72 {dimension_numbers = #tpu.dot_dimension_numbers<[1], [1], [0], [0], [0, 0, 1, 0], [], []>} : vector<128x16xf32>, vector<128x16xf32>, vector<128x128xf32> -> vector<128x128xf32>
    %cst_73 = arith.constant -9.000000e+15 : f32
    %223 = vector.broadcast %cst_73 : f32 to vector<128x128xf32>
    %224 = arith.select %153, %222, %223 : vector<128x128xi1>, vector<128x128xf32>
    %cst_74 = arith.constant dense<0xFF800000> : vector<128xf32>
    %225 = vector.multi_reduction <maximumf>, %224, %cst_74 [1] : vector<128x128xf32> to vector<128xf32>
    %226 = vector.shape_cast %225 : vector<128xf32> to vector<128x1xf32>
    %227 = vector.broadcast %226 : vector<128x1xf32> to vector<128x128xf32>
    %228 = arith.subf %224, %227 : vector<128x128xf32>
    %229 = math.exp %228 : vector<128x128xf32>
    %230 = arith.mulf %229, %9 : vector<128x128xf32>
    %cst_75 = arith.constant dense<0.000000e+00> : vector<128xf32>
    %231 = vector.multi_reduction <add>, %230, %cst_75 [1] : vector<128x128xf32> to vector<128xf32>
    %232 = vector.shape_cast %231 : vector<128xf32> to vector<128x1xf32>
    %cst_76 = arith.constant 1.000000e-30 : f32
    %233 = vector.broadcast %cst_76 : f32 to vector<128x1xf32>
    %234 = arith.maximumf %232, %233 : vector<128x1xf32>
    %cst_77 = arith.constant 1.000000e+00 : f32
    %235 = vector.broadcast %cst_77 : f32 to vector<128x1xf32>
    %236 = arith.divf %235, %234 : vector<128x1xf32>
    %237 = vector.broadcast %236 : vector<128x1xf32> to vector<128x128xf32>
    %238 = arith.mulf %230, %237 : vector<128x128xf32>
    %239 = arith.truncf %238 : vector<128x128xf32> to vector<128x128xbf16>
    %240 = arith.truncf %220 : vector<128x16xf32> to vector<128x16xbf16>
    %cst_78 = arith.constant dense<0.000000e+00> : vector<128x16xf32>
    %241 = tpu.matmul %239, %240, %cst_78 {dimension_numbers = #tpu.dot_dimension_numbers<[1], [0], [0], [1], [0, 0, 1, 1], [], []>} : vector<128x128xbf16>, vector<128x16xbf16>, vector<128x16xf32> -> vector<128x16xf32>
    %242 = vector.extract_strided_slice %3 {offsets = [0, 64], sizes = [128, 16], strides = [1, 1]} : vector<128x128xf32> to vector<128x16xf32>
    %243 = vector.extract_strided_slice %7 {offsets = [0, 64], sizes = [128, 16], strides = [1, 1]} : vector<128x128xf32> to vector<128x16xf32>
    %cst_79 = arith.constant dense<0.000000e+00> : vector<128x128xf32>
    %244 = tpu.matmul %243, %242, %cst_79 {dimension_numbers = #tpu.dot_dimension_numbers<[1], [1], [0], [0], [0, 0, 1, 0], [], []>} : vector<128x16xf32>, vector<128x16xf32>, vector<128x128xf32> -> vector<128x128xf32>
    %cst_80 = arith.constant -9.000000e+15 : f32
    %245 = vector.broadcast %cst_80 : f32 to vector<128x128xf32>
    %246 = arith.select %153, %244, %245 : vector<128x128xi1>, vector<128x128xf32>
    %cst_81 = arith.constant dense<0xFF800000> : vector<128xf32>
    %247 = vector.multi_reduction <maximumf>, %246, %cst_81 [1] : vector<128x128xf32> to vector<128xf32>
    %248 = vector.shape_cast %247 : vector<128xf32> to vector<128x1xf32>
    %249 = vector.broadcast %248 : vector<128x1xf32> to vector<128x128xf32>
    %250 = arith.subf %246, %249 : vector<128x128xf32>
    %251 = math.exp %250 : vector<128x128xf32>
    %252 = arith.mulf %251, %9 : vector<128x128xf32>
    %cst_82 = arith.constant dense<0.000000e+00> : vector<128xf32>
    %253 = vector.multi_reduction <add>, %252, %cst_82 [1] : vector<128x128xf32> to vector<128xf32>
    %254 = vector.shape_cast %253 : vector<128xf32> to vector<128x1xf32>
    %cst_83 = arith.constant 1.000000e-30 : f32
    %255 = vector.broadcast %cst_83 : f32 to vector<128x1xf32>
    %256 = arith.maximumf %254, %255 : vector<128x1xf32>
    %cst_84 = arith.constant 1.000000e+00 : f32
    %257 = vector.broadcast %cst_84 : f32 to vector<128x1xf32>
    %258 = arith.divf %257, %256 : vector<128x1xf32>
    %259 = vector.broadcast %258 : vector<128x1xf32> to vector<128x128xf32>
    %260 = arith.mulf %252, %259 : vector<128x128xf32>
    %261 = arith.truncf %260 : vector<128x128xf32> to vector<128x128xbf16>
    %262 = arith.truncf %242 : vector<128x16xf32> to vector<128x16xbf16>
    %cst_85 = arith.constant dense<0.000000e+00> : vector<128x16xf32>
    %263 = tpu.matmul %261, %262, %cst_85 {dimension_numbers = #tpu.dot_dimension_numbers<[1], [0], [0], [1], [0, 0, 1, 1], [], []>} : vector<128x128xbf16>, vector<128x16xbf16>, vector<128x16xf32> -> vector<128x16xf32>
    %264 = vector.extract_strided_slice %3 {offsets = [0, 80], sizes = [128, 16], strides = [1, 1]} : vector<128x128xf32> to vector<128x16xf32>
    %265 = vector.extract_strided_slice %7 {offsets = [0, 80], sizes = [128, 16], strides = [1, 1]} : vector<128x128xf32> to vector<128x16xf32>
    %cst_86 = arith.constant dense<0.000000e+00> : vector<128x128xf32>
    %266 = tpu.matmul %265, %264, %cst_86 {dimension_numbers = #tpu.dot_dimension_numbers<[1], [1], [0], [0], [0, 0, 1, 0], [], []>} : vector<128x16xf32>, vector<128x16xf32>, vector<128x128xf32> -> vector<128x128xf32>
    %cst_87 = arith.constant -9.000000e+15 : f32
    %267 = vector.broadcast %cst_87 : f32 to vector<128x128xf32>
    %268 = arith.select %153, %266, %267 : vector<128x128xi1>, vector<128x128xf32>
    %cst_88 = arith.constant dense<0xFF800000> : vector<128xf32>
    %269 = vector.multi_reduction <maximumf>, %268, %cst_88 [1] : vector<128x128xf32> to vector<128xf32>
    %270 = vector.shape_cast %269 : vector<128xf32> to vector<128x1xf32>
    %271 = vector.broadcast %270 : vector<128x1xf32> to vector<128x128xf32>
    %272 = arith.subf %268, %271 : vector<128x128xf32>
    %273 = math.exp %272 : vector<128x128xf32>
    %274 = arith.mulf %273, %9 : vector<128x128xf32>
    %cst_89 = arith.constant dense<0.000000e+00> : vector<128xf32>
    %275 = vector.multi_reduction <add>, %274, %cst_89 [1] : vector<128x128xf32> to vector<128xf32>
    %276 = vector.shape_cast %275 : vector<128xf32> to vector<128x1xf32>
    %cst_90 = arith.constant 1.000000e-30 : f32
    %277 = vector.broadcast %cst_90 : f32 to vector<128x1xf32>
    %278 = arith.maximumf %276, %277 : vector<128x1xf32>
    %cst_91 = arith.constant 1.000000e+00 : f32
    %279 = vector.broadcast %cst_91 : f32 to vector<128x1xf32>
    %280 = arith.divf %279, %278 : vector<128x1xf32>
    %281 = vector.broadcast %280 : vector<128x1xf32> to vector<128x128xf32>
    %282 = arith.mulf %274, %281 : vector<128x128xf32>
    %283 = arith.truncf %282 : vector<128x128xf32> to vector<128x128xbf16>
    %284 = arith.truncf %264 : vector<128x16xf32> to vector<128x16xbf16>
    %cst_92 = arith.constant dense<0.000000e+00> : vector<128x16xf32>
    %285 = tpu.matmul %283, %284, %cst_92 {dimension_numbers = #tpu.dot_dimension_numbers<[1], [0], [0], [1], [0, 0, 1, 1], [], []>} : vector<128x128xbf16>, vector<128x16xbf16>, vector<128x16xf32> -> vector<128x16xf32>
    %286 = vector.extract_strided_slice %3 {offsets = [0, 96], sizes = [128, 16], strides = [1, 1]} : vector<128x128xf32> to vector<128x16xf32>
    %287 = vector.extract_strided_slice %7 {offsets = [0, 96], sizes = [128, 16], strides = [1, 1]} : vector<128x128xf32> to vector<128x16xf32>
    %cst_93 = arith.constant dense<0.000000e+00> : vector<128x128xf32>
    %288 = tpu.matmul %287, %286, %cst_93 {dimension_numbers = #tpu.dot_dimension_numbers<[1], [1], [0], [0], [0, 0, 1, 0], [], []>} : vector<128x16xf32>, vector<128x16xf32>, vector<128x128xf32> -> vector<128x128xf32>
    %cst_94 = arith.constant -9.000000e+15 : f32
    %289 = vector.broadcast %cst_94 : f32 to vector<128x128xf32>
    %290 = arith.select %153, %288, %289 : vector<128x128xi1>, vector<128x128xf32>
    %cst_95 = arith.constant dense<0xFF800000> : vector<128xf32>
    %291 = vector.multi_reduction <maximumf>, %290, %cst_95 [1] : vector<128x128xf32> to vector<128xf32>
    %292 = vector.shape_cast %291 : vector<128xf32> to vector<128x1xf32>
    %293 = vector.broadcast %292 : vector<128x1xf32> to vector<128x128xf32>
    %294 = arith.subf %290, %293 : vector<128x128xf32>
    %295 = math.exp %294 : vector<128x128xf32>
    %296 = arith.mulf %295, %9 : vector<128x128xf32>
    %cst_96 = arith.constant dense<0.000000e+00> : vector<128xf32>
    %297 = vector.multi_reduction <add>, %296, %cst_96 [1] : vector<128x128xf32> to vector<128xf32>
    %298 = vector.shape_cast %297 : vector<128xf32> to vector<128x1xf32>
    %cst_97 = arith.constant 1.000000e-30 : f32
    %299 = vector.broadcast %cst_97 : f32 to vector<128x1xf32>
    %300 = arith.maximumf %298, %299 : vector<128x1xf32>
    %cst_98 = arith.constant 1.000000e+00 : f32
    %301 = vector.broadcast %cst_98 : f32 to vector<128x1xf32>
    %302 = arith.divf %301, %300 : vector<128x1xf32>
    %303 = vector.broadcast %302 : vector<128x1xf32> to vector<128x128xf32>
    %304 = arith.mulf %296, %303 : vector<128x128xf32>
    %305 = arith.truncf %304 : vector<128x128xf32> to vector<128x128xbf16>
    %306 = arith.truncf %286 : vector<128x16xf32> to vector<128x16xbf16>
    %cst_99 = arith.constant dense<0.000000e+00> : vector<128x16xf32>
    %307 = tpu.matmul %305, %306, %cst_99 {dimension_numbers = #tpu.dot_dimension_numbers<[1], [0], [0], [1], [0, 0, 1, 1], [], []>} : vector<128x128xbf16>, vector<128x16xbf16>, vector<128x16xf32> -> vector<128x16xf32>
    %308 = vector.extract_strided_slice %3 {offsets = [0, 112], sizes = [128, 16], strides = [1, 1]} : vector<128x128xf32> to vector<128x16xf32>
    %309 = vector.extract_strided_slice %7 {offsets = [0, 112], sizes = [128, 16], strides = [1, 1]} : vector<128x128xf32> to vector<128x16xf32>
    %cst_100 = arith.constant dense<0.000000e+00> : vector<128x128xf32>
    %310 = tpu.matmul %309, %308, %cst_100 {dimension_numbers = #tpu.dot_dimension_numbers<[1], [1], [0], [0], [0, 0, 1, 0], [], []>} : vector<128x16xf32>, vector<128x16xf32>, vector<128x128xf32> -> vector<128x128xf32>
    %cst_101 = arith.constant -9.000000e+15 : f32
    %311 = vector.broadcast %cst_101 : f32 to vector<128x128xf32>
    %312 = arith.select %153, %310, %311 : vector<128x128xi1>, vector<128x128xf32>
    %cst_102 = arith.constant dense<0xFF800000> : vector<128xf32>
    %313 = vector.multi_reduction <maximumf>, %312, %cst_102 [1] : vector<128x128xf32> to vector<128xf32>
    %314 = vector.shape_cast %313 : vector<128xf32> to vector<128x1xf32>
    %315 = vector.broadcast %314 : vector<128x1xf32> to vector<128x128xf32>
    %316 = arith.subf %312, %315 : vector<128x128xf32>
    %317 = math.exp %316 : vector<128x128xf32>
    %318 = arith.mulf %317, %9 : vector<128x128xf32>
    %cst_103 = arith.constant dense<0.000000e+00> : vector<128xf32>
    %319 = vector.multi_reduction <add>, %318, %cst_103 [1] : vector<128x128xf32> to vector<128xf32>
    %320 = vector.shape_cast %319 : vector<128xf32> to vector<128x1xf32>
    %cst_104 = arith.constant 1.000000e-30 : f32
    %321 = vector.broadcast %cst_104 : f32 to vector<128x1xf32>
    %322 = arith.maximumf %320, %321 : vector<128x1xf32>
    %cst_105 = arith.constant 1.000000e+00 : f32
    %323 = vector.broadcast %cst_105 : f32 to vector<128x1xf32>
    %324 = arith.divf %323, %322 : vector<128x1xf32>
    %325 = vector.broadcast %324 : vector<128x1xf32> to vector<128x128xf32>
    %326 = arith.mulf %318, %325 : vector<128x128xf32>
    %327 = arith.truncf %326 : vector<128x128xf32> to vector<128x128xbf16>
    %328 = arith.truncf %308 : vector<128x16xf32> to vector<128x16xbf16>
    %cst_106 = arith.constant dense<0.000000e+00> : vector<128x16xf32>
    %329 = tpu.matmul %327, %328, %cst_106 {dimension_numbers = #tpu.dot_dimension_numbers<[1], [0], [0], [1], [0, 0, 1, 1], [], []>} : vector<128x128xbf16>, vector<128x16xbf16>, vector<128x16xf32> -> vector<128x16xf32>
    %330 = tpu.concatenate %175, %197, %219, %241, %263, %285, %307, %329 in 1 : vector<128x16xf32>, vector<128x16xf32>, vector<128x16xf32>, vector<128x16xf32>, vector<128x16xf32>, vector<128x16xf32>, vector<128x16xf32>, vector<128x16xf32> -> vector<128x128xf32>
    %cst_107 = arith.constant 0.000000e+00 : f32
    %331 = vector.broadcast %cst_107 : f32 to vector<128x128xf32>
    %332 = arith.cmpf ogt, %330, %331 : vector<128x128xf32>
    %333 = math.exp %330 : vector<128x128xf32>
    %cst_108 = arith.constant 1.000000e+00 : f32
    %334 = vector.broadcast %cst_108 : f32 to vector<128x128xf32>
    %335 = arith.subf %333, %334 : vector<128x128xf32>
    %336 = arith.select %332, %330, %335 : vector<128x128xi1>, vector<128x128xf32>
    %c0_109 = arith.constant 0 : index
    %c0_110 = arith.constant 0 : index
    %c0_111 = arith.constant 0 : index
    %337 = vector.load %arg8[%c0_109, %c0_110, %c0_111] : memref<1x128x128xf32, #tpu.memory_space<vmem>>, vector<1x128x128xf32>
    %338 = vector.shape_cast %337 : vector<1x128x128xf32> to vector<128x128xf32>
    %339 = vector.shape_cast %336 : vector<128x128xf32> to vector<1x128x128xf32>
    tpu.vector_store %arg8[%c0_109, %c0_110, %c0_111], %339 {strides = array<i32>} : memref<1x128x128xf32, #tpu.memory_space<vmem>>, vector<1x128x128xf32>,
    %c0_112 = arith.constant 0 : index
    %c0_113 = arith.constant 0 : index
    %340 = vector.load %arg6[%c0_112, %c0_113] : memref<128x128xf32, #tpu.memory_space<vmem>>, vector<128x128xf32>
    %cst_114 = arith.constant dense<0.000000e+00> : vector<128x128xf32>
    %341 = tpu.matmul %336, %340, %cst_114 {dimension_numbers = #tpu.dot_dimension_numbers<[1], [0], [0], [1], [0, 0, 1, 1], [], []>} : vector<128x128xf32>, vector<128x128xf32>, vector<128x128xf32> -> vector<128x128xf32>
    %c0_115 = arith.constant 0 : index
    %c0_116 = arith.constant 0 : index
    %342 = vector.load %arg7[%c0_115, %c0_116] : memref<1x128xf32, #tpu.memory_space<vmem>>, vector<1x128xf32>
    %343 = vector.broadcast %342 : vector<1x128xf32> to vector<128x128xf32>
    %344 = arith.addf %341, %343 : vector<128x128xf32>
    %345 = math.tanh %344 : vector<128x128xf32>
    %cst_117 = arith.constant dense<0.000000e+00> : vector<128xf32>
    %346 = vector.multi_reduction <add>, %345, %cst_117 [0] : vector<128x128xf32> to vector<128xf32>
    %347 = vector.shape_cast %346 : vector<128xf32> to vector<1x128xf32>
    %c0_118 = arith.constant 0 : index
    %c0_119 = arith.constant 0 : index
    %c0_120 = arith.constant 0 : index
    %348 = vector.load %arg9[%c0_118, %c0_119, %c0_120] : memref<1x1x128xf32, #tpu.memory_space<vmem>>, vector<1x1x128xf32>
    %349 = vector.shape_cast %347 : vector<1x128xf32> to vector<1x1x128xf32>
    %350 = arith.addf %348, %349 : vector<1x1x128xf32>
    %c0_121 = arith.constant 0 : index
    %c0_122 = arith.constant 0 : index
    %c0_123 = arith.constant 0 : index
    %351 = vector.load %arg9[%c0_121, %c0_122, %c0_123] : memref<1x1x128xf32, #tpu.memory_space<vmem>>, vector<1x1x128xf32>
    tpu.vector_store %arg9[%c0_121, %c0_122, %c0_123], %350 {strides = array<i32>} : memref<1x1x128xf32, #tpu.memory_space<vmem>>, vector<1x1x128xf32>,
    return
  }
  func.func @transform_0(%arg0: i32, %arg1: i32) -> (i32, i32) {
    %c0_i32 = arith.constant 0 : i32
    %c0_i32_0 = arith.constant 0 : i32
    %c0_i32_1 = arith.constant 0 : i32
    return %c0_i32, %c0_i32_0 : i32, i32
  }
  func.func @transform_1(%arg0: i32, %arg1: i32) -> (i32, i32, i32) {
    %c0_i32 = arith.constant 0 : i32
    %c0_i32_0 = arith.constant 0 : i32
    %c0_i32_1 = arith.constant 0 : i32
    return %arg0, %c0_i32, %c0_i32_0 : i32, i32, i32
  }
  func.func @transform_2(%arg0: i32, %arg1: i32) -> (i32, i32, i32) {
    %c0_i32 = arith.constant 0 : i32
    %c0_i32_0 = arith.constant 0 : i32
    return %arg0, %arg1, %c0_i32 : i32, i32, i32
  }
  func.func @transform_3(%arg0: i32, %arg1: i32) -> (i32, i32, i32) {
    %c0_i32 = arith.constant 0 : i32
    %c0_i32_0 = arith.constant 0 : i32
    return %arg0, %arg1, %c0_i32 : i32, i32, i32
  }
  func.func @transform_4(%arg0: i32, %arg1: i32) -> (i32, i32) {
    %c0_i32 = arith.constant 0 : i32
    %c0_i32_0 = arith.constant 0 : i32
    %c0_i32_1 = arith.constant 0 : i32
    return %c0_i32, %c0_i32_0 : i32, i32
  }
  func.func @transform_5(%arg0: i32, %arg1: i32) -> (i32, i32) {
    %c0_i32 = arith.constant 0 : i32
    %c0_i32_0 = arith.constant 0 : i32
    %c0_i32_1 = arith.constant 0 : i32
    return %c0_i32, %c0_i32_0 : i32, i32
  }
  func.func @transform_6(%arg0: i32, %arg1: i32) -> (i32, i32, i32) {
    %c0_i32 = arith.constant 0 : i32
    %c0_i32_0 = arith.constant 0 : i32
    return %arg0, %arg1, %c0_i32 : i32, i32, i32
  }
  func.func @transform_7(%arg0: i32, %arg1: i32) -> (i32, i32, i32) {
    %c0_i32 = arith.constant 0 : i32
    %c0_i32_0 = arith.constant 0 : i32
    %c0_i32_1 = arith.constant 0 : i32
    return %arg0, %c0_i32, %c0_i32_0 : i32, i32, i32
  }
}

</mosaic_0001>

<bundles_post_ra>
// kernel: tpu_custom_call.1
= control target key start
LH: loop header
LB: loop body
LE: loop exit
PB: predicated region body
PF: predicated region fallthrough
CT: control target
= control target key end

     0   :  { %s17262_s0 = inlined_call_operand.vmem [shape: f32[128,64], index: 0, kind: input, shape index: {}]   ;;  %s17263_s1 = inlined_call_operand.vmem [shape: f32[2,64,128], index: 1, kind: input, shape index: {}]   ;;  %s17264_s2 = inlined_call_operand.hbm [shape: f32[2,128,128], index: 2, kind: input, shape index: {}]   ;;  %s17265_s3 = inlined_call_operand.hbm [shape: f32[2,128,128], index: 3, kind: input, shape index: {}]   ;;  %s17266_s4 = inlined_call_operand.hbm [shape: f32[128,128], index: 4, kind: input, shape index: {}]   ;;  %s17267_s5 = inlined_call_operand.vmem [shape: f32[1,128], index: 5, kind: input, shape index: {}]   ;;  %s17268_s6 = inlined_call_operand.hbm [shape: f32[2,128,128], index: 6, kind: output, shape index: {0}]   ;;  %s17269_s7 = inlined_call_operand.hbm [shape: f32[2,1,128], index: 7, kind: output, shape index: {1}]  }
   0x1   :  { %17612 = sst [smem:[#allocation287_spill]] %s17264_s2 }
   0x2   :  { %17613 = sst [smem:[#allocation288_spill]] %s17266_s4 }
   0x3   :  { %13 = vsyncpa [#allocation4], 0 }
   0x4   :  { %15 = vsyncpa [#allocation4 + $0x1], 0 }
   0x5   :  { %16 = vsyncpa [#allocation7], 0 }
   0x6   :  { %18 = vsyncpa [#allocation7 + $0x1], 0 }
   0x7   :  { %19 = vsyncpa [#allocation5], 0 }
   0x8   :  { %21 = vsyncpa [#allocation5 + $0x1], 0 }
   0x9   :  { %22 = vsyncpa [#allocation11], 0 }
   0xa   :  { %24 = vsyncpa [#allocation11 + $0x1], 0  ;;  %s11758_s24 = smov 0   ;;  %s11760_s25 = smov 0  }
   0xb   :  { %s11762_s26 = smov 0   ;;  %s11764_s27 = smov 0  }
   0xc   :  { %s11766_s28 = smov 0   ;;  %s11768_s29 = smov 0  }
   0xd LB: > { %17614 = sst [smem:[#allocation17_spill]] %s11687_s26  ;;  %s11789_s30 = sadd.s32 4294967295, %s11699_s29   ;;  %s11699_s29 = sphi %s11768_s29, %s30_s29   ;;  %s11695_s28 = sphi %s11766_s28, %s18777_s28   ;;  %s11691_s27 = sphi %s11764_s27, %s18776_s27   ;;  %s11687_s26 = sphi %s11762_s26, %s18775_s26   ;;  %s11683_s25 = sphi %s11760_s25, %s18779_s25   ;;  %s11679_s24 = sphi %s11758_s24, %s18778_s24  }
   0xe   : > { %17615 = sst [smem:[#allocation18_spill]] %s11695_s28  ;;  %s8238_s8 = sadd.s32 4294967294, %s11699_s29  }
   0xf   : > { %p111_p0 = scmp.ne.s32.totalorder %s11683_s25, %s11679_s24  ;;  %p17270_p1 = scmp.eq.s32.totalorder %s11789_s30, 0 }
  0x10   : > { %p213_p3 = scmp.eq.s32.totalorder %s8238_s8, 1  ;;  %p8239_p5 = scmp.ge.s32.totalorder %s11699_s29, 1 }
  0x11   : > { %p11798_p4 = por %p17270_p1, %p111_p0  ;;  %p246_p7 = scmp.lt.s32.totalorder %s11699_s29, 3 }
  0x12   : > { %p11803_p6 = por %p213_p3, %p111_p0  ;;  %s11701_s12 = smov [#allocation8]  }
  0x13   : > { %s17616_s9 = scalar_select %p11798_p4, 1, 0 }
  0x14   : > { %s17617_s10 = scalar_select %p11803_p6, 1, 0 }
  0x15   : > { %p11808_p8 = pnand %p8239_p5, %p246_p7  ;;  %s261_s13 = sshll.u32 %s11701_s12, 4  ;;  %s262_s13 = int_to_ptr.vmem [resolvable:$true] %s261_s13 }
  0x16   : > { %s42_s15 = sadd.s32 1, %s11695_s28  ;;  %s17620_s4 = sld [smem:[#allocation288_spill]] }
  0x17   : > { %s17618_s11 = scalar_select %p11808_p8, 1, 0 }
  0x18   : > { %p10502_p9 = pneg %p11808_p8 }
  0x1a   : > { %p11817_p11 = pnand %p10502_p9, %p17270_p1 }
  0x1c   : > { %s11489_s18 = scalar_lea.hbm %s17620_s4, 2048  ;;  %p11491_p13 = pneg %p11817_p11 }
  0x1d   : > { %p11490_p12 = scmp.ne.s32.totalorder %s17620_s4, %s11489_s18  ;;  %p11496_p5 = scmp.lt.u32.totalorder %s11489_s18, %s17620_s4 }
  0x1f   : > { %p11492_p0 = pnand %p11491_p13, %p11490_p12 }
  0x21   : > { %p11493_p3 = pneg %p11492_p0 }
  0x23   : > { %p11498_p7 = pnand %p11496_p5, %p11493_p3 }
  0x25   : > { %11501 = shalt.err (!%p11498_p7)
}
  0x26   : > { %s11502_s23 = scalar_lea.vmem %s262_s13, 2048  ;;  %p11510_p2 = scmp.lt.s32.totalorder %s262_s13, %s262_s13 }
  0x27   : > { %p11503_p9 = scmp.ne.s32.totalorder %s262_s13, %s11502_s23  ;;  %p11511_p6 = scmp.lt.s32.totalorder %s11502_s23, %s11502_s23 }
  0x29   : > { %p11505_p10 = pnand %p11503_p9, %p11491_p13  ;;  %p11512_p4 = por %p11511_p6, %p11510_p2 }
  0x2b   : > { %p11506_p1 = pneg %p11505_p10 }
  0x2d   : > { %p11513_p8 = pnand %p11512_p4, %p11506_p1 }
  0x2f   : > { %11516 = shalt.err (!%p11513_p8)
}
  0x30   : > { %s17273_s8 = smov 128   ;;  %s17275_s12 = smov 8  }
  0x31   : > { %10505 = dma.hbm_to_vmem [thread:$0]  (!%p11817_p11), %s17620_s4, 2048, %s262_s13, [#allocation7], %s17273_s8, %s17273_s8, %s17275_s12  }
  0x32   : > { %p44_p1 = scmp.ge.s32.totalorder %s42_s15, 2  ;;  %s98_s18 = sadd.s32 1, %s11687_s26 }
  0x33   : > { %p105_p2 = scmp.ne.s32.totalorder %s11687_s26, %s11683_s25  ;;  %p106_p4 = scmp.eq.s32.totalorder %s11699_s29, 0 }
  0x34   : > { %s18781_s15 = smov (%p44_p1, %s42_s15), 0  ;;  %p17623_p8 = scmp.eq.s32.totalorder %s11789_s30, 1 }
  0x35   : > { %17621 = sst [smem:[#allocation19_spill]] %s18781_s15  ;;  %p11847_p6 = por %p106_p4, %p105_p2 }
  0x36   : > { %p11853_p10 = por %p17623_p8, %p105_p2  ;;  %s93_s20 = ssub.s32 %s11695_s28, %s18781_s15 }
  0x37   : > { %p10521_p12 = scmp.lt.s32.totalorder %s11699_s29, 2  ;;  %p96_p11 = scmp.eq.s32.totalorder %s93_s20, 0 }
  0x38   : > { %s286_s13 = sand.u32 1, %s11687_s26   ;;  %s8678_s23 = sshll.u32 %s11695_s28, 11 }
  0x39   : > { %s8242_s21 = sshll.u32 %s286_s13, 7  ;;  %s17626_s2 = sld [smem:[#allocation287_spill]] }
  0x3a   : > { %s11862_s22 = scalar_select %p96_p11, %s11687_s26, %s98_s18  }
  0x3b   : > { %s290_s12 = scalar_lea.vmem [#allocation3], %s8242_s21  ;;  %p11874_p13 = pnand %p10521_p12, %p11847_p6 }
  0x3c   : > { %17625 = sst [smem:[#allocation20_spill]] %s11862_s22  ;;  %s299_s4 = sshll.u32 %s290_s12, 4  ;;  %s11870_s4 = int_to_ptr.vmem [resolvable:$true] %s299_s4 }
  0x3d   : > { %s11881_s16 = scalar_lea.hbm %s17265_s3, %s8678_s23  ;;  %s313_s17 = scalar_lea.vmem [#allocation6], %s8242_s21 }
  0x3e   : > { %s11883_s28 = sshll.u32 %s313_s17, 4  ;;  %s11885_s22 = scalar_lea.sflag [#allocation4], %s286_s13  ;;  %s11917_s28 = int_to_ptr.vmem [resolvable:$true] %s11883_s28 }
  0x3f   : > { %s11868_s8 = scalar_lea.hbm %s17626_s2, %s8678_s23  ;;  %p11519_p3 = pneg %p11874_p13 }
  0x40   : > { %s11517_s12 = scalar_lea.hbm %s11868_s8, 2048  ;;  %s11522_s15 = scalar_lea.hbm %s17626_s2, 4096 }
  0x41   : > { %p11518_p0 = scmp.ne.s32.totalorder %s11868_s8, %s11517_s12  ;;  %p11523_p9 = scmp.lt.u32.totalorder %s11868_s8, %s17626_s2 }
  0x42   : > { %p11524_p1 = scmp.lt.u32.totalorder %s11522_s15, %s11517_s12  ;;  %p11526_p4 = scmp.lt.u32.totalorder %s11517_s12, %s11868_s8 }
  0x43   : > { %p11520_p5 = pnand %p11519_p3, %p11518_p0 }
  0x44   : > { %p11525_p2 = por %p11524_p1, %p11523_p9 }
  0x45   : > { %p11521_p7 = pneg %p11520_p5 }
  0x46   : > { %p11527_p6 = por %p11526_p4, %p11525_p2 }
  0x48   : > { %p11528_p8 = pnand %p11527_p6, %p11521_p7 }
  0x4a   : > { %11531 = shalt.err (!%p11528_p8)
}
  0x4b   : > { %s11532_s13 = scalar_lea.vmem %s11870_s4, 2048  ;;  %s11704_s26 = smov [#allocation3]  }
  0x4c   : > { %p11533_p12 = scmp.ne.s32.totalorder %s11870_s4, %s11532_s13  ;;  %s11537_s21 = sshll.u32 %s11704_s26, 4  ;;  %s11538_s21 = int_to_ptr.vmem [resolvable:$false] %s11537_s21 }
  0x4d   : > { %s11539_s17 = scalar_lea.vmem %s11538_s21, 4096  ;;  %p11540_p5 = scmp.lt.s32.totalorder %s11870_s4, %s11538_s21 }
  0x4e   : > { %p11535_p11 = pnand %p11533_p12, %p11519_p3  ;;  %p11541_p9 = scmp.lt.s32.totalorder %s11539_s17, %s11532_s13 }
  0x50   : > { %p11536_p0 = pneg %p11535_p11  ;;  %p11542_p1 = por %p11541_p9, %p11540_p5 }
  0x52   : > { %p11543_p2 = pnand %p11542_p1, %p11536_p0 }
  0x54   : > { %11546 = shalt.err (!%p11543_p2)
}
  0x55   : > { %s17628_s12 = smov 8   ;;  %s17629_s19 = smov 128  }
  0x56   : > { %10509 = dma.hbm_to_vmem [thread:$0]  (!%p11874_p13), %s11868_s8, 2048, %s11870_s4, %s11885_s22, %s17629_s19, %s17629_s19, %s17628_s12  }
  0x57   : > { %s309_s15 = sand.u32 1, %s11699_s29   ;;  %s11547_s23 = scalar_lea.hbm %s11881_s16, 2048 }
  0x58   : > { %s11920_s18 = scalar_lea.sflag [#allocation7], %s309_s15  ;;  %p11548_p7 = scmp.ne.s32.totalorder %s11881_s16, %s11547_s23 }
  0x59   : > { %s11552_s21 = scalar_lea.hbm %s17265_s3, 4096  ;;  %p11553_p8 = scmp.lt.u32.totalorder %s11881_s16, %s17265_s3 }
  0x5a   : > { %p11550_p4 = pnand %p11548_p7, %p11519_p3  ;;  %p11554_p12 = scmp.lt.u32.totalorder %s11552_s21, %s11547_s23 }
  0x5b   : > { %p11556_p0 = scmp.lt.u32.totalorder %s11547_s23, %s11881_s16 }
  0x5c   : > { %p11551_p6 = pneg %p11550_p4  ;;  %p11555_p11 = por %p11554_p12, %p11553_p8 }
  0x5e   : > { %p11557_p5 = por %p11556_p0, %p11555_p11 }
  0x60   : > { %p11558_p9 = pnand %p11557_p5, %p11551_p6 }
  0x62   : > { %11561 = shalt.err (!%p11558_p9)
}
  0x63   : > { %s11562_s4 = scalar_lea.vmem %s11917_s28, 2048  ;;  %s11705_s8 = smov [#allocation6]  }
  0x64   : > { %p11563_p1 = scmp.ne.s32.totalorder %s11917_s28, %s11562_s4  ;;  %s11567_s22 = sshll.u32 %s11705_s8, 4  ;;  %s11568_s22 = int_to_ptr.vmem [resolvable:$false] %s11567_s22 }
  0x65   : > { %s11569_s2 = scalar_lea.vmem %s11568_s22, 4096  ;;  %p11570_p4 = scmp.lt.s32.totalorder %s11917_s28, %s11568_s22 }
  0x66   : > { %p11565_p2 = pnand %p11563_p1, %p11519_p3  ;;  %p11571_p8 = scmp.lt.s32.totalorder %s11569_s2, %s11562_s4 }
  0x68   : > { %p11566_p7 = pneg %p11565_p2  ;;  %p11572_p12 = por %p11571_p8, %p11570_p4 }
  0x6a   : > { %p11573_p11 = pnand %p11572_p12, %p11566_p7 }
  0x6c   : > { %11576 = shalt.err (!%p11573_p11)
}
  0x6d   : > { %10512 = dma.hbm_to_vmem [thread:$0]  (!%p11874_p13), %s11881_s16, 2048, %s11917_s28, %s11920_s18, %s17629_s19, %s17629_s19, %s17628_s12  }
  0x6e   : > { %p17630_p3 = scmp.ne.s32.totalorder %s17618_s11, 0 }
  0x70   : > { %334 = sbr.rel (%p17630_p3) target bundleno = 7017 (0x1b69), region = 44 }
  0x77   : > { %s11952_s15 = sand.u32 1, %s11683_s25   ;;  %p17631_p6 = scmp.ne.s32.totalorder %s17616_s9, 0 }
  0x78   : > { %s11955_s23 = sshll.u32 %s11952_s15, 7  ;;  %s337_s20 = scalar_lea.sflag [#allocation4], %s11952_s15 }
  0x79   : > { %s11959_s13 = scalar_lea.vmem [#allocation3], %s11955_s23 }
  0x7a   : > { %11658 = dma.done.wait (%p17631_p6), %s337_s20, 2048  }
  0x7b   : > { %11660 = vsyncadd (%p17631_p6), %s337_s20, 4294965248  ;;  %s345_s28 = sand.u32 1, %s11789_s30   ;;  %s11967_s16 = scalar_lea.vmem [#allocation6], %s11955_s23 }
  0x7c   : > { %s346_s11 = scalar_lea.sflag [#allocation7], %s345_s28 }
  0x7d   : > { %11662 = dma.done.wait (%p17631_p6), %s346_s11, 2048  }
  0x7e   : > { %11664 = vsyncadd (%p17631_p6), %s346_s11, 4294965248  ;;  %p17632_p13 = scmp.eq.s32.totalorder %s11789_s30, 0 }
  0x80   : > { %11666 = dma.done.wait (%p17632_p13), [#allocation7], 2048   ;;  %p17633_p0 = pmov %p17632_p13 }
  0x81   : > { %p398_p5 = scmp.lt.s32.totalorder %s11691_s27, 1  ;;  %vm17499_vm0 = vcmask 523264   ;;  %v411_v8 = vld [vmem:[%s17262_s0] sm:$0xff]  ;;  %v412_v13 = vld [vmem:[%s17262_s0 + $0x8] sm:$0xff]  ;;  %v413_v14 = vld [vmem:[%s17262_s0 + $0x10] sm:$0xff]  ;;  %vm17504_vm1 = vcmask 130048  }
  0x82   : > { %11668 = vsyncadd (%p17633_p0), [#allocation7], 4294965248  ;;  %9170 = vmatprep.mubr.msk.f32.mxu0 %vm17499_vm0, %v411_v8  ;;  %v414_v15 = vld [vmem:[%s17262_s0 + $0x18] sm:$0xff]  ;;  %v415_v16 = vld [vmem:[%s17262_s0 + $0x20] sm:$0xff]  ;;  %s11706_s17 = smov 112   ;;  %v17638_v32 = vmov 0 }
  0x83   : > { %s399_s12 = scalar_select %p398_p5, %s11691_s27, 1  ;;  %v416_v17 = vld [vmem:[%s17262_s0 + $0x28] sm:$0xff]  ;;  %v417_v18 = vld [vmem:[%s17262_s0 + $0x30] sm:$0xff]  ;;  %v418_v19 = vld [vmem:[%s17262_s0 + $0x38] sm:$0xff] }
  0x84   : > { %v419_v20 = vld [vmem:[%s17262_s0 + $0x40] sm:$0xff]  ;;  %v420_v21 = vld [vmem:[%s17262_s0 + $0x48] sm:$0xff]  ;;  %v421_v22 = vld [vmem:[%s17262_s0 + $0x50] sm:$0xff]  ;;  %s11709_s4 = smov 80   ;;  %s11710_s8 = smov 64  }
  0x85   : > { %s8680_s19 = sshll.u32 %s399_s12, 6  ;;  %v422_v23 = vld [vmem:[%s17262_s0 + $0x58] sm:$0xff]  ;;  %v423_v24 = vld [vmem:[%s17262_s0 + $0x60] sm:$0xff]  ;;  %v424_v25 = vld [vmem:[%s17262_s0 + $0x68] sm:$0xff]  ;;  %s11711_s22 = smov 48  }
  0x86   : > { %s402_s21 = scalar_lea.vmem %s17263_s1, %s8680_s19  ;;  %v425_v26 = vld [vmem:[%s17262_s0 + $0x70] sm:$0xff]  ;;  %v426_v27 = vld [vmem:[%s17262_s0 + $0x78] sm:$0xff]  ;;  %vm12065_vm2 = vmpackc.low %vm17504_vm1, %vm17504_vm1  ;;  %s11712_s2 = smov 32  }
  0x87   : > { %v427_v0 = vld [vmem:[%s402_s21] sm:$0xff]  ;;  %v428_v1 = vld [vmem:[%s402_s21 + $0x8] sm:$0xff]  ;;  %v429_v2 = vld [vmem:[%s402_s21 + $0x10] sm:$0xff]  ;;  %v17639_v32 = vsel %vm12065_vm2, 4294967295, %v17638_v32  ;;  %s11713_s20 = smov 16   ;;  %s8041_s18 = scalar_lea.sflag [#allocation5], %s11952_s15 }
  0x88   : > { %v10010_v3 = vpack.c.bf16 %v428_v1, %v427_v0  ;;  %v430_v4 = vld [vmem:[%s402_s21 + $0x18] sm:$0xff]  ;;  %v431_v6 = vld [vmem:[%s402_s21 + $0x20] sm:$0xff]  ;;  %v432_v7 = vld [vmem:[%s402_s21 + $0x28] sm:$0xff]  ;;  %17640 = vst [vmem:[#allocation25_spill] sm:$0xff] %v17639_v32 }
  0x89   : > { %v10014_v5 = vpack.c.bf16 %v430_v4, %v429_v2  ;;  %v10018_v9 = vpack.c.bf16 %v432_v7, %v431_v6  ;;  %v433_v10 = vld [vmem:[%s402_s21 + $0x30] sm:$0xff]  ;;  %v434_v11 = vld [vmem:[%s402_s21 + $0x38] sm:$0xff]  ;;  %s11714_s21 = smov [#allocation9]  }
  0x8a   : > { %10011 = vmatprep.subr.bf16.mxu0 %v10010_v3  ;;  %v10022_v12 = vpack.c.bf16 %v434_v11, %v433_v10  ;;  %s11581_s30 = sshll.u32 %s11714_s21, 4  ;;  %s11582_s30 = int_to_ptr.vmem [resolvable:$false] %s11581_s30 }
  0x8b   : > { %10013 = vmatpush3.bf16.msra.mxu0 %v10010_v3  ;;  %s11583_s9 = scalar_lea.vmem %s11582_s30, 4096 }
  0x8c   : > { %10015 = vmatprep.subr.bf16.mxu0 %v10014_v5 }
  0x8f   : > { %10017 = vmatpush3.bf16.msra.mxu0 %v10014_v5 }
  0x90   : > { %10019 = vmatprep.subr.bf16.mxu0 %v10018_v9 }
  0x93   : > { %10021 = vmatpush3.bf16.msra.mxu0 %v10018_v9 }
  0x94   : > { %10023 = vmatprep.subr.bf16.mxu0 %v10022_v12 }
  0x97   : > { %10025 = vmatpush3.bf16.msra.mxu0 %v10022_v12 }
  0x9a   : > { %9171 = vmatmul.mubr.msk.f32.vlgmr.msra.gmra.mrb[0].mxu0 %vm17499_vm0, %v412_v13 }
  0x9b   : > { %9173 = vmatprep.mubr.msk.f32.mxu0 %vm17499_vm0, %v413_v14 }
  0x9e   : > { %9174 = vmatmul.mubr.msk.f32.gmra.mrb[2].mxu0 %vm17499_vm0, %v414_v15 }
  0x9f   : > { %9176 = vmatprep.mubr.msk.f32.mxu0 %vm17499_vm0, %v415_v16 }
  0xa2   : > { %9177 = vmatmul.mubr.msk.f32.gmra.mrb[4].mxu0 %vm17499_vm0, %v416_v17 }
  0xa3   : > { %9179 = vmatprep.mubr.msk.f32.mxu0 %vm17499_vm0, %v417_v18 }
  0xa6   : > { %9180 = vmatmul.mubr.msk.f32.gmra.mrb[6].mxu0 %vm17499_vm0, %v418_v19 }
  0xa7   : > { %9182 = vmatprep.mubr.msk.f32.mxu0 %vm17499_vm0, %v419_v20 }
  0xaa   : > { %9183 = vmatmul.mubr.msk.f32.gmra.mrb[8].mxu0 %vm17499_vm0, %v420_v21 }
  0xab   : > { %9185 = vmatprep.mubr.msk.f32.mxu0 %vm17499_vm0, %v421_v22 }
  0xae   : > { %9186 = vmatmul.mubr.msk.f32.gmra.mrb[10].mxu0 %vm17499_vm0, %v422_v23 }
  0xaf   : > { %9188 = vmatprep.mubr.msk.f32.mxu0 %vm17499_vm0, %v423_v24 }
  0xb2   : > { %9189 = vmatmul.mubr.msk.f32.gmra.mrb[12].mxu0 %vm17499_vm0, %v424_v25 }
  0xb3   : > { %9191 = vmatprep.mubr.msk.f32.mxu0 %vm17499_vm0, %v425_v26 }
  0xb6   : > { %9192 = vmatmul.mubr.msk.f32.gmra.mrb[14].mxu0 %vm17499_vm0, %v426_v27 }
 0x16d   : > { %v12046_v28 = vpop.f32.mrb[0].mxu0 }
 0x16e   : > { %17634 = vst [vmem:[#allocation21_spill] sm:$0xff] %v12046_v28  ;;  %2894 = vrot.lane.b32.xlu1 %v12046_v28, %s11706_s17  ;;  %v12050_v29 = vpop.f32.mrb[1].mxu0 }
 0x16f   : > { %17635 = vst [vmem:[#allocation22_spill] sm:$0xff] %v12050_v29  ;;  %v12054_v30 = vpack.c.bf16 %v12046_v28, %v12050_v29  ;;  %9226 = vmatprep.mubr.f32.mxu1 %v12050_v29  ;;  %9282 = vmatprep.mubr.msk.f32.mxu0 %vm17504_vm1, %v12050_v29  ;;  %v12061_v31 = vpack.i.bf16 %v12046_v28, %v12050_v29 }
 0x171   : > { %17636 = vst [vmem:[#allocation23_spill] sm:$0xff] %v12054_v30  ;;  %17637 = vst [vmem:[#allocation24_spill] sm:$0xff] %v12061_v31  ;;  %10586 = vrot.lane.b32.xlu0 %v12061_v31, %s11706_s17  ;;  %10027 = vmatprep.subr.bf16.mxu1 %v12054_v30  ;;  %v12072_v33 = vpop.f32.mrb[2].mxu0 }
 0x172   : > { %17641 = vst [vmem:[#allocation26_spill] sm:$0xff] %v12072_v33  ;;  %10060 = vmatprep.subr.msk.bf16.mxu0 %vm12065_vm2, %v12054_v30  ;;  %2892 = vrot.lane.b32.xlu1 %v12050_v29, %s11706_s17  ;;  %v12079_v34 = vpop.f32.mrb[3].mxu0 }
 0x173   : > { %17642 = vst [vmem:[#allocation27_spill] sm:$0xff] %v12079_v34  ;;  %10029 = vmatpush3.bf16.xpose.msra.mxu1 %v12054_v30  ;;  %10063 = vmatpush3.bf16.xpose.msk.msra.mxu0 %vm12065_vm2, %v12054_v30  ;;  %v12087_v35 = vpack.c.bf16 %v12072_v33, %v12079_v34  ;;  %v12091_v36 = vpack.i.bf16 %v12072_v33, %v12079_v34 }
 0x175   : > { %17643 = vst [vmem:[#allocation28_spill] sm:$0xff] %v12087_v35  ;;  %17644 = vst [vmem:[#allocation29_spill] sm:$0xff] %v12091_v36  ;;  %3389 = vrot.lane.b32.xlu0 %v12054_v30, %s11706_s17  ;;  %v12095_v37 = vpop.f32.mrb[4].mxu0  ;;  %10031 = vmatprep.subr.bf16.mxu1 %v12087_v35 }
 0x176   : > { %17645 = vst [vmem:[#allocation30_spill] sm:$0xff] %v12095_v37  ;;  %2898 = vrot.lane.b32.xlu1 %v12072_v33, %s11706_s17  ;;  %v12100_v38 = vpop.f32.mrb[5].mxu0  ;;  %10066 = vmatprep.subr.msk.bf16.mxu0 %vm12065_vm2, %v12087_v35 }
 0x177   : > { %17646 = vst [vmem:[#allocation31_spill] sm:$0xff] %v12100_v38  ;;  %v12107_v39 = vpack.c.bf16 %v12095_v37, %v12100_v38  ;;  %v12111_v40 = vpack.i.bf16 %v12095_v37, %v12100_v38 }
 0x179   : > { %17647 = vst [vmem:[#allocation32_spill] sm:$0xff] %v12107_v39  ;;  %17648 = vst [vmem:[#allocation33_spill] sm:$0xff] %v12111_v40  ;;  %10596 = vrot.lane.b32.xlu0 %v12111_v40, %s11706_s17  ;;  %v12115_v41 = vpop.f32.mrb[6].mxu0 }
 0x17a   : > { %17649 = vst [vmem:[#allocation34_spill] sm:$0xff] %v12115_v41  ;;  %10591 = vrot.lane.b32.xlu1 %v12091_v36, %s11706_s17  ;;  %v12119_v42 = vpop.f32.mrb[7].mxu0 }
 0x17b   : > { %17650 = vst [vmem:[#allocation35_spill] sm:$0xff] %v12119_v42  ;;  %10033 = vmatpush3.bf16.xpose.msra.mxu1 %v12087_v35  ;;  %10069 = vmatpush3.bf16.xpose.msk.msra.mxu0 %vm12065_vm2, %v12087_v35  ;;  %v12127_v43 = vpack.c.bf16 %v12115_v41, %v12119_v42  ;;  %v12131_v44 = vpack.i.bf16 %v12115_v41, %v12119_v42 }
 0x17c   : > { %10035 = vmatprep.subr.bf16.mxu1 %v12107_v39  ;;  %10072 = vmatprep.subr.msk.bf16.mxu0 %vm12065_vm2, %v12107_v39 }
 0x17d   : > { %17651 = vst [vmem:[#allocation36_spill] sm:$0xff] %v12127_v43  ;;  %17652 = vst [vmem:[#allocation37_spill] sm:$0xff] %v12131_v44  ;;  %2900 = vrot.lane.b32.xlu0 %v12100_v38, %s11706_s17  ;;  %v12139_v45 = vpop.f32.mrb[8].mxu0 }
 0x17e   : > { %17653 = vst [vmem:[#allocation38_spill] sm:$0xff] %v12139_v45  ;;  %2896 = vrot.lane.b32.xlu1 %v12079_v34, %s11706_s17  ;;  %v12143_v46 = vpop.f32.mrb[9].mxu0 }
 0x17f   : > { %17654 = vst [vmem:[#allocation39_spill] sm:$0xff] %v12143_v46  ;;  %v12147_v47 = vpack.c.bf16 %v12139_v45, %v12143_v46  ;;  %v12151_v48 = vpack.i.bf16 %v12139_v45, %v12143_v46 }
 0x181   : > { %17655 = vst [vmem:[#allocation40_spill] sm:$0xff] %v12147_v47  ;;  %17656 = vst [vmem:[#allocation41_spill] sm:$0xff] %v12151_v48  ;;  %3393 = vrot.lane.b32.xlu0 %v12107_v39, %s11706_s17  ;;  %v12155_v49 = vpop.f32.mrb[10].mxu0 }
 0x182   : > { %17657 = vst [vmem:[#allocation42_spill] sm:$0xff] %v12155_v49  ;;  %3391 = vrot.lane.b32.xlu1 %v12087_v35, %s11706_s17  ;;  %v12159_v50 = vpop.f32.mrb[11].mxu0 }
 0x183   : > { %17658 = vst [vmem:[#allocation43_spill] sm:$0xff] %v12159_v50  ;;  %10037 = vmatpush3.bf16.xpose.msra.mxu1 %v12107_v39  ;;  %10075 = vmatpush3.bf16.xpose.msk.msra.mxu0 %vm12065_vm2, %v12107_v39  ;;  %v12167_v51 = vpack.c.bf16 %v12155_v49, %v12159_v50  ;;  %v12171_v52 = vpack.i.bf16 %v12155_v49, %v12159_v50 }
 0x184   : > { %10039 = vmatprep.subr.bf16.mxu1 %v12127_v43  ;;  %10078 = vmatprep.subr.msk.bf16.mxu0 %vm12065_vm2, %v12127_v43 }
 0x185   : > { %17659 = vst [vmem:[#allocation44_spill] sm:$0xff] %v12167_v51  ;;  %17660 = vst [vmem:[#allocation45_spill] sm:$0xff] %v12171_v52  ;;  %2906 = vrot.lane.b32.xlu0 %v12115_v41, %s11706_s17  ;;  %v12179_v53 = vpop.f32.mrb[12].mxu0 }
 0x186   : > { %17661 = vst [vmem:[#allocation46_spill] sm:$0xff] %v12179_v53  ;;  %2902 = vrot.lane.b32.xlu1 %v12095_v37, %s11706_s17  ;;  %v12183_v54 = vpop.f32.mrb[13].mxu0 }
 0x187   : > { %17662 = vst [vmem:[#allocation47_spill] sm:$0xff] %v12183_v54  ;;  %v12187_v55 = vpack.c.bf16 %v12179_v53, %v12183_v54  ;;  %v12191_v56 = vpack.i.bf16 %v12179_v53, %v12183_v54 }
 0x189   : > { %17663 = vst [vmem:[#allocation48_spill] sm:$0xff] %v12187_v55  ;;  %17664 = vst [vmem:[#allocation49_spill] sm:$0xff] %v12191_v56  ;;  %10601 = vrot.lane.b32.xlu0 %v12131_v44, %s11706_s17  ;;  %v12195_v57 = vpop.f32.mrb[14].mxu0 }
 0x18a   : > { %17665 = vst [vmem:[#allocation50_spill] sm:$0xff] %v12195_v57  ;;  %3395 = vrot.lane.b32.xlu1 %v12127_v43, %s11706_s17  ;;  %v12199_v58 = vpop.f32.mrb[15].mxu0 }
 0x18b   : > { %17666 = vst [vmem:[#allocation51_spill] sm:$0xff] %v12199_v58  ;;  %10041 = vmatpush3.bf16.xpose.msra.mxu1 %v12127_v43  ;;  %10081 = vmatpush3.bf16.xpose.msk.msra.mxu0 %vm12065_vm2, %v12127_v43  ;;  %v12207_v59 = vpack.c.bf16 %v12195_v57, %v12199_v58  ;;  %v12211_v60 = vpack.i.bf16 %v12195_v57, %v12199_v58 }
 0x18c   : > { %10043 = vmatprep.subr.bf16.mxu1 %v12147_v47  ;;  %10084 = vmatprep.subr.msk.bf16.mxu0 %vm12065_vm2, %v12147_v47 }
 0x18d   : > { %17667 = vst [vmem:[#allocation52_spill] sm:$0xff] %v12207_v59  ;;  %17668 = vst [vmem:[#allocation53_spill] sm:$0xff] %v12211_v60  ;;  %2904 = vrot.lane.b32.xlu0 %v12119_v42, %s11706_s17 }
 0x18e   : > { %10606 = vrot.lane.b32.xlu1 %v12151_v48, %s11706_s17 }
 0x191   : > { %2910 = vrot.lane.b32.xlu0 %v12139_v45, %s11706_s17 }
 0x192   : > { %2908 = vrot.lane.b32.xlu1 %v12143_v46, %s11706_s17 }
 0x193   : > { %10045 = vmatpush3.bf16.xpose.msra.mxu1 %v12147_v47  ;;  %10087 = vmatpush3.bf16.xpose.msk.msra.mxu0 %vm12065_vm2, %v12147_v47 }
 0x194   : > { %10047 = vmatprep.subr.bf16.mxu1 %v12167_v51  ;;  %10090 = vmatprep.subr.msk.bf16.mxu0 %vm12065_vm2, %v12167_v51 }
 0x195   : > { %2914 = vrot.lane.b32.xlu0 %v12155_v49, %s11706_s17 }
 0x196   : > { %10611 = vrot.lane.b32.xlu1 %v12171_v52, %s11706_s17 }
 0x199   : > { %2918 = vrot.lane.b32.xlu0 %v12179_v53, %s11706_s17 }
 0x19a   : > { %2912 = vrot.lane.b32.xlu1 %v12159_v50, %s11706_s17 }
 0x19b   : > { %10049 = vmatpush3.bf16.xpose.msra.mxu1 %v12167_v51  ;;  %10093 = vmatpush3.bf16.xpose.msk.msra.mxu0 %vm12065_vm2, %v12167_v51 }
 0x19c   : > { %10051 = vmatprep.subr.bf16.mxu1 %v12187_v55  ;;  %10096 = vmatprep.subr.msk.bf16.mxu0 %vm12065_vm2, %v12187_v55 }
 0x19d   : > { %10616 = vrot.lane.b32.xlu0 %v12191_v56, %s11706_s17 }
 0x19e   : > { %2916 = vrot.lane.b32.xlu1 %v12183_v54, %s11706_s17 }
 0x1a1   : > { %2922 = vrot.lane.b32.xlu0 %v12195_v57, %s11706_s17 }
 0x1a2   : > { %10621 = vrot.lane.b32.xlu1 %v12211_v60, %s11706_s17 }
 0x1a3   : > { %10053 = vmatpush3.bf16.xpose.msra.mxu1 %v12187_v55  ;;  %10099 = vmatpush3.bf16.xpose.msk.msra.mxu0 %vm12065_vm2, %v12187_v55 }
 0x1a4   : > { %10055 = vmatprep.subr.bf16.mxu1 %v12207_v59  ;;  %10102 = vmatprep.subr.msk.bf16.mxu0 %vm12065_vm2, %v12207_v59 }
 0x1a6   : > { %2920 = vrot.lane.b32.xlu1 %v12199_v58, %s11706_s17 }
 0x1ab   : > { %10057 = vmatpush3.bf16.xpose.msra.mxu1 %v12207_v59  ;;  %10105 = vmatpush3.bf16.xpose.msk.msra.mxu0 %vm12065_vm2, %v12207_v59 }
 0x1ac   : > { %9306 = vmatprep.subr.bf16.mxu1 %v12054_v30 }
 0x1b2   : > { %9227 = vmatmul.mubr.f32.vlgmr.msra.gmra.mrb[0].mxu1 %v12046_v28  ;;  %9283 = vmatmul.mubr.msk.f32.vlgmr.msra.gmra.mrb[16].mxu0 %vm17504_vm1, %v12046_v28 }
 0x1b3   : > { %9229 = vmatprep.mubr.f32.mxu1 %v12079_v34  ;;  %9285 = vmatprep.mubr.msk.f32.mxu0 %vm17504_vm1, %v12079_v34  ;;  %v17419_v34 = vmov 0.0  }
 0x1b4   : > { %9307 = vmatpush3.bf16.msra.mxu1 %v12054_v30 }
 0x1b5   : > { %9308 = vmatprep.subr.bf16.mxu1 %v12087_v35 }
 0x1b6   : > { %9230 = vmatmul.mubr.f32.gmra.mrb[2].mxu1 %v12072_v33  ;;  %9286 = vmatmul.mubr.msk.f32.gmra.mrb[18].mxu0 %vm17504_vm1, %v12072_v33 }
 0x1b7   : > { %9232 = vmatprep.mubr.f32.mxu1 %v12100_v38  ;;  %9288 = vmatprep.mubr.msk.f32.mxu0 %vm17504_vm1, %v12100_v38 }
 0x1b8   : > { %9309 = vmatpush3.bf16.msra.mxu1 %v12087_v35 }
 0x1b9   : > { %9310 = vmatprep.subr.bf16.mxu1 %v12107_v39 }
 0x1ba   : > { %9233 = vmatmul.mubr.f32.gmra.mrb[4].mxu1 %v12095_v37  ;;  %9289 = vmatmul.mubr.msk.f32.gmra.mrb[20].mxu0 %vm17504_vm1, %v12095_v37 }
 0x1bb   : > { %9235 = vmatprep.mubr.f32.mxu1 %v12119_v42  ;;  %9291 = vmatprep.mubr.msk.f32.mxu0 %vm17504_vm1, %v12119_v42 }
 0x1bc   : > { %9311 = vmatpush3.bf16.msra.mxu1 %v12107_v39 }
 0x1bd   : > { %9312 = vmatprep.subr.bf16.mxu1 %v12127_v43 }
 0x1be   : > { %9236 = vmatmul.mubr.f32.gmra.mrb[6].mxu1 %v12115_v41  ;;  %9292 = vmatmul.mubr.msk.f32.gmra.mrb[22].mxu0 %vm17504_vm1, %v12115_v41  ;;  %v709_v41 = vld [vmem:[%s11967_s16 + $0x68] sm:$0xff] }
 0x1bf   : > { %9238 = vmatprep.mubr.f32.mxu1 %v12143_v46  ;;  %9294 = vmatprep.mubr.msk.f32.mxu0 %vm17504_vm1, %v12143_v46 }
 0x1c0   : > { %9313 = vmatpush3.bf16.msra.mxu1 %v12127_v43 }
 0x1c1   : > { %9314 = vmatprep.subr.bf16.mxu1 %v12147_v47 }
 0x1c2   : > { %9239 = vmatmul.mubr.f32.gmra.mrb[8].mxu1 %v12139_v45  ;;  %9295 = vmatmul.mubr.msk.f32.gmra.mrb[24].mxu0 %vm17504_vm1, %v12139_v45 }
 0x1c3   : > { %9241 = vmatprep.mubr.f32.mxu1 %v12159_v50  ;;  %9297 = vmatprep.mubr.msk.f32.mxu0 %vm17504_vm1, %v12159_v50 }
 0x1c4   : > { %9315 = vmatpush3.bf16.msra.mxu1 %v12147_v47 }
 0x1c5   : > { %9316 = vmatprep.subr.bf16.mxu1 %v12167_v51 }
 0x1c6   : > { %9242 = vmatmul.mubr.f32.gmra.mrb[10].mxu1 %v12155_v49  ;;  %9298 = vmatmul.mubr.msk.f32.gmra.mrb[26].mxu0 %vm17504_vm1, %v12155_v49 }
 0x1c7   : > { %9244 = vmatprep.mubr.f32.mxu1 %v12183_v54  ;;  %9300 = vmatprep.mubr.msk.f32.mxu0 %vm17504_vm1, %v12183_v54 }
 0x1c8   : > { %9317 = vmatpush3.bf16.msra.mxu1 %v12167_v51 }
 0x1c9   : > { %9318 = vmatprep.subr.bf16.mxu1 %v12187_v55 }
 0x1ca   : > { %9245 = vmatmul.mubr.f32.gmra.mrb[12].mxu1 %v12179_v53  ;;  %9301 = vmatmul.mubr.msk.f32.gmra.mrb[28].mxu0 %vm17504_vm1, %v12179_v53 }
 0x1cb   : > { %9247 = vmatprep.mubr.f32.mxu1 %v12199_v58  ;;  %9303 = vmatprep.mubr.msk.f32.mxu0 %vm17504_vm1, %v12199_v58 }
 0x1cc   : > { %9319 = vmatpush3.bf16.msra.mxu1 %v12187_v55 }
 0x1cd   : > { %9320 = vmatprep.subr.bf16.mxu1 %v12207_v59 }
 0x1ce   : > { %9248 = vmatmul.mubr.f32.gmra.mrb[14].mxu1 %v12195_v57  ;;  %9304 = vmatmul.mubr.msk.f32.gmra.mrb[30].mxu0 %vm17504_vm1, %v12195_v57  ;;  %v707_v57 = vld [vmem:[%s11967_s16 + $0x58] sm:$0xff] }
 0x1d0   : > { %9321 = vmatpush3.bf16.msra.mxu1 %v12207_v59 }
 0x1e0   : > { %v12332_v61 = vpop.permute.xlu1 %2894 }
 0x1e3   : > { %v10587_v62 = vpop.permute.xlu0 %10586 }
 0x1e4   : > { %v10589_v63 = vunpack.i.h.bf16 %v10587_v62  ;;  %v10588_v0 = vunpack.i.l.bf16 %v10587_v62  ;;  %v2893_v1 = vpop.permute.xlu1 %2892 }
 0x1e5   : > { %9370 = vmatprep.mubr.msk.f32.mxu0 %vm17504_vm1, %v2893_v1 }
 0x1e6   : > { %v10106_v2 = vpack.c.bf16 %v10589_v63, %v10588_v0 }
 0x1e7   : > { %v12335_v3 = vpop.permute.xlu0 %3389 }
 0x1e8   : > { %17669 = vst [vmem:[#allocation54_spill] sm:$0xff] %v12335_v3  ;;  %v2899_v4 = vpop.permute.xlu1 %2898  ;;  %10108 = vmatprep.subr.msk.bf16.mxu0 %vm12065_vm2, %v10106_v2  ;;  %9394 = vmatprep.subr.bf16.mxu1 %v12335_v3 }
 0x1e9   : > { %10111 = vmatpush3.bf16.xpose.msk.msra.mxu0 %vm12065_vm2, %v10106_v2 }
 0x1eb   : > { %v10597_v5 = vpop.permute.xlu0 %10596 }
 0x1ec   : > { %v10599_v6 = vunpack.i.h.bf16 %v10597_v5  ;;  %v10598_v7 = vunpack.i.l.bf16 %v10597_v5  ;;  %v10592_v8 = vpop.permute.xlu1 %10591 }
 0x1ed   : > { %v10594_v9 = vunpack.i.h.bf16 %v10592_v8  ;;  %v10593_v10 = vunpack.i.l.bf16 %v10592_v8 }
 0x1ee   : > { %v10118_v11 = vpack.c.bf16 %v10599_v6, %v10598_v7 }
 0x1ef   : > { %v10112_v12 = vpack.c.bf16 %v10594_v9, %v10593_v10  ;;  %v2901_v13 = vpop.permute.xlu0 %2900 }
 0x1f0   : > { %v2897_v14 = vpop.permute.xlu1 %2896 }
 0x1f1   : > { %10114 = vmatprep.subr.msk.bf16.mxu0 %vm12065_vm2, %v10112_v12 }
 0x1f2   : > { %10117 = vmatpush3.bf16.xpose.msk.msra.mxu0 %vm12065_vm2, %v10112_v12 }
 0x1f3   : > { %v12346_v15 = vpop.permute.xlu0 %3393  ;;  %10120 = vmatprep.subr.msk.bf16.mxu0 %vm12065_vm2, %v10118_v11 }
 0x1f4   : > { %17670 = vst [vmem:[#allocation55_spill] sm:$0xff] %v12346_v15  ;;  %v12350_v16 = vpop.permute.xlu1 %3391 }
 0x1f5   : > { %17671 = vst [vmem:[#allocation56_spill] sm:$0xff] %v12350_v16 }
 0x1f7   : > { %v2907_v17 = vpop.permute.xlu0 %2906 }
 0x1f8   : > { %v2903_v18 = vpop.permute.xlu1 %2902 }
 0x1fa   : > { %10123 = vmatpush3.bf16.xpose.msk.msra.mxu0 %vm12065_vm2, %v10118_v11 }
 0x1fb   : > { %v10602_v19 = vpop.permute.xlu0 %10601 }
 0x1fc   : > { %v10604_v20 = vunpack.i.h.bf16 %v10602_v19  ;;  %v10603_v21 = vunpack.i.l.bf16 %v10602_v19  ;;  %v12354_v22 = vpop.permute.xlu1 %3395 }
 0x1fd   : > { %17672 = vst [vmem:[#allocation57_spill] sm:$0xff] %v12354_v22 }
 0x1fe   : > { %v10124_v23 = vpack.c.bf16 %v10604_v20, %v10603_v21 }
 0x1ff   : > { %v2905_v24 = vpop.permute.xlu0 %2904 }
 0x200   : > { %v10607_v25 = vpop.permute.xlu1 %10606  ;;  %10126 = vmatprep.subr.msk.bf16.mxu0 %vm12065_vm2, %v10124_v23 }
 0x201   : > { %v10609_v26 = vunpack.i.h.bf16 %v10607_v25  ;;  %v10608_v27 = vunpack.i.l.bf16 %v10607_v25 }
 0x202   : > { %10129 = vmatpush3.bf16.xpose.msk.msra.mxu0 %vm12065_vm2, %v10124_v23 }
 0x203   : > { %v10130_v62 = vpack.c.bf16 %v10609_v26, %v10608_v27  ;;  %v2911_v63 = vpop.permute.xlu0 %2910 }
 0x204   : > { %v2909_v0 = vpop.permute.xlu1 %2908 }
 0x205   : > { %10132 = vmatprep.subr.msk.bf16.mxu0 %vm12065_vm2, %v10130_v62 }
 0x207   : > { %v2915_v1 = vpop.permute.xlu0 %2914 }
 0x208   : > { %v10612_v2 = vpop.permute.xlu1 %10611 }
 0x209   : > { %v10614_v5 = vunpack.i.h.bf16 %v10612_v2  ;;  %v10613_v6 = vunpack.i.l.bf16 %v10612_v2 }
 0x20a   : > { %10135 = vmatpush3.bf16.xpose.msk.msra.mxu0 %vm12065_vm2, %v10130_v62  ;;  %v696_v62 = vld [vmem:[%s11967_s16] sm:$0xff] }
 0x20b   : > { %v10136_v7 = vpack.c.bf16 %v10614_v5, %v10613_v6  ;;  %v2919_v8 = vpop.permute.xlu0 %2918 }
 0x20c   : > { %v2913_v9 = vpop.permute.xlu1 %2912 }
 0x20d   : > { %10138 = vmatprep.subr.msk.bf16.mxu0 %vm12065_vm2, %v10136_v7 }
 0x20f   : > { %v10617_v10 = vpop.permute.xlu0 %10616 }
 0x210   : > { %v2917_v11 = vpop.permute.xlu1 %2916  ;;  %v10619_v12 = vunpack.i.h.bf16 %v10617_v10  ;;  %v10618_v19 = vunpack.i.l.bf16 %v10617_v10 }
 0x212   : > { %v10142_v20 = vpack.c.bf16 %v10619_v12, %v10618_v19  ;;  %10141 = vmatpush3.bf16.xpose.msk.msra.mxu0 %vm12065_vm2, %v10136_v7 }
 0x214   : > { %v10622_v21 = vpop.permute.xlu1 %10621  ;;  %10144 = vmatprep.subr.msk.bf16.mxu0 %vm12065_vm2, %v10142_v20 }
 0x215   : > { %v10624_v23 = vunpack.i.h.bf16 %v10622_v21  ;;  %v10623_v25 = vunpack.i.l.bf16 %v10622_v21  ;;  %v701_v21 = vld [vmem:[%s11967_s16 + $0x28] sm:$0xff] }
 0x217   : > { %v10148_v26 = vpack.c.bf16 %v10624_v23, %v10623_v25  ;;  %v702_v25 = vld [vmem:[%s11967_s16 + $0x30] sm:$0xff] }
 0x21a   : > { %10147 = vmatpush3.bf16.xpose.msk.msra.mxu0 %vm12065_vm2, %v10142_v20 }
 0x21b   : > { %10150 = vmatprep.subr.msk.bf16.mxu0 %vm12065_vm2, %v10148_v26 }
 0x222   : > { %10153 = vmatpush3.bf16.xpose.msk.msra.mxu0 %vm12065_vm2, %v10148_v26 }
 0x229   : > { %9371 = vmatmul.mubr.msk.f32.vlgmr.msra.gmra.mrb[32].mxu0 %vm17504_vm1, %v12332_v61  ;;  %v2921_v61 = vpop.permute.xlu1 %2920 }
 0x22a   : > { %9373 = vmatprep.mubr.msk.f32.mxu0 %vm17504_vm1, %v2897_v14 }
 0x22d   : > { %9374 = vmatmul.mubr.msk.f32.gmra.mrb[34].mxu0 %vm17504_vm1, %v2899_v4  ;;  %v2923_v4 = vpop.permute.xlu0 %2922 }
 0x22e   : > { %9376 = vmatprep.mubr.msk.f32.mxu0 %vm17504_vm1, %v2901_v13  ;;  %v697_v13 = vld [vmem:[%s11967_s16 + $0x8] sm:$0xff] }
 0x231   : > { %9377 = vmatmul.mubr.msk.f32.gmra.mrb[36].mxu0 %vm17504_vm1, %v2903_v18 }
 0x232   : > { %9379 = vmatprep.mubr.msk.f32.mxu0 %vm17504_vm1, %v2905_v24 }
 0x235   : > { %9380 = vmatmul.mubr.msk.f32.gmra.mrb[38].mxu0 %vm17504_vm1, %v2907_v17 }
 0x236   : > { %9382 = vmatprep.mubr.msk.f32.mxu0 %vm17504_vm1, %v2909_v0 }
 0x239   : > { %9383 = vmatmul.mubr.msk.f32.gmra.mrb[40].mxu0 %vm17504_vm1, %v2911_v63  ;;  %v699_v63 = vld [vmem:[%s11967_s16 + $0x18] sm:$0xff] }
 0x23a   : > { %9385 = vmatprep.mubr.msk.f32.mxu0 %vm17504_vm1, %v2913_v9  ;;  %v700_v9 = vld [vmem:[%s11967_s16 + $0x20] sm:$0xff] }
 0x23d   : > { %9386 = vmatmul.mubr.msk.f32.gmra.mrb[42].mxu0 %vm17504_vm1, %v2915_v1 }
 0x23e   : > { %9388 = vmatprep.mubr.msk.f32.mxu0 %vm17504_vm1, %v2917_v11 }
 0x241   : > { %9389 = vmatmul.mubr.msk.f32.gmra.mrb[44].mxu0 %vm17504_vm1, %v2919_v8  ;;  %v698_v8 = vld [vmem:[%s11967_s16 + $0x10] sm:$0xff] }
 0x242   : > { %9391 = vmatprep.mubr.msk.f32.mxu0 %vm17504_vm1, %v2921_v61 }
 0x245   : > { %9392 = vmatmul.mubr.msk.f32.gmra.mrb[46].mxu0 %vm17504_vm1, %v2923_v4 }
 0x285   : > { %v9228_v14 = vpop.f32.mrb[0].mxu1  ;;  %v12393_v17 = vpop.f32.mrb[16].mxu0 }
 0x286   : > { %17673 = vst [vmem:[#allocation58_spill] sm:$0xff] %v12393_v17  ;;  %v12395_v18 = vmul.f32 %v9228_v14, %v697_v13  ;;  %v778_v24 = vpop.f32.mrb[1].mxu1  ;;  %v12397_v27 = vpop.f32.mrb[17].mxu0 }
 0x287   : > { %17674 = vst [vmem:[#allocation59_spill] sm:$0xff] %v12397_v27  ;;  %v12404_v2 = vmul.f32 %v778_v24, %v696_v62  ;;  %v703_v24 = vld [vmem:[%s11967_s16 + $0x38] sm:$0xff] }
 0x288   : > { %875 = vmax.xlane.f32.xlu0 %v12395_v18 }
 0x289   : > { %v9231_v0 = vpop.f32.mrb[2].mxu1  ;;  %v12402_v1 = vpop.f32.mrb[18].mxu0  ;;  %17676 = vst [vmem:[#allocation61_spill] sm:$0xff] %v12404_v2 }
 0x28a   : > { %17675 = vst [vmem:[#allocation60_spill] sm:$0xff] %v12402_v1  ;;  %v12406_v5 = vmul.f32 %v9231_v0, %v699_v63  ;;  %v788_v6 = vpop.f32.mrb[3].mxu1  ;;  %v12408_v7 = vpop.f32.mrb[19].mxu0  ;;  %v704_v63 = vld [vmem:[%s11967_s16 + $0x40] sm:$0xff] }
 0x28b   : > { %17678 = vst [vmem:[#allocation63_spill] sm:$0xff] %v12408_v7  ;;  %v12416_v12 = vmul.f32 %v788_v6, %v698_v8 }
 0x28c   : > { %17677 = vst [vmem:[#allocation62_spill] sm:$0xff] %v12406_v5  ;;  %873 = vmax.xlane.f32.xlu0 %v12404_v2  ;;  %879 = vmax.xlane.f32.xlu1 %v12406_v5 }
 0x28d   : > { %v9234_v10 = vpop.f32.mrb[4].mxu1  ;;  %v12414_v11 = vpop.f32.mrb[20].mxu0  ;;  %17680 = vst [vmem:[#allocation65_spill] sm:$0xff] %v12416_v12 }
 0x28e   : > { %17679 = vst [vmem:[#allocation64_spill] sm:$0xff] %v12414_v11  ;;  %v798_v19 = vpop.f32.mrb[5].mxu1  ;;  %v12418_v20 = vpop.f32.mrb[21].mxu0  ;;  %v12428_v4 = vmul.f32 %v9234_v10, %v701_v21 }
 0x28f   : > { %17681 = vst [vmem:[#allocation66_spill] sm:$0xff] %v12418_v20  ;;  %v12421_v23 = vmul.f32 %v798_v19, %v700_v9  ;;  %v705_v19 = vld [vmem:[%s11967_s16 + $0x48] sm:$0xff] }
 0x290   : > { %877 = vmax.xlane.f32.xlu1 %v12416_v12  ;;  %17684 = vst [vmem:[#allocation69_spill] sm:$0xff] %v12428_v4 }
 0x291   : > { %17682 = vst [vmem:[#allocation67_spill] sm:$0xff] %v12421_v23  ;;  %v12425_v26 = vpop.f32.mrb[22].mxu0  ;;  %881 = vmax.xlane.f32.xlu0 %v12421_v23  ;;  %v9237_v61 = vpop.f32.mrb[6].mxu1 }
 0x292   : > { %17683 = vst [vmem:[#allocation68_spill] sm:$0xff] %v12425_v26  ;;  %v808_v13 = vpop.f32.mrb[7].mxu1  ;;  %v12430_v14 = vpop.f32.mrb[23].mxu0  ;;  %v12440_v8 = vmul.f32 %v9237_v61, %v703_v24 }
 0x293   : > { %17685 = vst [vmem:[#allocation70_spill] sm:$0xff] %v12430_v14  ;;  %v12433_v62 = vmul.f32 %v808_v13, %v702_v25  ;;  %v706_v25 = vld [vmem:[%s11967_s16 + $0x50] sm:$0xff] }
 0x294   : > { %883 = vmax.xlane.f32.xlu1 %v12428_v4  ;;  %17688 = vst [vmem:[#allocation73_spill] sm:$0xff] %v12440_v8 }
 0x295   : > { %17686 = vst [vmem:[#allocation71_spill] sm:$0xff] %v12433_v62  ;;  %v12437_v0 = vpop.f32.mrb[24].mxu0  ;;  %885 = vmax.xlane.f32.xlu0 %v12433_v62  ;;  %v9240_v6 = vpop.f32.mrb[8].mxu1 }
 0x296   : > { %17687 = vst [vmem:[#allocation72_spill] sm:$0xff] %v12437_v0  ;;  %v818_v9 = vpop.f32.mrb[9].mxu1  ;;  %v12442_v10 = vpop.f32.mrb[25].mxu0  ;;  %v12452_v30 = vmul.f32 %v9240_v6, %v705_v19 }
 0x297   : > { %17689 = vst [vmem:[#allocation74_spill] sm:$0xff] %v12442_v10  ;;  %v12445_v21 = vmul.f32 %v818_v9, %v704_v63  ;;  %v708_v63 = vld [vmem:[%s11967_s16 + $0x60] sm:$0xff] }
 0x298   : > { %887 = vmax.xlane.f32.xlu1 %v12440_v8  ;;  %17692 = vst [vmem:[#allocation77_spill] sm:$0xff] %v12452_v30 }
 0x299   : > { %17690 = vst [vmem:[#allocation75_spill] sm:$0xff] %v12445_v21  ;;  %v12449_v13 = vpop.f32.mrb[26].mxu0  ;;  %889 = vmax.xlane.f32.xlu0 %v12445_v21  ;;  %v9243_v39 = vpop.f32.mrb[10].mxu1 }
 0x29a   : > { %17691 = vst [vmem:[#allocation76_spill] sm:$0xff] %v12449_v13  ;;  %v828_v61 = vpop.f32.mrb[11].mxu1  ;;  %v12454_v24 = vpop.f32.mrb[27].mxu0  ;;  %v12464_v45 = vmul.f32 %v9243_v39, %v707_v57  ;;  %v711_v39 = vld [vmem:[%s11967_s16 + $0x78] sm:$0xff] }
 0x29b   : > { %17693 = vst [vmem:[#allocation78_spill] sm:$0xff] %v12454_v24  ;;  %v12457_v53 = vmul.f32 %v828_v61, %v706_v25  ;;  %v710_v25 = vld [vmem:[%s11967_s16 + $0x70] sm:$0xff]  ;;  %s11708_s16 = smov 96  }
 0x29c   : > { %891 = vmax.xlane.f32.xlu1 %v12452_v30  ;;  %17695 = vst [vmem:[#allocation80_spill] sm:$0xff] %v12464_v45 }
 0x29d   : > { %v12461_v9 = vpop.f32.mrb[28].mxu0  ;;  %893 = vmax.xlane.f32.xlu0 %v12457_v53  ;;  %v9246_v49 = vpop.f32.mrb[12].mxu1 }
 0x29e   : > { %17694 = vst [vmem:[#allocation79_spill] sm:$0xff] %v12461_v9  ;;  %v838_v6 = vpop.f32.mrb[13].mxu1  ;;  %v12466_v19 = vpop.f32.mrb[29].mxu0  ;;  %v12476_v33 = vmul.f32 %v9246_v49, %v709_v41 }
 0x29f   : > { %17696 = vst [vmem:[#allocation81_spill] sm:$0xff] %v12466_v19  ;;  %v12469_v37 = vmul.f32 %v838_v6, %v708_v63 }
 0x2a0   : > { %895 = vmax.xlane.f32.xlu1 %v12464_v45  ;;  %17699 = vst [vmem:[#allocation84_spill] sm:$0xff] %v12476_v33 }
 0x2a1   : > { %17697 = vst [vmem:[#allocation82_spill] sm:$0xff] %v12469_v37  ;;  %v12473_v61 = vpop.f32.mrb[30].mxu0  ;;  %897 = vmax.xlane.f32.xlu0 %v12469_v37  ;;  %v9249_v32 = vpop.f32.mrb[14].mxu1 }
 0x2a2   : > { %17698 = vst [vmem:[#allocation83_spill] sm:$0xff] %v12473_v61  ;;  %v848_v28 = vpop.f32.mrb[15].mxu1  ;;  %v12478_v60 = vpop.f32.mrb[31].mxu0  ;;  %v12485_v63 = vmul.f32 %v9249_v32, %v711_v39 }
 0x2a3   : > { %17700 = vst [vmem:[#allocation85_spill] sm:$0xff] %v12478_v60  ;;  %v12481_v57 = vmul.f32 %v848_v28, %v710_v25 }
 0x2a4   : > { %899 = vmax.xlane.f32.xlu1 %v12476_v33 }
 0x2a5   : > { %17701 = vst [vmem:[#allocation86_spill] sm:$0xff] %v12481_v57  ;;  %901 = vmax.xlane.f32.xlu0 %v12481_v57 }
 0x2a8   : > { %903 = vmax.xlane.f32.xlu1 %v12485_v63 }
 0x2fc   : > { %v12488_v6 = vpop.f32.mrb[32].mxu0 }
 0x2fd   : > { %17702 = vst [vmem:[#allocation87_spill] sm:$0xff] %v12488_v6  ;;  %v12490_v22 = vpop.f32.mrb[33].mxu0 }
 0x2fe   : > { %17703 = vst [vmem:[#allocation88_spill] sm:$0xff] %v12490_v22 }
 0x300   : > { %v12492_v41 = vpop.f32.mrb[34].mxu0 }
 0x301   : > { %17704 = vst [vmem:[#allocation89_spill] sm:$0xff] %v12492_v41  ;;  %v12494_v49 = vpop.f32.mrb[35].mxu0 }
 0x302   : > { %17705 = vst [vmem:[#allocation90_spill] sm:$0xff] %v12494_v49 }
 0x304   : > { %v12496_v15 = vpop.f32.mrb[36].mxu0 }
 0x305   : > { %17706 = vst [vmem:[#allocation91_spill] sm:$0xff] %v12496_v15  ;;  %v12498_v28 = vpop.f32.mrb[37].mxu0 }
 0x306   : > { %17707 = vst [vmem:[#allocation92_spill] sm:$0xff] %v12498_v28 }
 0x308   : > { %v12500_v25 = vpop.f32.mrb[38].mxu0 }
 0x309   : > { %17708 = vst [vmem:[#allocation93_spill] sm:$0xff] %v12500_v25  ;;  %v12502_v16 = vpop.f32.mrb[39].mxu0 }
 0x30a   : > { %17709 = vst [vmem:[#allocation94_spill] sm:$0xff] %v12502_v16 }
 0x30c   : > { %v12504_v32 = vpop.f32.mrb[40].mxu0 }
 0x30d   : > { %17710 = vst [vmem:[#allocation95_spill] sm:$0xff] %v12504_v32  ;;  %v12506_v39 = vpop.f32.mrb[41].mxu0 }
 0x30e   : > { %17711 = vst [vmem:[#allocation96_spill] sm:$0xff] %v12506_v39 }
 0x310   : > { %v12508_v3 = vpop.f32.mrb[42].mxu0 }
 0x311   : > { %17712 = vst [vmem:[#allocation97_spill] sm:$0xff] %v12508_v3  ;;  %v12510_v43 = vpop.f32.mrb[43].mxu0 }
 0x312   : > { %17713 = vst [vmem:[#allocation98_spill] sm:$0xff] %v12510_v43 }
 0x314   : > { %v12512_v35 = vpop.f32.mrb[44].mxu0 }
 0x315   : > { %17714 = vst [vmem:[#allocation99_spill] sm:$0xff] %v12512_v35  ;;  %v12514_v58 = vpop.xlane.xlu0 %875  ;;  %v12516_v54 = vpop.f32.mrb[45].mxu0 }
 0x316   : > { %17715 = vst [vmem:[#allocation100_spill] sm:$0xff] %v12516_v54  ;;  %vm906_vm3 = vcmp.ge.f32.partialorder %v12395_v18, %v12514_v58 }
 0x317   : > { %v1034_v50 = vsel %vm906_vm3, -3e+38, %v12395_v18  ;;  %v8272_v48 = vsel %vm906_vm3, 1.0, %v17419_v34 }
 0x318   : > { %1051 = vmax.xlane.f32.xlu1 %v1034_v50  ;;  %v12521_v46 = vpop.f32.mrb[46].mxu0 }
 0x319   : > { %17716 = vst [vmem:[#allocation101_spill] sm:$0xff] %v12521_v46  ;;  %v12523_v42 = vpop.xlane.xlu0 %873  ;;  %v12525_v38 = vpop.xlane.xlu1 %879 }
 0x31a   : > { %v12527_v56 = vpop.f32.mrb[47].mxu0  ;;  %vm905_vm4 = vcmp.ge.f32.partialorder %v12404_v2, %v12523_v42  ;;  %vm908_vm5 = vcmp.ge.f32.partialorder %v12406_v5, %v12525_v38 }
 0x31b   : > { %17717 = vst [vmem:[#allocation102_spill] sm:$0xff] %v12527_v56  ;;  %v1033_v29 = vsel %vm905_vm4, -3e+38, %v12404_v2  ;;  %v1036_v52 = vsel %vm908_vm5, -3e+38, %v12406_v5  ;;  %v8271_v44 = vsel %vm905_vm4, 1.0, %v17419_v34 }
 0x31c   : > { %955 = vadd.xlane.f32.xlu1 %v8272_v48  ;;  %1049 = vmax.xlane.f32.xlu0 %v1033_v29  ;;  %v8274_v40 = vsel %vm908_vm5, 1.0, %v17419_v34 }
 0x31d   : > { %v12535_v50 = vpop.xlane.xlu1 %877 }
 0x31e   : > { %vm907_vm6 = vcmp.ge.f32.partialorder %v12416_v12, %v12535_v50  ;;  %v12547_v48 = vpop.xlane.xlu0 %881 }
 0x31f   : > { %v1035_v29 = vsel %vm907_vm6, -3e+38, %v12416_v12  ;;  %vm909_vm8 = vcmp.ge.f32.partialorder %v12421_v23, %v12547_v48 }
 0x320   : > { %1055 = vmax.xlane.f32.xlu1 %v1036_v52  ;;  %953 = vadd.xlane.f32.xlu0 %v8271_v44  ;;  %v8273_v44 = vsel %vm907_vm6, 1.0, %v17419_v34 }
 0x321   : > { %v12541_v56 = vpop.xlane.xlu1 %883 }
 0x322   : > { %vm910_vm7 = vcmp.ge.f32.partialorder %v12428_v4, %v12541_v56 }
 0x323   : > { %v1038_v60 = vsel %vm910_vm7, -3e+38, %v12428_v4  ;;  %v8276_v46 = vsel %vm910_vm7, 1.0, %v17419_v34 }
 0x324   : > { %959 = vadd.xlane.f32.xlu1 %v8274_v40  ;;  %1053 = vmax.xlane.f32.xlu0 %v1035_v29  ;;  %v1037_v40 = vsel %vm909_vm8, -3e+38, %v12421_v23  ;;  %v12559_v29 = vpop.xlane.xlu0 %885 }
 0x325   : > { %v12553_v52 = vpop.xlane.xlu1 %887  ;;  %vm911_vm10 = vcmp.ge.f32.partialorder %v12433_v62, %v12559_v29 }
 0x326   : > { %vm912_vm9 = vcmp.ge.f32.partialorder %v12440_v8, %v12553_v52 }
 0x327   : > { %v1040_v36 = vsel %vm912_vm9, -3e+38, %v12440_v8  ;;  %v8278_v31 = vsel %vm912_vm9, 1.0, %v17419_v34 }
 0x328   : > { %1059 = vmax.xlane.f32.xlu1 %v1038_v60  ;;  %957 = vadd.xlane.f32.xlu0 %v8273_v44  ;;  %v8275_v60 = vsel %vm909_vm8, 1.0, %v17419_v34 }
 0x329   : > { %v12565_v44 = vpop.xlane.xlu1 %891 }
 0x32a   : > { %vm914_vm11 = vcmp.ge.f32.partialorder %v12452_v30, %v12565_v44 }
 0x32b   : > { %v1042_v54 = vsel %vm914_vm11, -3e+38, %v12452_v30  ;;  %v8280_v61 = vsel %vm914_vm11, 1.0, %v17419_v34 }
 0x32c   : > { %963 = vadd.xlane.f32.xlu1 %v8276_v46  ;;  %1057 = vmax.xlane.f32.xlu0 %v1037_v40  ;;  %v1039_v46 = vsel %vm911_vm10, -3e+38, %v12433_v62  ;;  %v12571_v40 = vpop.xlane.xlu0 %889 }
 0x32d   : > { %vm913_vm12 = vcmp.ge.f32.partialorder %v12445_v21, %v12571_v40 }
 0x330   : > { %1063 = vmax.xlane.f32.xlu1 %v1040_v36  ;;  %961 = vadd.xlane.f32.xlu0 %v8275_v60  ;;  %v8277_v36 = vsel %vm911_vm10, 1.0, %v17419_v34  ;;  %v12577_v60 = vpop.xlane.xlu1 %895 }
 0x331   : > { %vm916_vm13 = vcmp.ge.f32.partialorder %v12464_v45, %v12577_v60 }
 0x332   : > { %v1044_v19 = vsel %vm916_vm13, -3e+38, %v12464_v45  ;;  %v8282_v43 = vsel %vm916_vm13, 1.0, %v17419_v34 }
 0x334   : > { %967 = vadd.xlane.f32.xlu1 %v8278_v31  ;;  %1061 = vmax.xlane.f32.xlu0 %v1039_v46  ;;  %v1041_v31 = vsel %vm913_vm12, -3e+38, %v12445_v21  ;;  %v12583_v46 = vpop.xlane.xlu0 %893 }
 0x335   : > { %vm915_vm14 = vcmp.ge.f32.partialorder %v12457_v53, %v12583_v46 }
 0x338   : > { %1067 = vmax.xlane.f32.xlu1 %v1042_v54  ;;  %965 = vadd.xlane.f32.xlu0 %v8277_v36  ;;  %v8279_v54 = vsel %vm913_vm12, 1.0, %v17419_v34  ;;  %v12589_v36 = vpop.xlane.xlu1 %899 }
 0x339   : > { %vm918_vm15 = vcmp.ge.f32.partialorder %v12476_v33, %v12589_v36 }
 0x33a   : > { %v1046_v35 = vsel %vm918_vm15, -3e+38, %v12476_v33  ;;  %v8284_v24 = vsel %vm918_vm15, 1.0, %v17419_v34 }
 0x33c   : > { %971 = vadd.xlane.f32.xlu1 %v8280_v61  ;;  %1065 = vmax.xlane.f32.xlu0 %v1041_v31  ;;  %v1043_v61 = vsel %vm915_vm14, -3e+38, %v12457_v53  ;;  %v12595_v31 = vpop.xlane.xlu0 %897 }
 0x33d   : > { %vm917_vm3 = vcmp.ge.f32.partialorder %v12469_v37, %v12595_v31 }
 0x340   : > { %1071 = vmax.xlane.f32.xlu1 %v1044_v19  ;;  %969 = vadd.xlane.f32.xlu0 %v8279_v54  ;;  %v8281_v19 = vsel %vm915_vm14, 1.0, %v17419_v34  ;;  %v12601_v54 = vpop.xlane.xlu1 %903 }
 0x341   : > { %vm920_vm4 = vcmp.ge.f32.partialorder %v12485_v63, %v12601_v54 }
 0x342   : > { %v1048_v9 = vsel %vm920_vm4, -3e+38, %v12485_v63 }
 0x344   : > { %975 = vadd.xlane.f32.xlu1 %v8282_v43  ;;  %1069 = vmax.xlane.f32.xlu0 %v1043_v61  ;;  %v1045_v43 = vsel %vm917_vm3, -3e+38, %v12469_v37  ;;  %v12607_v61 = vpop.xlane.xlu0 %901 }
 0x345   : > { %17718 = vst [vmem:[#allocation103_spill] sm:$0xff] %v12607_v61  ;;  %vm919_vm5 = vcmp.ge.f32.partialorder %v12481_v57, %v12607_v61 }
 0x348   : > { %1075 = vmax.xlane.f32.xlu1 %v1046_v35  ;;  %973 = vadd.xlane.f32.xlu0 %v8281_v19  ;;  %v8283_v35 = vsel %vm917_vm3, 1.0, %v17419_v34  ;;  %v1047_v19 = vsel %vm919_vm5, -3e+38, %v12481_v57 }
 0x34c   : > { %979 = vadd.xlane.f32.xlu1 %v8284_v24  ;;  %1073 = vmax.xlane.f32.xlu0 %v1045_v43  ;;  %v8285_v24 = vsel %vm919_vm5, 1.0, %v17419_v34  ;;  %v8286_v43 = vsel %vm920_vm4, 1.0, %v17419_v34 }
 0x350   : > { %1079 = vmax.xlane.f32.xlu1 %v1048_v9  ;;  %977 = vadd.xlane.f32.xlu0 %v8283_v35 }
 0x354   : > { %1077 = vmax.xlane.f32.xlu0 %v1047_v19 }
 0x358   : > { %981 = vadd.xlane.f32.xlu0 %v8285_v24 }
 0x361   : > { %3397 = vrot.lane.b32.xlu1 %v12147_v47, %s11706_s17 }
 0x385   : > { %983 = vadd.xlane.f32.xlu1 %v8286_v43 }
 0x3a5   : > { %v12618_v3 = vpop.xlane.xlu1 %1051 }
 0x3a6   : > { %vm1082_vm6 = vcmp.ge.f32.partialorder %v12395_v18, %v12618_v3 }
 0x3a7   : > { %v1210_v9 = vsel %vm1082_vm6, -3e+38, %v12395_v18  ;;  %v8288_v24 = vsel %vm1082_vm6, 1.0, %v17419_v34 }
 0x3a8   : > { %1227 = vmax.xlane.f32.xlu1 %v1210_v9 }
 0x3a9   : > { %v12623_v35 = vpop.xlane.xlu1 %955  ;;  %v12625_v19 = vpop.xlane.xlu0 %1049 }
 0x3aa   : > { %vm1081_vm7 = vcmp.ge.f32.partialorder %v12404_v2, %v12625_v19 }
 0x3ab   : > { %v1209_v47 = vsel %vm1081_vm7, -3e+38, %v12404_v2  ;;  %v8287_v39 = vsel %vm1081_vm7, 1.0, %v17419_v34 }
 0x3ac   : > { %1131 = vadd.xlane.f32.xlu1 %v8288_v24  ;;  %1225 = vmax.xlane.f32.xlu0 %v1209_v47 }
 0x3ad   : > { %v12631_v43 = vpop.xlane.xlu1 %1055  ;;  %v12633_v61 = vpop.xlane.xlu0 %953 }
 0x3ae   : > { %17719 = vst [vmem:[#allocation104_spill] sm:$0xff] %v12631_v43  ;;  %vm1084_vm8 = vcmp.ge.f32.partialorder %v12406_v5, %v12631_v43 }
 0x3af   : > { %v1212_v9 = vsel %vm1084_vm8, -3e+38, %v12406_v5  ;;  %v8290_v47 = vsel %vm1084_vm8, 1.0, %v17419_v34 }
 0x3b0   : > { %1231 = vmax.xlane.f32.xlu1 %v1212_v9  ;;  %1129 = vadd.xlane.f32.xlu0 %v8287_v39 }
 0x3b1   : > { %v12639_v13 = vpop.xlane.xlu1 %959  ;;  %v12641_v10 = vpop.xlane.xlu0 %1053 }
 0x3b2   : > { %17720 = vst [vmem:[#allocation105_spill] sm:$0xff] %v12641_v10  ;;  %vm1083_vm9 = vcmp.ge.f32.partialorder %v12416_v12, %v12641_v10 }
 0x3b3   : > { %v1211_v24 = vsel %vm1083_vm9, -3e+38, %v12416_v12  ;;  %v8289_v9 = vsel %vm1083_vm9, 1.0, %v17419_v34 }
 0x3b4   : > { %1135 = vadd.xlane.f32.xlu1 %v8290_v47  ;;  %1229 = vmax.xlane.f32.xlu0 %v1211_v24 }
 0x3b5   : > { %v12647_v32 = vpop.xlane.xlu1 %1059  ;;  %v12649_v16 = vpop.xlane.xlu0 %957 }
 0x3b6   : > { %17721 = vst [vmem:[#allocation106_spill] sm:$0xff] %v12647_v32  ;;  %vm1086_vm10 = vcmp.ge.f32.partialorder %v12428_v4, %v12647_v32 }
 0x3b7   : > { %v1214_v39 = vsel %vm1086_vm10, -3e+38, %v12428_v4  ;;  %v8292_v47 = vsel %vm1086_vm10, 1.0, %v17419_v34 }
 0x3b8   : > { %1235 = vmax.xlane.f32.xlu1 %v1214_v39  ;;  %1133 = vadd.xlane.f32.xlu0 %v8289_v9 }
 0x3b9   : > { %v12655_v0 = vpop.xlane.xlu1 %963  ;;  %v12657_v14 = vpop.xlane.xlu0 %1057 }
 0x3ba   : > { %17722 = vst [vmem:[#allocation107_spill] sm:$0xff] %v12657_v14  ;;  %vm1085_vm11 = vcmp.ge.f32.partialorder %v12421_v23, %v12657_v14 }
 0x3bb   : > { %v1213_v24 = vsel %vm1085_vm11, -3e+38, %v12421_v23  ;;  %v8291_v9 = vsel %vm1085_vm11, 1.0, %v17419_v34 }
 0x3bc   : > { %1139 = vadd.xlane.f32.xlu1 %v8292_v47  ;;  %1233 = vmax.xlane.f32.xlu0 %v1213_v24 }
 0x3bd   : > { %v12663_v25 = vpop.xlane.xlu1 %1063  ;;  %v12665_v28 = vpop.xlane.xlu0 %961 }
 0x3be   : > { %17723 = vst [vmem:[#allocation108_spill] sm:$0xff] %v12663_v25  ;;  %vm1088_vm12 = vcmp.ge.f32.partialorder %v12440_v8, %v12663_v25 }
 0x3bf   : > { %v1216_v39 = vsel %vm1088_vm12, -3e+38, %v12440_v8  ;;  %v8294_v47 = vsel %vm1088_vm12, 1.0, %v17419_v34 }
 0x3c0   : > { %1239 = vmax.xlane.f32.xlu1 %v1216_v39  ;;  %1137 = vadd.xlane.f32.xlu0 %v8291_v9 }
 0x3c1   : > { %v12671_v26 = vpop.xlane.xlu1 %967  ;;  %v12673_v20 = vpop.xlane.xlu0 %1061 }
 0x3c2   : > { %17724 = vst [vmem:[#allocation109_spill] sm:$0xff] %v12673_v20  ;;  %vm1087_vm13 = vcmp.ge.f32.partialorder %v12433_v62, %v12673_v20 }
 0x3c3   : > { %v1215_v24 = vsel %vm1087_vm13, -3e+38, %v12433_v62  ;;  %v8293_v9 = vsel %vm1087_vm13, 1.0, %v17419_v34 }
 0x3c4   : > { %1143 = vadd.xlane.f32.xlu1 %v8294_v47  ;;  %1237 = vmax.xlane.f32.xlu0 %v1215_v24 }
 0x3c5   : > { %v12679_v15 = vpop.xlane.xlu1 %1067  ;;  %v12681_v49 = vpop.xlane.xlu0 %965 }
 0x3c6   : > { %17725 = vst [vmem:[#allocation110_spill] sm:$0xff] %v12679_v15  ;;  %vm1090_vm14 = vcmp.ge.f32.partialorder %v12452_v30, %v12679_v15 }
 0x3c7   : > { %v1218_v39 = vsel %vm1090_vm14, -3e+38, %v12452_v30  ;;  %v8296_v47 = vsel %vm1090_vm14, 1.0, %v17419_v34 }
 0x3c8   : > { %1243 = vmax.xlane.f32.xlu1 %v1218_v39  ;;  %1141 = vadd.xlane.f32.xlu0 %v8293_v9 }
 0x3c9   : > { %v12687_v11 = vpop.xlane.xlu1 %971  ;;  %v12689_v7 = vpop.xlane.xlu0 %1065 }
 0x3ca   : > { %17726 = vst [vmem:[#allocation111_spill] sm:$0xff] %v12689_v7  ;;  %vm1089_vm15 = vcmp.ge.f32.partialorder %v12445_v21, %v12689_v7 }
 0x3cb   : > { %v1217_v24 = vsel %vm1089_vm15, -3e+38, %v12445_v21  ;;  %v8295_v9 = vsel %vm1089_vm15, 1.0, %v17419_v34 }
 0x3cc   : > { %1147 = vadd.xlane.f32.xlu1 %v8296_v47  ;;  %1241 = vmax.xlane.f32.xlu0 %v1217_v24 }
 0x3cd   : > { %v12695_v41 = vpop.xlane.xlu1 %1071  ;;  %v12697_v22 = vpop.xlane.xlu0 %969 }
 0x3ce   : > { %17727 = vst [vmem:[#allocation112_spill] sm:$0xff] %v12695_v41  ;;  %vm1092_vm3 = vcmp.ge.f32.partialorder %v12464_v45, %v12695_v41 }
 0x3cf   : > { %v1220_v39 = vsel %vm1092_vm3, -3e+38, %v12464_v45  ;;  %v8298_v47 = vsel %vm1092_vm3, 1.0, %v17419_v34 }
 0x3d0   : > { %1247 = vmax.xlane.f32.xlu1 %v1220_v39  ;;  %1145 = vadd.xlane.f32.xlu0 %v8295_v9 }
 0x3d1   : > { %v12703_v1 = vpop.xlane.xlu1 %975  ;;  %v12705_v27 = vpop.xlane.xlu0 %1069 }
 0x3d2   : > { %17728 = vst [vmem:[#allocation113_spill] sm:$0xff] %v12705_v27  ;;  %vm1091_vm4 = vcmp.ge.f32.partialorder %v12457_v53, %v12705_v27 }
 0x3d3   : > { %v1219_v24 = vsel %vm1091_vm4, -3e+38, %v12457_v53  ;;  %v8297_v9 = vsel %vm1091_vm4, 1.0, %v17419_v34 }
 0x3d4   : > { %1151 = vadd.xlane.f32.xlu1 %v8298_v47  ;;  %1245 = vmax.xlane.f32.xlu0 %v1219_v24 }
 0x3d5   : > { %v12711_v6 = vpop.xlane.xlu1 %1075  ;;  %v12713_v17 = vpop.xlane.xlu0 %973 }
 0x3d6   : > { %17729 = vst [vmem:[#allocation114_spill] sm:$0xff] %v12711_v6  ;;  %vm1094_vm5 = vcmp.ge.f32.partialorder %v12476_v33, %v12711_v6 }
 0x3d7   : > { %v1222_v39 = vsel %vm1094_vm5, -3e+38, %v12476_v33  ;;  %v8300_v47 = vsel %vm1094_vm5, 1.0, %v17419_v34 }
 0x3d8   : > { %1251 = vmax.xlane.f32.xlu1 %v1222_v39  ;;  %1149 = vadd.xlane.f32.xlu0 %v8297_v9 }
 0x3d9   : > { %v12719_v27 = vpop.xlane.xlu1 %979  ;;  %v12721_v41 = vpop.xlane.xlu0 %1073 }
 0x3da   : > { %17730 = vst [vmem:[#allocation115_spill] sm:$0xff] %v12721_v41  ;;  %vm1093_vm6 = vcmp.ge.f32.partialorder %v12469_v37, %v12721_v41 }
 0x3db   : > { %v1221_v24 = vsel %vm1093_vm6, -3e+38, %v12469_v37  ;;  %v8299_v9 = vsel %vm1093_vm6, 1.0, %v17419_v34 }
 0x3dc   : > { %1155 = vadd.xlane.f32.xlu1 %v8300_v47  ;;  %1249 = vmax.xlane.f32.xlu0 %v1221_v24 }
 0x3dd   : > { %v12727_v6 = vpop.xlane.xlu1 %1079  ;;  %v12729_v7 = vpop.xlane.xlu0 %977 }
 0x3de   : > { %17731 = vst [vmem:[#allocation116_spill] sm:$0xff] %v12727_v6  ;;  %vm1096_vm7 = vcmp.ge.f32.partialorder %v12485_v63, %v12727_v6 }
 0x3df   : > { %v1224_v39 = vsel %vm1096_vm7, -3e+38, %v12485_v63  ;;  %v8302_v47 = vsel %vm1096_vm7, 1.0, %v17419_v34 }
 0x3e0   : > { %1255 = vmax.xlane.f32.xlu1 %v1224_v39  ;;  %1153 = vadd.xlane.f32.xlu0 %v8299_v9 }
 0x3e1   : > { %v12735_v41 = vpop.xlane.xlu0 %1077  ;;  %v12742_v6 = vpop.permute.xlu1 %3397 }
 0x3e2   : > { %17732 = vst [vmem:[#allocation117_spill] sm:$0xff] %v12735_v41  ;;  %vm1095_vm8 = vcmp.ge.f32.partialorder %v12481_v57, %v12735_v41  ;;  %17733 = vst [vmem:[#allocation118_spill] sm:$0xff] %v12742_v6 }
 0x3e3   : > { %v1223_v24 = vsel %vm1095_vm8, -3e+38, %v12481_v57  ;;  %v8301_v15 = vsel %vm1095_vm8, 1.0, %v17419_v34 }
 0x3e4   : > { %1159 = vadd.xlane.f32.xlu1 %v8302_v47  ;;  %1253 = vmax.xlane.f32.xlu0 %v1223_v24 }
 0x3e5   : > { %v12746_v39 = vpop.xlane.xlu0 %981 }
 0x3e6   : > { %17734 = vst [vmem:[#allocation119_spill] sm:$0xff] %v12746_v39 }
 0x3e8   : > { %1157 = vadd.xlane.f32.xlu0 %v8301_v15 }
 0x412   : > { %v12744_v20 = vpop.xlane.xlu1 %983 }
 0x435   : > { %v12748_v9 = vpop.xlane.xlu1 %1227 }
 0x436   : > { %17735 = vst [vmem:[#allocation120_spill] sm:$0xff] %v12748_v9  ;;  %vm1258_vm9 = vcmp.ge.f32.partialorder %v12395_v18, %v12748_v9 }
 0x437   : > { %v1386_v41 = vsel %vm1258_vm9, -3e+38, %v12395_v18  ;;  %v8304_v15 = vsel %vm1258_vm9, 1.0, %v17419_v34 }
 0x438   : > { %1403 = vmax.xlane.f32.xlu1 %v1386_v41 }
 0x439   : > { %v12753_v25 = vpop.xlane.xlu1 %1131  ;;  %v12755_v47 = vpop.xlane.xlu0 %1225 }
 0x43a   : > { %17736 = vst [vmem:[#allocation121_spill] sm:$0xff] %v12755_v47  ;;  %vm1257_vm10 = vcmp.ge.f32.partialorder %v12404_v2, %v12755_v47 }
 0x43b   : > { %v1385_v24 = vsel %vm1257_vm10, -3e+38, %v12404_v2  ;;  %v8303_v9 = vsel %vm1257_vm10, 1.0, %v17419_v34 }
 0x43c   : > { %1307 = vadd.xlane.f32.xlu1 %v8304_v15  ;;  %1401 = vmax.xlane.f32.xlu0 %v1385_v24 }
 0x43d   : > { %v12761_v6 = vpop.xlane.xlu1 %1231  ;;  %v12763_v39 = vpop.xlane.xlu0 %1129 }
 0x43e   : > { %17737 = vst [vmem:[#allocation122_spill] sm:$0xff] %v12761_v6  ;;  %vm1260_vm11 = vcmp.ge.f32.partialorder %v12406_v5, %v12761_v6 }
 0x43f   : > { %v1388_v41 = vsel %vm1260_vm11, -3e+38, %v12406_v5  ;;  %v8306_v15 = vsel %vm1260_vm11, 1.0, %v17419_v34 }
 0x440   : > { %1407 = vmax.xlane.f32.xlu1 %v1388_v41  ;;  %1305 = vadd.xlane.f32.xlu0 %v8303_v9 }
 0x441   : > { %v12769_v47 = vpop.xlane.xlu1 %1135  ;;  %v12771_v14 = vpop.xlane.xlu0 %1229 }
 0x442   : > { %17738 = vst [vmem:[#allocation123_spill] sm:$0xff] %v12771_v14  ;;  %vm1259_vm12 = vcmp.ge.f32.partialorder %v12416_v12, %v12771_v14 }
 0x443   : > { %v1387_v24 = vsel %vm1259_vm12, -3e+38, %v12416_v12  ;;  %v8305_v41 = vsel %vm1259_vm12, 1.0, %v17419_v34 }
 0x444   : > { %1311 = vadd.xlane.f32.xlu1 %v8306_v15  ;;  %1405 = vmax.xlane.f32.xlu0 %v1387_v24 }
 0x445   : > { %v12777_v6 = vpop.xlane.xlu1 %1235  ;;  %v12779_v32 = vpop.xlane.xlu0 %1133 }
 0x446   : > { %17739 = vst [vmem:[#allocation124_spill] sm:$0xff] %v12777_v6  ;;  %vm1262_vm13 = vcmp.ge.f32.partialorder %v12428_v4, %v12777_v6 }
 0x447   : > { %v1390_v9 = vsel %vm1262_vm13, -3e+38, %v12428_v4  ;;  %v8308_v15 = vsel %vm1262_vm13, 1.0, %v17419_v34 }
 0x448   : > { %1411 = vmax.xlane.f32.xlu1 %v1390_v9  ;;  %1309 = vadd.xlane.f32.xlu0 %v8305_v41 }
 0x449   : > { %v12785_v14 = vpop.xlane.xlu1 %1139  ;;  %v12787_v10 = vpop.xlane.xlu0 %1233 }
 0x44a   : > { %17740 = vst [vmem:[#allocation125_spill] sm:$0xff] %v12785_v14  ;;  %17741 = vst [vmem:[#allocation126_spill] sm:$0xff] %v12787_v10  ;;  %vm1261_vm14 = vcmp.ge.f32.partialorder %v12421_v23, %v12787_v10 }
 0x44b   : > { %v1389_v24 = vsel %vm1261_vm14, -3e+38, %v12421_v23  ;;  %v8307_v41 = vsel %vm1261_vm14, 1.0, %v17419_v34 }
 0x44c   : > { %1315 = vadd.xlane.f32.xlu1 %v8308_v15  ;;  %1409 = vmax.xlane.f32.xlu0 %v1389_v24 }
 0x44d   : > { %v12793_v6 = vpop.xlane.xlu1 %1239  ;;  %v12795_v43 = vpop.xlane.xlu0 %1137 }
 0x44e   : > { %17742 = vst [vmem:[#allocation127_spill] sm:$0xff] %v12793_v6  ;;  %17743 = vst [vmem:[#allocation128_spill] sm:$0xff] %v12795_v43  ;;  %vm1264_vm15 = vcmp.ge.f32.partialorder %v12440_v8, %v12793_v6 }
 0x44f   : > { %v1392_v9 = vsel %vm1264_vm15, -3e+38, %v12440_v8  ;;  %v8310_v15 = vsel %vm1264_vm15, 1.0, %v17419_v34 }
 0x450   : > { %1415 = vmax.xlane.f32.xlu1 %v1392_v9  ;;  %1313 = vadd.xlane.f32.xlu0 %v8307_v41 }
 0x451   : > { %v12801_v10 = vpop.xlane.xlu1 %1143  ;;  %v12803_v14 = vpop.xlane.xlu0 %1237 }
 0x452   : > { %17744 = vst [vmem:[#allocation129_spill] sm:$0xff] %v12801_v10  ;;  %17745 = vst [vmem:[#allocation130_spill] sm:$0xff] %v12803_v14  ;;  %vm1263_vm3 = vcmp.ge.f32.partialorder %v12433_v62, %v12803_v14 }
 0x453   : > { %v1391_v24 = vsel %vm1263_vm3, -3e+38, %v12433_v62  ;;  %v8309_v41 = vsel %vm1263_vm3, 1.0, %v17419_v34 }
 0x454   : > { %1319 = vadd.xlane.f32.xlu1 %v8310_v15  ;;  %1413 = vmax.xlane.f32.xlu0 %v1391_v24 }
 0x455   : > { %v12809_v6 = vpop.xlane.xlu1 %1243  ;;  %v12811_v43 = vpop.xlane.xlu0 %1141 }
 0x456   : > { %17746 = vst [vmem:[#allocation131_spill] sm:$0xff] %v12809_v6  ;;  %17747 = vst [vmem:[#allocation132_spill] sm:$0xff] %v12811_v43  ;;  %vm1266_vm4 = vcmp.ge.f32.partialorder %v12452_v30, %v12809_v6 }
 0x457   : > { %v1394_v9 = vsel %vm1266_vm4, -3e+38, %v12452_v30  ;;  %v8312_v15 = vsel %vm1266_vm4, 1.0, %v17419_v34 }
 0x458   : > { %1419 = vmax.xlane.f32.xlu1 %v1394_v9  ;;  %1317 = vadd.xlane.f32.xlu0 %v8309_v41 }
 0x459   : > { %v12817_v14 = vpop.xlane.xlu1 %1147  ;;  %v12819_v10 = vpop.xlane.xlu0 %1241 }
 0x45a   : > { %17748 = vst [vmem:[#allocation133_spill] sm:$0xff] %v12817_v14  ;;  %17749 = vst [vmem:[#allocation134_spill] sm:$0xff] %v12819_v10  ;;  %vm1265_vm5 = vcmp.ge.f32.partialorder %v12445_v21, %v12819_v10 }
 0x45b   : > { %v1393_v24 = vsel %vm1265_vm5, -3e+38, %v12445_v21  ;;  %v8311_v41 = vsel %vm1265_vm5, 1.0, %v17419_v34 }
 0x45c   : > { %1323 = vadd.xlane.f32.xlu1 %v8312_v15  ;;  %1417 = vmax.xlane.f32.xlu0 %v1393_v24 }
 0x45d   : > { %v12825_v6 = vpop.xlane.xlu1 %1247  ;;  %v12827_v43 = vpop.xlane.xlu0 %1145 }
 0x45e   : > { %17750 = vst [vmem:[#allocation135_spill] sm:$0xff] %v12825_v6  ;;  %17751 = vst [vmem:[#allocation136_spill] sm:$0xff] %v12827_v43  ;;  %vm1268_vm6 = vcmp.ge.f32.partialorder %v12464_v45, %v12825_v6 }
 0x45f   : > { %v1396_v9 = vsel %vm1268_vm6, -3e+38, %v12464_v45  ;;  %v8314_v15 = vsel %vm1268_vm6, 1.0, %v17419_v34 }
 0x460   : > { %1423 = vmax.xlane.f32.xlu1 %v1396_v9  ;;  %1321 = vadd.xlane.f32.xlu0 %v8311_v41 }
 0x461   : > { %v12833_v10 = vpop.xlane.xlu1 %1151  ;;  %v12835_v14 = vpop.xlane.xlu0 %1245 }
 0x462   : > { %17752 = vst [vmem:[#allocation137_spill] sm:$0xff] %v12833_v10  ;;  %17753 = vst [vmem:[#allocation138_spill] sm:$0xff] %v12835_v14  ;;  %vm1267_vm7 = vcmp.ge.f32.partialorder %v12457_v53, %v12835_v14 }
 0x463   : > { %v1395_v24 = vsel %vm1267_vm7, -3e+38, %v12457_v53  ;;  %v8313_v41 = vsel %vm1267_vm7, 1.0, %v17419_v34 }
 0x464   : > { %1327 = vadd.xlane.f32.xlu1 %v8314_v15  ;;  %1421 = vmax.xlane.f32.xlu0 %v1395_v24 }
 0x465   : > { %v12841_v6 = vpop.xlane.xlu1 %1251  ;;  %v12843_v43 = vpop.xlane.xlu0 %1149 }
 0x466   : > { %17754 = vst [vmem:[#allocation139_spill] sm:$0xff] %v12841_v6  ;;  %17755 = vst [vmem:[#allocation140_spill] sm:$0xff] %v12843_v43  ;;  %vm1270_vm8 = vcmp.ge.f32.partialorder %v12476_v33, %v12841_v6 }
 0x467   : > { %v1398_v9 = vsel %vm1270_vm8, -3e+38, %v12476_v33  ;;  %v8316_v15 = vsel %vm1270_vm8, 1.0, %v17419_v34 }
 0x468   : > { %1427 = vmax.xlane.f32.xlu1 %v1398_v9  ;;  %1325 = vadd.xlane.f32.xlu0 %v8313_v41 }
 0x469   : > { %v12849_v14 = vpop.xlane.xlu1 %1155  ;;  %v12851_v10 = vpop.xlane.xlu0 %1249 }
 0x46a   : > { %17756 = vst [vmem:[#allocation141_spill] sm:$0xff] %v12849_v14  ;;  %17757 = vst [vmem:[#allocation142_spill] sm:$0xff] %v12851_v10  ;;  %vm1269_vm9 = vcmp.ge.f32.partialorder %v12469_v37, %v12851_v10 }
 0x46b   : > { %v1397_v24 = vsel %vm1269_vm9, -3e+38, %v12469_v37  ;;  %v8315_v41 = vsel %vm1269_vm9, 1.0, %v17419_v34 }
 0x46c   : > { %1331 = vadd.xlane.f32.xlu1 %v8316_v15  ;;  %1425 = vmax.xlane.f32.xlu0 %v1397_v24 }
 0x46d   : > { %v12857_v6 = vpop.xlane.xlu1 %1255  ;;  %v12859_v43 = vpop.xlane.xlu0 %1153 }
 0x46e   : > { %17758 = vst [vmem:[#allocation143_spill] sm:$0xff] %v12857_v6  ;;  %17759 = vst [vmem:[#allocation144_spill] sm:$0xff] %v12859_v43  ;;  %vm1272_vm10 = vcmp.ge.f32.partialorder %v12485_v63, %v12857_v6 }
 0x46f   : > { %v1400_v9 = vsel %vm1272_vm10, -3e+38, %v12485_v63  ;;  %v8318_v15 = vsel %vm1272_vm10, 1.0, %v17419_v34 }
 0x470   : > { %1431 = vmax.xlane.f32.xlu1 %v1400_v9  ;;  %1329 = vadd.xlane.f32.xlu0 %v8315_v41 }
 0x471   : > { %v12865_v10 = vpop.xlane.xlu0 %1253  ;;  %v12874_v43 = vpop.xlane.xlu1 %1159 }
 0x472   : > { %17760 = vst [vmem:[#allocation145_spill] sm:$0xff] %v12865_v10  ;;  %vm1271_vm11 = vcmp.ge.f32.partialorder %v12481_v57, %v12865_v10  ;;  %17761 = vst [vmem:[#allocation146_spill] sm:$0xff] %v12874_v43 }
 0x473   : > { %v1399_v24 = vsel %vm1271_vm11, -3e+38, %v12481_v57  ;;  %v8317_v6 = vsel %vm1271_vm11, 1.0, %v17419_v34 }
 0x474   : > { %1335 = vadd.xlane.f32.xlu1 %v8318_v15  ;;  %1429 = vmax.xlane.f32.xlu0 %v1399_v24 }
 0x475   : > { %v12876_v9 = vpop.xlane.xlu0 %1157 }
 0x476   : > { %17762 = vst [vmem:[#allocation147_spill] sm:$0xff] %v12876_v9 }
 0x48a   : > { %3399 = vrot.lane.b32.xlu0 %v12167_v51, %s11706_s17 }
 0x4a9   : > { %1333 = vadd.xlane.f32.xlu0 %v8317_v6 }
 0x4c5   : > { %v12878_v41 = vpop.xlane.xlu1 %1403 }
 0x4c6   : > { %17763 = vst [vmem:[#allocation148_spill] sm:$0xff] %v12878_v41  ;;  %vm1434_vm12 = vcmp.ge.f32.partialorder %v12395_v18, %v12878_v41 }
 0x4c7   : > { %v1562_v10 = vsel %vm1434_vm12, -3e+38, %v12395_v18  ;;  %v8320_v6 = vsel %vm1434_vm12, 1.0, %v17419_v34 }
 0x4c8   : > { %1579 = vmax.xlane.f32.xlu1 %v1562_v10 }
 0x4c9   : > { %v12883_v15 = vpop.xlane.xlu1 %1307  ;;  %v12885_v24 = vpop.xlane.xlu0 %1401 }
 0x4ca   : > { %17764 = vst [vmem:[#allocation149_spill] sm:$0xff] %v12883_v15  ;;  %17765 = vst [vmem:[#allocation150_spill] sm:$0xff] %v12885_v24  ;;  %vm1433_vm13 = vcmp.ge.f32.partialorder %v12404_v2, %v12885_v24 }
 0x4cb   : > { %v1561_v51 = vsel %vm1433_vm13, -3e+38, %v12404_v2  ;;  %v8319_v41 = vsel %vm1433_vm13, 1.0, %v17419_v34 }
 0x4cc   : > { %1483 = vadd.xlane.f32.xlu1 %v8320_v6  ;;  %1577 = vmax.xlane.f32.xlu0 %v1561_v51 }
 0x4cd   : > { %v12891_v9 = vpop.xlane.xlu1 %1407  ;;  %v12893_v43 = vpop.xlane.xlu0 %1305 }
 0x4ce   : > { %17766 = vst [vmem:[#allocation151_spill] sm:$0xff] %v12891_v9  ;;  %17767 = vst [vmem:[#allocation152_spill] sm:$0xff] %v12893_v43  ;;  %vm1436_vm14 = vcmp.ge.f32.partialorder %v12406_v5, %v12891_v9 }
 0x4cf   : > { %v1564_v10 = vsel %vm1436_vm14, -3e+38, %v12406_v5  ;;  %v8322_v51 = vsel %vm1436_vm14, 1.0, %v17419_v34 }
 0x4d0   : > { %1583 = vmax.xlane.f32.xlu1 %v1564_v10  ;;  %1481 = vadd.xlane.f32.xlu0 %v8319_v41 }
 0x4d1   : > { %v12899_v24 = vpop.xlane.xlu1 %1311  ;;  %v12901_v15 = vpop.xlane.xlu0 %1405 }
 0x4d2   : > { %17768 = vst [vmem:[#allocation153_spill] sm:$0xff] %v12899_v24  ;;  %17769 = vst [vmem:[#allocation154_spill] sm:$0xff] %v12901_v15  ;;  %vm1435_vm15 = vcmp.ge.f32.partialorder %v12416_v12, %v12901_v15 }
 0x4d3   : > { %v1563_v6 = vsel %vm1435_vm15, -3e+38, %v12416_v12  ;;  %v8321_v10 = vsel %vm1435_vm15, 1.0, %v17419_v34 }
 0x4d4   : > { %1487 = vadd.xlane.f32.xlu1 %v8322_v51  ;;  %1581 = vmax.xlane.f32.xlu0 %v1563_v6 }
 0x4d5   : > { %v12907_v9 = vpop.xlane.xlu1 %1411  ;;  %v12909_v43 = vpop.xlane.xlu0 %1309 }
 0x4d6   : > { %17770 = vst [vmem:[#allocation155_spill] sm:$0xff] %v12907_v9  ;;  %17771 = vst [vmem:[#allocation156_spill] sm:$0xff] %v12909_v43  ;;  %vm1438_vm3 = vcmp.ge.f32.partialorder %v12428_v4, %v12907_v9 }
 0x4d7   : > { %v1566_v41 = vsel %vm1438_vm3, -3e+38, %v12428_v4  ;;  %v8324_v51 = vsel %vm1438_vm3, 1.0, %v17419_v34 }
 0x4d8   : > { %1587 = vmax.xlane.f32.xlu1 %v1566_v41  ;;  %1485 = vadd.xlane.f32.xlu0 %v8321_v10 }
 0x4d9   : > { %v12915_v15 = vpop.xlane.xlu1 %1315  ;;  %v12917_v24 = vpop.xlane.xlu0 %1409 }
 0x4da   : > { %17772 = vst [vmem:[#allocation157_spill] sm:$0xff] %v12915_v15  ;;  %17773 = vst [vmem:[#allocation158_spill] sm:$0xff] %v12917_v24  ;;  %vm1437_vm4 = vcmp.ge.f32.partialorder %v12421_v23, %v12917_v24 }
 0x4db   : > { %v1565_v6 = vsel %vm1437_vm4, -3e+38, %v12421_v23  ;;  %v8323_v10 = vsel %vm1437_vm4, 1.0, %v17419_v34 }
 0x4dc   : > { %1491 = vadd.xlane.f32.xlu1 %v8324_v51  ;;  %1585 = vmax.xlane.f32.xlu0 %v1565_v6 }
 0x4dd   : > { %v12923_v9 = vpop.xlane.xlu1 %1415  ;;  %v12925_v43 = vpop.xlane.xlu0 %1313 }
 0x4de   : > { %17774 = vst [vmem:[#allocation159_spill] sm:$0xff] %v12923_v9  ;;  %17775 = vst [vmem:[#allocation160_spill] sm:$0xff] %v12925_v43  ;;  %vm1440_vm5 = vcmp.ge.f32.partialorder %v12440_v8, %v12923_v9 }
 0x4df   : > { %v1568_v41 = vsel %vm1440_vm5, -3e+38, %v12440_v8  ;;  %v8326_v51 = vsel %vm1440_vm5, 1.0, %v17419_v34 }
 0x4e0   : > { %1591 = vmax.xlane.f32.xlu1 %v1568_v41  ;;  %1489 = vadd.xlane.f32.xlu0 %v8323_v10 }
 0x4e1   : > { %v12931_v24 = vpop.xlane.xlu1 %1319  ;;  %v12933_v15 = vpop.xlane.xlu0 %1413 }
 0x4e2   : > { %17776 = vst [vmem:[#allocation161_spill] sm:$0xff] %v12931_v24  ;;  %17777 = vst [vmem:[#allocation162_spill] sm:$0xff] %v12933_v15  ;;  %vm1439_vm6 = vcmp.ge.f32.partialorder %v12433_v62, %v12933_v15 }
 0x4e3   : > { %v1567_v6 = vsel %vm1439_vm6, -3e+38, %v12433_v62  ;;  %v8325_v10 = vsel %vm1439_vm6, 1.0, %v17419_v34 }
 0x4e4   : > { %1495 = vadd.xlane.f32.xlu1 %v8326_v51  ;;  %1589 = vmax.xlane.f32.xlu0 %v1567_v6 }
 0x4e5   : > { %v12939_v9 = vpop.xlane.xlu1 %1419  ;;  %v12941_v43 = vpop.xlane.xlu0 %1317 }
 0x4e6   : > { %17778 = vst [vmem:[#allocation163_spill] sm:$0xff] %v12939_v9  ;;  %17779 = vst [vmem:[#allocation164_spill] sm:$0xff] %v12941_v43  ;;  %vm1442_vm7 = vcmp.ge.f32.partialorder %v12452_v30, %v12939_v9 }
 0x4e7   : > { %v1570_v41 = vsel %vm1442_vm7, -3e+38, %v12452_v30  ;;  %v8328_v51 = vsel %vm1442_vm7, 1.0, %v17419_v34 }
 0x4e8   : > { %1595 = vmax.xlane.f32.xlu1 %v1570_v41  ;;  %1493 = vadd.xlane.f32.xlu0 %v8325_v10 }
 0x4e9   : > { %v12947_v15 = vpop.xlane.xlu1 %1323  ;;  %v12949_v24 = vpop.xlane.xlu0 %1417 }
 0x4ea   : > { %17780 = vst [vmem:[#allocation165_spill] sm:$0xff] %v12947_v15  ;;  %17781 = vst [vmem:[#allocation166_spill] sm:$0xff] %v12949_v24  ;;  %vm1441_vm8 = vcmp.ge.f32.partialorder %v12445_v21, %v12949_v24 }
 0x4eb   : > { %v1569_v6 = vsel %vm1441_vm8, -3e+38, %v12445_v21  ;;  %v8327_v10 = vsel %vm1441_vm8, 1.0, %v17419_v34 }
 0x4ec   : > { %1499 = vadd.xlane.f32.xlu1 %v8328_v51  ;;  %1593 = vmax.xlane.f32.xlu0 %v1569_v6 }
 0x4ed   : > { %v12955_v9 = vpop.xlane.xlu1 %1423  ;;  %v12957_v43 = vpop.xlane.xlu0 %1321 }
 0x4ee   : > { %17782 = vst [vmem:[#allocation167_spill] sm:$0xff] %v12955_v9  ;;  %17783 = vst [vmem:[#allocation168_spill] sm:$0xff] %v12957_v43  ;;  %vm1444_vm9 = vcmp.ge.f32.partialorder %v12464_v45, %v12955_v9 }
 0x4ef   : > { %v1572_v41 = vsel %vm1444_vm9, -3e+38, %v12464_v45  ;;  %v8330_v51 = vsel %vm1444_vm9, 1.0, %v17419_v34 }
 0x4f0   : > { %1599 = vmax.xlane.f32.xlu1 %v1572_v41  ;;  %1497 = vadd.xlane.f32.xlu0 %v8327_v10 }
 0x4f1   : > { %v12963_v24 = vpop.xlane.xlu1 %1327  ;;  %v12965_v15 = vpop.xlane.xlu0 %1421 }
 0x4f2   : > { %17784 = vst [vmem:[#allocation169_spill] sm:$0xff] %v12963_v24  ;;  %17785 = vst [vmem:[#allocation170_spill] sm:$0xff] %v12965_v15  ;;  %vm1443_vm10 = vcmp.ge.f32.partialorder %v12457_v53, %v12965_v15 }
 0x4f3   : > { %v1571_v6 = vsel %vm1443_vm10, -3e+38, %v12457_v53  ;;  %v8329_v10 = vsel %vm1443_vm10, 1.0, %v17419_v34 }
 0x4f4   : > { %1503 = vadd.xlane.f32.xlu1 %v8330_v51  ;;  %1597 = vmax.xlane.f32.xlu0 %v1571_v6 }
 0x4f5   : > { %v12971_v9 = vpop.xlane.xlu1 %1427  ;;  %v12973_v43 = vpop.xlane.xlu0 %1325 }
 0x4f6   : > { %17786 = vst [vmem:[#allocation171_spill] sm:$0xff] %v12971_v9  ;;  %17787 = vst [vmem:[#allocation172_spill] sm:$0xff] %v12973_v43  ;;  %vm1446_vm11 = vcmp.ge.f32.partialorder %v12476_v33, %v12971_v9 }
 0x4f7   : > { %v1574_v41 = vsel %vm1446_vm11, -3e+38, %v12476_v33  ;;  %v8332_v51 = vsel %vm1446_vm11, 1.0, %v17419_v34 }
 0x4f8   : > { %1603 = vmax.xlane.f32.xlu1 %v1574_v41  ;;  %1501 = vadd.xlane.f32.xlu0 %v8329_v10 }
 0x4f9   : > { %v12979_v15 = vpop.xlane.xlu1 %1331  ;;  %v12981_v24 = vpop.xlane.xlu0 %1425 }
 0x4fa   : > { %17788 = vst [vmem:[#allocation173_spill] sm:$0xff] %v12979_v15  ;;  %17789 = vst [vmem:[#allocation174_spill] sm:$0xff] %v12981_v24  ;;  %vm1445_vm12 = vcmp.ge.f32.partialorder %v12469_v37, %v12981_v24 }
 0x4fb   : > { %v1573_v6 = vsel %vm1445_vm12, -3e+38, %v12469_v37  ;;  %v8331_v10 = vsel %vm1445_vm12, 1.0, %v17419_v34 }
 0x4fc   : > { %1507 = vadd.xlane.f32.xlu1 %v8332_v51  ;;  %1601 = vmax.xlane.f32.xlu0 %v1573_v6 }
 0x4fd   : > { %v12987_v9 = vpop.xlane.xlu1 %1431  ;;  %v12989_v43 = vpop.xlane.xlu0 %1329 }
 0x4fe   : > { %17790 = vst [vmem:[#allocation175_spill] sm:$0xff] %v12987_v9  ;;  %17791 = vst [vmem:[#allocation176_spill] sm:$0xff] %v12989_v43  ;;  %vm1448_vm13 = vcmp.ge.f32.partialorder %v12485_v63, %v12987_v9 }
 0x4ff   : > { %v1576_v41 = vsel %vm1448_vm13, -3e+38, %v12485_v63  ;;  %v8334_v51 = vsel %vm1448_vm13, 1.0, %v17419_v34 }
 0x500   : > { %1607 = vmax.xlane.f32.xlu1 %v1576_v41  ;;  %1505 = vadd.xlane.f32.xlu0 %v8331_v10 }
 0x501   : > { %v12995_v24 = vpop.xlane.xlu0 %1429  ;;  %v13002_v9 = vpop.xlane.xlu1 %1335 }
 0x502   : > { %17792 = vst [vmem:[#allocation177_spill] sm:$0xff] %v12995_v24  ;;  %vm1447_vm14 = vcmp.ge.f32.partialorder %v12481_v57, %v12995_v24  ;;  %17793 = vst [vmem:[#allocation178_spill] sm:$0xff] %v13002_v9 }
 0x503   : > { %v1575_v6 = vsel %vm1447_vm14, -3e+38, %v12481_v57  ;;  %v8333_v43 = vsel %vm1447_vm14, 1.0, %v17419_v34 }
 0x504   : > { %1511 = vadd.xlane.f32.xlu1 %v8334_v51  ;;  %1605 = vmax.xlane.f32.xlu0 %v1575_v6 }
 0x505   : > { %v13004_v15 = vpop.permute.xlu0 %3399 }
 0x506   : > { %17794 = vst [vmem:[#allocation179_spill] sm:$0xff] %v13004_v15 }
 0x508   : > { %1509 = vadd.xlane.f32.xlu0 %v8333_v43 }
 0x536   : > { %v13006_v41 = vpop.xlane.xlu0 %1333 }
 0x537   : > { %17795 = vst [vmem:[#allocation180_spill] sm:$0xff] %v13006_v41 }
 0x555   : > { %v13008_v10 = vpop.xlane.xlu1 %1579 }
 0x556   : > { %17796 = vst [vmem:[#allocation181_spill] sm:$0xff] %v13008_v10  ;;  %vm1610_vm15 = vcmp.ge.f32.partialorder %v12395_v18, %v13008_v10 }
 0x557   : > { %v1738_v24 = vsel %vm1610_vm15, -3e+38, %v12395_v18  ;;  %v8336_v43 = vsel %vm1610_vm15, 1.0, %v17419_v34 }
 0x558   : > { %1755 = vmax.xlane.f32.xlu1 %v1738_v24 }
 0x559   : > { %v13013_v14 = vpop.xlane.xlu1 %1483  ;;  %v13015_v51 = vpop.xlane.xlu0 %1577 }
 0x55a   : > { %17797 = vst [vmem:[#allocation182_spill] sm:$0xff] %v13013_v14  ;;  %17798 = vst [vmem:[#allocation183_spill] sm:$0xff] %v13015_v51  ;;  %vm1609_vm3 = vcmp.ge.f32.partialorder %v12404_v2, %v13015_v51 }
 0x55b   : > { %v8335_v6 = vsel %vm1609_vm3, 1.0, %v17419_v34  ;;  %v1737_v9 = vsel %vm1609_vm3, -3e+38, %v12404_v2 }
 0x55c   : > { %1659 = vadd.xlane.f32.xlu1 %v8336_v43  ;;  %1657 = vadd.xlane.f32.xlu0 %v8335_v6 }
 0x55d   : > { %v13021_v15 = vpop.xlane.xlu1 %1583  ;;  %v13023_v41 = vpop.xlane.xlu0 %1481 }
 0x55e   : > { %17799 = vst [vmem:[#allocation184_spill] sm:$0xff] %v13021_v15  ;;  %17800 = vst [vmem:[#allocation185_spill] sm:$0xff] %v13023_v41  ;;  %vm1612_vm4 = vcmp.ge.f32.partialorder %v12406_v5, %v13021_v15 }
 0x55f   : > { %v1740_v43 = vsel %vm1612_vm4, -3e+38, %v12406_v5 }
 0x560   : > { %1753 = vmax.xlane.f32.xlu1 %v1737_v9  ;;  %v8338_v9 = vsel %vm1612_vm4, 1.0, %v17419_v34 }
 0x561   : > { %v13028_v24 = vpop.xlane.xlu1 %1487  ;;  %v13030_v10 = vpop.xlane.xlu0 %1581 }
 0x562   : > { %17801 = vst [vmem:[#allocation186_spill] sm:$0xff] %v13028_v24  ;;  %17802 = vst [vmem:[#allocation187_spill] sm:$0xff] %v13030_v10  ;;  %vm1611_vm5 = vcmp.ge.f32.partialorder %v12416_v12, %v13030_v10 }
 0x563   : > { %v8337_v6 = vsel %vm1611_vm5, 1.0, %v17419_v34  ;;  %v1739_v10 = vsel %vm1611_vm5, -3e+38, %v12416_v12 }
 0x564   : > { %1759 = vmax.xlane.f32.xlu1 %v1740_v43  ;;  %1661 = vadd.xlane.f32.xlu0 %v8337_v6 }
 0x565   : > { %v13036_v51 = vpop.xlane.xlu1 %1587  ;;  %v13038_v41 = vpop.xlane.xlu0 %1485 }
 0x566   : > { %17803 = vst [vmem:[#allocation188_spill] sm:$0xff] %v13036_v51  ;;  %17804 = vst [vmem:[#allocation189_spill] sm:$0xff] %v13038_v41  ;;  %vm1614_vm7 = vcmp.ge.f32.partialorder %v12428_v4, %v13036_v51 }
 0x568   : > { %1663 = vadd.xlane.f32.xlu1 %v8338_v9  ;;  %v1742_v9 = vsel %vm1614_vm7, -3e+38, %v12428_v4 }
 0x569   : > { %v13041_v15 = vpop.xlane.xlu1 %1491  ;;  %v13043_v24 = vpop.xlane.xlu0 %1585 }
 0x56a   : > { %17805 = vst [vmem:[#allocation190_spill] sm:$0xff] %v13041_v15  ;;  %17806 = vst [vmem:[#allocation191_spill] sm:$0xff] %v13043_v24  ;;  %vm1613_vm6 = vcmp.ge.f32.partialorder %v12421_v23, %v13043_v24 }
 0x56b   : > { %v1741_v14 = vsel %vm1613_vm6, -3e+38, %v12421_v23  ;;  %v8339_v15 = vsel %vm1613_vm6, 1.0, %v17419_v34 }
 0x56c   : > { %1757 = vmax.xlane.f32.xlu1 %v1739_v10  ;;  %1761 = vmax.xlane.f32.xlu0 %v1741_v14  ;;  %v8340_v14 = vsel %vm1614_vm7, 1.0, %v17419_v34 }
 0x56d   : > { %v13051_v43 = vpop.xlane.xlu1 %1591  ;;  %v13053_v6 = vpop.xlane.xlu0 %1489 }
 0x56e   : > { %17807 = vst [vmem:[#allocation192_spill] sm:$0xff] %v13051_v43  ;;  %17808 = vst [vmem:[#allocation193_spill] sm:$0xff] %v13053_v6  ;;  %vm1616_vm8 = vcmp.ge.f32.partialorder %v12440_v8, %v13051_v43 }
 0x56f   : > { %v1744_v51 = vsel %vm1616_vm8, -3e+38, %v12440_v8 }
 0x570   : > { %1763 = vmax.xlane.f32.xlu1 %v1742_v9  ;;  %1665 = vadd.xlane.f32.xlu0 %v8339_v15  ;;  %v8342_v15 = vsel %vm1616_vm8, 1.0, %v17419_v34 }
 0x571   : > { %v13059_v24 = vpop.xlane.xlu1 %1495  ;;  %v13061_v10 = vpop.xlane.xlu0 %1589 }
 0x572   : > { %17809 = vst [vmem:[#allocation194_spill] sm:$0xff] %v13059_v24  ;;  %17810 = vst [vmem:[#allocation195_spill] sm:$0xff] %v13061_v10  ;;  %vm1615_vm9 = vcmp.ge.f32.partialorder %v12433_v62, %v13061_v10 }
 0x573   : > { %v1743_v43 = vsel %vm1615_vm9, -3e+38, %v12433_v62  ;;  %v8341_v10 = vsel %vm1615_vm9, 1.0, %v17419_v34 }
 0x574   : > { %1667 = vadd.xlane.f32.xlu1 %v8340_v14  ;;  %1767 = vmax.xlane.f32.xlu0 %v1744_v51 }
 0x575   : > { %v13067_v6 = vpop.xlane.xlu1 %1595  ;;  %v13069_v9 = vpop.xlane.xlu0 %1493 }
 0x576   : > { %17811 = vst [vmem:[#allocation196_spill] sm:$0xff] %v13067_v6  ;;  %17812 = vst [vmem:[#allocation197_spill] sm:$0xff] %v13069_v9  ;;  %vm1618_vm10 = vcmp.ge.f32.partialorder %v12452_v30, %v13067_v6 }
 0x577   : > { %v1746_v51 = vsel %vm1618_vm10, -3e+38, %v12452_v30 }
 0x578   : > { %1671 = vadd.xlane.f32.xlu1 %v8342_v15  ;;  %1765 = vmax.xlane.f32.xlu0 %v1743_v43  ;;  %v8344_v43 = vsel %vm1618_vm10, 1.0, %v17419_v34 }
 0x579   : > { %v13075_v24 = vpop.xlane.xlu1 %1499  ;;  %v13077_v14 = vpop.xlane.xlu0 %1593 }
 0x57a   : > { %17813 = vst [vmem:[#allocation198_spill] sm:$0xff] %v13075_v24  ;;  %17814 = vst [vmem:[#allocation199_spill] sm:$0xff] %v13077_v14  ;;  %vm1617_vm11 = vcmp.ge.f32.partialorder %v12445_v21, %v13077_v14 }
 0x57b   : > { %v8343_v6 = vsel %vm1617_vm11, 1.0, %v17419_v34 }
 0x57c   : > { %1771 = vmax.xlane.f32.xlu1 %v1746_v51  ;;  %1669 = vadd.xlane.f32.xlu0 %v8341_v10  ;;  %v1745_v10 = vsel %vm1617_vm11, -3e+38, %v12445_v21 }
 0x57d   : > { %v13083_v9 = vpop.xlane.xlu1 %1599  ;;  %v13085_v15 = vpop.xlane.xlu0 %1497 }
 0x57e   : > { %17815 = vst [vmem:[#allocation200_spill] sm:$0xff] %v13083_v9  ;;  %17816 = vst [vmem:[#allocation201_spill] sm:$0xff] %v13085_v15  ;;  %vm1620_vm13 = vcmp.ge.f32.partialorder %v12464_v45, %v13083_v9 }
 0x57f   : > { %v1748_v14 = vsel %vm1620_vm13, -3e+38, %v12464_v45 }
 0x580   : > { %1675 = vadd.xlane.f32.xlu1 %v8344_v43  ;;  %1673 = vadd.xlane.f32.xlu0 %v8343_v6 }
 0x581   : > { %v13089_v24 = vpop.xlane.xlu1 %1503  ;;  %v13091_v41 = vpop.xlane.xlu0 %1597 }
 0x582   : > { %17817 = vst [vmem:[#allocation202_spill] sm:$0xff] %v13089_v24  ;;  %17818 = vst [vmem:[#allocation203_spill] sm:$0xff] %v13091_v41  ;;  %vm1619_vm12 = vcmp.ge.f32.partialorder %v12457_v53, %v13091_v41 }
 0x583   : > { %v8345_v51 = vsel %vm1619_vm12, 1.0, %v17419_v34 }
 0x584   : > { %1769 = vmax.xlane.f32.xlu1 %v1745_v10  ;;  %1677 = vadd.xlane.f32.xlu0 %v8345_v51  ;;  %v8346_v51 = vsel %vm1620_vm13, 1.0, %v17419_v34 }
 0x585   : > { %v13102_v6 = vpop.xlane.xlu1 %1603  ;;  %v13104_v43 = vpop.xlane.xlu0 %1501 }
 0x586   : > { %17819 = vst [vmem:[#allocation204_spill] sm:$0xff] %v13102_v6  ;;  %17820 = vst [vmem:[#allocation205_spill] sm:$0xff] %v13104_v43  ;;  %vm1622_vm14 = vcmp.ge.f32.partialorder %v12476_v33, %v13102_v6 }
 0x587   : > { %v1750_v24 = vsel %vm1622_vm14, -3e+38, %v12476_v33 }
 0x588   : > { %1775 = vmax.xlane.f32.xlu1 %v1748_v14  ;;  %1779 = vmax.xlane.f32.xlu0 %v1750_v24  ;;  %v1747_v24 = vsel %vm1619_vm12, -3e+38, %v12457_v53 }
 0x589   : > { %v13113_v10 = vpop.xlane.xlu0 %1601  ;;  %v13124_v15 = vpop.xlane.xlu1 %1507 }
 0x58a   : > { %17821 = vst [vmem:[#allocation206_spill] sm:$0xff] %v13113_v10  ;;  %vm1621_vm15 = vcmp.ge.f32.partialorder %v12469_v37, %v13113_v10  ;;  %17823 = vst [vmem:[#allocation208_spill] sm:$0xff] %v13124_v15 }
 0x58b   : > { %v8347_v9 = vsel %vm1621_vm15, 1.0, %v17419_v34 }
 0x58c   : > { %1679 = vadd.xlane.f32.xlu1 %v8346_v51  ;;  %1681 = vadd.xlane.f32.xlu0 %v8347_v9  ;;  %v8348_v9 = vsel %vm1622_vm14, 1.0, %v17419_v34 }
 0x58d   : > { %v13122_v43 = vpop.xlane.xlu0 %1505 }
 0x58e   : > { %17822 = vst [vmem:[#allocation207_spill] sm:$0xff] %v13122_v43  ;;  %v13139_v43 = vpop.xlane.xlu1 %1607 }
 0x58f   : > { %17825 = vst [vmem:[#allocation210_spill] sm:$0xff] %v13139_v43  ;;  %vm1624_vm4 = vcmp.ge.f32.partialorder %v12485_v63, %v13139_v43 }
 0x590   : > { %1773 = vmax.xlane.f32.xlu1 %v1747_v24  ;;  %v1749_v24 = vsel %vm1621_vm15, -3e+38, %v12469_v37  ;;  %v8350_v6 = vsel %vm1624_vm4, 1.0, %v17419_v34 }
 0x591   : > { %v13130_v14 = vpop.xlane.xlu0 %1605 }
 0x592   : > { %17824 = vst [vmem:[#allocation209_spill] sm:$0xff] %v13130_v14  ;;  %vm1623_vm3 = vcmp.ge.f32.partialorder %v12481_v57, %v13130_v14  ;;  %v1752_v14 = vsel %vm1624_vm4, -3e+38, %v12485_v63 }
 0x593   : > { %v8349_v51 = vsel %vm1623_vm3, 1.0, %v17419_v34 }
 0x594   : > { %1683 = vadd.xlane.f32.xlu1 %v8348_v9  ;;  %1685 = vadd.xlane.f32.xlu0 %v8349_v51  ;;  %v1751_v9 = vsel %vm1623_vm3, -3e+38, %v12481_v57  ;;  %v13150_v51 = vpop.xlane.xlu1 %1511 }
 0x595   : > { %17826 = vst [vmem:[#allocation211_spill] sm:$0xff] %v13150_v51  ;;  %v13160_v10 = vpop.xlane.xlu0 %1509 }
 0x596   : > { %17829 = vst [vmem:[#allocation214_spill] sm:$0xff] %v13160_v10 }
 0x598   : > { %1777 = vmax.xlane.f32.xlu1 %v1749_v24 }
 0x59c   : > { %1783 = vmax.xlane.f32.xlu1 %v1752_v14 }
 0x5a0   : > { %1687 = vadd.xlane.f32.xlu1 %v8350_v6 }
 0x5a4   : > { %1781 = vmax.xlane.f32.xlu1 %v1751_v9 }
 0x5e5   : > { %v13152_v41 = vpop.xlane.xlu1 %1755 }
 0x5e6   : > { %17827 = vst [vmem:[#allocation212_spill] sm:$0xff] %v13152_v41  ;;  %vm1786_vm5 = vcmp.ge.f32.partialorder %v12395_v18, %v13152_v41 }
 0x5e7   : > { %v8352_v24 = vsel %vm1786_vm5, 1.0, %v17419_v34  ;;  %v1914_v43 = vsel %vm1786_vm5, -3e+38, %v12395_v18 }
 0x5e8   : > { %1835 = vadd.xlane.f32.xlu1 %v8352_v24  ;;  %1931 = vmax.xlane.f32.xlu0 %v1914_v43 }
 0x5e9   : > { %v13158_v14 = vpop.xlane.xlu1 %1659  ;;  %v13168_v15 = vpop.xlane.xlu0 %1657 }
 0x5ea   : > { %17828 = vst [vmem:[#allocation213_spill] sm:$0xff] %v13158_v14  ;;  %17831 = vst [vmem:[#allocation216_spill] sm:$0xff] %v13168_v15 }
 0x5ed   : > { %v13162_v6 = vpop.xlane.xlu1 %1753 }
 0x5ee   : > { %17830 = vst [vmem:[#allocation215_spill] sm:$0xff] %v13162_v6  ;;  %vm1785_vm6 = vcmp.ge.f32.partialorder %v12404_v2, %v13162_v6 }
 0x5ef   : > { %v1913_v9 = vsel %vm1785_vm6, -3e+38, %v12404_v2  ;;  %v8351_v51 = vsel %vm1785_vm6, 1.0, %v17419_v34 }
 0x5f0   : > { %1929 = vmax.xlane.f32.xlu1 %v1913_v9  ;;  %1833 = vadd.xlane.f32.xlu0 %v8351_v51 }
 0x5f1   : > { %v13170_v41 = vpop.xlane.xlu1 %1759  ;;  %v13175_v24 = vpop.xlane.xlu0 %1661 }
 0x5f2   : > { %17832 = vst [vmem:[#allocation217_spill] sm:$0xff] %v13170_v41  ;;  %vm1788_vm7 = vcmp.ge.f32.partialorder %v12406_v5, %v13170_v41  ;;  %17833 = vst [vmem:[#allocation218_spill] sm:$0xff] %v13175_v24 }
 0x5f3   : > { %v1916_v43 = vsel %vm1788_vm7, -3e+38, %v12406_v5  ;;  %v8354_v6 = vsel %vm1788_vm7, 1.0, %v17419_v34 }
 0x5f4   : > { %1935 = vmax.xlane.f32.xlu1 %v1916_v43 }
 0x5f5   : > { %v13177_v10 = vpop.xlane.xlu1 %1663 }
 0x5f6   : > { %17834 = vst [vmem:[#allocation219_spill] sm:$0xff] %v13177_v10 }
 0x5f8   : > { %1839 = vadd.xlane.f32.xlu1 %v8354_v6  ;;  %v17839_v6 = vmov 0.0  }
 0x5f9   : > { %v13180_v14 = vpop.xlane.xlu1 %1757  ;;  %v13182_v51 = vpop.xlane.xlu0 %1761 }
 0x5fa   : > { %17835 = vst [vmem:[#allocation220_spill] sm:$0xff] %v13180_v14  ;;  %17836 = vst [vmem:[#allocation221_spill] sm:$0xff] %v13182_v51  ;;  %vm1787_vm8 = vcmp.ge.f32.partialorder %v12416_v12, %v13180_v14  ;;  %vm1789_vm10 = vcmp.ge.f32.partialorder %v12421_v23, %v13182_v51 }
 0x5fb   : > { %v1915_v9 = vsel %vm1787_vm8, -3e+38, %v12416_v12  ;;  %v8353_v24 = vsel %vm1787_vm8, 1.0, %v17839_v6 }
 0x5fc   : > { %1933 = vmax.xlane.f32.xlu0 %v1915_v9 }
 0x5fd   : > { %v13187_v41 = vpop.xlane.xlu1 %1763  ;;  %v13189_v43 = vpop.xlane.xlu0 %1665 }
 0x5fe   : > { %17837 = vst [vmem:[#allocation222_spill] sm:$0xff] %v13187_v41  ;;  %17838 = vst [vmem:[#allocation223_spill] sm:$0xff] %v13189_v43  ;;  %vm1790_vm9 = vcmp.ge.f32.partialorder %v12428_v4, %v13187_v41  ;;  %v1917_v43 = vsel %vm1789_vm10, -3e+38, %v12421_v23 }
 0x5ff   : > { %v1918_v34 = vsel %vm1790_vm9, -3e+38, %v12428_v4  ;;  %v8356_v9 = vsel %vm1790_vm9, 1.0, %v17839_v6 }
 0x600   : > { %1939 = vmax.xlane.f32.xlu1 %v1918_v34  ;;  %1837 = vadd.xlane.f32.xlu0 %v8353_v24  ;;  %v8355_v24 = vsel %vm1789_vm10, 1.0, %v17839_v6 }
 0x601   : > { %v13197_v14 = vpop.xlane.xlu1 %1667  ;;  %v13199_v10 = vpop.xlane.xlu0 %1767 }
 0x602   : > { %17840 = vst [vmem:[#allocation224_spill] sm:$0xff] %v13197_v14  ;;  %17841 = vst [vmem:[#allocation225_spill] sm:$0xff] %v13199_v10  ;;  %vm1792_vm11 = vcmp.ge.f32.partialorder %v12440_v8, %v13199_v10 }
 0x603   : > { %v1920_v51 = vsel %vm1792_vm11, -3e+38, %v12440_v8 }
 0x604   : > { %1843 = vadd.xlane.f32.xlu1 %v8356_v9  ;;  %1937 = vmax.xlane.f32.xlu0 %v1917_v43  ;;  %v8358_v43 = vsel %vm1792_vm11, 1.0, %v17839_v6 }
 0x605   : > { %v13205_v41 = vpop.xlane.xlu1 %1671  ;;  %v13207_v34 = vpop.xlane.xlu0 %1765 }
 0x606   : > { %17842 = vst [vmem:[#allocation226_spill] sm:$0xff] %v13205_v41  ;;  %17843 = vst [vmem:[#allocation227_spill] sm:$0xff] %v13207_v34  ;;  %vm1791_vm12 = vcmp.ge.f32.partialorder %v12433_v62, %v13207_v34 }
 0x607   : > { %v1919_v10 = vsel %vm1791_vm12, -3e+38, %v12433_v62  ;;  %v8357_v34 = vsel %vm1791_vm12, 1.0, %v17839_v6 }
 0x608   : > { %1841 = vadd.xlane.f32.xlu0 %v8355_v24  ;;  %1943 = vmax.xlane.f32.xlu1 %v1920_v51 }
 0x609   : > { %v13213_v14 = vpop.xlane.xlu1 %1771  ;;  %v13215_v9 = vpop.xlane.xlu0 %1669 }
 0x60a   : > { %17844 = vst [vmem:[#allocation228_spill] sm:$0xff] %v13213_v14  ;;  %17845 = vst [vmem:[#allocation229_spill] sm:$0xff] %v13215_v9  ;;  %vm1794_vm13 = vcmp.ge.f32.partialorder %v12452_v30, %v13213_v14 }
 0x60b   : > { %v1922_v51 = vsel %vm1794_vm13, -3e+38, %v12452_v30 }
 0x60c   : > { %1847 = vadd.xlane.f32.xlu1 %v8358_v43  ;;  %1941 = vmax.xlane.f32.xlu0 %v1919_v10  ;;  %v8360_v10 = vsel %vm1794_vm13, 1.0, %v17839_v6 }
 0x60d   : > { %v13221_v41 = vpop.xlane.xlu1 %1675  ;;  %v13223_v24 = vpop.xlane.xlu0 %1673 }
 0x60e   : > { %17846 = vst [vmem:[#allocation230_spill] sm:$0xff] %v13221_v41  ;;  %17847 = vst [vmem:[#allocation231_spill] sm:$0xff] %v13223_v24 }
 0x610   : > { %1947 = vmax.xlane.f32.xlu1 %v1922_v51  ;;  %1845 = vadd.xlane.f32.xlu0 %v8357_v34 }
 0x611   : > { %v13227_v9 = vpop.xlane.xlu1 %1769  ;;  %v13231_v43 = vpop.xlane.xlu0 %1677 }
 0x612   : > { %17848 = vst [vmem:[#allocation232_spill] sm:$0xff] %v13227_v9  ;;  %vm1793_vm14 = vcmp.ge.f32.partialorder %v12445_v21, %v13227_v9  ;;  %17849 = vst [vmem:[#allocation233_spill] sm:$0xff] %v13231_v43 }
 0x613   : > { %v1921_v14 = vsel %vm1793_vm14, -3e+38, %v12445_v21  ;;  %v8359_v51 = vsel %vm1793_vm14, 1.0, %v17839_v6 }
 0x614   : > { %1851 = vadd.xlane.f32.xlu1 %v8360_v10  ;;  %1945 = vmax.xlane.f32.xlu0 %v1921_v14 }
 0x615   : > { %v13235_v24 = vpop.xlane.xlu1 %1775  ;;  %v13241_v9 = vpop.xlane.xlu0 %1779 }
 0x616   : > { %17850 = vst [vmem:[#allocation234_spill] sm:$0xff] %v13235_v24  ;;  %vm1796_vm15 = vcmp.ge.f32.partialorder %v12464_v45, %v13235_v24  ;;  %17851 = vst [vmem:[#allocation235_spill] sm:$0xff] %v13241_v9  ;;  %vm1798_vm3 = vcmp.ge.f32.partialorder %v12476_v33, %v13241_v9 }
 0x617   : > { %v1924_v34 = vsel %vm1796_vm15, -3e+38, %v12464_v45  ;;  %v8362_v41 = vsel %vm1796_vm15, 1.0, %v17839_v6 }
 0x618   : > { %1951 = vmax.xlane.f32.xlu1 %v1924_v34  ;;  %1849 = vadd.xlane.f32.xlu0 %v8359_v51  ;;  %v1926_v34 = vsel %vm1798_vm3, -3e+38, %v12476_v33 }
 0x619   : > { %v13243_v43 = vpop.xlane.xlu1 %1679 }
 0x61a   : > { %17852 = vst [vmem:[#allocation236_spill] sm:$0xff] %v13243_v43 }
 0x61c   : > { %1855 = vadd.xlane.f32.xlu1 %v8362_v41  ;;  %v8364_v41 = vsel %vm1798_vm3, 1.0, %v17839_v6 }
 0x61d   : > { %v13248_v14 = vpop.xlane.xlu1 %1773 }
 0x61e   : > { %17853 = vst [vmem:[#allocation237_spill] sm:$0xff] %v13248_v14  ;;  %vm1795_vm4 = vcmp.ge.f32.partialorder %v12457_v53, %v13248_v14 }
 0x61f   : > { %v1923_v10 = vsel %vm1795_vm4, -3e+38, %v12457_v53  ;;  %v8361_v24 = vsel %vm1795_vm4, 1.0, %v17839_v6 }
 0x620   : > { %1949 = vmax.xlane.f32.xlu0 %v1923_v10  ;;  %1955 = vmax.xlane.f32.xlu1 %v1926_v34 }
 0x621   : > { %v13254_v51 = vpop.xlane.xlu1 %1683 }
 0x622   : > { %17854 = vst [vmem:[#allocation238_spill] sm:$0xff] %v13254_v51  ;;  %v13278_v51 = vpop.xlane.xlu0 %1681 }
 0x623   : > { %17859 = vst [vmem:[#allocation243_spill] sm:$0xff] %v13278_v51 }
 0x624   : > { %1853 = vadd.xlane.f32.xlu0 %v8361_v24  ;;  %1859 = vadd.xlane.f32.xlu1 %v8364_v41 }
 0x625   : > { %v13258_v9 = vpop.xlane.xlu1 %1777 }
 0x626   : > { %17855 = vst [vmem:[#allocation239_spill] sm:$0xff] %v13258_v9  ;;  %vm1797_vm5 = vcmp.ge.f32.partialorder %v12469_v37, %v13258_v9 }
 0x627   : > { %v1925_v14 = vsel %vm1797_vm5, -3e+38, %v12469_v37  ;;  %v8363_v10 = vsel %vm1797_vm5, 1.0, %v17839_v6 }
 0x628   : > { %1953 = vmax.xlane.f32.xlu0 %v1925_v14 }
 0x629   : > { %v13263_v43 = vpop.xlane.xlu1 %1783 }
 0x62a   : > { %17856 = vst [vmem:[#allocation240_spill] sm:$0xff] %v13263_v43  ;;  %vm1800_vm6 = vcmp.ge.f32.partialorder %v12485_v63, %v13263_v43 }
 0x62b   : > { %v1928_v34 = vsel %vm1800_vm6, -3e+38, %v12485_v63  ;;  %v8366_v41 = vsel %vm1800_vm6, 1.0, %v17839_v6 }
 0x62c   : > { %1857 = vadd.xlane.f32.xlu0 %v8363_v10  ;;  %1959 = vmax.xlane.f32.xlu1 %v1928_v34  ;;  %v13280_v10 = vpop.xlane.xlu0 %1685 }
 0x62d   : > { %v13269_v24 = vpop.xlane.xlu1 %1687  ;;  %17860 = vst [vmem:[#allocation244_spill] sm:$0xff] %v13280_v10 }
 0x62e   : > { %17857 = vst [vmem:[#allocation241_spill] sm:$0xff] %v13269_v24 }
 0x630   : > { %1863 = vadd.xlane.f32.xlu1 %v8366_v41 }
 0x631   : > { %v13272_v9 = vpop.xlane.xlu1 %1781 }
 0x632   : > { %17858 = vst [vmem:[#allocation242_spill] sm:$0xff] %v13272_v9  ;;  %vm1799_vm7 = vcmp.ge.f32.partialorder %v12481_v57, %v13272_v9 }
 0x633   : > { %v8365_v14 = vsel %vm1799_vm7, 1.0, %v17839_v6  ;;  %v1927_v43 = vsel %vm1799_vm7, -3e+38, %v12481_v57 }
 0x634   : > { %1861 = vadd.xlane.f32.xlu0 %v8365_v14  ;;  %1957 = vmax.xlane.f32.xlu1 %v1927_v43 }
 0x675   : > { %v13282_v34 = vpop.xlane.xlu0 %1931  ;;  %v13288_v9 = vpop.xlane.xlu1 %1835 }
 0x676   : > { %17861 = vst [vmem:[#allocation245_spill] sm:$0xff] %v13282_v34  ;;  %vm1962_vm8 = vcmp.ge.f32.partialorder %v12395_v18, %v13282_v34 }
 0x677   : > { %v2090_v41 = vsel %vm1962_vm8, -3e+38, %v12395_v18  ;;  %v8368_v24 = vsel %vm1962_vm8, 1.0, %v17839_v6 }
 0x678   : > { %2107 = vmax.xlane.f32.xlu0 %v2090_v41  ;;  %2011 = vadd.xlane.f32.xlu1 %v8368_v24 }
 0x67d   : > { %v13290_v15 = vpop.xlane.xlu1 %1929  ;;  %v13301_v41 = vpop.xlane.xlu0 %1833 }
 0x67e   : > { %17862 = vst [vmem:[#allocation246_spill] sm:$0xff] %v13290_v15  ;;  %vm1961_vm9 = vcmp.ge.f32.partialorder %v12404_v2, %v13290_v15  ;;  %17864 = vst [vmem:[#allocation248_spill] sm:$0xff] %v13301_v41 }
 0x67f   : > { %v8367_v43 = vsel %vm1961_vm9, 1.0, %v17839_v6  ;;  %v2089_v14 = vsel %vm1961_vm9, -3e+38, %v12404_v2 }
 0x680   : > { %2009 = vadd.xlane.f32.xlu0 %v8367_v43  ;;  %2105 = vmax.xlane.f32.xlu1 %v2089_v14 }
 0x681   : > { %v13296_v10 = vpop.xlane.xlu1 %1935 }
 0x682   : > { %17863 = vst [vmem:[#allocation247_spill] sm:$0xff] %v13296_v10  ;;  %vm1964_vm10 = vcmp.ge.f32.partialorder %v12406_v5, %v13296_v10 }
 0x683   : > { %v2092_v24 = vsel %vm1964_vm10, -3e+38, %v12406_v5  ;;  %v8370_v51 = vsel %vm1964_vm10, 1.0, %v17839_v6 }
 0x684   : > { %2111 = vmax.xlane.f32.xlu1 %v2092_v24 }
 0x685   : > { %v13304_v15 = vpop.xlane.xlu1 %1839 }
 0x686   : > { %17865 = vst [vmem:[#allocation249_spill] sm:$0xff] %v13304_v15 }
 0x688   : > { %2015 = vadd.xlane.f32.xlu1 %v8370_v51 }
 0x689   : > { %v13306_v34 = vpop.xlane.xlu0 %1933 }
 0x68a   : > { %17866 = vst [vmem:[#allocation250_spill] sm:$0xff] %v13306_v34  ;;  %vm1963_vm11 = vcmp.ge.f32.partialorder %v12416_v12, %v13306_v34 }
 0x68b   : > { %v2091_v43 = vsel %vm1963_vm11, -3e+38, %v12416_v12  ;;  %v8369_v51 = vsel %vm1963_vm11, 1.0, %v17839_v6 }
 0x68c   : > { %2109 = vmax.xlane.f32.xlu0 %v2091_v43 }
 0x68d   : > { %v13311_v14 = vpop.xlane.xlu1 %1939  ;;  %v13313_v10 = vpop.xlane.xlu0 %1837 }
 0x68e   : > { %17867 = vst [vmem:[#allocation251_spill] sm:$0xff] %v13311_v14  ;;  %17868 = vst [vmem:[#allocation252_spill] sm:$0xff] %v13313_v10  ;;  %vm1966_vm12 = vcmp.ge.f32.partialorder %v12428_v4, %v13311_v14 }
 0x68f   : > { %v2094_v24 = vsel %vm1966_vm12, -3e+38, %v12428_v4  ;;  %v8372_v43 = vsel %vm1966_vm12, 1.0, %v17839_v6 }
 0x690   : > { %2115 = vmax.xlane.f32.xlu1 %v2094_v24  ;;  %2013 = vadd.xlane.f32.xlu0 %v8369_v51 }
 0x691   : > { %v13319_v15 = vpop.xlane.xlu1 %1843  ;;  %v13321_v41 = vpop.xlane.xlu0 %1937 }
 0x692   : > { %17869 = vst [vmem:[#allocation253_spill] sm:$0xff] %v13319_v15  ;;  %17870 = vst [vmem:[#allocation254_spill] sm:$0xff] %v13321_v41  ;;  %vm1965_vm13 = vcmp.ge.f32.partialorder %v12421_v23, %v13321_v41 }
 0x693   : > { %v2093_v34 = vsel %vm1965_vm13, -3e+38, %v12421_v23  ;;  %v8371_v51 = vsel %vm1965_vm13, 1.0, %v17839_v6 }
 0x694   : > { %2019 = vadd.xlane.f32.xlu1 %v8372_v43  ;;  %2113 = vmax.xlane.f32.xlu0 %v2093_v34 }
 0x695   : > { %v13327_v14 = vpop.xlane.xlu1 %1943  ;;  %v13329_v10 = vpop.xlane.xlu0 %1841 }
 0x696   : > { %17871 = vst [vmem:[#allocation255_spill] sm:$0xff] %v13327_v14  ;;  %17872 = vst [vmem:[#allocation256_spill] sm:$0xff] %v13329_v10  ;;  %vm1968_vm14 = vcmp.ge.f32.partialorder %v12440_v8, %v13327_v14 }
 0x697   : > { %v2096_v24 = vsel %vm1968_vm14, -3e+38, %v12440_v8  ;;  %v8374_v34 = vsel %vm1968_vm14, 1.0, %v17839_v6 }
 0x698   : > { %2119 = vmax.xlane.f32.xlu1 %v2096_v24  ;;  %2017 = vadd.xlane.f32.xlu0 %v8371_v51 }
 0x699   : > { %v13335_v41 = vpop.xlane.xlu1 %1847  ;;  %v13337_v15 = vpop.xlane.xlu0 %1941 }
 0x69a   : > { %17873 = vst [vmem:[#allocation257_spill] sm:$0xff] %v13335_v41  ;;  %17874 = vst [vmem:[#allocation258_spill] sm:$0xff] %v13337_v15  ;;  %vm1967_vm15 = vcmp.ge.f32.partialorder %v12433_v62, %v13337_v15 }
 0x69b   : > { %v2095_v43 = vsel %vm1967_vm15, -3e+38, %v12433_v62  ;;  %v8373_v51 = vsel %vm1967_vm15, 1.0, %v17839_v6 }
 0x69c   : > { %2023 = vadd.xlane.f32.xlu1 %v8374_v34  ;;  %2117 = vmax.xlane.f32.xlu0 %v2095_v43 }
 0x69d   : > { %v13343_v14 = vpop.xlane.xlu1 %1947  ;;  %v13345_v10 = vpop.xlane.xlu0 %1845 }
 0x69e   : > { %17875 = vst [vmem:[#allocation259_spill] sm:$0xff] %v13343_v14  ;;  %17876 = vst [vmem:[#allocation260_spill] sm:$0xff] %v13345_v10  ;;  %vm1970_vm3 = vcmp.ge.f32.partialorder %v12452_v30, %v13343_v14 }
 0x69f   : > { %v2098_v24 = vsel %vm1970_vm3, -3e+38, %v12452_v30  ;;  %v8376_v34 = vsel %vm1970_vm3, 1.0, %v17839_v6 }
 0x6a0   : > { %2123 = vmax.xlane.f32.xlu1 %v2098_v24  ;;  %2021 = vadd.xlane.f32.xlu0 %v8373_v51 }
 0x6a1   : > { %v13351_v15 = vpop.xlane.xlu1 %1851  ;;  %v13353_v41 = vpop.xlane.xlu0 %1945 }
 0x6a2   : > { %17877 = vst [vmem:[#allocation261_spill] sm:$0xff] %v13351_v15  ;;  %17878 = vst [vmem:[#allocation262_spill] sm:$0xff] %v13353_v41  ;;  %vm1969_vm4 = vcmp.ge.f32.partialorder %v12445_v21, %v13353_v41 }
 0x6a3   : > { %v2097_v43 = vsel %vm1969_vm4, -3e+38, %v12445_v21  ;;  %v8375_v51 = vsel %vm1969_vm4, 1.0, %v17839_v6 }
 0x6a4   : > { %2027 = vadd.xlane.f32.xlu1 %v8376_v34  ;;  %2121 = vmax.xlane.f32.xlu0 %v2097_v43 }
 0x6a5   : > { %v13359_v14 = vpop.xlane.xlu1 %1951  ;;  %v13365_v15 = vpop.xlane.xlu0 %1849 }
 0x6a6   : > { %17879 = vst [vmem:[#allocation263_spill] sm:$0xff] %v13359_v14  ;;  %vm1972_vm5 = vcmp.ge.f32.partialorder %v12464_v45, %v13359_v14  ;;  %17880 = vst [vmem:[#allocation264_spill] sm:$0xff] %v13365_v15 }
 0x6a7   : > { %v2100_v24 = vsel %vm1972_vm5, -3e+38, %v12464_v45  ;;  %v8378_v10 = vsel %vm1972_vm5, 1.0, %v17839_v6 }
 0x6a8   : > { %2127 = vmax.xlane.f32.xlu1 %v2100_v24  ;;  %2025 = vadd.xlane.f32.xlu0 %v8375_v51 }
 0x6a9   : > { %v13367_v41 = vpop.xlane.xlu1 %1855 }
 0x6aa   : > { %17881 = vst [vmem:[#allocation265_spill] sm:$0xff] %v13367_v41 }
 0x6ac   : > { %2031 = vadd.xlane.f32.xlu1 %v8378_v10 }
 0x6ad   : > { %v13370_v34 = vpop.xlane.xlu1 %1955  ;;  %v13372_v43 = vpop.xlane.xlu0 %1949 }
 0x6ae   : > { %17882 = vst [vmem:[#allocation266_spill] sm:$0xff] %v13370_v34  ;;  %17883 = vst [vmem:[#allocation267_spill] sm:$0xff] %v13372_v43  ;;  %vm1974_vm6 = vcmp.ge.f32.partialorder %v12476_v33, %v13370_v34  ;;  %vm1971_vm7 = vcmp.ge.f32.partialorder %v12457_v53, %v13372_v43 }
 0x6af   : > { %v2102_v24 = vsel %vm1974_vm6, -3e+38, %v12476_v33  ;;  %v2099_v51 = vsel %vm1971_vm7, -3e+38, %v12457_v53  ;;  %v8380_v10 = vsel %vm1974_vm6, 1.0, %v17839_v6  ;;  %v8377_v41 = vsel %vm1971_vm7, 1.0, %v17839_v6 }
 0x6b0   : > { %2131 = vmax.xlane.f32.xlu1 %v2102_v24  ;;  %2125 = vmax.xlane.f32.xlu0 %v2099_v51 }
 0x6b1   : > { %v13380_v14 = vpop.xlane.xlu0 %1853  ;;  %v13384_v15 = vpop.xlane.xlu1 %1859 }
 0x6b2   : > { %17884 = vst [vmem:[#allocation268_spill] sm:$0xff] %v13380_v14  ;;  %17885 = vst [vmem:[#allocation269_spill] sm:$0xff] %v13384_v15 }
 0x6b4   : > { %2035 = vadd.xlane.f32.xlu1 %v8380_v10  ;;  %2029 = vadd.xlane.f32.xlu0 %v8377_v41 }
 0x6b5   : > { %v13386_v34 = vpop.xlane.xlu0 %1953 }
 0x6b6   : > { %17886 = vst [vmem:[#allocation270_spill] sm:$0xff] %v13386_v34  ;;  %vm1973_vm8 = vcmp.ge.f32.partialorder %v12469_v37, %v13386_v34 }
 0x6b7   : > { %v2101_v43 = vsel %vm1973_vm8, -3e+38, %v12469_v37  ;;  %v8379_v10 = vsel %vm1973_vm8, 1.0, %v17839_v6 }
 0x6b8   : > { %2129 = vmax.xlane.f32.xlu0 %v2101_v43 }
 0x6b9   : > { %v13391_v24 = vpop.xlane.xlu1 %1959 }
 0x6ba   : > { %17887 = vst [vmem:[#allocation271_spill] sm:$0xff] %v13391_v24  ;;  %vm1976_vm9 = vcmp.ge.f32.partialorder %v12485_v63, %v13391_v24 }
 0x6bb   : > { %v2104_v51 = vsel %vm1976_vm9, -3e+38, %v12485_v63  ;;  %v8382_v24 = vsel %vm1976_vm9, 1.0, %v17839_v6 }
 0x6bc   : > { %2135 = vmax.xlane.f32.xlu1 %v2104_v51  ;;  %2033 = vadd.xlane.f32.xlu0 %v8379_v10  ;;  %v13410_v10 = vpop.xlane.xlu0 %1857 }
 0x6bd   : > { %v13401_v41 = vpop.xlane.xlu1 %1863  ;;  %17890 = vst [vmem:[#allocation274_spill] sm:$0xff] %v13410_v10 }
 0x6be   : > { %17888 = vst [vmem:[#allocation272_spill] sm:$0xff] %v13401_v41 }
 0x6c1   : > { %v13403_v43 = vpop.xlane.xlu1 %1957 }
 0x6c2   : > { %17889 = vst [vmem:[#allocation273_spill] sm:$0xff] %v13403_v43  ;;  %vm1975_vm10 = vcmp.ge.f32.partialorder %v12481_v57, %v13403_v43 }
 0x6c3   : > { %v2103_v34 = vsel %vm1975_vm10, -3e+38, %v12481_v57  ;;  %v8381_v51 = vsel %vm1975_vm10, 1.0, %v17839_v6 }
 0x6cd   : > { %3401 = vrot.lane.b32.xlu1 %v12187_v55, %s11706_s17  ;;  %v13412_v55 = vpop.xlane.xlu0 %1861 }
 0x6ce   : > { %17891 = vst [vmem:[#allocation275_spill] sm:$0xff] %v13412_v55 }
 0x6d2   : > { %3403 = vrot.lane.b32.xlu0 %v12207_v59, %s11706_s17 }
 0x6f1   : > { %2039 = vadd.xlane.f32.xlu1 %v8382_v24  ;;  %2133 = vmax.xlane.f32.xlu0 %v2103_v34 }
 0x6f5   : > { %2037 = vadd.xlane.f32.xlu0 %v8381_v51 }
 0x705   : > { %v13414_v59 = vpop.xlane.xlu0 %2107  ;;  %v13419_v41 = vpop.xlane.xlu1 %2011 }
 0x706   : > { %vm2138_vm11 = vcmp.ge.f32.partialorder %v12395_v18, %v13414_v59 }
 0x707   : > { %v8384_v43 = vsel %vm2138_vm11, 1.0, %v17839_v6 }
 0x708   : > { %2187 = vadd.xlane.f32.xlu1 %v8384_v43 }
 0x70d   : > { %v13421_v14 = vpop.xlane.xlu1 %2105  ;;  %v13431_v55 = vpop.xlane.xlu0 %2009 }
 0x70e   : > { %vm2137_vm12 = vcmp.ge.f32.partialorder %v12404_v2, %v13421_v14 }
 0x70f   : > { %v8383_v34 = vsel %vm2137_vm12, 1.0, %v17839_v6 }
 0x710   : > { %2185 = vadd.xlane.f32.xlu0 %v8383_v34 }
 0x711   : > { %v13426_v24 = vpop.xlane.xlu1 %2111 }
 0x712   : > { %17892 = vst [vmem:[#allocation276_spill] sm:$0xff] %v13426_v24  ;;  %vm2140_vm13 = vcmp.ge.f32.partialorder %v12406_v5, %v13426_v24 }
 0x713   : > { %v8386_v51 = vsel %vm2140_vm13, 1.0, %v17839_v6  ;;  %vm986_vm13 = vcmp.ge.f32.partialorder %v12623_v35, 8.0 }
 0x714   : > { %2191 = vadd.xlane.f32.xlu1 %v8386_v51 }
 0x715   : > { %v13433_v43 = vpop.xlane.xlu1 %2015 }
 0x719   : > { %v13435_v10 = vpop.xlane.xlu0 %2109 }
 0x71a   : > { %17893 = vst [vmem:[#allocation277_spill] sm:$0xff] %v13435_v10  ;;  %vm2139_vm14 = vcmp.ge.f32.partialorder %v12416_v12, %v13435_v10 }
 0x71b   : > { %v8385_v15 = vsel %vm2139_vm14, 1.0, %v17839_v6  ;;  %vm985_vm14 = vcmp.ge.f32.partialorder %v12633_v61, 8.0  ;;  %v17903_v61 = vld [vmem:[#allocation104_spill] sm:$0xff] }
 0x71c   : > { %2189 = vadd.xlane.f32.xlu0 %v8385_v15 }
 0x71d   : > { %v13440_v34 = vpop.xlane.xlu1 %2115  ;;  %v13442_v2 = vpop.xlane.xlu0 %2013 }
 0x71e   : > { %17894 = vst [vmem:[#allocation278_spill] sm:$0xff] %v13440_v34  ;;  %vm2142_vm15 = vcmp.ge.f32.partialorder %v12428_v4, %v13440_v34 }
 0x71f   : > { %v8388_v51 = vsel %vm2142_vm15, 1.0, %v17839_v6  ;;  %vm988_vm15 = vcmp.ge.f32.partialorder %v12639_v13, 8.0 }
 0x720   : > { %2195 = vadd.xlane.f32.xlu1 %v8388_v51 }
 0x721   : > { %v13447_v5 = vpop.xlane.xlu1 %2019  ;;  %v13449_v24 = vpop.xlane.xlu0 %2113 }
 0x722   : > { %17895 = vst [vmem:[#allocation279_spill] sm:$0xff] %v13449_v24  ;;  %vm2141_vm3 = vcmp.ge.f32.partialorder %v12421_v23, %v13449_v24 }
 0x723   : > { %v8387_v12 = vsel %vm2141_vm3, 1.0, %v17839_v6  ;;  %vm987_vm3 = vcmp.ge.f32.partialorder %v12649_v16, 8.0 }
 0x724   : > { %2193 = vadd.xlane.f32.xlu0 %v8387_v12  ;;  %v1003_v35 = vsel %vm987_vm3, %v12535_v50, -3e+38  ;;  %vm1161_vm3 = vcmp.ge.f32.partialorder %v12763_v39, 8.0  ;;  %v17904_v39 = vld [vmem:[#allocation125_spill] sm:$0xff] }
 0x725   : > { %v13454_v15 = vpop.xlane.xlu1 %2119  ;;  %v13456_v10 = vpop.xlane.xlu0 %2017 }
 0x726   : > { %17896 = vst [vmem:[#allocation280_spill] sm:$0xff] %v13454_v15  ;;  %vm2144_vm4 = vcmp.ge.f32.partialorder %v12440_v8, %v13454_v15 }
 0x727   : > { %v8390_v4 = vsel %vm2144_vm4, 1.0, %v17839_v6  ;;  %vm990_vm4 = vcmp.ge.f32.partialorder %v12655_v0, 8.0  ;;  %v1019_v0 = vmax.f32 %v1003_v35, -3e+38 }
 0x728   : > { %2199 = vadd.xlane.f32.xlu1 %v8390_v4 }
 0x729   : > { %v13461_v51 = vpop.xlane.xlu1 %2023  ;;  %v13463_v34 = vpop.xlane.xlu0 %2117 }
 0x72a   : > { %17897 = vst [vmem:[#allocation281_spill] sm:$0xff] %v13463_v34  ;;  %vm2143_vm5 = vcmp.ge.f32.partialorder %v12433_v62, %v13463_v34 }
 0x72b   : > { %v8389_v23 = vsel %vm2143_vm5, 1.0, %v17839_v6  ;;  %vm989_vm5 = vcmp.ge.f32.partialorder %v12665_v28, 8.0 }
 0x72c   : > { %2197 = vadd.xlane.f32.xlu0 %v8389_v23  ;;  %v13532_v16 = vsel %vm989_vm5, %v12547_v48, -3e+38  ;;  %vm1163_vm5 = vcmp.ge.f32.partialorder %v12779_v32, 8.0 }
 0x72d   : > { %v13468_v12 = vpop.xlane.xlu1 %2123  ;;  %v13470_v24 = vpop.xlane.xlu0 %2021 }
 0x72e   : > { %17898 = vst [vmem:[#allocation282_spill] sm:$0xff] %v13468_v12  ;;  %vm2146_vm6 = vcmp.ge.f32.partialorder %v12452_v30, %v13468_v12 }
 0x72f   : > { %v8392_v8 = vsel %vm2146_vm6, 1.0, %v17839_v6  ;;  %vm992_vm6 = vcmp.ge.f32.partialorder %v12671_v26, 8.0 }
 0x730   : > { %2203 = vadd.xlane.f32.xlu1 %v8392_v8 }
 0x731   : > { %v13475_v4 = vpop.xlane.xlu1 %2027  ;;  %v13477_v15 = vpop.xlane.xlu0 %2121 }
 0x732   : > { %17899 = vst [vmem:[#allocation283_spill] sm:$0xff] %v13475_v4  ;;  %vm2145_vm7 = vcmp.ge.f32.partialorder %v12445_v21, %v13477_v15 }
 0x733   : > { %v8391_v62 = vsel %vm2145_vm7, 1.0, %v17839_v6  ;;  %vm991_vm7 = vcmp.ge.f32.partialorder %v12681_v49, 8.0 }
 0x734   : > { %2201 = vadd.xlane.f32.xlu0 %v8391_v62  ;;  %v13538_v26 = vsel %vm991_vm7, %v12559_v29, -3e+38 }
 0x735   : > { %v13482_v23 = vpop.xlane.xlu1 %2127  ;;  %v13487_v12 = vpop.xlane.xlu0 %2025  ;;  %v1023_v28 = vmax.f32 %v13538_v26, -3e+38  ;;  %v17911_v26 = vld [vmem:[#allocation106_spill] sm:$0xff] }
 0x736   : > { %17900 = vst [vmem:[#allocation284_spill] sm:$0xff] %v13482_v23  ;;  %vm2148_vm8 = vcmp.ge.f32.partialorder %v12464_v45, %v13482_v23 }
 0x737   : > { %v8394_v30 = vsel %vm2148_vm8, 1.0, %v17839_v6  ;;  %vm994_vm8 = vcmp.ge.f32.partialorder %v12687_v11, 8.0 }
 0x738   : > { %2207 = vadd.xlane.f32.xlu1 %v8394_v30 }
 0x739   : > { %v13489_v8 = vpop.xlane.xlu1 %2031 }
 0x73d   : > { %v13491_v34 = vpop.xlane.xlu1 %2131  ;;  %v13493_v4 = vpop.xlane.xlu0 %2125 }
 0x73e   : > { %17901 = vst [vmem:[#allocation285_spill] sm:$0xff] %v13491_v34  ;;  %vm2150_vm9 = vcmp.ge.f32.partialorder %v12476_v33, %v13491_v34  ;;  %vm2147_vm10 = vcmp.ge.f32.partialorder %v12457_v53, %v13493_v4 }
 0x73f   : > { %v8396_v62 = vsel %vm2150_vm9, 1.0, %v17839_v6  ;;  %v8393_v45 = vsel %vm2147_vm10, 1.0, %v17839_v6  ;;  %vm993_vm9 = vcmp.ge.f32.partialorder %v12697_v22, 8.0  ;;  %vm996_vm10 = vcmp.ge.f32.partialorder %v12703_v1, 8.0 }
 0x740   : > { %2211 = vadd.xlane.f32.xlu1 %v8396_v62  ;;  %2205 = vadd.xlane.f32.xlu0 %v8393_v45  ;;  %v1002_v45 = vsel %vm986_vm13, %v12514_v58, -3e+38  ;;  %v13528_v58 = vsel %vm990_vm4, %v12541_v56, -3e+38  ;;  %v13543_v56 = vsel %vm994_vm8, %v12565_v44, -3e+38 }
 0x741   : > { %v13501_v30 = vpop.xlane.xlu0 %2029  ;;  %v13503_v21 = vpop.xlane.xlu1 %2035  ;;  %v1022_v49 = vmax.f32 %v13528_v58, -3e+38  ;;  %v1009_v50 = vsel %vm993_vm9, %v12571_v40, -3e+38  ;;  %vm997_vm13 = vcmp.ge.f32.partialorder %v12729_v7, 8.0  ;;  %vm1164_vm4 = vcmp.ge.f32.partialorder %v12769_v47, 8.0 }
 0x742   : > { %v1026_v48 = vmax.f32 %v13543_v56, -3e+38  ;;  %v1012_v1 = vsel %vm996_vm10, %v12577_v60, -3e+38  ;;  %v13564_v29 = vsel %vm997_vm13, %v12595_v31, -3e+38 }
 0x743   : > { %v1028_v7 = vmax.f32 %v1012_v1, -3e+38  ;;  %v17909_v58 = vld [vmem:[#allocation133_spill] sm:$0xff] }
 0x744   : > { %vm1170_vm10 = vcmp.ge.f32.partialorder %v17909_v58, 8.0 }
 0x745   : > { %v13505_v23 = vpop.xlane.xlu0 %2129 }
 0x746   : > { %vm2149_vm11 = vcmp.ge.f32.partialorder %v12469_v37, %v13505_v23  ;;  %v1004_v37 = vsel %vm988_vm15, %v12525_v38, -3e+38  ;;  %v13535_v38 = vsel %vm992_vm6, %v12553_v52, -3e+38  ;;  %vm1162_vm15 = vcmp.ge.f32.partialorder %v12753_v25, 8.0 }
 0x747   : > { %v8395_v33 = vsel %vm2149_vm11, 1.0, %v17839_v6  ;;  %v1024_v11 = vmax.f32 %v13535_v38, -3e+38  ;;  %vm995_vm11 = vcmp.ge.f32.partialorder %v12713_v17, 8.0  ;;  %v1178_v60 = vsel %vm1162_vm15, %v12618_v3, -3e+38 }
 0x748   : > { %2209 = vadd.xlane.f32.xlu0 %v8395_v33  ;;  %v1001_v33 = vsel %vm985_vm14, %v12523_v42, -3e+38  ;;  %v1020_v42 = vmax.f32 %v1004_v37, -3e+38  ;;  %v1021_v37 = vmax.f32 %v13532_v16, -3e+38 }
 0x749   : > { %v13510_v34 = vpop.xlane.xlu1 %2135  ;;  %v1017_v13 = vmax.f32 %v1001_v33, -3e+38  ;;  %v13553_v22 = vpop.xlane.xlu0 %2033  ;;  %vm1000_vm14 = vcmp.ge.f32.partialorder %v12744_v20, 8.0  ;;  %v1011_v52 = vsel %vm995_vm11, %v12583_v46, -3e+38  ;;  %vm1166_vm6 = vcmp.ge.f32.partialorder %v17904_v39, 8.0 }
 0x74a   : > { %vm2152_vm12 = vcmp.ge.f32.partialorder %v12485_v63, %v13510_v34  ;;  %v13568_v44 = vsel %vm1000_vm14, %v12601_v54, -3e+38  ;;  %v1027_v20 = vmax.f32 %v1011_v52, -3e+38  ;;  %v1029_v46 = vmax.f32 %v13564_v29, -3e+38 }
 0x74b   : > { %v8398_v62 = vsel %vm2152_vm12, 1.0, %v17839_v6  ;;  %vm998_vm12 = vcmp.ge.f32.partialorder %v12719_v27, 8.0  ;;  %v1025_v27 = vmax.f32 %v1009_v50, -3e+38  ;;  %v1177_v25 = vsel %vm1161_vm3, %v12625_v19, -3e+38 }
 0x74c   : > { %2215 = vadd.xlane.f32.xlu1 %v8398_v62  ;;  %v1018_v62 = vmax.f32 %v1002_v45, -3e+38  ;;  %v13560_v17 = vsel %vm998_vm12, %v12589_v36, -3e+38  ;;  %v1180_v54 = vsel %vm1164_vm4, %v17903_v61, -3e+38  ;;  %v13586_v35 = vmax.f32 %v1017_v13, %v1177_v25 }
 0x74d   : > { %v1030_v40 = vmax.f32 %v13560_v17, -3e+38  ;;  %v13576_v36 = vpop.permute.xlu0 %3403  ;;  %v17905_v45 = vld [vmem:[#allocation128_spill] sm:$0xff]  ;;  %v17906_v33 = vld [vmem:[#allocation129_spill] sm:$0xff]  ;;  %v13591_v38 = vmax.f32 %v1020_v42, %v1180_v54  ;;  %v1182_v56 = vsel %vm1166_vm6, %v17911_v26, -3e+38 }
 0x74e   : > { %17902 = vst [vmem:[#allocation286_spill] sm:$0xff] %v13576_v36  ;;  %v13581_v47 = vmax.f32 %v1018_v62, %v1178_v60  ;;  %vm1165_vm7 = vcmp.ge.f32.partialorder %v17905_v45, 8.0  ;;  %vm1168_vm8 = vcmp.ge.f32.partialorder %v17906_v33, 8.0  ;;  %v17907_v3 = vld [vmem:[#allocation132_spill] sm:$0xff]  ;;  %v17908_v19 = vld [vmem:[#allocation105_spill] sm:$0xff]  ;;  %v17915_v52 = vld [vmem:[#allocation107_spill] sm:$0xff] }
 0x74f   : > { %vm1167_vm9 = vcmp.ge.f32.partialorder %v17907_v3, 8.0  ;;  %v1179_v32 = vsel %vm1163_vm5, %v17908_v19, -3e+38  ;;  %v17910_v16 = vld [vmem:[#allocation136_spill] sm:$0xff]  ;;  %v17912_v62 = vld [vmem:[#allocation137_spill] sm:$0xff]  ;;  %v17918_v42 = vld [vmem:[#allocation110_spill] sm:$0xff]  ;;  %v13608_v3 = vmax.f32 %v1022_v49, %v1182_v56 }
 0x750   : > { %vm1169_vm11 = vcmp.ge.f32.partialorder %v17910_v16, 8.0  ;;  %vm1172_vm12 = vcmp.ge.f32.partialorder %v17912_v62, 8.0  ;;  %v17913_v50 = vld [vmem:[#allocation140_spill] sm:$0xff]  ;;  %v1181_v17 = vsel %vm1165_vm7, %v17915_v52, -3e+38  ;;  %v17917_v60 = vld [vmem:[#allocation109_spill] sm:$0xff]  ;;  %v13603_v61 = vmax.f32 %v1019_v0, %v1179_v32 }
 0x751   : > { %vm1171_vm13 = vcmp.ge.f32.partialorder %v17913_v50, 8.0  ;;  %v17916_v13 = vld [vmem:[#allocation108_spill] sm:$0xff]  ;;  %v1183_v25 = vsel %vm1167_vm9, %v17917_v60, -3e+38  ;;  %v1186_v54 = vsel %vm1170_vm10, %v17918_v42, -3e+38  ;;  %v13613_v50 = vmax.f32 %v1021_v37, %v1181_v17 }
 0x752   : > { %v1184_v29 = vsel %vm1168_vm8, %v17916_v13, -3e+38  ;;  %v17919_v39 = vld [vmem:[#allocation111_spill] sm:$0xff]  ;;  %v17920_v19 = vld [vmem:[#allocation112_spill] sm:$0xff]  ;;  %v17921_v16 = vld [vmem:[#allocation113_spill] sm:$0xff]  ;;  %v13619_v13 = vmax.f32 %v1023_v28, %v1183_v25  ;;  %v13621_v60 = vmax.f32 %v1026_v48, %v1186_v54 }
 0x753   : > { %v1185_v45 = vsel %vm1169_vm11, %v17919_v39, -3e+38  ;;  %v1188_v58 = vsel %vm1172_vm12, %v17920_v19, -3e+38  ;;  %v1187_v26 = vsel %vm1171_vm13, %v17921_v16, -3e+38  ;;  %v13615_v52 = vmax.f32 %v1024_v11, %v1184_v29 }
 0x754   : > { %v17922_v62 = vld [vmem:[#allocation141_spill] sm:$0xff]  ;;  %v17923_v0 = vld [vmem:[#allocation144_spill] sm:$0xff]  ;;  %v13623_v49 = vmax.f32 %v1025_v27, %v1185_v45  ;;  %v13626_v42 = vmax.f32 %v1028_v7, %v1188_v58  ;;  %v13628_v39 = vmax.f32 %v1027_v20, %v1187_v26  ;;  %v17926_v37 = vld [vmem:[#allocation114_spill] sm:$0xff] }
 0x755   : > { %vm1174_vm15 = vcmp.ge.f32.partialorder %v17922_v62, 8.0  ;;  %vm1173_vm3 = vcmp.ge.f32.partialorder %v17923_v0, 8.0  ;;  %v17924_v32 = vld [vmem:[#allocation149_spill] sm:$0xff]  ;;  %v17925_v56 = vld [vmem:[#allocation152_spill] sm:$0xff]  ;;  %v17928_v29 = vld [vmem:[#allocation115_spill] sm:$0xff] }
 0x756   : > { %vm1338_vm4 = vcmp.ge.f32.partialorder %v17924_v32, 8.0  ;;  %vm1337_vm5 = vcmp.ge.f32.partialorder %v17925_v56, 8.0  ;;  %v1190_v17 = vsel %vm1174_vm15, %v17926_v37, -3e+38  ;;  %v17927_v11 = vld [vmem:[#allocation153_spill] sm:$0xff]  ;;  %v17929_v19 = vld [vmem:[#allocation120_spill] sm:$0xff] }
 0x757   : > { %vm1340_vm6 = vcmp.ge.f32.partialorder %v17927_v11, 8.0  ;;  %v1354_v16 = vsel %vm1338_vm4, %v17929_v19, -3e+38  ;;  %v17930_v28 = vld [vmem:[#allocation156_spill] sm:$0xff]  ;;  %v17931_v48 = vld [vmem:[#allocation157_spill] sm:$0xff]  ;;  %v13640_v45 = vmax.f32 %v1030_v40, %v1190_v17  ;;  %v17936_v58 = vld [vmem:[#allocation122_spill] sm:$0xff] }
 0x758   : > { %vm1339_vm7 = vcmp.ge.f32.partialorder %v17930_v28, 8.0  ;;  %vm1342_vm8 = vcmp.ge.f32.partialorder %v17931_v48, 8.0  ;;  %v17932_v27 = vld [vmem:[#allocation121_spill] sm:$0xff]  ;;  %v17933_v54 = vld [vmem:[#allocation160_spill] sm:$0xff]  ;;  %v1356_v26 = vsel %vm1340_vm6, %v17936_v58, -3e+38  ;;  %v1370_v56 = vmax.f32 %v13581_v47, %v1354_v16 }
 0x759   : > { %v1353_v25 = vsel %vm1337_vm5, %v17932_v27, -3e+38  ;;  %vm1341_vm9 = vcmp.ge.f32.partialorder %v17933_v54, 8.0  ;;  %v17934_v7 = vld [vmem:[#allocation161_spill] sm:$0xff]  ;;  %v17935_v20 = vld [vmem:[#allocation164_spill] sm:$0xff]  ;;  %v17939_v37 = vld [vmem:[#allocation123_spill] sm:$0xff] }
 0x75a   : > { %vm1344_vm10 = vcmp.ge.f32.partialorder %v17934_v7, 8.0  ;;  %vm1343_vm11 = vcmp.ge.f32.partialorder %v17935_v20, 8.0  ;;  %v17937_v62 = vld [vmem:[#allocation165_spill] sm:$0xff]  ;;  %v17938_v0 = vld [vmem:[#allocation168_spill] sm:$0xff]  ;;  %v1355_v11 = vsel %vm1339_vm7, %v17939_v37, -3e+38  ;;  %v1369_v28 = vmax.f32 %v13586_v35, %v1353_v25 }
 0x75b   : > { %vm1346_vm12 = vcmp.ge.f32.partialorder %v17937_v62, 8.0  ;;  %vm1345_vm13 = vcmp.ge.f32.partialorder %v17938_v0, 8.0  ;;  %v17941_v48 = vld [vmem:[#allocation126_spill] sm:$0xff]  ;;  %v17942_v40 = vld [vmem:[#allocation127_spill] sm:$0xff]  ;;  %v1372_v20 = vmax.f32 %v13591_v38, %v1356_v26  ;;  %v1371_v35 = vmax.f32 %v13603_v61, %v1355_v11  ;;  %v17947_v62 = vld [vmem:[#allocation169_spill] sm:$0xff] }
 0x75c   : > { %v1357_v27 = vsel %vm1341_vm9, %v17941_v48, -3e+38  ;;  %v13653_v17 = vsel %vm1344_vm10, %v17942_v40, -3e+38  ;;  %v17943_v54 = vld [vmem:[#allocation130_spill] sm:$0xff]  ;;  %vm1348_vm15 = vcmp.ge.f32.partialorder %v17947_v62, 8.0  ;;  %v13682_v40 = vpop.permute.xlu1 %3401 }
 0x75d   : > { %v13656_v7 = vsel %vm1343_vm11, %v17943_v54, -3e+38  ;;  %v17945_v47 = vld [vmem:[#allocation134_spill] sm:$0xff]  ;;  %v17948_v0 = vld [vmem:[#allocation172_spill] sm:$0xff]  ;;  %v1373_v37 = vmax.f32 %v13613_v50, %v1357_v27  ;;  %17952 = vst [vmem:[#allocation125_spill] sm:$0xff] %v13682_v40  ;;  %v17953_v50 = vld [vmem:[#allocation135_spill] sm:$0xff] }
 0x75e   : > { %v13663_v16 = vsel %vm1345_vm13, %v17945_v47, -3e+38  ;;  %v17946_v58 = vld [vmem:[#allocation182_spill] sm:$0xff]  ;;  %v17951_v11 = vld [vmem:[#allocation148_spill] sm:$0xff]  ;;  %v13685_v27 = vsel %vm1348_vm15, %v17953_v50, -3e+38 }
 0x75f   : > { %v17954_v54 = vld [vmem:[#allocation138_spill] sm:$0xff]  ;;  %v17955_v47 = vld [vmem:[#allocation185_spill] sm:$0xff]  ;;  %vm1866_vm7 = vcmp.ge.f32.partialorder %v13288_v9, 8.0  ;;  %v17961_v50 = vld [vmem:[#allocation176_spill] sm:$0xff] }
 0x760   : > { %vm1513_vm6 = vcmp.ge.f32.partialorder %v17955_v47, 8.0  ;;  %v17957_v62 = vld [vmem:[#allocation189_spill] sm:$0xff]  ;;  %vm1349_vm11 = vcmp.ge.f32.partialorder %v17961_v50, 8.0  ;;  %v17962_v9 = vld [vmem:[#allocation150_spill] sm:$0xff] }
 0x761   : > { %vm1515_vm9 = vcmp.ge.f32.partialorder %v17957_v62, 8.0  ;;  %v1529_v47 = vsel %vm1513_vm6, %v17962_v9, -3e+38  ;;  %v17964_v62 = vld [vmem:[#allocation212_spill] sm:$0xff]  ;;  %v17968_v9 = vld [vmem:[#allocation142_spill] sm:$0xff] }
 0x762   : > { %v1882_v48 = vsel %vm1866_vm7, %v17964_v62, -3e+38  ;;  %v1545_v36 = vmax.f32 %v1369_v28, %v1529_v47  ;;  %v17970_v40 = vld [vmem:[#allocation158_spill] sm:$0xff] }
 0x77e   : > { %v13596_v1 = vpop.xlane.xlu0 %2133 }
 0x77f   : > { %17914 = vst [vmem:[#allocation104_spill] sm:$0xff] %v13596_v1  ;;  %vm2151_vm14 = vcmp.ge.f32.partialorder %v12481_v57, %v13596_v1  ;;  %v17971_v57 = vld [vmem:[#allocation216_spill] sm:$0xff]  ;;  %v17973_v1 = vld [vmem:[#allocation197_spill] sm:$0xff] }
 0x780   : > { %v8397_v33 = vsel %vm2151_vm14, 1.0, %v17839_v6  ;;  %vm1514_vm14 = vcmp.ge.f32.partialorder %v17946_v58, 8.0  ;;  %v17956_v58 = vld [vmem:[#allocation186_spill] sm:$0xff]  ;;  %v17967_v6 = vld [vmem:[#allocation155_spill] sm:$0xff] }
 0x781   : > { %2213 = vadd.xlane.f32.xlu0 %v8397_v33  ;;  %v1189_v33 = vsel %vm1173_vm3, %v17928_v29, -3e+38  ;;  %v17940_v29 = vld [vmem:[#allocation124_spill] sm:$0xff]  ;;  %vm1347_vm3 = vcmp.ge.f32.partialorder %v17948_v0, 8.0  ;;  %v17958_v0 = vld [vmem:[#allocation190_spill] sm:$0xff] }
 0x782   : > { %v13645_v32 = vmax.f32 %v1029_v46, %v1189_v33  ;;  %v1358_v19 = vsel %vm1342_vm8, %v17940_v29, -3e+38  ;;  %v17944_v46 = vld [vmem:[#allocation131_spill] sm:$0xff]  ;;  %v17949_v29 = vld [vmem:[#allocation213_spill] sm:$0xff]  ;;  %vm1516_vm8 = vcmp.ge.f32.partialorder %v17956_v58, 8.0  ;;  %vm1518_vm10 = vcmp.ge.f32.partialorder %v17958_v0, 8.0  ;;  %v13706_v0 = vpop.xlane.xlu1 %2039 }
 0x783   : > { %v13660_v33 = vsel %vm1346_vm12, %v17944_v46, -3e+38  ;;  %v1374_v25 = vmax.f32 %v13608_v3, %v1358_v19  ;;  %vm1690_vm4 = vcmp.ge.f32.partialorder %v17949_v29, 8.0  ;;  %v17950_v3 = vld [vmem:[#allocation173_spill] sm:$0xff]  ;;  %v1530_v19 = vsel %vm1514_vm14, %v17951_v11, -3e+38 }
 0x784   : > { %vm1350_vm5 = vcmp.ge.f32.partialorder %v17950_v3, 8.0  ;;  %v13688_v46 = vsel %vm1347_vm3, %v17954_v54, -3e+38  ;;  %v17959_v29 = vld [vmem:[#allocation181_spill] sm:$0xff]  ;;  %v17960_v11 = vld [vmem:[#allocation139_spill] sm:$0xff]  ;;  %v1546_v61 = vmax.f32 %v1370_v56, %v1530_v19  ;;  %vm2042_vm12 = vcmp.ge.f32.partialorder %v13419_v41, 8.0 }
 0x785   : > { %v1706_v3 = vsel %vm1690_vm4, %v17959_v29, -3e+38  ;;  %v13697_v31 = vsel %vm1350_vm5, %v17960_v11, -3e+38  ;;  %v17963_v58 = vld [vmem:[#allocation193_spill] sm:$0xff]  ;;  %v17965_v29 = vld [vmem:[#allocation151_spill] sm:$0xff] }
 0x786   : > { %vm1517_vm13 = vcmp.ge.f32.partialorder %v17963_v58, 8.0  ;;  %v1532_v26 = vsel %vm1516_vm8, %v17965_v29, -3e+38  ;;  %v17966_v11 = vld [vmem:[#allocation154_spill] sm:$0xff]  ;;  %v1534_v50 = vsel %vm1518_vm10, %v17967_v6, -3e+38  ;;  %v1722_v56 = vmax.f32 %v1546_v61, %v1706_v3 }
 0x787   : > { %v1531_v38 = vsel %vm1515_vm9, %v17966_v11, -3e+38  ;;  %v13716_v54 = vsel %vm1349_vm11, %v17968_v9, -3e+38  ;;  %v17969_v58 = vld [vmem:[#allocation245_spill] sm:$0xff]  ;;  %vm1689_vm14 = vcmp.ge.f32.partialorder %v17971_v57, 8.0  ;;  %v1548_v6 = vmax.f32 %v1372_v20, %v1532_v26 }
 0x788   : > { %v2058_v62 = vsel %vm2042_vm12, %v17969_v58, -3e+38  ;;  %v1533_v29 = vsel %vm1517_vm13, %v17970_v40, -3e+38  ;;  %v1898_v11 = vmax.f32 %v1722_v56, %v1882_v48  ;;  %v13721_v61 = vmax.f32 %v1371_v35, %v1531_v38  ;;  %v17972_v41 = vld [vmem:[#allocation194_spill] sm:$0xff]  ;;  %v17974_v9 = vld [vmem:[#allocation248_spill] sm:$0xff] }
 0x789   : > { %v13723_v3 = vmax.f32 %v1374_v25, %v1534_v50  ;;  %vm1520_vm15 = vcmp.ge.f32.partialorder %v17972_v41, 8.0  ;;  %vm1519_vm3 = vcmp.ge.f32.partialorder %v17973_v1, 8.0  ;;  %vm1865_vm4 = vcmp.ge.f32.partialorder %v17974_v9, 8.0  ;;  %v17975_v40 = vld [vmem:[#allocation183_spill] sm:$0xff]  ;;  %v13733_v20 = vld [vmem:[%s11959_s13 + $0x8] sm:$0xff] }
 0x78a   : > { %v2074_v58 = vmax.f32 %v1898_v11, %v2058_v62  ;;  %v13728_v28 = vmax.f32 %v1373_v37, %v1533_v29  ;;  %v1705_v47 = vsel %vm1689_vm14, %v17975_v40, -3e+38  ;;  %v17976_v57 = vld [vmem:[#allocation219_spill] sm:$0xff]  ;;  %v17978_v26 = vld [vmem:[#allocation198_spill] sm:$0xff]  ;;  %vm2041_vm8 = vcmp.ge.f32.partialorder %v13431_v55, 8.0  ;;  %v17980_v56 = vld [vmem:[#allocation201_spill] sm:$0xff]  ;;  %v13743_v62 = vpop.xlane.xlu0 %2037 }
 0x78b   : > { %vm1692_vm6 = vcmp.ge.f32.partialorder %v17976_v57, 8.0  ;;  %v17977_v25 = vld [vmem:[#allocation159_spill] sm:$0xff]  ;;  %vm1522_vm7 = vcmp.ge.f32.partialorder %v17978_v26, 8.0  ;;  %v17979_v48 = vld [vmem:[#allocation162_spill] sm:$0xff]  ;;  %vm1521_vm9 = vcmp.ge.f32.partialorder %v17980_v56, 8.0  ;;  %v1721_v29 = vmax.f32 %v1545_v36, %v1705_v47  ;;  %v17983_v11 = vld [vmem:[#allocation184_spill] sm:$0xff] }
 0x78c   : > { %v1536_v38 = vsel %vm1520_vm15, %v17977_v25, -3e+38  ;;  %v1535_v50 = vsel %vm1519_vm3, %v17979_v48, -3e+38  ;;  %v17981_v37 = vld [vmem:[#allocation215_spill] sm:$0xff]  ;;  %vm2282_vm11 = vcmp.gt.f32.partialorder %v13733_v20, 0.0  ;;  %v17984_v55 = vmax.f32 %v13615_v52, %v13653_v17 }
 0x78d   : > { %v1881_v41 = vsel %vm1865_vm4, %v17981_v37, -3e+38  ;;  %v17985_v40 = vld [vmem:[#allocation163_spill] sm:$0xff]  ;;  %vm2044_vm12 = vcmp.ge.f32.partialorder %v13433_v43, 8.0  ;;  %v17987_v26 = vld [vmem:[#allocation166_spill] sm:$0xff]  ;;  %v17988_v36 = vld [vmem:[#allocation217_spill] sm:$0xff] }
 0x78e   : > { %v1538_v57 = vsel %vm1522_vm7, %v17985_v40, -3e+38  ;;  %v1537_v48 = vsel %vm1521_vm9, %v17987_v26, -3e+38  ;;  %v1897_v56 = vmax.f32 %v1721_v29, %v1881_v41  ;;  %v17990_v17 = vld [vmem:[#allocation202_spill] sm:$0xff]  ;;  %v17992_v43 = vmov 0 }
 0x78f   : > { %vm1524_vm14 = vcmp.ge.f32.partialorder %v17990_v17, 8.0  ;;  %v17995_v29 = vld [vmem:[#allocation247_spill] sm:$0xff]  ;;  %v18000_v26 = vld [vmem:[#allocation205_spill] sm:$0xff] }
 0x795   : > { %v2188_v19 = vpop.xlane.xlu1 %2187 }
 0x796   : > { %vm2218_vm5 = vcmp.ge.f32.partialorder %v2188_v19, 8.0  ;;  %v17982_v19 = vld [vmem:[#allocation249_spill] sm:$0xff] }
 0x797   : > { %v2234_v35 = vsel %vm2218_vm5, %v13414_v59, -3e+38  ;;  %vm1868_vm10 = vcmp.ge.f32.partialorder %v17982_v19, 8.0  ;;  %v1708_v59 = vsel %vm1692_vm6, %v17983_v11, -3e+38  ;;  %vm1523_vm5 = vcmp.ge.f32.partialorder %v18000_v26, 8.0 }
 0x798   : > { %v2250_v1 = vmax.f32 %v2074_v58, %v2234_v35  ;;  %v13750_v58 = vmax.f32 %v17984_v55, %v1536_v38  ;;  %v17986_v35 = vld [vmem:[#allocation246_spill] sm:$0xff]  ;;  %v1884_v47 = vsel %vm1868_vm10, %v17988_v36, -3e+38  ;;  %v1724_v37 = vmax.f32 %v1548_v6, %v1708_v59  ;;  %v13786_v55 = vld [vmem:[%s11959_s13] sm:$0xff]  ;;  %v18004_v36 = vld [vmem:[#allocation87_spill] sm:$0xff] }
 0x799   : > { %v2057_v25 = vsel %vm2041_vm8, %v17986_v35, -3e+38  ;;  %v17991_v38 = vld [vmem:[#allocation218_spill] sm:$0xff]  ;;  %v2060_v11 = vsel %vm2044_vm12, %v17995_v29, -3e+38  ;;  %v17998_v6 = vmax.f32 %v13623_v49, %v13663_v16  ;;  %v17999_v35 = vld [vmem:[#allocation167_spill] sm:$0xff] }
 0x79a   : > { %v2266_v9 = vmax.f32 %v2250_v1, 0.0  ;;  %v17989_v1 = vmax.f32 %v13619_v13, %v13656_v7  ;;  %vm1691_vm15 = vcmp.ge.f32.partialorder %v17991_v38, 8.0  ;;  %v2073_v19 = vmax.f32 %v1897_v56, %v2057_v25  ;;  %v18002_v49 = vld [vmem:[#allocation224_spill] sm:$0xff]  ;;  %v18006_v38 = vld [vmem:[#allocation170_spill] sm:$0xff] }
 0x79b   : > { %v17997_v7 = vmax.f32 %v13621_v60, %v13660_v33  ;;  %v13783_v59 = vmax.f32 %v17998_v6, %v1537_v48  ;;  %v1540_v25 = vsel %vm1524_vm14, %v17999_v35, -3e+38  ;;  %v18001_v60 = vld [vmem:[#allocation187_spill] sm:$0xff]  ;;  %vm1694_vm6 = vcmp.ge.f32.partialorder %v18002_v49, 8.0  ;;  %v18003_v16 = vld [vmem:[#allocation252_spill] sm:$0xff]  ;;  %v18012_v35 = vld [vmem:[#allocation226_spill] sm:$0xff] }
 0x79c   : > { %vm2298_vm13 = vcmp.ge.f32.partialorder %v12395_v18, %v2266_v9  ;;  %v13761_v52 = vmax.f32 %v17989_v1, %v1535_v50  ;;  %v17996_v18 = vld [vmem:[#allocation58_spill] sm:$0xff]  ;;  %v1900_v9 = vmax.f32 %v1724_v37, %v1884_v47  ;;  %v1707_v33 = vsel %vm1691_vm15, %v18001_v60, -3e+38  ;;  %v18007_v29 = vld [vmem:[#allocation276_spill] sm:$0xff] }
 0x79d   : > { %vm13765_vm3 = vmand %vm2282_vm11, %vm2298_vm13  ;;  %v2186_v41 = vpop.xlane.xlu0 %2185  ;;  %v13778_v50 = vmax.f32 %v17997_v7, %v1538_v57  ;;  %vm1867_vm7 = vcmp.ge.f32.partialorder %v18003_v16, 8.0  ;;  %vm2043_vm8 = vcmp.ge.f32.partialorder %v13442_v2, 8.0  ;;  %vm2281_vm9 = vcmp.gt.f32.partialorder %v13786_v55, 0.0  ;;  %v18009_v7 = vld [vmem:[#allocation220_spill] sm:$0xff] }
 0x79e   : > { %v17993_v43 = vsel %vm13765_vm3, 4294967295, %v17992_v43  ;;  %vm2217_vm4 = vcmp.ge.f32.partialorder %v2186_v41, 8.0  ;;  %v13773_v13 = vsel %vm13765_vm3, %v17996_v18, -9e+15  ;;  %v2076_v48 = vmax.f32 %v1900_v9, %v2060_v11  ;;  %v18008_v18 = vld [vmem:[#allocation223_spill] sm:$0xff]  ;;  %v18010_v9 = vld [vmem:[#allocation61_spill] sm:$0xff] }
 0x79f   : > { %17994 = vst [vmem:[#allocation128_spill] sm:$0xff] %v17993_v43  ;;  %v2233_v40 = vsel %vm2217_vm4, %v13421_v14, -3e+38  ;;  %2589 = vmax.xlane.f32.xlu1 %v13773_v13  ;;  %v13802_v47 = vsel %vm13765_vm3, %v18004_v36, -9e+15  ;;  %v18005_v1 = vmax.f32 %v13626_v42, %v13685_v27  ;;  %v1723_v41 = vmax.f32 %v13721_v61, %v1707_v33  ;;  %v18011_v42 = vld [vmem:[#allocation188_spill] sm:$0xff] }
 0x7a0   : > { %v2249_v57 = vmax.f32 %v2073_v19, %v2233_v40  ;;  %v1539_v37 = vsel %vm1523_vm5, %v18006_v38, -3e+38  ;;  %v13812_v19 = vld [vmem:[%s11959_s13 + $0x18] sm:$0xff]  ;;  %vm1693_vm11 = vcmp.ge.f32.partialorder %v18008_v18, 8.0  ;;  %v1883_v6 = vsel %vm1867_vm7, %v18009_v7, -3e+38 }
 0x7a1   : > { %v2192_v14 = vpop.xlane.xlu1 %2191  ;;  %v13807_v17 = vmax.f32 %v18005_v1, %v1540_v25  ;;  %v1710_v27 = vsel %vm1694_vm6, %v18011_v42, -3e+38  ;;  %vm1696_vm13 = vcmp.ge.f32.partialorder %v18012_v35, 8.0  ;;  %v18013_v61 = vld [vmem:[#allocation253_spill] sm:$0xff]  ;;  %v18014_v25 = vld [vmem:[#allocation250_spill] sm:$0xff]  ;;  %v18015_v60 = vmov 0 }
 0x7a2   : > { %v2265_v56 = vmax.f32 %v2249_v57, 0.0  ;;  %vm2220_vm10 = vcmp.ge.f32.partialorder %v2192_v14, 8.0  ;;  %vm1870_vm14 = vcmp.ge.f32.partialorder %v18013_v61, 8.0  ;;  %v2059_v26 = vsel %vm2043_vm8, %v18014_v25, -3e+38  ;;  %v18018_v57 = vld [vmem:[#allocation59_spill] sm:$0xff] }
 0x7a3   : > { %v2236_v11 = vsel %vm2220_vm10, %v18007_v29, -3e+38  ;;  %3183 = vmax.xlane.f32.xlu1 %v13802_v47  ;;  %vm2046_vm4 = vcmp.ge.f32.partialorder %v13447_v5, 8.0  ;;  %vm2284_vm5 = vcmp.gt.f32.partialorder %v13812_v19, 0.0  ;;  %v18019_v2 = vmax.f32 %v13628_v39, %v13688_v46  ;;  %v18021_v14 = vld [vmem:[#allocation191_spill] sm:$0xff]  ;;  %v18022_v38 = vld [vmem:[#allocation192_spill] sm:$0xff] }
 0x7a4   : > { %vm2297_vm12 = vcmp.ge.f32.partialorder %v18010_v9, %v2265_v56  ;;  %v2252_v40 = vmax.f32 %v2076_v48, %v2236_v11  ;;  %v18020_v48 = vld [vmem:[#allocation208_spill] sm:$0xff]  ;;  %v1709_v56 = vsel %vm1693_vm11, %v18021_v14, -3e+38  ;;  %v1899_v36 = vmax.f32 %v1723_v41, %v1883_v6  ;;  %v18023_v11 = vld [vmem:[#allocation222_spill] sm:$0xff]  ;;  %v18025_v9 = vld [vmem:[#allocation229_spill] sm:$0xff] }
 0x7a5   : > { %vm13829_vm15 = vmand %vm2281_vm9, %vm2297_vm12  ;;  %v13843_v16 = vmax.f32 %v18019_v2, %v1539_v37  ;;  %vm1526_vm6 = vcmp.ge.f32.partialorder %v18020_v48, 8.0  ;;  %v1726_v1 = vmax.f32 %v13723_v3, %v1710_v27  ;;  %v1712_v29 = vsel %vm1696_vm13, %v18022_v38, -3e+38  ;;  %v18024_v7 = vld [vmem:[#allocation62_spill] sm:$0xff]  ;;  %v18026_v39 = vld [vmem:[#allocation256_spill] sm:$0xff] }
 0x7a6   : > { %v18016_v60 = vsel %vm13829_vm15, 4294967295, %v18015_v60  ;;  %v2268_v33 = vmax.f32 %v2252_v40, 0.0  ;;  %v13838_v49 = vsel %vm13829_vm15, %v18018_v57, -9e+15  ;;  %v1886_v18 = vsel %vm1870_vm14, %v18023_v11, -3e+38 }
 0x7a7   : > { %18017 = vst [vmem:[#allocation129_spill] sm:$0xff] %v18016_v60  ;;  %2587 = vmax.xlane.f32.xlu0 %v13838_v49  ;;  %vm1695_vm8 = vcmp.ge.f32.partialorder %v18025_v9, 8.0  ;;  %vm1869_vm9 = vcmp.ge.f32.partialorder %v18026_v39, 8.0  ;;  %v2075_v46 = vmax.f32 %v1899_v36, %v2059_v26  ;;  %v18027_v37 = vld [vmem:[#allocation251_spill] sm:$0xff]  ;;  %v18028_v3 = vmov 0  ;;  %v18031_v40 = vld [vmem:[#allocation60_spill] sm:$0xff] }
 0x7a8   : > { %vm2300_vm7 = vcmp.ge.f32.partialorder %v18024_v7, %v2268_v33  ;;  %v2062_v41 = vsel %vm2046_vm4, %v18027_v37, -3e+38  ;;  %vm2045_vm11 = vcmp.ge.f32.partialorder %v13456_v10, 8.0  ;;  %v18032_v27 = vld [vmem:[#allocation88_spill] sm:$0xff]  ;;  %v18033_v35 = vld [vmem:[#allocation171_spill] sm:$0xff]  ;;  %v1725_v25 = vmax.f32 %v13728_v28, %v1709_v56  ;;  %v18034_v57 = vld [vmem:[#allocation277_spill] sm:$0xff] }
 0x7a9   : > { %vm13859_vm10 = vmand %vm2284_vm5, %vm2300_vm7  ;;  %v2190_v6 = vpop.xlane.xlu0 %2189  ;;  %v13872_v5 = vsel %vm13829_vm15, %v18032_v27, -9e+15  ;;  %v13877_v61 = vsel %vm1526_vm6, %v18033_v35, -3e+38  ;;  %v1902_v26 = vmax.f32 %v1726_v1, %v1886_v18  ;;  %v13881_v33 = vld [vmem:[%s11959_s13 + $0x10] sm:$0xff]  ;;  %v1728_v14 = vmax.f32 %v13750_v58, %v1712_v29  ;;  %v18036_v38 = vld [vmem:[#allocation221_spill] sm:$0xff] }
 0x7aa   : > { %v18029_v3 = vsel %vm13859_vm10, 4294967295, %v18028_v3  ;;  %vm2219_vm12 = vcmp.ge.f32.partialorder %v2190_v6, 8.0  ;;  %v13867_v42 = vsel %vm13859_vm10, %v18031_v40, -9e+15  ;;  %v18035_v36 = vld [vmem:[#allocation195_spill] sm:$0xff]  ;;  %v18037_v1 = vld [vmem:[#allocation257_spill] sm:$0xff] }
 0x7ab   : > { %18030 = vst [vmem:[#allocation132_spill] sm:$0xff] %v18029_v3  ;;  %v2235_v2 = vsel %vm2219_vm12, %v18034_v57, -3e+38  ;;  %2593 = vmax.xlane.f32.xlu1 %v13867_v42  ;;  %3181 = vmax.xlane.f32.xlu0 %v13872_v5  ;;  %v1711_v48 = vsel %vm1695_vm8, %v18035_v36, -3e+38  ;;  %vm1872_vm13 = vcmp.ge.f32.partialorder %v18037_v1, 8.0  ;;  %v2078_v11 = vmax.f32 %v1902_v26, %v2062_v41 }
 0x7ac   : > { %v1885_v28 = vsel %vm1869_vm9, %v18036_v38, -3e+38  ;;  %v2251_v56 = vmax.f32 %v2075_v46, %v2235_v2  ;;  %v18038_v18 = vld [vmem:[#allocation254_spill] sm:$0xff]  ;;  %vm2048_vm14 = vcmp.ge.f32.partialorder %v13461_v51, 8.0  ;;  %vm2283_vm4 = vcmp.gt.f32.partialorder %v13881_v33, 0.0  ;;  %v18039_v9 = vld [vmem:[#allocation89_spill] sm:$0xff] }
 0x7ad   : > { %v2061_v7 = vsel %vm2045_vm11, %v18038_v18, -3e+38  ;;  %v2196_v58 = vpop.xlane.xlu1 %2195  ;;  %v13902_v39 = vsel %vm13859_vm10, %v18039_v9, -9e+15  ;;  %v1727_v46 = vmax.f32 %v13761_v52, %v1711_v48  ;;  %v18040_v37 = vld [vmem:[#allocation230_spill] sm:$0xff]  ;;  %v1901_v41 = vmax.f32 %v1725_v25, %v1885_v28  ;;  %v18042_v27 = vld [vmem:[#allocation231_spill] sm:$0xff] }
 0x7ae   : > { %v2267_v29 = vmax.f32 %v2251_v56, 0.0  ;;  %vm2222_vm5 = vcmp.ge.f32.partialorder %v2196_v58, 8.0  ;;  %vm1698_vm6 = vcmp.ge.f32.partialorder %v18040_v37, 8.0  ;;  %v13907_v10 = vld [vmem:[%s11959_s13 + $0x28] sm:$0xff]  ;;  %vm1697_vm7 = vcmp.ge.f32.partialorder %v18042_v27, 8.0  ;;  %v18045_v52 = vld [vmem:[#allocation260_spill] sm:$0xff] }
 0x7af   : > { %v18041_v6 = vld [vmem:[#allocation278_spill] sm:$0xff]  ;;  %3187 = vmax.xlane.f32.xlu1 %v13902_v39  ;;  %v18043_v35 = vld [vmem:[#allocation225_spill] sm:$0xff]  ;;  %vm1871_vm9 = vcmp.ge.f32.partialorder %v18045_v52, 8.0  ;;  %v2077_v36 = vmax.f32 %v1901_v41, %v2061_v7  ;;  %v18046_v25 = vld [vmem:[#allocation255_spill] sm:$0xff]  ;;  %vm2047_vm11 = vcmp.ge.f32.partialorder %v13470_v24, 8.0  ;;  %v18047_v38 = vmov 0 }
 0x7b0   : > { %v2238_v40 = vsel %vm2222_vm5, %v18041_v6, -3e+38  ;;  %v1888_v26 = vsel %vm1872_vm13, %v18043_v35, -3e+38  ;;  %v18044_v57 = vld [vmem:[#allocation65_spill] sm:$0xff]  ;;  %vm2286_vm13 = vcmp.gt.f32.partialorder %v13907_v10, 0.0 }
 0x7b1   : > { %vm2299_vm8 = vcmp.ge.f32.partialorder %v18044_v57, %v2267_v29  ;;  %v2254_v2 = vmax.f32 %v2078_v11, %v2238_v40  ;;  %v2064_v48 = vsel %vm2048_vm14, %v18046_v25, -3e+38  ;;  %v2194_v28 = vpop.xlane.xlu0 %2193  ;;  %v13929_v1 = vld [vmem:[%s11959_s13 + $0x20] sm:$0xff]  ;;  %v18050_v11 = vld [vmem:[#allocation63_spill] sm:$0xff]  ;;  %v1904_v9 = vmax.f32 %v1728_v14, %v1888_v26 }
 0x7b2   : > { %vm13923_vm12 = vmand %vm2283_vm4, %vm2299_vm8  ;;  %vm2221_vm5 = vcmp.ge.f32.partialorder %v2194_v28, 8.0  ;;  %v18051_v18 = vld [vmem:[#allocation196_spill] sm:$0xff]  ;;  %v18052_v58 = vld [vmem:[#allocation199_spill] sm:$0xff]  ;;  %v18059_v14 = vmov 0  ;;  %vm2285_vm8 = vcmp.gt.f32.partialorder %v13929_v1, 0.0 }
 0x7b3   : > { %v18048_v38 = vsel %vm13923_vm12, 4294967295, %v18047_v38  ;;  %v2270_v56 = vmax.f32 %v2254_v2, 0.0  ;;  %v13934_v51 = vsel %vm13923_vm12, %v18050_v11, -9e+15  ;;  %v1714_v7 = vsel %vm1698_vm6, %v18051_v18, -3e+38 }
 0x7b4   : > { %18049 = vst [vmem:[#allocation105_spill] sm:$0xff] %v18048_v38  ;;  %v13942_v29 = vsel %vm1697_vm7, %v18052_v58, -3e+38  ;;  %v18053_v41 = vld [vmem:[#allocation279_spill] sm:$0xff]  ;;  %2591 = vmax.xlane.f32.xlu0 %v13934_v51  ;;  %v18055_v57 = vld [vmem:[#allocation261_spill] sm:$0xff]  ;;  %v2080_v25 = vmax.f32 %v1904_v9, %v2064_v48  ;;  %v18057_v28 = vld [vmem:[#allocation258_spill] sm:$0xff]  ;;  %v1730_v58 = vmax.f32 %v13778_v50, %v1714_v7 }
 0x7b5   : > { %v2237_v6 = vsel %vm2221_vm5, %v18053_v41, -3e+38  ;;  %v18054_v40 = vld [vmem:[#allocation227_spill] sm:$0xff]  ;;  %vm1874_vm14 = vcmp.ge.f32.partialorder %v18055_v57, 8.0  ;;  %v18056_v2 = vld [vmem:[#allocation69_spill] sm:$0xff]  ;;  %v2200_v52 = vpop.xlane.xlu1 %2199  ;;  %v18063_v48 = vld [vmem:[#allocation90_spill] sm:$0xff] }
 0x7b6   : > { %v1887_v35 = vsel %vm1871_vm9, %v18054_v40, -3e+38  ;;  %vm2302_vm4 = vcmp.ge.f32.partialorder %v18056_v2, %v2270_v56  ;;  %v2253_v37 = vmax.f32 %v2077_v36, %v2237_v6  ;;  %v2063_v27 = vsel %vm2047_vm11, %v18057_v28, -3e+38  ;;  %v18058_v11 = vld [vmem:[#allocation283_spill] sm:$0xff]  ;;  %v18062_v36 = vld [vmem:[#allocation64_spill] sm:$0xff] }
 0x7b7   : > { %vm2050_vm6 = vcmp.ge.f32.partialorder %v18058_v11, 8.0  ;;  %vm13957_vm7 = vmand %vm2286_vm13, %vm2302_vm4  ;;  %v13963_v26 = vld [vmem:[%s11959_s13 + $0x38] sm:$0xff]  ;;  %vm2224_vm9 = vcmp.ge.f32.partialorder %v2200_v52, 8.0  ;;  %v13973_v18 = vsel %vm13923_vm12, %v18063_v48, -9e+15  ;;  %v1903_v41 = vmax.f32 %v1727_v46, %v1887_v35  ;;  %v13997_v35 = vld [vmem:[%s11959_s13 + $0x30] sm:$0xff] }
 0x7b8   : > { %v18060_v14 = vsel %vm13957_vm7, 4294967295, %v18059_v14  ;;  %v2269_v56 = vmax.f32 %v2253_v37, 0.0  ;;  %v13968_v24 = vsel %vm13957_vm7, %v18062_v36, -9e+15  ;;  %v18064_v9 = vld [vmem:[#allocation236_spill] sm:$0xff]  ;;  %3185 = vmax.xlane.f32.xlu0 %v13973_v18  ;;  %v18068_v52 = vld [vmem:[#allocation67_spill] sm:$0xff] }
 0x7b9   : > { %18061 = vst [vmem:[#allocation133_spill] sm:$0xff] %v18060_v14  ;;  %vm1700_vm11 = vcmp.ge.f32.partialorder %v18064_v9, 8.0  ;;  %v18065_v6 = vld [vmem:[#allocation280_spill] sm:$0xff]  ;;  %2597 = vmax.xlane.f32.xlu1 %v13968_v24  ;;  %v2079_v48 = vmax.f32 %v1903_v41, %v2063_v27  ;;  %v18069_v50 = vld [vmem:[#allocation259_spill] sm:$0xff]  ;;  %vm2049_vm4 = vcmp.ge.f32.partialorder %v13487_v12, 8.0  ;;  %v18070_v7 = vmov 0  ;;  %v2198_v57 = vpop.xlane.xlu0 %2197 }
 0x7ba   : > { %v2240_v40 = vsel %vm2224_vm9, %v18065_v6, -3e+38  ;;  %v18066_v2 = vld [vmem:[#allocation228_spill] sm:$0xff]  ;;  %vm2301_vm5 = vcmp.ge.f32.partialorder %v18068_v52, %v2269_v56  ;;  %v2066_v46 = vsel %vm2050_vm6, %v18069_v50, -3e+38  ;;  %vm2223_vm0 = vcmp.ge.f32.partialorder %v2198_v57, 8.0 }
 0x7bb   : > { %v1890_v37 = vsel %vm1874_vm14, %v18066_v2, -3e+38  ;;  %v18067_v28 = vld [vmem:[#allocation264_spill] sm:$0xff]  ;;  %v2256_v36 = vmax.f32 %v2080_v25, %v2240_v40  ;;  %vm13991_vm9 = vmand %vm2285_vm8, %vm2301_vm5  ;;  %vm2288_vm14 = vcmp.gt.f32.partialorder %v13963_v26, 0.0  ;;  %v18073_v25 = vld [vmem:[#allocation91_spill] sm:$0xff]  ;;  %v1729_v6 = vmax.f32 %v13783_v59, %v13942_v29 }
 0x7bc   : > { %vm1873_vm13 = vcmp.ge.f32.partialorder %v18067_v28, 8.0  ;;  %v18071_v7 = vsel %vm13991_vm9, 4294967295, %v18070_v7  ;;  %v14002_v27 = vsel %vm13957_vm7, %v18073_v25, -9e+15  ;;  %v18074_v11 = vld [vmem:[#allocation66_spill] sm:$0xff]  ;;  %v18075_v40 = vld [vmem:[#allocation200_spill] sm:$0xff]  ;;  %v1906_v52 = vmax.f32 %v1730_v58, %v1890_v37 }
 0x7bd   : > { %18072 = vst [vmem:[#allocation136_spill] sm:$0xff] %v18071_v7  ;;  %v2272_v56 = vmax.f32 %v2256_v36, 0.0  ;;  %v14007_v41 = vsel %vm13991_vm9, %v18074_v11, -9e+15  ;;  %v1716_v2 = vsel %vm1700_vm11, %v18075_v40, -3e+38  ;;  %3191 = vmax.xlane.f32.xlu1 %v14002_v27  ;;  %v2204_v28 = vpop.xlane.xlu1 %2203 }
 0x7be   : > { %v18076_v36 = vld [vmem:[#allocation281_spill] sm:$0xff]  ;;  %2595 = vmax.xlane.f32.xlu0 %v14007_v41  ;;  %v18077_v57 = vld [vmem:[#allocation232_spill] sm:$0xff]  ;;  %v2082_v29 = vmax.f32 %v1906_v52, %v2066_v46  ;;  %v18080_v38 = vld [vmem:[#allocation262_spill] sm:$0xff]  ;;  %v18081_v9 = vmov 0  ;;  %vm2226_vm5 = vcmp.ge.f32.partialorder %v2204_v28, 8.0  ;;  %v18096_v7 = vmov 0 }
 0x7bf   : > { %v2239_v50 = vsel %vm2223_vm0, %v18076_v36, -3e+38  ;;  %v1889_v25 = vsel %vm1873_vm13, %v18077_v57, -3e+38  ;;  %v18078_v11 = vld [vmem:[#allocation265_spill] sm:$0xff]  ;;  %vm2052_vm0 = vcmp.ge.f32.partialorder %v13489_v8, 8.0 }
 0x7c0   : > { %vm1876_vm6 = vcmp.ge.f32.partialorder %v18078_v11, 8.0  ;;  %v18079_v14 = vld [vmem:[#allocation73_spill] sm:$0xff]  ;;  %v2255_v59 = vmax.f32 %v2079_v48, %v2239_v50  ;;  %v2065_v58 = vsel %vm2049_vm4, %v18080_v38, -3e+38  ;;  %vm2287_vm13 = vcmp.gt.f32.partialorder %v13997_v35, 0.0  ;;  %v18085_v48 = vld [vmem:[#allocation68_spill] sm:$0xff] }
 0x7c1   : > { %vm2304_vm8 = vcmp.ge.f32.partialorder %v18079_v14, %v2272_v56  ;;  %v14034_v37 = vld [vmem:[%s11959_s13 + $0x48] sm:$0xff]  ;;  %v18086_v38 = vld [vmem:[#allocation92_spill] sm:$0xff]  ;;  %v18087_v56 = vmax.f32 %v13640_v45, %v13697_v31  ;;  %v1905_v36 = vmax.f32 %v1729_v6, %v1889_v25  ;;  %v18093_v45 = vld [vmem:[#allocation71_spill] sm:$0xff]  ;;  %v1732_v6 = vmax.f32 %v13807_v17, %v1716_v2 }
 0x7c2   : > { %vm14028_vm11 = vmand %vm2288_vm14, %vm2304_vm8  ;;  %18084 = vst [vmem:[#allocation137_spill] sm:$0xff] %v14034_v37  ;;  %v2271_v14 = vmax.f32 %v2255_v59, 0.0  ;;  %v14044_v46 = vsel %vm13991_vm9, %v18086_v38, -9e+15  ;;  %v18088_v52 = vld [vmem:[#allocation233_spill] sm:$0xff]  ;;  %v18089_v50 = vld [vmem:[#allocation282_spill] sm:$0xff] }
 0x7c3   : > { %v18082_v9 = vsel %vm14028_vm11, 4294967295, %v18081_v9  ;;  %v14039_v12 = vsel %vm14028_vm11, %v18085_v48, -9e+15  ;;  %v14050_v40 = vmax.f32 %v18087_v56, %v13877_v61  ;;  %v2242_v57 = vsel %vm2226_vm5, %v18089_v50, -3e+38  ;;  %3189 = vmax.xlane.f32.xlu0 %v14044_v46  ;;  %v18090_v59 = vld [vmem:[#allocation146_spill] sm:$0xff] }
 0x7c4   : > { %18083 = vst [vmem:[#allocation106_spill] sm:$0xff] %v18082_v9  ;;  %2601 = vmax.xlane.f32.xlu1 %v14039_v12  ;;  %v18091_v28 = vld [vmem:[#allocation238_spill] sm:$0xff]  ;;  %vm2303_vm1 = vcmp.ge.f32.partialorder %v18093_v45, %v2271_v14  ;;  %v2258_v61 = vmax.f32 %v2082_v29, %v2242_v57  ;;  %v2081_v25 = vmax.f32 %v1905_v36, %v2065_v58  ;;  %v18095_v56 = vld [vmem:[#allocation263_spill] sm:$0xff]  ;;  %v14075_v11 = vld [vmem:[%s11959_s13 + $0x40] sm:$0xff]  ;;  %v2202_v29 = vpop.xlane.xlu0 %2201 }
 0x7c5   : > { %vm1702_vm8 = vcmp.ge.f32.partialorder %v18091_v28, 8.0  ;;  %v18092_v48 = vld [vmem:[#allocation234_spill] sm:$0xff]  ;;  %v2068_v50 = vsel %vm2052_vm0, %v18095_v56, -3e+38  ;;  %vm14069_vm5 = vmand %vm2287_vm13, %vm2303_vm1  ;;  %vm2225_vm4 = vcmp.ge.f32.partialorder %v2202_v29, 8.0  ;;  %v18099_v57 = vld [vmem:[#allocation93_spill] sm:$0xff]  ;;  %v2208_v28 = vpop.xlane.xlu1 %2207 }
 0x7c6   : > { %v1892_v31 = vsel %vm1876_vm6, %v18092_v48, -3e+38  ;;  %v18094_v38 = vld [vmem:[#allocation178_spill] sm:$0xff]  ;;  %v18097_v7 = vsel %vm14069_vm5, 4294967295, %v18096_v7  ;;  %vm2290_vm6 = vcmp.gt.f32.partialorder %v14034_v37, 0.0  ;;  %v2274_v14 = vmax.f32 %v2258_v61, 0.0 }
 0x7c7   : > { %18098 = vst [vmem:[#allocation140_spill] sm:$0xff] %v18097_v7  ;;  %v14080_v17 = vsel %vm14028_vm11, %v18099_v57, -9e+15  ;;  %v18100_v8 = vld [vmem:[#allocation70_spill] sm:$0xff]  ;;  %v18101_v58 = vld [vmem:[#allocation203_spill] sm:$0xff]  ;;  %vm18102_vm1 = vcmp.ge.f32.partialorder %v18088_v52, 8.0  ;;  %v1908_v61 = vmax.f32 %v1732_v6, %v1892_v31 }
 0x7c8   : > { %v14085_v2 = vsel %vm14069_vm5, %v18100_v8, -9e+15  ;;  %v1715_v36 = vsel %vm18102_vm1, %v18101_v58, -3e+38  ;;  %v18103_v48 = vld [vmem:[#allocation204_spill] sm:$0xff]  ;;  %3195 = vmax.xlane.f32.xlu1 %v14080_v17  ;;  %v18104_v29 = vld [vmem:[#allocation269_spill] sm:$0xff] }
 0x7c9   : > { %v1718_v45 = vsel %vm1702_vm8, %v18103_v48, -3e+38  ;;  %v2241_v56 = vsel %vm2225_vm4, %v13477_v15, -3e+38  ;;  %2599 = vmax.xlane.f32.xlu0 %v14085_v2  ;;  %vm1878_vm0 = vcmp.ge.f32.partialorder %v18104_v29, 8.0  ;;  %v18105_v57 = vld [vmem:[#allocation268_spill] sm:$0xff]  ;;  %v2084_v58 = vmax.f32 %v1908_v61, %v2068_v50 }
 0x7ca   : > { %v18106_v8 = vld [vmem:[#allocation77_spill] sm:$0xff]  ;;  %v2257_v52 = vmax.f32 %v2081_v25, %v2241_v56  ;;  %vm2054_vm1 = vcmp.ge.f32.partialorder %v13503_v21, 8.0  ;;  %vm2051_vm8 = vcmp.ge.f32.partialorder %v13501_v30, 8.0  ;;  %v18107_v15 = vmov 0  ;;  %v18110_v6 = vld [vmem:[#allocation72_spill] sm:$0xff]  ;;  %v18111_v50 = vld [vmem:[#allocation94_spill] sm:$0xff] }
 0x7cb   : > { %vm2306_vm14 = vcmp.ge.f32.partialorder %v18106_v8, %v2274_v14  ;;  %vm2228_vm13 = vcmp.ge.f32.partialorder %v2208_v28, 8.0  ;;  %v14116_v14 = vsel %vm14069_vm5, %v18111_v50, -9e+15  ;;  %v18112_v48 = vld [vmem:[#allocation207_spill] sm:$0xff]  ;;  %v1731_v56 = vmax.f32 %v13843_v16, %v1715_v36  ;;  %v18116_v50 = vld [vmem:[#allocation237_spill] sm:$0xff]  ;;  %v18127_v21 = vld [vmem:[#allocation74_spill] sm:$0xff] }
 0x7cc   : > { %vm14103_vm4 = vmand %vm2290_vm6, %vm2306_vm14  ;;  %v2273_v31 = vmax.f32 %v2257_v52, 0.0  ;;  %v18113_v61 = vld [vmem:[#allocation211_spill] sm:$0xff]  ;;  %v18114_v52 = vld [vmem:[#allocation284_spill] sm:$0xff]  ;;  %vm18117_vm11 = vcmp.ge.f32.partialorder %v18105_v57, 8.0  ;;  %v1734_v36 = vmax.f32 %v14050_v40, %v1718_v45  ;;  %v18123_v57 = vmov 0 }
 0x7cd   : > { %v18108_v15 = vsel %vm14103_vm4, 4294967295, %v18107_v15  ;;  %v14111_v25 = vsel %vm14103_vm4, %v18110_v6, -9e+15  ;;  %v14122_v8 = vld [vmem:[%s11959_s13 + $0x58] sm:$0xff]  ;;  %v2244_v28 = vsel %vm2228_vm13, %v18114_v52, -3e+38  ;;  %3193 = vmax.xlane.f32.xlu0 %v14116_v14 }
 0x7ce   : > { %18109 = vst [vmem:[#allocation107_spill] sm:$0xff] %v18108_v15  ;;  %2605 = vmax.xlane.f32.xlu1 %v14111_v25  ;;  %v18115_v6 = vld [vmem:[#allocation235_spill] sm:$0xff]  ;;  %v1891_v9 = vsel %vm18117_vm11, %v18116_v50, -3e+38  ;;  %v2260_v60 = vmax.f32 %v2084_v58, %v2244_v28  ;;  %v18120_v52 = vld [vmem:[#allocation266_spill] sm:$0xff]  ;;  %v18128_v30 = vld [vmem:[#allocation116_spill] sm:$0xff] }
 0x7cf   : > { %v1894_v7 = vsel %vm1878_vm0, %v18115_v6, -3e+38  ;;  %v18118_v3 = vld [vmem:[#allocation75_spill] sm:$0xff]  ;;  %v2070_v43 = vsel %vm2054_vm1, %v18120_v52, -3e+38  ;;  %vm18122_vm0 = vcmp.gt.f32.partialorder %v14075_v11, 0.0  ;;  %v1907_v6 = vmax.f32 %v1731_v56, %v1891_v9 }
 0x7d0   : > { %vm2305_vm6 = vcmp.ge.f32.partialorder %v18118_v3, %v2273_v31  ;;  %v18119_v16 = vld [vmem:[#allocation243_spill] sm:$0xff]  ;;  %v2276_v3 = vmax.f32 %v2260_v60, 0.0  ;;  %vm18129_vm1 = vcmp.ge.f32.partialorder %v18090_v59, 8.0  ;;  %v1381_v31 = vmax.f32 %v13645_v32, %v13716_v54  ;;  %v18132_v52 = vld [vmem:[#allocation174_spill] sm:$0xff]  ;;  %v18136_v32 = vld [vmem:[#allocation80_spill] sm:$0xff] }
 0x7d1   : > { %vm1701_vm14 = vcmp.ge.f32.partialorder %v18119_v16, 8.0  ;;  %v18121_v37 = vld [vmem:[#allocation267_spill] sm:$0xff]  ;;  %vm14144_vm13 = vmand %vm18122_vm0, %vm2305_vm6  ;;  %v1910_v28 = vmax.f32 %v1734_v36, %v1894_v7  ;;  %vm18133_vm6 = vcmp.ge.f32.partialorder %v18112_v48, 8.0  ;;  %vm18135_vm0 = vcmp.ge.f32.partialorder %v18113_v61, 8.0  ;;  %v18137_v54 = vld [vmem:[#allocation206_spill] sm:$0xff]  ;;  %v2212_v36 = vpop.xlane.xlu1 %2211  ;;  %v2206_v61 = vpop.xlane.xlu0 %2205 }
 0x7d2   : > { %v2067_v29 = vsel %vm2051_vm8, %v18121_v37, -3e+38  ;;  %v18124_v57 = vsel %vm14144_vm13, 4294967295, %v18123_v57  ;;  %v18126_v58 = vld [vmem:[#allocation95_spill] sm:$0xff]  ;;  %v14157_v45 = vsel %vm14144_vm13, %v18127_v21, -9e+15 }
 0x7d3   : > { %18125 = vst [vmem:[#allocation108_spill] sm:$0xff] %v18124_v57  ;;  %v14152_v40 = vsel %vm14103_vm4, %v18126_v58, -9e+15  ;;  %v1192_v37 = vsel %vm18129_vm1, %v18128_v30, -3e+38  ;;  %2603 = vmax.xlane.f32.xlu0 %v14157_v45  ;;  %v18130_v60 = vld [vmem:[#allocation143_spill] sm:$0xff]  ;;  %vm2308_vm1 = vcmp.ge.f32.partialorder %v18136_v32, %v2276_v3  ;;  %v2086_v56 = vmax.f32 %v1910_v28, %v2070_v43 }
 0x7d4   : > { %3199 = vmax.xlane.f32.xlu1 %v14152_v40  ;;  %vm18131_vm8 = vcmp.ge.f32.partialorder %v18094_v38, 8.0  ;;  %v1541_v58 = vsel %vm18133_vm6, %v18132_v52, -3e+38  ;;  %v18134_v21 = vld [vmem:[#allocation175_spill] sm:$0xff]  ;;  %v1717_v7 = vsel %vm1701_vm14, %v18137_v54, -3e+38  ;;  %v2083_v38 = vmax.f32 %v1907_v6, %v2067_v29 }
 0x7d5   : > { %v1368_v50 = vsel %vm18131_vm8, %v18130_v60, -3e+38  ;;  %v1544_v59 = vsel %vm18135_vm0, %v18134_v21, -3e+38  ;;  %v18138_v9 = vld [vmem:[#allocation274_spill] sm:$0xff]  ;;  %vm18139_vm8 = vcmp.gt.f32.partialorder %v14122_v8, 0.0  ;;  %v1557_v6 = vmax.f32 %v1381_v31, %v1541_v58 }
 0x7d6   : > { %vm1877_vm11 = vcmp.ge.f32.partialorder %v18138_v9, 8.0  ;;  %vm14182_vm4 = vmand %vm18139_vm8, %vm2308_vm1  ;;  %v18140_v48 = vmov 0  ;;  %vm2230_vm6 = vcmp.ge.f32.partialorder %v2212_v36, 8.0  ;;  %vm2227_vm0 = vcmp.ge.f32.partialorder %v2206_v61, 8.0  ;;  %v18143_v3 = vld [vmem:[#allocation76_spill] sm:$0xff]  ;;  %v14199_v60 = vld [vmem:[%s11959_s13 + $0x68] sm:$0xff] }
 0x7d7   : > { %v18141_v48 = vsel %vm14182_vm4, 4294967295, %v18140_v48  ;;  %v14189_v16 = vsel %vm14182_vm4, %v18143_v3, -9e+15  ;;  %v18144_v30 = vld [vmem:[#allocation96_spill] sm:$0xff]  ;;  %v18145_v29 = vmax.f32 %v13568_v44, -3e+38  ;;  %v1733_v31 = vmax.f32 %v1557_v6, %v1717_v7 }
 0x7d8   : > { %18142 = vst [vmem:[#allocation109_spill] sm:$0xff] %v18141_v48  ;;  %v14194_v43 = vsel %vm14144_vm13, %v18144_v30, -9e+15  ;;  %v18146_v52 = vld [vmem:[#allocation285_spill] sm:$0xff]  ;;  %v2243_v32 = vsel %vm2227_vm0, %v13493_v4, -3e+38  ;;  %2609 = vmax.xlane.f32.xlu1 %v14189_v16 }
 0x7d9   : > { %v1208_v28 = vmax.f32 %v18145_v29, %v1192_v37  ;;  %v2246_v21 = vsel %vm2230_vm6, %v18146_v52, -3e+38  ;;  %3197 = vmax.xlane.f32.xlu0 %v14194_v43  ;;  %v18147_v54 = vld [vmem:[#allocation241_spill] sm:$0xff]  ;;  %vm2053_vm1 = vcmp.ge.f32.partialorder %v13553_v22, 8.0  ;;  %v14208_v61 = vld [vmem:[%s11959_s13 + $0x50] sm:$0xff]  ;;  %v2259_v44 = vmax.f32 %v2083_v38, %v2243_v32  ;;  %v18149_v30 = vld [vmem:[#allocation272_spill] sm:$0xff] }
 0x7da   : > { %vm1704_vm14 = vcmp.ge.f32.partialorder %v18147_v54, 8.0  ;;  %v2262_v36 = vmax.f32 %v2086_v56, %v2246_v21  ;;  %v18148_v58 = vld [vmem:[#allocation239_spill] sm:$0xff]  ;;  %vm1880_vm8 = vcmp.ge.f32.partialorder %v18149_v30, 8.0  ;;  %vm2294_vm6 = vcmp.gt.f32.partialorder %v14199_v60, 0.0  ;;  %v18150_v52 = vld [vmem:[#allocation97_spill] sm:$0xff]  ;;  %v18151_v38 = vld [vmem:[#allocation210_spill] sm:$0xff] }
 0x7db   : > { %v1384_v37 = vmax.f32 %v1208_v28, %v1368_v50  ;;  %v1893_v3 = vsel %vm1877_vm11, %v18148_v58, -3e+38  ;;  %v2275_v29 = vmax.f32 %v2259_v44, 0.0  ;;  %v14218_v22 = vsel %vm14182_vm4, %v18150_v52, -9e+15  ;;  %v18152_v7 = vld [vmem:[#allocation270_spill] sm:$0xff] }
 0x7dc   : > { %v2278_v4 = vmax.f32 %v2262_v36, 0.0  ;;  %v1720_v50 = vsel %vm1704_vm14, %v18151_v38, -3e+38  ;;  %v2069_v28 = vsel %vm2053_vm1, %v18152_v7, -3e+38  ;;  %vm2291_vm0 = vcmp.gt.f32.partialorder %v14208_v61, 0.0  ;;  %3203 = vmax.xlane.f32.xlu1 %v14218_v22  ;;  %v2216_v38 = vpop.xlane.xlu1 %2215 }
 0x7dd   : > { %v1560_v56 = vmax.f32 %v1384_v37, %v1544_v59  ;;  %v1909_v9 = vmax.f32 %v1733_v31, %v1893_v3  ;;  %vm2056_vm11 = vcmp.ge.f32.partialorder %v13706_v0, 8.0  ;;  %v18153_v6 = vld [vmem:[#allocation84_spill] sm:$0xff]  ;;  %vm2307_vm5 = vcmp.ge.f32.partialorder %v12457_v53, %v2275_v29  ;;  %v2210_v59 = vpop.xlane.xlu0 %2209  ;;  %v18161_v0 = vld [vmem:[#allocation79_spill] sm:$0xff] }
 0x7de   : > { %vm2310_vm13 = vcmp.ge.f32.partialorder %v18153_v6, %v2278_v4  ;;  %v18154_v21 = vld [vmem:[#allocation240_spill] sm:$0xff]  ;;  %v18155_v54 = vmov 0  ;;  %vm14232_vm14 = vmand %vm2291_vm0, %vm2307_vm5  ;;  %v18158_v37 = vmov 0  ;;  %vm2229_vm1 = vcmp.ge.f32.partialorder %v2210_v59, 8.0  ;;  %v18162_v58 = vld [vmem:[#allocation271_spill] sm:$0xff] }
 0x7df   : > { %v1896_v32 = vsel %vm1880_vm8, %v18154_v21, -3e+38  ;;  %vm14228_vm4 = vmand %vm2294_vm6, %vm2310_vm13  ;;  %v1736_v36 = vmax.f32 %v1560_v56, %v1720_v50  ;;  %v2085_v44 = vmax.f32 %v1909_v9, %v2069_v28  ;;  %v18159_v37 = vsel %vm14232_vm14, 4294967295, %v18158_v37  ;;  %v14237_v31 = vld [vmem:[%s11959_s13 + $0x60] sm:$0xff]  ;;  %v18163_v4 = vld [vmem:[#allocation78_spill] sm:$0xff] }
 0x7e0   : > { %v18156_v54 = vsel %vm14228_vm4, 4294967295, %v18155_v54  ;;  %18160 = vst [vmem:[#allocation111_spill] sm:$0xff] %v18159_v37  ;;  %v14242_v53 = vsel %vm14228_vm4, %v18161_v0, -9e+15  ;;  %v2072_v3 = vsel %vm2056_vm11, %v18162_v58, -3e+38 }
 0x7e1   : > { %18157 = vst [vmem:[#allocation110_spill] sm:$0xff] %v18156_v54  ;;  %v2245_v30 = vsel %vm2229_vm1, %v13505_v23, -3e+38  ;;  %2613 = vmax.xlane.f32.xlu1 %v14242_v53  ;;  %v14250_v29 = vsel %vm14232_vm14, %v18163_v4, -9e+15  ;;  %v1912_v52 = vmax.f32 %v1736_v36, %v1896_v32  ;;  %vm2293_vm5 = vcmp.gt.f32.partialorder %v14237_v31, 0.0 }
 0x7e2   : > { %v2261_v56 = vmax.f32 %v2085_v44, %v2245_v30  ;;  %2607 = vmax.xlane.f32.xlu0 %v14250_v29  ;;  %vm2232_vm13 = vcmp.ge.f32.partialorder %v2216_v38, 8.0  ;;  %v18164_v28 = vld [vmem:[#allocation99_spill] sm:$0xff]  ;;  %v18165_v21 = vld [vmem:[#allocation98_spill] sm:$0xff]  ;;  %v18167_v44 = vmov 0  ;;  %v18177_v38 = vld [vmem:[#allocation29_spill] sm:$0xff] }
 0x7e3   : > { %v2088_v50 = vmax.f32 %v1912_v52, %v2072_v3  ;;  %v14257_v23 = vsel %vm14228_vm4, %v18164_v28, -9e+15  ;;  %v14260_v9 = vld [vmem:[%s11959_s13 + $0x78] sm:$0xff]  ;;  %v2248_v6 = vsel %vm2232_vm13, %v13510_v34, -3e+38  ;;  %v18166_v59 = vld [vmem:[#allocation82_spill] sm:$0xff] }
 0x7e4   : > { %v2277_v7 = vmax.f32 %v2261_v56, 0.0  ;;  %v14267_v32 = vsel %vm14232_vm14, %v18165_v21, -9e+15  ;;  %vm2296_vm0 = vcmp.gt.f32.partialorder %v14260_v9, 0.0  ;;  %v18170_v34 = vld [vmem:[#allocation81_spill] sm:$0xff]  ;;  %v18171_v3 = vmov 0 }
 0x7e5   : > { %3207 = vmax.xlane.f32.xlu1 %v14257_v23  ;;  %v2264_v36 = vmax.f32 %v2088_v50, %v2248_v6  ;;  %v18174_v30 = vld [vmem:[#allocation83_spill] sm:$0xff]  ;;  %v18175_v52 = vld [vmem:[#allocation100_spill] sm:$0xff]  ;;  %v18186_v37 = vld [vmem:[#allocation177_spill] sm:$0xff] }
 0x7e6   : > { %vm2309_vm8 = vcmp.ge.f32.partialorder %v18166_v59, %v2277_v7  ;;  %3201 = vmax.xlane.f32.xlu0 %v14267_v32  ;;  %v18178_v50 = vld [vmem:[#allocation119_spill] sm:$0xff]  ;;  %v18181_v21 = vld [vmem:[#allocation180_spill] sm:$0xff]  ;;  %v18182_v59 = vld [vmem:[#allocation117_spill] sm:$0xff] }
 0x7e7   : > { %vm14271_vm6 = vmand %vm2293_vm5, %vm2309_vm8  ;;  %v2280_v0 = vmax.f32 %v2264_v36, 0.0  ;;  %vm999_vm5 = vcmp.ge.f32.partialorder %v18178_v50, 8.0  ;;  %v18179_v7 = vld [vmem:[#allocation147_spill] sm:$0xff]  ;;  %vm1351_vm8 = vcmp.ge.f32.partialorder %v18181_v21, 8.0  ;;  %v18185_v54 = vld [vmem:[#allocation244_spill] sm:$0xff] }
 0x7e8   : > { %v18168_v44 = vsel %vm14271_vm6, 4294967295, %v18167_v44  ;;  %v14279_v58 = vsel %vm14271_vm6, %v18170_v34, -9e+15  ;;  %v14296_v56 = vsel %vm14271_vm6, %v18175_v52, -9e+15  ;;  %vm1175_vm13 = vcmp.ge.f32.partialorder %v18179_v7, 8.0 }
 0x7e9   : > { %18169 = vst [vmem:[#allocation112_spill] sm:$0xff] %v18168_v44  ;;  %vm2312_vm11 = vcmp.ge.f32.partialorder %v12485_v63, %v2280_v0  ;;  %v18176_v63 = vld [vmem:[#allocation24_spill] sm:$0xff]  ;;  %v18180_v28 = vld [vmem:[#allocation103_spill] sm:$0xff]  ;;  %v1191_v36 = vsel %vm1175_vm13, %v18182_v59, -3e+38  ;;  %v18183_v34 = vld [vmem:[#allocation214_spill] sm:$0xff] }
 0x7ea   : > { %2611 = vmax.xlane.f32.xlu0 %v14279_v58  ;;  %vm14283_vm1 = vmand %vm2296_vm0, %vm2312_vm11  ;;  %v1015_v6 = vsel %vm999_vm5, %v18180_v28, -3e+38  ;;  %vm1527_vm0 = vcmp.ge.f32.partialorder %v18183_v34, 8.0  ;;  %vm1703_vm11 = vcmp.ge.f32.partialorder %v18185_v54, 8.0  ;;  %v18187_v57 = vld [vmem:[#allocation275_spill] sm:$0xff]  ;;  %v18188_v7 = vld [vmem:[#allocation209_spill] sm:$0xff] }
 0x7eb   : > { %v18172_v3 = vsel %vm14283_vm1, 4294967295, %v18171_v3  ;;  %v14290_v4 = vsel %vm14283_vm1, %v18174_v30, -9e+15  ;;  %v1031_v0 = vmax.f32 %v1015_v6, -3e+38  ;;  %v18184_v30 = vld [vmem:[#allocation145_spill] sm:$0xff] }
 0x7ec   : > { %18173 = vst [vmem:[#allocation113_spill] sm:$0xff] %v18172_v3  ;;  %2617 = vmax.xlane.f32.xlu1 %v14290_v4  ;;  %v1367_v52 = vsel %vm1351_vm8, %v18184_v30, -3e+38  ;;  %v1543_v48 = vsel %vm1527_vm0, %v18186_v37, -3e+38  ;;  %vm1879_vm6 = vcmp.ge.f32.partialorder %v18187_v57, 8.0 }
 0x7ed   : > { %v1207_v44 = vmax.f32 %v1031_v0, %v1191_v36  ;;  %v1719_v28 = vsel %vm1703_vm11, %v18188_v7, -3e+38  ;;  %vm2055_vm5 = vcmp.ge.f32.partialorder %v13743_v62, 8.0  ;;  %v18189_v21 = vld [vmem:[#allocation242_spill] sm:$0xff]  ;;  %v18190_v34 = vld [vmem:[#allocation273_spill] sm:$0xff]  ;;  %v18191_v37 = vld [vmem:[#allocation104_spill] sm:$0xff] }
 0x7ee   : > { %3205 = vmax.xlane.f32.xlu0 %v14296_v56  ;;  %v1895_v6 = vsel %vm1879_vm6, %v18189_v21, -3e+38  ;;  %v14318_v54 = vld [vmem:[%s11959_s13 + $0x70] sm:$0xff]  ;;  %v18193_v62 = vmov 0  ;;  %v18198_v21 = vld [vmem:[#allocation33_spill] sm:$0xff]  ;;  %vm18239_vm6 = vcmask 130048  }
 0x7ef   : > { %v1383_v50 = vmax.f32 %v1207_v44, %v1367_v52  ;;  %vm2295_vm8 = vcmp.gt.f32.partialorder %v14318_v54, 0.0 }
 0x7f1   : > { %v1559_v15 = vmax.f32 %v1383_v50, %v1543_v48  ;;  %v18192_v48 = vld [vmem:[#allocation86_spill] sm:$0xff] }
 0x7f3   : > { %v1735_v59 = vmax.f32 %v1559_v15, %v1719_v28  ;;  %v18196_v15 = vld [vmem:[#allocation101_spill] sm:$0xff] }
 0x7f4   : > { %v14330_v52 = vsel %vm14283_vm1, %v18196_v15, -9e+15 }
 0x7f5   : > { %v1911_v30 = vmax.f32 %v1735_v59, %v1895_v6 }
 0x7fd   : > { %10626 = vrot.lane.b32.xlu1 %v18176_v63, %s11708_s16  ;;  %v2071_v63 = vsel %vm2055_vm5, %v18190_v34, -3e+38  ;;  %vm18240_vm5 = vmmov %vm18239_vm6 }
 0x7fe   : > { %v2087_v36 = vmax.f32 %v1911_v30, %v2071_v63  ;;  %v18197_v63 = vld [vmem:[#allocation85_spill] sm:$0xff] }
 0x804   : > { %10631 = vrot.lane.b32.xlu0 %v18177_v38, %s11708_s16 }
 0x80e   : > { %v2214_v38 = vpop.xlane.xlu0 %2213 }
 0x80f   : > { %vm2231_vm13 = vcmp.ge.f32.partialorder %v2214_v38, 8.0 }
 0x810   : > { %v2247_v44 = vsel %vm2231_vm13, %v18191_v37, -3e+38  ;;  %vm18241_vm13 = vmmov %vm18240_vm5 }
 0x811   : > { %v2263_v0 = vmax.f32 %v2087_v36, %v2247_v44 }
 0x813   : > { %v2279_v57 = vmax.f32 %v2263_v0, 0.0 }
 0x815   : > { %vm2311_vm0 = vcmp.ge.f32.partialorder %v18192_v48, %v2279_v57 }
 0x816   : > { %vm14323_vm11 = vmand %vm2295_vm8, %vm2311_vm0 }
 0x817   : > { %v18194_v62 = vsel %vm14323_vm11, 4294967295, %v18193_v62  ;;  %v14335_v38 = vsel %vm14323_vm11, %v18197_v63, -9e+15  ;;  %vm18242_vm8 = vmmov %vm18240_vm5 }
 0x818   : > { %18195 = vst [vmem:[#allocation141_spill] sm:$0xff] %v18194_v62  ;;  %vm18243_vm0 = vmmov %vm18240_vm5 }
 0x821   : > { %3211 = vmax.xlane.f32.xlu1 %v14330_v52 }
 0x823   : > { %2615 = vmax.xlane.f32.xlu0 %v14335_v38 }
 0x82c   : > { %v2590_v50 = vpop.xlane.xlu1 %2589 }
 0x82d   : > { %v2620_v7 = vsub.f32 %v13773_v13, %v2590_v50 }
 0x82f   : > { %v2637_v28 = vmul.f32 1.442695, %v2620_v7 }
 0x830   : > { %v3184_v6 = vpop.xlane.xlu1 %3183 }
 0x831   : > { %10865 = vpow2.f32 %v2637_v28  ;;  %v3214_v0 = vsub.f32 %v13802_v47, %v3184_v6 }
 0x833   : > { %v3231_v50 = vmul.f32 1.442695, %v3214_v0 }
 0x834   : > { %v2588_v59 = vpop.xlane.xlu0 %2587 }
 0x835   : > { %v2619_v7 = vsub.f32 %v13838_v49, %v2588_v59 }
 0x837   : > { %v2635_v28 = vmul.f32 1.442695, %v2619_v7  ;;  %v18199_v7 = vld [vmem:[#allocation102_spill] sm:$0xff] }
 0x838   : > { %v2594_v34 = vpop.xlane.xlu1 %2593  ;;  %v3182_v30 = vpop.xlane.xlu0 %3181 }
 0x839   : > { %10636 = vrot.lane.b32.xlu0 %v18198_v21, %s11708_s16  ;;  %v2622_v36 = vsub.f32 %v13867_v42, %v2594_v34  ;;  %v3213_v37 = vsub.f32 %v13872_v5, %v3182_v30 }
 0x83b   : > { %v10866_v44 = vpop.eup %10865  ;;  %v3229_v57 = vmul.f32 1.442695, %v3213_v37  ;;  %v2641_v48 = vmul.f32 1.442695, %v2622_v36 }
 0x83c   : > { %v3188_v15 = vpop.xlane.xlu1 %3187  ;;  %v14346_v13 = vmul.f32 %v10866_v44, %v13733_v20 }
 0x83d   : > { %v3216_v63 = vsub.f32 %v13902_v39, %v3188_v15  ;;  %10867 = vpow2.f32 %v3229_v57 }
 0x83e   : > { %2685 = vadd.xlane.f32.xlu1 %v14346_v13  ;;  %10869 = vpow2.f32 %v2641_v48 }
 0x83f   : > { %v3235_v42 = vmul.f32 1.442695, %v3216_v63  ;;  %10871 = vpow2.f32 %v3231_v50 }
 0x841   : > { %v2592_v5 = vpop.xlane.xlu0 %2591  ;;  %10873 = vpow2.f32 %v3235_v42  ;;  %v14364_v42 = vsel %vm14323_vm11, %v18199_v7, -9e+15  ;;  %vm18245_vm11 = vmmov %vm18243_vm0 }
 0x842   : > { %v2621_v47 = vsub.f32 %v13934_v51, %v2592_v5  ;;  %10875 = vpow2.f32 %v2635_v28 }
 0x844   : > { %v2639_v39 = vmul.f32 1.442695, %v2621_v47 }
 0x845   : > { %v3186_v34 = vpop.xlane.xlu0 %3185 }
 0x846   : > { %v2598_v6 = vpop.xlane.xlu1 %2597  ;;  %v3215_v37 = vsub.f32 %v13973_v18, %v3186_v34 }
 0x847   : > { %v2624_v30 = vsub.f32 %v13968_v24, %v2598_v6  ;;  %v10868_v44 = vpop.eup %10867 }
 0x848   : > { %v14355_v59 = vmul.f32 %v10868_v44, %v13786_v55  ;;  %v10870_v57 = vpop.eup %10869  ;;  %v3233_v51 = vmul.f32 1.442695, %v3215_v37 }
 0x849   : > { %v2645_v36 = vmul.f32 1.442695, %v2624_v30  ;;  %v10872_v63 = vpop.eup %10871  ;;  %v14367_v5 = vmul.f32 %v10870_v57, %v13812_v19 }
 0x84a   : > { %v3192_v0 = vpop.xlane.xlu1 %3191  ;;  %3277 = vadd.xlane.f32.xlu1 %v14355_v59  ;;  %v14373_v30 = vmul.f32 %v10872_v63, %v13733_v20 }
 0x84b   : > { %v2596_v49 = vpop.xlane.xlu0 %2595  ;;  %10877 = vpow2.f32 %v2645_v36  ;;  %v3218_v48 = vsub.f32 %v14002_v27, %v3192_v0  ;;  %v10874_v28 = vpop.eup %10873 }
 0x84c   : > { %10879 = vpow2.f32 %v2639_v39  ;;  %v2623_v47 = vsub.f32 %v14007_v41, %v2596_v49  ;;  %v10876_v39 = vpop.eup %10875  ;;  %v14377_v37 = vmul.f32 %v10874_v28, %v13812_v19 }
 0x84d   : > { %10881 = vpow2.f32 %v3233_v51  ;;  %v3239_v27 = vmul.f32 1.442695, %v3218_v48  ;;  %v14383_v51 = vmul.f32 %v10876_v39, %v13786_v55 }
 0x84e   : > { %2689 = vadd.xlane.f32.xlu1 %v14367_v5  ;;  %v2643_v41 = vmul.f32 1.442695, %v2623_v47 }
 0x850   : > { %v3190_v15 = vpop.xlane.xlu0 %3189 }
 0x851   : > { %v2602_v24 = vpop.xlane.xlu1 %2601  ;;  %v3217_v18 = vsub.f32 %v14044_v46, %v3190_v15 }
 0x852   : > { %v2626_v50 = vsub.f32 %v14039_v12, %v2602_v24  ;;  %3283 = vadd.xlane.f32.xlu1 %v14377_v37 }
 0x853   : > { %v3237_v6 = vmul.f32 1.442695, %v3217_v18 }
 0x854   : > { %v2649_v12 = vmul.f32 1.442695, %v2626_v50 }
 0x855   : > { %v3196_v46 = vpop.xlane.xlu1 %3195  ;;  %10883 = vpow2.f32 %v3237_v6  ;;  %v10878_v44 = vpop.eup %10877 }
 0x856   : > { %v2600_v34 = vpop.xlane.xlu0 %2599  ;;  %v3220_v36 = vsub.f32 %v14080_v17, %v3196_v46  ;;  %10885 = vpow2.f32 %v3239_v27  ;;  %v14386_v19 = vmul.f32 %v10878_v44, %v13907_v10  ;;  %v10880_v17 = vpop.eup %10879 }
 0x857   : > { %v2625_v0 = vsub.f32 %v14085_v2, %v2600_v34  ;;  %10887 = vpow2.f32 %v2649_v12  ;;  %v14393_v55 = vmul.f32 %v10880_v17, %v13881_v33  ;;  %v10882_v18 = vpop.eup %10881 }
 0x858   : > { %3209 = vmax.xlane.f32.xlu0 %v14364_v42  ;;  %v3243_v49 = vmul.f32 1.442695, %v3220_v36  ;;  %10889 = vpow2.f32 %v2643_v41  ;;  %2693 = vadd.xlane.f32.xlu1 %v14386_v19  ;;  %v14399_v12 = vmul.f32 %v10882_v18, %v13881_v33 }
 0x859   : > { %v2647_v24 = vmul.f32 1.442695, %v2625_v0 }
 0x85a   : > { %v3194_v57 = vpop.xlane.xlu0 %3193  ;;  %10891 = vpow2.f32 %v3243_v49 }
 0x85b   : > { %v2606_v20 = vpop.xlane.xlu1 %2605  ;;  %v3219_v2 = vsub.f32 %v14116_v14, %v3194_v57  ;;  %10893 = vpow2.f32 %v2647_v24 }
 0x85c   : > { %3279 = vadd.xlane.f32.xlu0 %v14373_v30  ;;  %v2628_v48 = vsub.f32 %v14111_v25, %v2606_v20 }
 0x85d   : > { %v3241_v25 = vmul.f32 1.442695, %v3219_v2 }
 0x85e   : > { %v2653_v15 = vmul.f32 1.442695, %v2628_v48 }
 0x85f   : > { %v10884_v27 = vpop.eup %10883 }
 0x860   : > { %2683 = vadd.xlane.f32.xlu0 %v14383_v51  ;;  %v2604_v50 = vpop.xlane.xlu0 %2603  ;;  %10895 = vpow2.f32 %v2653_v15  ;;  %v10886_v46 = vpop.eup %10885  ;;  %v14403_v39 = vmul.f32 %v10884_v27, %v13929_v1 }
 0x861   : > { %v3200_v63 = vpop.xlane.xlu1 %3199  ;;  %v2627_v28 = vsub.f32 %v14157_v45, %v2604_v50  ;;  %10897 = vpow2.f32 %v3241_v25  ;;  %v14409_v33 = vmul.f32 %v10886_v46, %v13907_v10 }
 0x862   : > { %v3222_v7 = vsub.f32 %v14152_v40, %v3200_v63  ;;  %v10888_v40 = vpop.eup %10887  ;;  %3285 = vadd.xlane.f32.xlu1 %v14403_v39 }
 0x863   : > { %v2651_v36 = vmul.f32 1.442695, %v2627_v28  ;;  %v10890_v0 = vpop.eup %10889 }
 0x864   : > { %2687 = vadd.xlane.f32.xlu0 %v14393_v55  ;;  %v3247_v14 = vmul.f32 1.442695, %v3222_v7  ;;  %v10892_v49 = vpop.eup %10891  ;;  %v18200_v7 = vld [vmem:[#allocation137_spill] sm:$0xff] }
 0x865   : > { %v2610_v47 = vpop.xlane.xlu1 %2609  ;;  %v10894_v17 = vpop.eup %10893  ;;  %v14421_v48 = vmul.f32 %v10892_v49, %v13963_v26 }
 0x866   : > { %v3198_v6 = vpop.xlane.xlu0 %3197  ;;  %10899 = vpow2.f32 %v3247_v14  ;;  %v2630_v45 = vsub.f32 %v14189_v16, %v2610_v47  ;;  %v14418_v16 = vmul.f32 %v10890_v0, %v13929_v1 }
 0x867   : > { %v3221_v34 = vsub.f32 %v14194_v43, %v3198_v6  ;;  %v14412_v43 = vmul.f32 %v10888_v40, %v13963_v26  ;;  %10901 = vpow2.f32 %v2651_v36 }
 0x868   : > { %3281 = vadd.xlane.f32.xlu0 %v14399_v12  ;;  %v2657_v20 = vmul.f32 1.442695, %v2630_v45 }
 0x869   : > { %v3245_v44 = vmul.f32 1.442695, %v3221_v34  ;;  %v3204_v41 = vpop.xlane.xlu1 %3203  ;;  %2697 = vadd.xlane.f32.xlu1 %v14412_v43 }
 0x86a   : > { %v3224_v57 = vsub.f32 %v14218_v22, %v3204_v41  ;;  %v10896_v24 = vpop.eup %10895  ;;  %v14427_v22 = vmul.f32 %v10894_v17, %v13997_v35 }
 0x86b   : > { %10903 = vpow2.f32 %v3245_v44  ;;  %v10898_v1 = vpop.eup %10897  ;;  %v14430_v25 = vmul.f32 %v10896_v24, %v18200_v7 }
 0x86c   : > { %3287 = vadd.xlane.f32.xlu0 %v14409_v33  ;;  %10905 = vpow2.f32 %v2657_v20  ;;  %v3251_v63 = vmul.f32 1.442695, %v3224_v57  ;;  %v14437_v47 = vmul.f32 %v10898_v1, %v13997_v35 }
 0x86d   : > { %3291 = vadd.xlane.f32.xlu1 %v14421_v48 }
 0x86e   : > { %v2614_v2 = vpop.xlane.xlu1 %2613 }
 0x86f   : > { %v2608_v10 = vpop.xlane.xlu0 %2607 }
 0x870   : > { %v2629_v15 = vsub.f32 %v14250_v29, %v2608_v10  ;;  %2691 = vadd.xlane.f32.xlu0 %v14418_v16  ;;  %v10900_v26 = vpop.eup %10899  ;;  %v2632_v29 = vsub.f32 %v14242_v53, %v2614_v2 }
 0x871   : > { %2701 = vadd.xlane.f32.xlu1 %v14430_v25  ;;  %v10902_v6 = vpop.eup %10901  ;;  %v14440_v34 = vmul.f32 %v10900_v26, %v18200_v7  ;;  %v18201_v26 = vld [vmem:[#allocation37_spill] sm:$0xff] }
 0x872   : > { %v2655_v50 = vmul.f32 1.442695, %v2629_v15  ;;  %v3208_v27 = vpop.xlane.xlu1 %3207  ;;  %v2661_v36 = vmul.f32 1.442695, %v2632_v29  ;;  %v14446_v44 = vmul.f32 %v10902_v6, %v14075_v11 }
 0x873   : > { %v3202_v18 = vpop.xlane.xlu0 %3201 }
 0x874   : > { %10907 = vpow2.f32 %v2655_v50  ;;  %v3223_v28 = vsub.f32 %v14267_v32, %v3202_v18  ;;  %2695 = vadd.xlane.f32.xlu0 %v14427_v22 }
 0x875   : > { %10909 = vpow2.f32 %v3251_v63  ;;  %v10904_v40 = vpop.eup %10903  ;;  %3295 = vadd.xlane.f32.xlu1 %v14440_v34 }
 0x876   : > { %v3249_v14 = vmul.f32 1.442695, %v3223_v28  ;;  %v14450_v0 = vmul.f32 %v10904_v40, %v14075_v11  ;;  %v10906_v49 = vpop.eup %10905 }
 0x877   : > { %v2612_v46 = vpop.xlane.xlu0 %2611  ;;  %v14456_v10 = vmul.f32 %v10906_v49, %v14122_v8 }
 0x878   : > { %v2631_v32 = vsub.f32 %v14279_v58, %v2612_v46  ;;  %3289 = vadd.xlane.f32.xlu0 %v14437_v47  ;;  %10911 = vpow2.f32 %v3249_v14 }
 0x879   : > { %v2618_v45 = vpop.xlane.xlu1 %2617  ;;  %3293 = vadd.xlane.f32.xlu1 %v14450_v0 }
 0x87a   : > { %v2659_v53 = vmul.f32 1.442695, %v2631_v32  ;;  %v2634_v35 = vsub.f32 %v14290_v4, %v2618_v45 }
 0x87b   : > { %v3206_v41 = vpop.xlane.xlu0 %3205 }
 0x87c   : > { %10913 = vpow2.f32 %v2659_v53  ;;  %v3225_v58 = vsub.f32 %v14296_v56, %v3206_v41  ;;  %2699 = vadd.xlane.f32.xlu0 %v14446_v44  ;;  %v2665_v57 = vmul.f32 1.442695, %v2634_v35 }
 0x87d   : > { %10915 = vpow2.f32 %v2661_v36  ;;  %2705 = vadd.xlane.f32.xlu1 %v14456_v10  ;;  %v14489_v28 = vpop.permute.xlu1 %10626 }
 0x87e   : > { %v10908_v20 = vpop.eup %10907  ;;  %v3253_v17 = vmul.f32 1.442695, %v3225_v58  ;;  %v18204_v58 = vld [vmem:[#allocation41_spill] sm:$0xff] }
 0x87f   : > { %v14459_v4 = vmul.f32 %v10908_v20, %v14208_v61  ;;  %v10910_v11 = vpop.eup %10909  ;;  %v14491_v29 = vpop.permute.xlu0 %10631 }
 0x880   : > { %10917 = vpow2.f32 %v3253_v17  ;;  %v14464_v56 = vmul.f32 %v10910_v11, %v14122_v8  ;;  %v18207_v11 = vld [vmem:[#allocation31_spill] sm:$0xff] }
 0x881   : > { %2703 = vadd.xlane.f32.xlu0 %v14459_v4  ;;  %10919 = vpow2.f32 %v2665_v57 }
 0x882   : > { %v10912_v24 = vpop.eup %10911  ;;  %3299 = vadd.xlane.f32.xlu1 %v14464_v56 }
 0x883   : > { %v14468_v15 = vmul.f32 %v10912_v24, %v14208_v61 }
 0x886   : > { %v10914_v2 = vpop.eup %10913  ;;  %3297 = vadd.xlane.f32.xlu1 %v14468_v15 }
 0x887   : > { %v14471_v63 = vmul.f32 %v10914_v2, %v14237_v31  ;;  %v10916_v50 = vpop.eup %10915 }
 0x888   : > { %v14476_v18 = vmul.f32 %v10916_v50, %v14199_v60 }
 0x889   : > { %2707 = vadd.xlane.f32.xlu0 %v14471_v63 }
 0x88a   : > { %v10918_v1 = vpop.eup %10917  ;;  %2709 = vadd.xlane.f32.xlu1 %v14476_v18 }
 0x88b   : > { %v14479_v8 = vmul.f32 %v10918_v1, %v14237_v31  ;;  %v10920_v7 = vpop.eup %10919  ;;  %v3226_v31 = vsub.f32 %v14257_v23, %v3208_v27  ;;  %v18203_v27 = vld [vmem:[#allocation22_spill] sm:$0xff]  ;;  %v18208_v1 = vld [vmem:[#allocation35_spill] sm:$0xff] }
 0x88c   : > { %v14484_v61 = vmul.f32 %v10920_v7, %v14260_v9 }
 0x88d   : > { %3301 = vadd.xlane.f32.xlu0 %v14479_v8  ;;  %v3255_v32 = vmul.f32 1.442695, %v3226_v31 }
 0x88e   : > { %2713 = vadd.xlane.f32.xlu1 %v14484_v61 }
 0x89f   : > { %10641 = vrot.lane.b32.xlu1 %v18201_v26, %s11708_s16 }
 0x8ae   : > { %v3212_v14 = vpop.xlane.xlu1 %3211 }
 0x8af   : > { %v3228_v6 = vsub.f32 %v14330_v52, %v3212_v14 }
 0x8b0   : > { %v2616_v46 = vpop.xlane.xlu0 %2615 }
 0x8b1   : > { %v2633_v40 = vsub.f32 %v14335_v38, %v2616_v46  ;;  %v3259_v36 = vmul.f32 1.442695, %v3228_v6  ;;  %v18202_v38 = vld [vmem:[#allocation45_spill] sm:$0xff]  ;;  %v18209_v6 = vld [vmem:[#allocation39_spill] sm:$0xff] }
 0x8b3   : > { %v2663_v53 = vmul.f32 1.442695, %v2633_v40 }
 0x8b4   : > { %v14518_v57 = vpop.permute.xlu0 %10636 }
 0x8b5   : > { %10921 = vpow2.f32 %v2663_v53  ;;  %v18210_v53 = vld [vmem:[#allocation43_spill] sm:$0xff] }
 0x8b6   : > { %10923 = vpow2.f32 %v3255_v32 }
 0x8b7   : > { %10925 = vpow2.f32 %v3259_v36 }
 0x8bf   : > { %v10922_v45 = vpop.eup %10921 }
 0x8c0   : > { %v10924_v35 = vpop.eup %10923  ;;  %v14497_v41 = vmul.f32 %v10922_v45, %v14318_v54 }
 0x8c1   : > { %v10926_v49 = vpop.eup %10925  ;;  %v14501_v23 = vmul.f32 %v10924_v35, %v14199_v60  ;;  %v18205_v60 = vld [vmem:[#allocation27_spill] sm:$0xff] }
 0x8c2   : > { %2711 = vadd.xlane.f32.xlu0 %v14497_v41  ;;  %v14504_v52 = vmul.f32 %v10926_v49, %v14260_v9  ;;  %v18206_v9 = vld [vmem:[#allocation49_spill] sm:$0xff]  ;;  %v18211_v49 = vld [vmem:[#allocation47_spill] sm:$0xff] }
 0x8c3   : > { %3303 = vadd.xlane.f32.xlu1 %v14501_v23 }
 0x8c6   : > { %3307 = vadd.xlane.f32.xlu0 %v14504_v52 }
 0x8cb   : > { %v2686_v20 = vpop.xlane.xlu1 %2685 }
 0x8cc   : > { %v2716_v31 = vmax.f32 %v2686_v20, 1e-30 }
 0x8ce   : > { %10927 = vrcp.f32 %v2716_v31 }
 0x8d4   : > { %10651 = vrot.lane.b32.xlu1 %v18202_v38, %s11708_s16 }
 0x8d7   : > { %v14520_v17 = vpop.xlane.xlu1 %3277 }
 0x8d8   : > { %3510 = vrot.lane.b32.xlu1 %v18203_v27, %s11708_s16 }
 0x8db   : > { %v2690_v2 = vpop.xlane.xlu1 %2689 }
 0x8dc   : > { %10646 = vrot.lane.b32.xlu0 %v18204_v58, %s11708_s16  ;;  %3514 = vrot.lane.b32.xlu1 %v18205_v60, %s11708_s16  ;;  %v2718_v32 = vmax.f32 %v2690_v2, 1e-30  ;;  %v18212_v2 = vld [vmem:[#allocation51_spill] sm:$0xff] }
 0x8df   : > { %v14531_v46 = vpop.xlane.xlu1 %3283 }
 0x8e0   : > { %10656 = vrot.lane.b32.xlu0 %v18206_v9, %s11708_s16  ;;  %3518 = vrot.lane.b32.xlu1 %v18207_v11, %s11708_s16 }
 0x8e4   : > { %3522 = vrot.lane.b32.xlu1 %v18208_v1, %s11708_s16 }
 0x8e5   : > { %v3210_v24 = vpop.xlane.xlu0 %3209  ;;  %v2694_v45 = vpop.xlane.xlu1 %2693 }
 0x8e6   : > { %v3227_v50 = vsub.f32 %v14364_v42, %v3210_v24 }
 0x8e8   : > { %v3257_v14 = vmul.f32 1.442695, %v3227_v50  ;;  %3526 = vrot.lane.b32.xlu1 %v18209_v6, %s11708_s16  ;;  %v10928_v50 = vpop.eup %10927 }
 0x8e9   : > { %v14527_v7 = vpop.xlane.xlu0 %3279 }
 0x8ea   : > { %10929 = vpow2.f32 %v3257_v14 }
 0x8ec   : > { %3530 = vrot.lane.b32.xlu1 %v18210_v53, %s11708_s16 }
 0x8ed   : > { %v2684_v40 = vpop.xlane.xlu0 %2683 }
 0x8ee   : > { %v2715_v36 = vmax.f32 %v2684_v40, 1e-30 }
 0x8ef   : > { %v14539_v24 = vpop.xlane.xlu1 %3285 }
 0x8f0   : > { %10931 = vrcp.f32 %v2715_v36  ;;  %3534 = vrot.lane.b32.xlu1 %v18211_v49, %s11708_s16  ;;  %v2720_v36 = vmax.f32 %v2694_v45, 1e-30 }
 0x8f1   : > { %v2688_v42 = vpop.xlane.xlu0 %2687  ;;  %10933 = vrcp.f32 %v2718_v32 }
 0x8f2   : > { %v2717_v35 = vmax.f32 %v2688_v42, 1e-30  ;;  %v18213_v42 = vld [vmem:[#allocation28_spill] sm:$0xff] }
 0x8f4   : > { %10935 = vrcp.f32 %v2717_v35  ;;  %3538 = vrot.lane.b32.xlu1 %v18212_v2, %s11708_s16  ;;  %v10930_v31 = vpop.eup %10929  ;;  %v2764_v35 = vmul.f32 %v10928_v50, %v14346_v13 }
 0x8f5   : > { %v14537_v20 = vpop.xlane.xlu0 %3281  ;;  %v14550_v1 = vmul.f32 %v10930_v31, %v14318_v54  ;;  %10937 = vrcp.f32 %v2720_v36 }
 0x8f6   : > { %v2698_v32 = vpop.xlane.xlu1 %2697 }
 0x8f7   : > { %v2722_v60 = vmax.f32 %v2698_v32, 1e-30 }
 0x8f8   : > { %4001 = vrot.lane.b32.xlu1 %v18213_v42, %s11708_s16 }
 0x8f9   : > { %v14543_v14 = vpop.xlane.xlu0 %3287 }
 0x8fa   : > { %v10932_v40 = vpop.eup %10931  ;;  %v14552_v38 = vpop.xlane.xlu1 %3291 }
 0x8fb   : > { %v2763_v49 = vmul.f32 %v10932_v40, %v14383_v51  ;;  %v10934_v53 = vpop.eup %10933  ;;  %v18214_v51 = vld [vmem:[#allocation36_spill] sm:$0xff] }
 0x8fc   : > { %v2766_v45 = vmul.f32 %v10934_v53, %v14367_v5  ;;  %4005 = vrot.lane.b32.xlu1 %v18214_v51, %s11708_s16  ;;  %v18216_v5 = vld [vmem:[#allocation54_spill] sm:$0xff] }
 0x8fd   : > { %v2692_v6 = vpop.xlane.xlu0 %2691  ;;  %v2779_v2 = vpack.c.bf16 %v2764_v35, %v2763_v49 }
 0x8fe   : > { %v10936_v11 = vpop.eup %10935  ;;  %v2719_v27 = vmax.f32 %v2692_v6, 1e-30  ;;  %v2702_v50 = vpop.xlane.xlu1 %2701  ;;  %v18215_v6 = vld [vmem:[#allocation40_spill] sm:$0xff] }
 0x8ff   : > { %v2765_v42 = vmul.f32 %v10936_v11, %v14393_v55  ;;  %3305 = vadd.xlane.f32.xlu0 %v14550_v1  ;;  %9322 = vmatprep.mubr.bf16.mxu1 %v2779_v2  ;;  %v18217_v55 = vld [vmem:[#allocation56_spill] sm:$0xff]  ;;  %v2724_v53 = vmax.f32 %v2702_v50, 1e-30  ;;  %v18219_v2 = vld [vmem:[#allocation55_spill] sm:$0xff] }
 0x900   : > { %10939 = vrcp.f32 %v2719_v27  ;;  %4007 = vrot.lane.b32.xlu1 %v18215_v6, %s11708_s16  ;;  %v18218_v27 = vld [vmem:[#allocation48_spill] sm:$0xff] }
 0x901   : > { %v2696_v54 = vpop.xlane.xlu0 %2695  ;;  %v2780_v13 = vpack.c.bf16 %v2766_v45, %v2765_v42  ;;  %10941 = vrcp.f32 %v2722_v60  ;;  %v10938_v60 = vpop.eup %10937 }
 0x902   : > { %v2721_v49 = vmax.f32 %v2696_v54, 1e-30  ;;  %v14565_v31 = vpop.xlane.xlu1 %3295  ;;  %v2768_v45 = vmul.f32 %v10938_v60, %v14386_v19  ;;  %v18221_v19 = vld [vmem:[#allocation118_spill] sm:$0xff] }
 0x903   : > { %9323 = vmatmul.mubr.bf16.vlgmr.msra.gmra.mrb[16].mxu1 %v2780_v13  ;;  %v18220_v13 = vld [vmem:[#allocation57_spill] sm:$0xff] }
 0x904   : > { %10943 = vrcp.f32 %v2721_v49  ;;  %9395 = vmatpush3.bf16.msra.mxu1 %v18216_v5  ;;  %4011 = vrot.lane.b32.xlu1 %v18218_v27, %s11708_s16 }
 0x905   : > { %9396 = vmatprep.subr.bf16.mxu1 %v18217_v55  ;;  %v14563_v11 = vpop.xlane.xlu0 %3289  ;;  %10945 = vrcp.f32 %v2724_v53 }
 0x906   : > { %v14571_v42 = vpop.xlane.xlu1 %3293 }
 0x908   : > { %9397 = vmatpush3.bf16.msra.mxu1 %v18217_v55 }
 0x909   : > { %9398 = vmatprep.subr.bf16.mxu1 %v18219_v2  ;;  %v2700_v40 = vpop.xlane.xlu0 %2699 }
 0x90a   : > { %v10940_v36 = vpop.eup %10939  ;;  %v2723_v32 = vmax.f32 %v2700_v40, 1e-30  ;;  %v2706_v5 = vpop.xlane.xlu1 %2705 }
 0x90b   : > { %v2767_v35 = vmul.f32 %v10940_v36, %v14418_v16  ;;  %v10942_v54 = vpop.eup %10941  ;;  %v2726_v27 = vmax.f32 %v2706_v5, 1e-30  ;;  %v18222_v36 = vld [vmem:[#allocation179_spill] sm:$0xff] }
 0x90c   : > { %10947 = vrcp.f32 %v2723_v32  ;;  %9399 = vmatpush3.bf16.msra.mxu1 %v18219_v2  ;;  %v2770_v40 = vmul.f32 %v10942_v54, %v14412_v43  ;;  %v18223_v32 = vld [vmem:[#allocation53_spill] sm:$0xff] }
 0x90d   : > { %9400 = vmatprep.subr.bf16.mxu1 %v18220_v13  ;;  %v2781_v49 = vpack.c.bf16 %v2768_v45, %v2767_v35  ;;  %10949 = vrcp.f32 %v2726_v27  ;;  %v18224_v54 = vld [vmem:[#allocation125_spill] sm:$0xff] }
 0x90e   : > { %v10944_v50 = vpop.eup %10943  ;;  %v2704_v55 = vpop.xlane.xlu0 %2703 }
 0x90f   : > { %v2725_v6 = vmax.f32 %v2704_v55, 1e-30  ;;  %9326 = vmatprep.mubr.bf16.mxu1 %v2781_v49  ;;  %v2769_v53 = vmul.f32 %v10944_v50, %v14427_v22  ;;  %v14581_v60 = vpop.xlane.xlu1 %3299  ;;  %v10946_v2 = vpop.eup %10945  ;;  %v10629_v55 = vunpack.i.h.bf16 %v14489_v28 }
 0x910   : > { %9401 = vmatpush3.bf16.msra.mxu1 %v18220_v13  ;;  %v18225_v13 = vld [vmem:[#allocation21_spill] sm:$0xff] }
 0x911   : > { %9402 = vmatprep.subr.bf16.mxu1 %v18221_v19  ;;  %v2782_v16 = vpack.c.bf16 %v2770_v40, %v2769_v53  ;;  %10951 = vrcp.f32 %v2725_v6  ;;  %v2772_v6 = vmul.f32 %v10946_v2, %v14430_v25  ;;  %v10628_v53 = vunpack.i.l.bf16 %v14489_v28  ;;  %v18228_v28 = vld [vmem:[#allocation25_spill] sm:$0xff] }
 0x913   : > { %9327 = vmatmul.mubr.bf16.gmra.mrb[20].mxu1 %v2782_v16  ;;  %v14587_v43 = vpop.xlane.xlu1 %3297  ;;  %v18227_v16 = vld [vmem:[#allocation26_spill] sm:$0xff] }
 0x914   : > { %9403 = vmatpush3.bf16.msra.mxu1 %v18221_v19  ;;  %v18226_v19 = vld [vmem:[#allocation286_spill] sm:$0xff] }
 0x915   : > { %9404 = vmatprep.subr.bf16.mxu1 %v18222_v36  ;;  %10661 = vrot.lane.b32.xlu0 %v18223_v32, %s11708_s16 }
 0x916   : > { %v10948_v22 = vpop.eup %10947  ;;  %v2708_v35 = vpop.xlane.xlu0 %2707 }
 0x917   : > { %v2727_v27 = vmax.f32 %v2708_v35, 1e-30  ;;  %v2771_v45 = vmul.f32 %v10948_v22, %v14446_v44  ;;  %v2710_v50 = vpop.xlane.xlu1 %2709  ;;  %v10950_v5 = vpop.eup %10949 }
 0x918   : > { %9405 = vmatpush3.bf16.msra.mxu1 %v18222_v36  ;;  %v2728_v40 = vmax.f32 %v2710_v50, 1e-30  ;;  %v2774_v25 = vmul.f32 %v10950_v5, %v14456_v10  ;;  %v14603_v36 = vpack.c.bf16 %v10629_v55, %v10628_v53  ;;  %v18229_v10 = vld [vmem:[#allocation30_spill] sm:$0xff]  ;;  %v18235_v53 = vld [vmem:[#allocation23_spill] sm:$0xff] }
 0x919   : > { %9406 = vmatprep.subr.bf16.mxu1 %v18224_v54  ;;  %3512 = vrot.lane.b32.xlu0 %v18225_v13, %s11708_s16  ;;  %v2783_v49 = vpack.c.bf16 %v2772_v6, %v2771_v45  ;;  %10953 = vrcp.f32 %v2727_v27  ;;  %v18230_v27 = vld [vmem:[#allocation34_spill] sm:$0xff] }
 0x91a   : > { %10955 = vrcp.f32 %v2728_v40  ;;  %v18232_v50 = vld [vmem:[#allocation42_spill] sm:$0xff]  ;;  %v18238_v40 = vld [vmem:[#allocation52_spill] sm:$0xff] }
 0x91b   : > { %9330 = vmatprep.mubr.bf16.mxu1 %v2783_v49  ;;  %v10952_v44 = vpop.eup %10951  ;;  %v18233_v5 = vld [vmem:[#allocation46_spill] sm:$0xff] }
 0x91c   : > { %9407 = vmatpush3.bf16.msra.mxu1 %v18224_v54  ;;  %v2773_v2 = vmul.f32 %v10952_v44, %v14459_v4  ;;  %v18231_v54 = vld [vmem:[#allocation38_spill] sm:$0xff]  ;;  %v2714_v44 = vpop.xlane.xlu1 %2713 }
 0x91d   : > { %9408 = vmatprep.subr.bf16.mxu1 %v18226_v19  ;;  %3516 = vrot.lane.b32.xlu0 %v18227_v16, %s11708_s16  ;;  %v18234_v55 = vld [vmem:[#allocation50_spill] sm:$0xff] }
 0x91e   : > { %v2784_v22 = vpack.c.bf16 %v2774_v25, %v2773_v2  ;;  %v3310_v25 = vmax.f32 %v14527_v7, 1e-30  ;;  %v2730_v2 = vmax.f32 %v2714_v44, 1e-30  ;;  %v3315_v44 = vmax.f32 %v14563_v11, 1e-30 }
 0x920   : > { %9409 = vmatpush3.bf16.msra.mxu1 %v18226_v19  ;;  %v3302_v19 = vpop.xlane.xlu0 %3301  ;;  %10957 = vrcp.f32 %v3310_v25 }
 0x921   : > { %9331 = vmatmul.mubr.bf16.gmra.mrb[24].mxu1 %v2784_v22  ;;  %10156 = vmatprep.subr.msk.bf16.mxu1 %vm12065_vm2, %v14603_v36  ;;  %v3309_v22 = vmax.f32 %v14520_v17, 1e-30  ;;  %10959 = vrcp.f32 %v2730_v2  ;;  %v3317_v2 = vmax.f32 %v14571_v42, 1e-30 }
 0x922   : > { %3520 = vrot.lane.b32.xlu0 %v18229_v10, %s11708_s16 }
 0x923   : > { %v10954_v35 = vpop.eup %10953  ;;  %10961 = vrcp.f32 %v3309_v22 }
 0x924   : > { %v10956_v45 = vpop.eup %10955  ;;  %v2775_v4 = vmul.f32 %v10954_v35, %v14471_v63  ;;  %v18236_v63 = vld [vmem:[#allocation32_spill] sm:$0xff] }
 0x925   : > { %v2776_v6 = vmul.f32 %v10956_v45, %v14476_v18  ;;  %v18237_v18 = vld [vmem:[#allocation44_spill] sm:$0xff] }
 0x926   : > { %3524 = vrot.lane.b32.xlu0 %v18230_v27, %s11708_s16 }
 0x927   : > { %v2785_v49 = vpack.c.bf16 %v2776_v6, %v2775_v4  ;;  %v3311_v4 = vmax.f32 %v14537_v20, 1e-30  ;;  %v3314_v6 = vmax.f32 %v14543_v14, 1e-30  ;;  %v3316_v20 = vmax.f32 %v14552_v38, 1e-30 }
 0x929   : > { %9334 = vmatprep.mubr.bf16.mxu1 %v2785_v49  ;;  %v3312_v49 = vmax.f32 %v14531_v46, 1e-30 }
 0x92a   : > { %3528 = vrot.lane.b32.xlu0 %v18231_v54, %s11708_s16  ;;  %v10958_v7 = vpop.eup %10957 }
 0x92b   : > { %v10960_v17 = vpop.eup %10959  ;;  %v3358_v46 = vmul.f32 %v10958_v7, %v14373_v30  ;;  %v3319_v30 = vmax.f32 %v14587_v43, 1e-30  ;;  %v3320_v7 = vmax.f32 %v14581_v60, 1e-30  ;;  %v10639_v60 = vunpack.i.h.bf16 %v14518_v57 }
 0x92d   : > { %v10962_v25 = vpop.eup %10961 }
 0x92e   : > { %3532 = vrot.lane.b32.xlu0 %v18232_v50, %s11708_s16 }
 0x932   : > { %3536 = vrot.lane.b32.xlu0 %v18233_v5, %s11708_s16 }
 0x936   : > { %3540 = vrot.lane.b32.xlu0 %v18234_v55, %s11708_s16 }
 0x93a   : > { %3999 = vrot.lane.b32.xlu0 %v18235_v53, %s11708_s16 }
 0x93e   : > { %4003 = vrot.lane.b32.xlu0 %v18236_v63, %s11708_s16 }
 0x942   : > { %4009 = vrot.lane.b32.xlu0 %v18237_v18, %s11708_s16 }
 0x946   : > { %4013 = vrot.lane.b32.xlu0 %v18238_v40, %s11708_s16  ;;  %v3313_v40 = vmax.f32 %v14539_v24, 1e-30  ;;  %v3318_v24 = vmax.f32 %v14565_v31, 1e-30 }
 0x94f   : > { %v2712_v35 = vpop.xlane.xlu0 %2711 }
 0x950   : > { %v2729_v45 = vmax.f32 %v2712_v35, 1e-30  ;;  %v14640_v35 = vpop.permute.xlu1 %10641 }
 0x952   : > { %10963 = vrcp.f32 %v2729_v45  ;;  %v2778_v45 = vmul.f32 %v10960_v17, %v14484_v61  ;;  %v10634_v17 = vunpack.i.h.bf16 %v14491_v29 }
 0x953   : > { %10965 = vrcp.f32 %v3311_v4 }
 0x954   : > { %10967 = vrcp.f32 %v3314_v6  ;;  %v3304_v42 = vpop.xlane.xlu1 %3303 }
 0x955   : > { %10969 = vrcp.f32 %v3312_v49  ;;  %v3322_v61 = vmax.f32 %v3304_v42, 1e-30 }
 0x956   : > { %10971 = vrcp.f32 %v3313_v40  ;;  %v3357_v40 = vmul.f32 %v10962_v25, %v14355_v59 }
 0x957   : > { %10973 = vrcp.f32 %v3315_v44  ;;  %v10633_v44 = vunpack.i.l.bf16 %v14491_v29 }
 0x958   : > { %10975 = vrcp.f32 %v3317_v2  ;;  %v3373_v6 = vpack.c.bf16 %v3358_v46, %v3357_v40  ;;  %v3321_v2 = vmax.f32 %v3302_v19, 1e-30  ;;  %v10638_v19 = vunpack.i.l.bf16 %v14518_v57 }
 0x959   : > { %10977 = vrcp.f32 %v3316_v20  ;;  %v10644_v57 = vunpack.i.h.bf16 %v14640_v35 }
 0x95a   : > { %10979 = vrcp.f32 %v3318_v24  ;;  %v10160_v24 = vpack.c.bf16 %v10634_v17, %v10633_v44  ;;  %v10166_v42 = vpack.c.bf16 %v10639_v60, %v10638_v19 }
 0x95b   : > { %10981 = vrcp.f32 %v3319_v30 }
 0x95c   : > { %v10964_v22 = vpop.eup %10963  ;;  %10983 = vrcp.f32 %v3322_v61 }
 0x95d   : > { %v2777_v14 = vmul.f32 %v10964_v22, %v14497_v41  ;;  %v10966_v4 = vpop.eup %10965  ;;  %10985 = vrcp.f32 %v3320_v7 }
 0x95e   : > { %v10968_v38 = vpop.eup %10967  ;;  %v3359_v41 = vmul.f32 %v10966_v4, %v14399_v12  ;;  %10987 = vrcp.f32 %v3321_v2 }
 0x95f   : > { %v2786_v11 = vpack.c.bf16 %v2778_v45, %v2777_v14  ;;  %v10970_v49 = vpop.eup %10969  ;;  %v3362_v59 = vmul.f32 %v10968_v38, %v14409_v33  ;;  %v10643_v38 = vunpack.i.l.bf16 %v14640_v35 }
 0x960   : > { %v10972_v31 = vpop.eup %10971  ;;  %v3360_v25 = vmul.f32 %v10970_v49, %v14377_v37 }
 0x961   : > { %9335 = vmatmul.mubr.bf16.gmra.mrb[28].mxu1 %v2786_v11  ;;  %v3361_v22 = vmul.f32 %v10972_v31, %v14403_v39  ;;  %v10974_v20 = vpop.eup %10973  ;;  %v10172_v61 = vpack.c.bf16 %v10644_v57, %v10643_v38 }
 0x962   : > { %9410 = vmatprep.mubr.bf16.mxu1 %v3373_v6  ;;  %v3374_v43 = vpack.c.bf16 %v3360_v25, %v3359_v41  ;;  %v10976_v46 = vpop.eup %10975  ;;  %v3363_v39 = vmul.f32 %v10974_v20, %v14437_v47 }
 0x963   : > { %v3375_v12 = vpack.c.bf16 %v3362_v59, %v3361_v22  ;;  %v10978_v33 = vpop.eup %10977  ;;  %v3365_v29 = vmul.f32 %v10976_v46, %v14450_v0  ;;  %v10652_v59 = vpop.permute.xlu1 %10651 }
 0x964   : > { %v10980_v37 = vpop.eup %10979  ;;  %v3364_v14 = vmul.f32 %v10978_v33, %v14421_v48  ;;  %v3308_v48 = vpop.xlane.xlu0 %3307 }
 0x965   : > { %v3366_v45 = vmul.f32 %v10980_v37, %v14440_v34  ;;  %v10982_v11 = vpop.eup %10981  ;;  %v3324_v25 = vmax.f32 %v3308_v48, 1e-30 }
 0x966   : > { %v3376_v40 = vpack.c.bf16 %v3364_v14, %v3363_v39  ;;  %v10984_v4 = vpop.eup %10983  ;;  %v3367_v0 = vmul.f32 %v10982_v11, %v14468_v15 }
 0x967   : > { %v10986_v6 = vpop.eup %10985  ;;  %v3370_v34 = vmul.f32 %v10984_v4, %v14501_v23  ;;  %v3511_v17 = vpop.permute.xlu1 %3510  ;;  %10989 = vrcp.f32 %v3324_v25 }
 0x968   : > { %v10988_v47 = vpop.eup %10987  ;;  %v3368_v49 = vmul.f32 %v10986_v6, %v14464_v56  ;;  %v10647_v7 = vpop.permute.xlu0 %10646  ;;  %v10654_v56 = vunpack.i.h.bf16 %v10652_v59 }
 0x969   : > { %9411 = vmatmul.mubr.bf16.vlgmr.msra.gmra.mrb[32].mxu1 %v3374_v43  ;;  %v3369_v30 = vmul.f32 %v10988_v47, %v14479_v8  ;;  %v10649_v15 = vunpack.i.h.bf16 %v10647_v7  ;;  %v10648_v23 = vunpack.i.l.bf16 %v10647_v7  ;;  %v10653_v8 = vunpack.i.l.bf16 %v10652_v59 }
 0x96a   : > { %10159 = vmatpush3.bf16.xpose.msk.msra.mxu1 %vm12065_vm2, %v14603_v36  ;;  %9414 = vmatprep.mubr.bf16.mxu1 %v3375_v12  ;;  %v3377_v36 = vpack.c.bf16 %v3366_v45, %v3365_v29  ;;  %v3378_v31 = vpack.c.bf16 %v3368_v49, %v3367_v0 }
 0x96b   : > { %10162 = vmatprep.subr.msk.bf16.mxu1 %vm12065_vm2, %v10160_v24  ;;  %v3379_v41 = vpack.c.bf16 %v3370_v34, %v3369_v30  ;;  %v10178_v35 = vpack.c.bf16 %v10649_v15, %v10648_v23  ;;  %v10184_v2 = vpack.c.bf16 %v10654_v56, %v10653_v8  ;;  %v3515_v22 = vpop.permute.xlu1 %3514 }
 0x96c   : > { %v10657_v44 = vpop.permute.xlu0 %10656 }
 0x96d   : > { %v10659_v20 = vunpack.i.h.bf16 %v10657_v44  ;;  %v10658_v12 = vunpack.i.l.bf16 %v10657_v44 }
 0x96f   : > { %v10190_v33 = vpack.c.bf16 %v10659_v20, %v10658_v12  ;;  %v3519_v37 = vpop.permute.xlu1 %3518 }
 0x971   : > { %9415 = vmatmul.mubr.bf16.gmra.mrb[36].mxu1 %v3376_v40  ;;  %v10990_v19 = vpop.eup %10989 }
 0x972   : > { %10165 = vmatpush3.bf16.xpose.msk.msra.mxu1 %vm12065_vm2, %v10160_v24  ;;  %9418 = vmatprep.mubr.bf16.mxu1 %v3377_v36  ;;  %v3372_v4 = vmul.f32 %v10990_v19, %v14504_v52 }
 0x973   : > { %10168 = vmatprep.subr.msk.bf16.mxu1 %vm12065_vm2, %v10166_v42  ;;  %v3523_v14 = vpop.permute.xlu1 %3522 }
 0x977   : > { %v3527_v47 = vpop.permute.xlu1 %3526 }
 0x979   : > { %9419 = vmatmul.mubr.bf16.gmra.mrb[40].mxu1 %v3378_v31 }
 0x97a   : > { %10171 = vmatpush3.bf16.xpose.msk.msra.mxu1 %vm12065_vm2, %v10166_v42  ;;  %9422 = vmatprep.mubr.bf16.mxu1 %v3379_v41 }
 0x97b   : > { %10174 = vmatprep.subr.msk.bf16.mxu1 %vm12065_vm2, %v10172_v61  ;;  %v3531_v48 = vpop.permute.xlu1 %3530 }
 0x982   : > { %10177 = vmatpush3.bf16.xpose.msk.msra.mxu1 %vm12065_vm2, %v10172_v61 }
 0x983   : > { %10180 = vmatprep.subr.msk.bf16.mxu1 %vm12065_vm2, %v10178_v35 }
 0x98a   : > { %10183 = vmatpush3.bf16.xpose.msk.msra.mxu1 %vm12065_vm2, %v10178_v35 }
 0x98b   : > { %10186 = vmatprep.subr.msk.bf16.mxu1 %vm12065_vm2, %v10184_v2 }
 0x98c   : > { %v3306_v43 = vpop.xlane.xlu0 %3305 }
 0x98d   : > { %v3323_v46 = vmax.f32 %v3306_v43, 1e-30 }
 0x98f   : > { %10991 = vrcp.f32 %v3323_v46 }
 0x990   : > { %v10662_v24 = vpop.permute.xlu0 %10661 }
 0x991   : > { %v10664_v29 = vunpack.i.h.bf16 %v10662_v24  ;;  %v10663_v60 = vunpack.i.l.bf16 %v10662_v24 }
 0x992   : > { %10189 = vmatpush3.bf16.xpose.msk.msra.mxu1 %vm12065_vm2, %v10184_v2 }
 0x993   : > { %10192 = vmatprep.subr.msk.bf16.mxu1 %vm12065_vm2, %v10190_v33  ;;  %v10196_v11 = vpack.c.bf16 %v10664_v29, %v10663_v60 }
 0x994   : > { %v3513_v39 = vpop.permute.xlu0 %3512 }
 0x998   : > { %v3517_v45 = vpop.permute.xlu0 %3516 }
 0x999   : > { %v10992_v40 = vpop.eup %10991 }
 0x99a   : > { %10195 = vmatpush3.bf16.xpose.msk.msra.mxu1 %vm12065_vm2, %v10190_v33  ;;  %v3371_v36 = vmul.f32 %v10992_v40, %v14550_v1  ;;  %v3535_v1 = vpop.permute.xlu1 %3534 }
 0x99b   : > { %10198 = vmatprep.subr.msk.bf16.mxu1 %vm12065_vm2, %v10196_v11 }
 0x99c   : > { %v3521_v42 = vpop.permute.xlu0 %3520  ;;  %v3380_v6 = vpack.c.bf16 %v3372_v4, %v3371_v36 }
 0x99e   : > { %9423 = vmatmul.mubr.bf16.gmra.mrb[44].mxu1 %v3380_v6  ;;  %v3539_v38 = vpop.permute.xlu1 %3538 }
 0x99f   : > { %9458 = vmatprep.mubr.msk.f32.mxu1 %vm18239_vm6, %v3511_v17  ;;  %vm18244_vm6 = vmmov %vm18243_vm0 }
 0x9a0   : > { %v3525_v0 = vpop.permute.xlu0 %3524 }
 0x9a2   : > { %10201 = vmatpush3.bf16.xpose.msk.msra.mxu1 %vm12065_vm2, %v10196_v11  ;;  %vm18246_vm2 = vmmov %vm18243_vm0  ;;  %v4002_v31 = vpop.permute.xlu1 %4001 }
 0x9a4   : > { %v3529_v34 = vpop.permute.xlu0 %3528 }
 0x9a6   : > { %v4006_v61 = vpop.permute.xlu1 %4005 }
 0x9a8   : > { %v3533_v57 = vpop.permute.xlu0 %3532 }
 0x9a9   : > { %9459 = vmatmul.mubr.msk.f32.vlgmr.msra.gmra.mrb[48].mxu1 %vm18240_vm5, %v3513_v39  ;;  %vm18247_vm5 = vmmov %vm18243_vm0 }
 0x9aa   : > { %9461 = vmatprep.mubr.msk.f32.mxu1 %vm18241_vm13, %v3515_v22  ;;  %vm18248_vm13 = vmmov %vm18243_vm0  ;;  %v4008_v7 = vpop.permute.xlu1 %4007 }
 0x9ac   : > { %v3537_v52 = vpop.permute.xlu0 %3536 }
 0x9ad   : > { %9462 = vmatmul.mubr.msk.f32.gmra.mrb[50].mxu1 %vm18242_vm8, %v3517_v45  ;;  %vm18249_vm8 = vmmov %vm18243_vm0 }
 0x9ae   : > { %9464 = vmatprep.mubr.msk.f32.mxu1 %vm18243_vm0, %v3519_v37  ;;  %v4012_v23 = vpop.permute.xlu1 %4011 }
 0x9b0   : > { %v3541_v49 = vpop.permute.xlu0 %3540 }
 0x9b1   : > { %9465 = vmatmul.mubr.msk.f32.gmra.mrb[52].mxu1 %vm18244_vm6, %v3521_v42  ;;  %vm18252_vm6 = vmmov %vm18243_vm0 }
 0x9b2   : > { %9467 = vmatprep.mubr.msk.f32.mxu1 %vm18245_vm11, %v3523_v14  ;;  %vm18250_vm11 = vmmov %vm18243_vm0 }
 0x9b4   : > { %v4000_v30 = vpop.permute.xlu0 %3999 }
 0x9b5   : > { %9468 = vmatmul.mubr.msk.f32.gmra.mrb[54].mxu1 %vm18246_vm2, %v3525_v0  ;;  %9482 = vmatprep.subr.bf16.mxu0 %v4000_v30  ;;  %vm18251_vm2 = vmmov %vm18243_vm0 }
 0x9b6   : > { %9470 = vmatprep.mubr.msk.f32.mxu1 %vm18247_vm5, %v3527_v47  ;;  %9483 = vmatpush3.bf16.msra.mxu0 %v4000_v30  ;;  %vm18253_vm5 = vmmov %vm18243_vm0 }
 0x9b7   : > { %9484 = vmatprep.subr.bf16.mxu0 %v4002_v31 }
 0x9b8   : > { %v4004_v41 = vpop.permute.xlu0 %4003 }
 0x9b9   : > { %9471 = vmatmul.mubr.msk.f32.gmra.mrb[56].mxu1 %vm18248_vm13, %v3529_v34 }
 0x9ba   : > { %9473 = vmatprep.mubr.msk.f32.mxu1 %vm18249_vm8, %v3531_v48  ;;  %9485 = vmatpush3.bf16.msra.mxu0 %v4002_v31 }
 0x9bb   : > { %9486 = vmatprep.subr.bf16.mxu0 %v4004_v41 }
 0x9bc   : > { %v4010_v15 = vpop.permute.xlu0 %4009 }
 0x9bd   : > { %9474 = vmatmul.mubr.msk.f32.gmra.mrb[58].mxu1 %vm18243_vm0, %v3533_v57 }
 0x9be   : > { %9476 = vmatprep.mubr.msk.f32.mxu1 %vm18250_vm11, %v3535_v1  ;;  %9487 = vmatpush3.bf16.msra.mxu0 %v4004_v41 }
 0x9bf   : > { %9488 = vmatprep.subr.bf16.mxu0 %v4006_v61 }
 0x9c0   : > { %v4014_v59 = vpop.permute.xlu0 %4013 }
 0x9c1   : > { %9477 = vmatmul.mubr.msk.f32.gmra.mrb[60].mxu1 %vm18251_vm2, %v3537_v52 }
 0x9c2   : > { %9479 = vmatprep.mubr.msk.f32.mxu1 %vm18252_vm6, %v3539_v38  ;;  %9489 = vmatpush3.bf16.msra.mxu0 %v4006_v61 }
 0x9c3   : > { %9490 = vmatprep.subr.bf16.mxu0 %v4008_v7 }
 0x9c5   : > { %9480 = vmatmul.mubr.msk.f32.gmra.mrb[62].mxu1 %vm18253_vm5, %v3541_v49  ;;  %vm18308_vm5 = vnez %v18194_v62 }
 0x9c6   : > { %9491 = vmatpush3.bf16.msra.mxu0 %v4008_v7 }
 0x9c7   : > { %9492 = vmatprep.subr.bf16.mxu0 %v4010_v15 }
 0x9ca   : > { %9493 = vmatpush3.bf16.msra.mxu0 %v4010_v15 }
 0x9cb   : > { %9494 = vmatprep.subr.bf16.mxu0 %v4012_v23 }
 0x9ce   : > { %9495 = vmatpush3.bf16.msra.mxu0 %v4012_v23 }
 0x9cf   : > { %9496 = vmatprep.subr.bf16.mxu0 %v4014_v59 }
 0x9d2   : > { %9497 = vmatpush3.bf16.msra.mxu0 %v4014_v59 }
 0x9d6   : > { %v14716_v35 = vpop.f32.mrb[16].mxu1 }
 0x9d7   : > { %18254 = vst [vmem:[#allocation144_spill] sm:$0xff] %v14716_v35  ;;  %v14718_v56 = vpop.f32.mrb[17].mxu1  ;;  %v18298_v35 = vld [vmem:[#allocation107_spill] sm:$0xff] }
 0x9d8   : > { %18255 = vst [vmem:[#allocation149_spill] sm:$0xff] %v14718_v56  ;;  %v14720_v8 = vpop.f32.mrb[18].mxu1  ;;  %vm18299_vm0 = vnez %v18298_v35 }
 0x9d9   : > { %18256 = vst [vmem:[#allocation152_spill] sm:$0xff] %v14720_v8  ;;  %v14722_v17 = vpop.f32.mrb[19].mxu1 }
 0x9da   : > { %18257 = vst [vmem:[#allocation114_spill] sm:$0xff] %v14722_v17  ;;  %v18294_v17 = vld [vmem:[#allocation106_spill] sm:$0xff] }
 0x9db   : > { %vm18295_vm13 = vnez %v18294_v17 }
 0x9e6   : > { %v14724_v44 = vpop.f32.mrb[20].mxu1 }
 0x9e7   : > { %18258 = vst [vmem:[#allocation153_spill] sm:$0xff] %v14724_v44  ;;  %v14726_v25 = vpop.f32.mrb[21].mxu1 }
 0x9e8   : > { %18259 = vst [vmem:[#allocation115_spill] sm:$0xff] %v14726_v25  ;;  %v14728_v2 = vpop.f32.mrb[22].mxu1 }
 0x9e9   : > { %18260 = vst [vmem:[#allocation120_spill] sm:$0xff] %v14728_v2  ;;  %v14730_v22 = vpop.f32.mrb[23].mxu1 }
 0x9ea   : > { %18261 = vst [vmem:[#allocation156_spill] sm:$0xff] %v14730_v22 }
 0x9f4   : > { %v14732_v43 = vpop.f32.mrb[24].mxu1 }
 0x9f5   : > { %18262 = vst [vmem:[#allocation157_spill] sm:$0xff] %v14732_v43  ;;  %v14734_v20 = vpop.f32.mrb[25].mxu1 }
 0x9f6   : > { %18263 = vst [vmem:[#allocation121_spill] sm:$0xff] %v14734_v20  ;;  %v14736_v12 = vpop.f32.mrb[26].mxu1 }
 0x9f7   : > { %18264 = vst [vmem:[#allocation160_spill] sm:$0xff] %v14736_v12  ;;  %v14738_v46 = vpop.f32.mrb[27].mxu1  ;;  %v18289_v12 = vld [vmem:[#allocation29_spill] sm:$0xff] }
 0x9f8   : > { %18265 = vst [vmem:[#allocation161_spill] sm:$0xff] %v14738_v46 }
 0xa34   : > { %v14740_v24 = vpop.f32.mrb[28].mxu1 }
 0xa35   : > { %18266 = vst [vmem:[#allocation164_spill] sm:$0xff] %v14740_v24  ;;  %v14742_v33 = vpop.f32.mrb[29].mxu1 }
 0xa36   : > { %18267 = vst [vmem:[#allocation122_spill] sm:$0xff] %v14742_v33  ;;  %v14744_v37 = vpop.f32.mrb[30].mxu1 }
 0xa37   : > { %18268 = vst [vmem:[#allocation165_spill] sm:$0xff] %v14744_v37  ;;  %v14746_v39 = vpop.f32.mrb[31].mxu1 }
 0xa38   : > { %18269 = vst [vmem:[#allocation168_spill] sm:$0xff] %v14746_v39 }
 0xa3c   : > { %v14748_v29 = vpop.f32.mrb[32].mxu1 }
 0xa3d   : > { %18270 = vst [vmem:[#allocation123_spill] sm:$0xff] %v14748_v29  ;;  %v14750_v60 = vpop.f32.mrb[33].mxu1 }
 0xa3e   : > { %18271 = vst [vmem:[#allocation124_spill] sm:$0xff] %v14750_v60  ;;  %v14752_v19 = vpop.f32.mrb[34].mxu1 }
 0xa3f   : > { %18272 = vst [vmem:[#allocation126_spill] sm:$0xff] %v14752_v19  ;;  %v14754_v14 = vpop.f32.mrb[35].mxu1 }
 0xa40   : > { %18273 = vst [vmem:[#allocation127_spill] sm:$0xff] %v14754_v14 }
 0xa44   : > { %v14756_v45 = vpop.f32.mrb[36].mxu1 }
 0xa45   : > { %18274 = vst [vmem:[#allocation130_spill] sm:$0xff] %v14756_v45  ;;  %v14758_v40 = vpop.f32.mrb[37].mxu1 }
 0xa46   : > { %18275 = vst [vmem:[#allocation131_spill] sm:$0xff] %v14758_v40  ;;  %v14760_v11 = vpop.f32.mrb[38].mxu1 }
 0xa47   : > { %18276 = vst [vmem:[#allocation134_spill] sm:$0xff] %v14760_v11  ;;  %v14762_v36 = vpop.f32.mrb[39].mxu1 }
 0xa48   : > { %18277 = vst [vmem:[#allocation182_spill] sm:$0xff] %v14762_v36 }
 0xa4c   : > { %v14764_v4 = vpop.f32.mrb[40].mxu1 }
 0xa4d   : > { %18278 = vst [vmem:[#allocation169_spill] sm:$0xff] %v14764_v4  ;;  %v14766_v42 = vpop.f32.mrb[41].mxu1  ;;  %v18305_v4 = vld [vmem:[#allocation110_spill] sm:$0xff] }
 0xa4e   : > { %18279 = vst [vmem:[#allocation172_spill] sm:$0xff] %v14766_v42  ;;  %v14768_v6 = vpop.f32.mrb[42].mxu1 }
 0xa4f   : > { %18280 = vst [vmem:[#allocation213_spill] sm:$0xff] %v14768_v6  ;;  %v14770_v47 = vpop.f32.mrb[43].mxu1 }
 0xa50   : > { %18281 = vst [vmem:[#allocation173_spill] sm:$0xff] %v14770_v47 }
 0xa71   : > { %v14772_v0 = vpop.f32.mrb[44].mxu1 }
 0xa72   : > { %18282 = vst [vmem:[#allocation148_spill] sm:$0xff] %v14772_v0  ;;  %v14774_v48 = vpop.f32.mrb[45].mxu1 }
 0xa73   : > { %18283 = vst [vmem:[#allocation135_spill] sm:$0xff] %v14774_v48  ;;  %v14776_v34 = vpop.f32.mrb[46].mxu1  ;;  %v18302_v48 = vld [vmem:[#allocation109_spill] sm:$0xff] }
 0xa74   : > { %18284 = vst [vmem:[#allocation138_spill] sm:$0xff] %v14776_v34  ;;  %v14778_v57 = vpop.f32.mrb[47].mxu1  ;;  %vm18303_vm2 = vnez %v18302_v48 }
 0xa75   : > { %18285 = vst [vmem:[#allocation185_spill] sm:$0xff] %v14778_v57 }
 0xa7c   : > { %v9460_v1 = vpop.f32.mrb[48].mxu1 }
 0xa7d   : > { %v3784_v38 = vsel %vm13765_vm3, %v9460_v1, -9e+15  ;;  %v3704_v49 = vpop.f32.mrb[49].mxu1 }
 0xa7e   : > { %v3783_v31 = vsel %vm13829_vm15, %v3704_v49, -9e+15  ;;  %3801 = vmax.xlane.f32.xlu0 %v3784_v38  ;;  %v18290_v49 = vld [vmem:[#allocation24_spill] sm:$0xff] }
 0xa7f   : > { %3799 = vmax.xlane.f32.xlu1 %v3783_v31 }
 0xa80   : > { %v9463_v41 = vpop.f32.mrb[50].mxu1 }
 0xa81   : > { %v3786_v7 = vsel %vm13859_vm10, %v9463_v41, -9e+15  ;;  %v3714_v15 = vpop.f32.mrb[51].mxu1 }
 0xa82   : > { %v14794_v44 = vsel %vm13923_vm12, %v3714_v15, -9e+15  ;;  %v18296_v15 = vld [vmem:[#allocation140_spill] sm:$0xff] }
 0xa83   : > { %3805 = vmax.xlane.f32.xlu1 %v3786_v7  ;;  %vm18297_vm8 = vnez %v18296_v15 }
 0xa84   : > { %v9466_v23 = vpop.f32.mrb[52].mxu1 }
 0xa85   : > { %v3724_v59 = vpop.f32.mrb[53].mxu1  ;;  %v14798_v34 = vsel %vm13957_vm7, %v9466_v23, -9e+15 }
 0xa86   : > { %v14804_v8 = vsel %vm13991_vm9, %v3724_v59, -9e+15  ;;  %v18300_v59 = vld [vmem:[#allocation108_spill] sm:$0xff] }
 0xa87   : > { %vm18301_vm11 = vnez %v18300_v59 }
 0xa88   : > { %v9469_v56 = vpop.f32.mrb[54].mxu1 }
 0xa89   : > { %v3734_v37 = vpop.f32.mrb[55].mxu1  ;;  %v14808_v0 = vsel %vm18295_vm13, %v9469_v56, -9e+15 }
 0xa8a   : > { %v14814_v23 = vsel %vm18297_vm8, %v3734_v37, -9e+15  ;;  %v18304_v37 = vld [vmem:[#allocation111_spill] sm:$0xff] }
 0xa8c   : > { %v9472_v24 = vpop.f32.mrb[56].mxu1 }
 0xa8d   : > { %v3744_v39 = vpop.f32.mrb[57].mxu1  ;;  %v14818_v57 = vsel %vm18299_vm0, %v9472_v24, -9e+15 }
 0xa8e   : > { %v14824_v56 = vsel %vm18301_vm11, %v3744_v39, -9e+15  ;;  %v18306_v39 = vld [vmem:[#allocation112_spill] sm:$0xff] }
 0xa8f   : > { %vm18307_vm6 = vnez %v18306_v39 }
 0xa90   : > { %v9475_v33 = vpop.f32.mrb[58].mxu1 }
 0xa91   : > { %v3754_v1 = vpop.f32.mrb[59].mxu1  ;;  %v14828_v6 = vsel %vm18303_vm2, %v9475_v33, -9e+15 }
 0xa92   : > { %v14834_v24 = vsel %vm14232_vm14, %v3754_v1, -9e+15 }
 0xa94   : > { %10671 = vrot.lane.b32.xlu0 %v18289_v12, %s11709_s4  ;;  %10666 = vrot.lane.b32.xlu1 %v18290_v49, %s11709_s4  ;;  %v9478_v43 = vpop.f32.mrb[60].mxu1 }
 0xa95   : > { %v3764_v46 = vpop.f32.mrb[61].mxu1  ;;  %v14838_v47 = vsel %vm14228_vm4, %v9478_v43, -9e+15 }
 0xa96   : > { %v14844_v33 = vsel %vm18307_vm6, %v3764_v46, -9e+15 }
 0xa98   : > { %10676 = vrot.lane.b32.xlu0 %v18198_v21, %s11709_s4  ;;  %v9481_v41 = vpop.f32.mrb[62].mxu1 }
 0xa99   : > { %v3774_v20 = vpop.f32.mrb[63].mxu1  ;;  %v14848_v42 = vsel %vm14283_vm1, %v9481_v41, -9e+15  ;;  %vm18336_vm1 = vcmask 130048  }
 0xa9a   : > { %v14854_v43 = vsel %vm18308_vm5, %v3774_v20, -9e+15  ;;  %vm18309_vm5 = vnez %v18228_v28  ;;  %vm18337_vm6 = vmmov %vm18336_vm1 }
 0xa9b   : > { %vm18339_vm4 = vmmov %vm18336_vm1 }
 0xa9c   : > { %vm18340_vm14 = vmmov %vm18336_vm1 }
 0xa9d   : > { %vm18341_vm2 = vmmov %vm18336_vm1 }
 0xa9e   : > { %vm18342_vm11 = vmmov %vm18336_vm1 }
 0xa9f   : > { %vm18343_vm0 = vmmov %vm18336_vm1 }
 0xab7   : > { %3803 = vmax.xlane.f32.xlu0 %v14794_v44 }
 0xab8   : > { %3809 = vmax.xlane.f32.xlu1 %v14798_v34 }
 0xabb   : > { %3807 = vmax.xlane.f32.xlu0 %v14804_v8 }
 0xabc   : > { %3813 = vmax.xlane.f32.xlu1 %v14808_v0 }
 0xabf   : > { %3811 = vmax.xlane.f32.xlu0 %v14814_v23 }
 0xac0   : > { %3817 = vmax.xlane.f32.xlu1 %v14818_v57 }
 0xac3   : > { %3815 = vmax.xlane.f32.xlu0 %v14824_v56 }
 0xac4   : > { %3821 = vmax.xlane.f32.xlu1 %v14828_v6 }
 0xac7   : > { %3819 = vmax.xlane.f32.xlu0 %v14834_v24 }
 0xac8   : > { %3825 = vmax.xlane.f32.xlu1 %v14838_v47 }
 0xacb   : > { %3823 = vmax.xlane.f32.xlu0 %v14844_v33 }
 0xacc   : > { %3829 = vmax.xlane.f32.xlu1 %v14848_v42 }
 0xacf   : > { %3827 = vmax.xlane.f32.xlu0 %v14854_v43 }
 0xb0b   : > { %v3802_v1 = vpop.xlane.xlu0 %3801 }
 0xb0c   : > { %v3832_v11 = vsub.f32 %v3784_v38, %v3802_v1  ;;  %v3800_v45 = vpop.xlane.xlu1 %3799 }
 0xb0d   : > { %v3831_v36 = vsub.f32 %v3783_v31, %v3800_v45 }
 0xb0e   : > { %v3849_v46 = vmul.f32 1.442695, %v3832_v11 }
 0xb0f   : > { %v3847_v40 = vmul.f32 1.442695, %v3831_v36  ;;  %v14863_v36 = vld [vmem:[%s11959_s13 + $0x8] sm:$0xff]  ;;  %v14887_v31 = vpop.permute.xlu0 %10671 }
 0xb10   : > { %10993 = vpow2.f32 %v3849_v46  ;;  %v3806_v41 = vpop.xlane.xlu1 %3805  ;;  %18310 = vst [vmem:[#allocation186_spill] sm:$0xff] %v14863_v36 }
 0xb11   : > { %10995 = vpow2.f32 %v3847_v40  ;;  %v3834_v19 = vsub.f32 %v3786_v7, %v3806_v41  ;;  %v14869_v40 = vld [vmem:[%s11959_s13] sm:$0xff] }
 0xb12   : > { %18311 = vst [vmem:[#allocation189_spill] sm:$0xff] %v14869_v40 }
 0xb13   : > { %v3853_v29 = vmul.f32 1.442695, %v3834_v19  ;;  %v14889_v7 = vpop.permute.xlu0 %10676 }
 0xb14   : > { %v10667_v14 = vpop.permute.xlu1 %10666 }
 0xb15   : > { %10997 = vpow2.f32 %v3853_v29  ;;  %v10669_v20 = vunpack.i.h.bf16 %v10667_v14  ;;  %v10668_v60 = vunpack.i.l.bf16 %v10667_v14 }
 0xb17   : > { %v14857_v62 = vpack.c.bf16 %v10669_v20, %v10668_v60  ;;  %v14877_v60 = vld [vmem:[%s11959_s13 + $0x18] sm:$0xff] }
 0xb18   : > { %18312 = vst [vmem:[#allocation190_spill] sm:$0xff] %v14877_v60 }
 0xb19   : > { %10204 = vmatprep.subr.msk.bf16.mxu0 %vm18309_vm5, %v14857_v62 }
 0xb1a   : > { %v10994_v45 = vpop.eup %10993 }
 0xb1b   : > { %v10996_v11 = vpop.eup %10995  ;;  %v14866_v38 = vmul.f32 %v14863_v36, %v10994_v45 }
 0xb1c   : > { %v14872_v19 = vmul.f32 %v14869_v40, %v10996_v11 }
 0xb1d   : > { %3897 = vadd.xlane.f32.xlu0 %v14866_v38 }
 0xb1e   : > { %3895 = vadd.xlane.f32.xlu1 %v14872_v19 }
 0xb1f   : > { %v10998_v29 = vpop.eup %10997 }
 0xb20   : > { %v14880_v14 = vmul.f32 %v14877_v60, %v10998_v29 }
 0xb22   : > { %3901 = vadd.xlane.f32.xlu1 %v14880_v14 }
 0xb33   : > { %10681 = vrot.lane.b32.xlu1 %v18201_v26, %s11709_s4  ;;  %10686 = vrot.lane.b32.xlu0 %v18204_v58, %s11709_s4 }
 0xb44   : > { %v3804_v1 = vpop.xlane.xlu0 %3803 }
 0xb45   : > { %v3833_v46 = vsub.f32 %v14794_v44, %v3804_v1  ;;  %v3810_v41 = vpop.xlane.xlu1 %3809 }
 0xb46   : > { %v3836_v20 = vsub.f32 %v14798_v34, %v3810_v41 }
 0xb47   : > { %v3851_v45 = vmul.f32 1.442695, %v3833_v46 }
 0xb48   : > { %v3857_v11 = vmul.f32 1.442695, %v3836_v20  ;;  %v3808_v29 = vpop.xlane.xlu0 %3807 }
 0xb49   : > { %10999 = vpow2.f32 %v3851_v45  ;;  %v3835_v60 = vsub.f32 %v14804_v8, %v3808_v29  ;;  %v3814_v26 = vpop.xlane.xlu1 %3813  ;;  %v14908_v29 = vld [vmem:[%s11959_s13 + $0x20] sm:$0xff] }
 0xb4a   : > { %v3838_v40 = vsub.f32 %v14808_v0, %v3814_v26  ;;  %11001 = vpow2.f32 %v3857_v11 }
 0xb4b   : > { %v3855_v58 = vmul.f32 1.442695, %v3835_v60 }
 0xb4c   : > { %v3861_v36 = vmul.f32 1.442695, %v3838_v40  ;;  %v3812_v3 = vpop.xlane.xlu0 %3811 }
 0xb4d   : > { %11003 = vpow2.f32 %v3855_v58  ;;  %v3837_v44 = vsub.f32 %v14814_v23, %v3812_v3  ;;  %v3818_v1 = vpop.xlane.xlu1 %3817  ;;  %v14900_v3 = vld [vmem:[%s11959_s13 + $0x10] sm:$0xff] }
 0xb4e   : > { %v3840_v34 = vsub.f32 %v14818_v57, %v3818_v1  ;;  %11005 = vpow2.f32 %v3861_v36 }
 0xb4f   : > { %v3859_v46 = vmul.f32 1.442695, %v3837_v44  ;;  %v14914_v44 = vld [vmem:[%s11959_s13 + $0x28] sm:$0xff] }
 0xb50   : > { %v3865_v41 = vmul.f32 1.442695, %v3840_v34  ;;  %v3816_v20 = vpop.xlane.xlu0 %3815 }
 0xb51   : > { %11007 = vpow2.f32 %v3859_v46  ;;  %v3839_v8 = vsub.f32 %v14824_v56, %v3816_v20  ;;  %v3822_v26 = vpop.xlane.xlu1 %3821  ;;  %v14923_v20 = vld [vmem:[%s11959_s13 + $0x38] sm:$0xff] }
 0xb52   : > { %11009 = vpow2.f32 %v3865_v41  ;;  %v3842_v58 = vsub.f32 %v14828_v6, %v3822_v26  ;;  %18313 = vst [vmem:[#allocation181_spill] sm:$0xff] %v14923_v20  ;;  %v14929_v26 = vld [vmem:[%s11959_s13 + $0x30] sm:$0xff] }
 0xb53   : > { %v11000_v0 = vpop.eup %10999  ;;  %v3863_v40 = vmul.f32 1.442695, %v3839_v8  ;;  %18314 = vst [vmem:[#allocation139_spill] sm:$0xff] %v14929_v26 }
 0xb54   : > { %v3820_v60 = vpop.xlane.xlu0 %3819  ;;  %v14903_v57 = vmul.f32 %v14900_v3, %v11000_v0  ;;  %v11002_v23 = vpop.eup %11001  ;;  %v3869_v56 = vmul.f32 1.442695, %v3842_v58 }
 0xb55   : > { %11011 = vpow2.f32 %v3863_v40  ;;  %v3841_v45 = vsub.f32 %v14834_v24, %v3820_v60  ;;  %v3826_v11 = vpop.xlane.xlu1 %3825  ;;  %v14917_v1 = vmul.f32 %v14914_v44, %v11002_v23 }
 0xb56   : > { %3899 = vadd.xlane.f32.xlu0 %v14903_v57  ;;  %11013 = vpow2.f32 %v3869_v56  ;;  %v3844_v41 = vsub.f32 %v14838_v47, %v3826_v11  ;;  %v14937_v47 = vld [vmem:[%s11959_s13 + $0x48] sm:$0xff]  ;;  %v14951_v11 = vld [vmem:[%s11959_s13 + $0x58] sm:$0xff] }
 0xb57   : > { %v11004_v36 = vpop.eup %11003  ;;  %v3867_v24 = vmul.f32 1.442695, %v3841_v45  ;;  %18315 = vst [vmem:[#allocation176_spill] sm:$0xff] %v14937_v47  ;;  %18317 = vst [vmem:[#allocation193_spill] sm:$0xff] %v14951_v11 }
 0xb58   : > { %v14911_v6 = vmul.f32 %v14908_v29, %v11004_v36  ;;  %v11006_v34 = vpop.eup %11005  ;;  %v3873_v58 = vmul.f32 1.442695, %v3844_v41  ;;  %v14944_v36 = vld [vmem:[%s11959_s13 + $0x40] sm:$0xff] }
 0xb59   : > { %v14926_v8 = vmul.f32 %v14923_v20, %v11006_v34  ;;  %11015 = vpow2.f32 %v3867_v24  ;;  %18316 = vst [vmem:[#allocation150_spill] sm:$0xff] %v14944_v36  ;;  %v14958_v24 = vld [vmem:[%s11959_s13 + $0x50] sm:$0xff] }
 0xb5a   : > { %3903 = vadd.xlane.f32.xlu1 %v14911_v6  ;;  %3905 = vadd.xlane.f32.xlu0 %v14917_v1  ;;  %11017 = vpow2.f32 %v3873_v58  ;;  %18318 = vst [vmem:[#allocation212_spill] sm:$0xff] %v14958_v24  ;;  %v14965_v58 = vld [vmem:[%s11959_s13 + $0x68] sm:$0xff] }
 0xb5b   : > { %v11008_v46 = vpop.eup %11007  ;;  %18319 = vst [vmem:[#allocation151_spill] sm:$0xff] %v14965_v58  ;;  %v18321_v20 = vld [vmem:[#allocation22_spill] sm:$0xff] }
 0xb5c   : > { %v14932_v0 = vmul.f32 %v14929_v26, %v11008_v46  ;;  %v11010_v40 = vpop.eup %11009  ;;  %v18320_v26 = vld [vmem:[#allocation45_spill] sm:$0xff] }
 0xb5d   : > { %v14940_v60 = vmul.f32 %v14937_v47, %v11010_v40 }
 0xb5e   : > { %3909 = vadd.xlane.f32.xlu1 %v14926_v8  ;;  %3907 = vadd.xlane.f32.xlu0 %v14932_v0 }
 0xb5f   : > { %v11012_v23 = vpop.eup %11011 }
 0xb60   : > { %v14947_v56 = vmul.f32 %v14944_v36, %v11012_v23  ;;  %v11014_v45 = vpop.eup %11013  ;;  %v3830_v36 = vpop.xlane.xlu1 %3829 }
 0xb61   : > { %v14954_v34 = vmul.f32 %v14951_v11, %v11014_v45  ;;  %v3824_v45 = vpop.xlane.xlu0 %3823 }
 0xb62   : > { %3913 = vadd.xlane.f32.xlu1 %v14940_v60  ;;  %v3843_v11 = vsub.f32 %v14844_v33, %v3824_v45  ;;  %v18322_v45 = vld [vmem:[#allocation27_spill] sm:$0xff] }
 0xb63   : > { %v11016_v46 = vpop.eup %11015 }
 0xb64   : > { %v14961_v41 = vmul.f32 %v14958_v24, %v11016_v46  ;;  %v11018_v40 = vpop.eup %11017  ;;  %v3871_v46 = vmul.f32 1.442695, %v3843_v11  ;;  %v3846_v24 = vsub.f32 %v14848_v42, %v3830_v36  ;;  %v18323_v36 = vld [vmem:[#allocation31_spill] sm:$0xff]  ;;  %v14985_v11 = vld [vmem:[%s11959_s13 + $0x60] sm:$0xff] }
 0xb65   : > { %v14968_v23 = vmul.f32 %v14965_v58, %v11018_v40  ;;  %v3828_v47 = vpop.xlane.xlu0 %3827  ;;  %18324 = vst [vmem:[#allocation154_spill] sm:$0xff] %v14985_v11 }
 0xb66   : > { %3911 = vadd.xlane.f32.xlu1 %v14947_v56  ;;  %11019 = vpow2.f32 %v3871_v46  ;;  %v3877_v40 = vmul.f32 1.442695, %v3846_v24  ;;  %v3845_v58 = vsub.f32 %v14854_v43, %v3828_v47  ;;  %v18325_v47 = vld [vmem:[#allocation35_spill] sm:$0xff] }
 0xb68   : > { %11021 = vpow2.f32 %v3877_v40  ;;  %v3875_v33 = vmul.f32 1.442695, %v3845_v58  ;;  %v14994_v58 = vld [vmem:[%s11959_s13 + $0x78] sm:$0xff] }
 0xb69   : > { %18326 = vst [vmem:[#allocation155_spill] sm:$0xff] %v14994_v58 }
 0xb6a   : > { %3917 = vadd.xlane.f32.xlu1 %v14954_v34  ;;  %11023 = vpow2.f32 %v3875_v33  ;;  %v18327_v33 = vld [vmem:[#allocation39_spill] sm:$0xff] }
 0xb6e   : > { %3915 = vadd.xlane.f32.xlu1 %v14961_v41 }
 0xb70   : > { %v11020_v42 = vpop.eup %11019 }
 0xb71   : > { %v14988_v24 = vmul.f32 %v14985_v11, %v11020_v42  ;;  %v18330_v11 = vld [vmem:[#allocation47_spill] sm:$0xff] }
 0xb72   : > { %3921 = vadd.xlane.f32.xlu1 %v14968_v23  ;;  %v11022_v43 = vpop.eup %11021 }
 0xb73   : > { %v14997_v46 = vmul.f32 %v14994_v58, %v11022_v43  ;;  %v18331_v43 = vld [vmem:[#allocation51_spill] sm:$0xff] }
 0xb74   : > { %10696 = vrot.lane.b32.xlu0 %v18206_v9, %s11709_s4  ;;  %v11024_v40 = vpop.eup %11023 }
 0xb83   : > { %10691 = vrot.lane.b32.xlu1 %v18320_v26, %s11709_s4 }
 0xb87   : > { %4120 = vrot.lane.b32.xlu1 %v18321_v20, %s11709_s4 }
 0xb8b   : > { %4124 = vrot.lane.b32.xlu1 %v18322_v45, %s11709_s4 }
 0xb8f   : > { %4128 = vrot.lane.b32.xlu1 %v18323_v36, %s11709_s4  ;;  %v15003_v36 = vld [vmem:[%s11959_s13 + $0x70] sm:$0xff] }
 0xb90   : > { %18328 = vst [vmem:[#allocation142_spill] sm:$0xff] %v15003_v36  ;;  %v15006_v42 = vmul.f32 %v15003_v36, %v11024_v40 }
 0xb93   : > { %4132 = vrot.lane.b32.xlu1 %v18325_v47, %s11709_s4  ;;  %3919 = vadd.xlane.f32.xlu0 %v14988_v24  ;;  %v18329_v47 = vld [vmem:[#allocation43_spill] sm:$0xff] }
 0xb97   : > { %4136 = vrot.lane.b32.xlu1 %v18327_v33, %s11709_s4  ;;  %3925 = vadd.xlane.f32.xlu0 %v14997_v46  ;;  %v18332_v33 = vld [vmem:[#allocation28_spill] sm:$0xff] }
 0xb9b   : > { %4140 = vrot.lane.b32.xlu1 %v18329_v47, %s11709_s4  ;;  %3923 = vadd.xlane.f32.xlu0 %v15006_v42  ;;  %v18333_v47 = vld [vmem:[#allocation40_spill] sm:$0xff] }
 0xb9f   : > { %4144 = vrot.lane.b32.xlu1 %v18330_v11, %s11709_s4 }
 0xba3   : > { %4148 = vrot.lane.b32.xlu1 %v18331_v43, %s11709_s4  ;;  %v18334_v43 = vld [vmem:[#allocation48_spill] sm:$0xff] }
 0xba7   : > { %4611 = vrot.lane.b32.xlu1 %v18332_v33, %s11709_s4 }
 0xbaa   : > { %v3898_v58 = vpop.xlane.xlu0 %3897 }
 0xbab   : > { %v3928_v45 = vmax.f32 %v3898_v58, 1e-30  ;;  %4615 = vrot.lane.b32.xlu1 %v18214_v51, %s11709_s4  ;;  %v3896_v40 = vpop.xlane.xlu1 %3895 }
 0xbac   : > { %v3927_v36 = vmax.f32 %v3896_v40, 1e-30 }
 0xbad   : > { %11025 = vrcp.f32 %v3928_v45 }
 0xbae   : > { %11027 = vrcp.f32 %v3927_v36 }
 0xbaf   : > { %4617 = vrot.lane.b32.xlu1 %v18333_v47, %s11709_s4 }
 0xbb1   : > { %10701 = vrot.lane.b32.xlu0 %v18223_v32, %s11709_s4 }
 0xbb3   : > { %4621 = vrot.lane.b32.xlu1 %v18334_v43, %s11709_s4 }
 0xbb5   : > { %4122 = vrot.lane.b32.xlu0 %v18225_v13, %s11709_s4 }
 0xbb7   : > { %v11026_v58 = vpop.eup %11025 }
 0xbb8   : > { %v11028_v33 = vpop.eup %11027  ;;  %v3976_v51 = vmul.f32 %v11026_v58, %v14866_v38  ;;  %v15049_v38 = vpop.permute.xlu0 %10686 }
 0xbb9   : > { %4126 = vrot.lane.b32.xlu0 %v18227_v16, %s11709_s4  ;;  %v3975_v45 = vmul.f32 %v11028_v33, %v14872_v19  ;;  %v18335_v33 = vld [vmem:[#allocation52_spill] sm:$0xff] }
 0xbbb   : > { %v3991_v36 = vpack.c.bf16 %v3976_v51, %v3975_v45  ;;  %v3902_v51 = vpop.xlane.xlu1 %3901 }
 0xbbc   : > { %v3930_v19 = vmax.f32 %v3902_v51, 1e-30 }
 0xbbd   : > { %4130 = vrot.lane.b32.xlu0 %v18229_v10, %s11709_s4  ;;  %9498 = vmatprep.mubr.bf16.mxu0 %v3991_v36 }
 0xbbe   : > { %11029 = vrcp.f32 %v3930_v19  ;;  %v10674_v19 = vunpack.i.h.bf16 %v14887_v31 }
 0xbbf   : > { %v15053_v40 = vpop.permute.xlu1 %10681 }
 0xbc1   : > { %4134 = vrot.lane.b32.xlu0 %v18230_v27, %s11709_s4 }
 0xbc5   : > { %4138 = vrot.lane.b32.xlu0 %v18231_v54, %s11709_s4 }
 0xbc8   : > { %v11030_v51 = vpop.eup %11029 }
 0xbc9   : > { %4142 = vrot.lane.b32.xlu0 %v18232_v50, %s11709_s4 }
 0xbcd   : > { %4146 = vrot.lane.b32.xlu0 %v18233_v5, %s11709_s4 }
 0xbd1   : > { %4150 = vrot.lane.b32.xlu0 %v18234_v55, %s11709_s4 }
 0xbd5   : > { %4609 = vrot.lane.b32.xlu0 %v18235_v53, %s11709_s4 }
 0xbd9   : > { %4613 = vrot.lane.b32.xlu0 %v18236_v63, %s11709_s4 }
 0xbdd   : > { %4619 = vrot.lane.b32.xlu0 %v18237_v18, %s11709_s4 }
 0xbe1   : > { %4623 = vrot.lane.b32.xlu0 %v18335_v33, %s11709_s4 }
 0xbe3   : > { %v3900_v58 = vpop.xlane.xlu0 %3899 }
 0xbe4   : > { %v3929_v45 = vmax.f32 %v3900_v58, 1e-30  ;;  %v10673_v58 = vunpack.i.l.bf16 %v14887_v31 }
 0xbe6   : > { %11031 = vrcp.f32 %v3929_v45  ;;  %v3978_v45 = vmul.f32 %v11030_v51, %v14880_v14  ;;  %v10208_v16 = vpack.c.bf16 %v10674_v19, %v10673_v58  ;;  %v10679_v51 = vunpack.i.h.bf16 %v14889_v7 }
 0xbe7   : > { %v3904_v36 = vpop.xlane.xlu1 %3903  ;;  %v3906_v53 = vpop.xlane.xlu0 %3905 }
 0xbe8   : > { %v3931_v55 = vmax.f32 %v3904_v36, 1e-30  ;;  %v3932_v63 = vmax.f32 %v3906_v53, 1e-30 }
 0xbea   : > { %11033 = vrcp.f32 %v3931_v55 }
 0xbeb   : > { %11035 = vrcp.f32 %v3932_v63  ;;  %v3910_v5 = vpop.xlane.xlu1 %3909  ;;  %v3908_v18 = vpop.xlane.xlu0 %3907 }
 0xbec   : > { %v3934_v50 = vmax.f32 %v3910_v5, 1e-30  ;;  %v3933_v54 = vmax.f32 %v3908_v18, 1e-30 }
 0xbee   : > { %11037 = vrcp.f32 %v3934_v50 }
 0xbef   : > { %11039 = vrcp.f32 %v3933_v54  ;;  %v3914_v33 = vpop.xlane.xlu1 %3913 }
 0xbf0   : > { %v11032_v27 = vpop.eup %11031  ;;  %v3936_v10 = vmax.f32 %v3914_v33, 1e-30 }
 0xbf1   : > { %v3977_v53 = vmul.f32 %v11032_v27, %v14903_v57 }
 0xbf2   : > { %11041 = vrcp.f32 %v3936_v10 }
 0xbf3   : > { %v3912_v55 = vpop.xlane.xlu1 %3911  ;;  %v3992_v63 = vpack.c.bf16 %v3978_v45, %v3977_v53 }
 0xbf4   : > { %v11034_v36 = vpop.eup %11033  ;;  %v3935_v5 = vmax.f32 %v3912_v55, 1e-30 }
 0xbf5   : > { %v11036_v18 = vpop.eup %11035  ;;  %9499 = vmatmul.mubr.bf16.vlgmr.msra.gmra.mrb[48].mxu0 %v3992_v63  ;;  %v3979_v54 = vmul.f32 %v11034_v36, %v14911_v6  ;;  %v10678_v6 = vunpack.i.l.bf16 %v14889_v7  ;;  %v10683_v63 = vunpack.i.l.bf16 %v15053_v40 }
 0xbf6   : > { %11043 = vrcp.f32 %v3935_v5  ;;  %10207 = vmatpush3.bf16.xpose.msk.msra.mxu0 %vm18309_vm5, %v14857_v62  ;;  %v3980_v50 = vmul.f32 %v11036_v18, %v14917_v1 }
 0xbf7   : > { %10210 = vmatprep.subr.msk.bf16.mxu0 %vm18309_vm5, %v10208_v16  ;;  %v3918_v27 = vpop.xlane.xlu1 %3917  ;;  %v10214_v53 = vpack.c.bf16 %v10679_v51, %v10678_v6 }
 0xbf8   : > { %v11038_v14 = vpop.eup %11037  ;;  %v3938_v31 = vmax.f32 %v3918_v27, 1e-30  ;;  %v3993_v10 = vpack.c.bf16 %v3980_v50, %v3979_v54  ;;  %v10689_v50 = vunpack.i.h.bf16 %v15049_v38 }
 0xbf9   : > { %v11040_v57 = vpop.eup %11039  ;;  %v3982_v33 = vmul.f32 %v11038_v14, %v14926_v8 }
 0xbfa   : > { %9502 = vmatprep.mubr.bf16.mxu0 %v3993_v10  ;;  %v3981_v19 = vmul.f32 %v11040_v57, %v14932_v0  ;;  %11045 = vrcp.f32 %v3938_v31  ;;  %v10684_v0 = vunpack.i.h.bf16 %v15053_v40  ;;  %v10688_v40 = vunpack.i.l.bf16 %v15049_v38 }
 0xbfb   : > { %v3916_v62 = vpop.xlane.xlu1 %3915 }
 0xbfc   : > { %v3937_v1 = vmax.f32 %v3916_v62, 1e-30  ;;  %v3994_v58 = vpack.c.bf16 %v3982_v33, %v3981_v19  ;;  %v11042_v45 = vpop.eup %11041  ;;  %v10220_v18 = vpack.c.bf16 %v10684_v0, %v10683_v63  ;;  %v10226_v14 = vpack.c.bf16 %v10689_v50, %v10688_v40 }
 0xbfd   : > { %v3984_v8 = vmul.f32 %v11042_v45, %v14940_v60 }
 0xbfe   : > { %11047 = vrcp.f32 %v3937_v1  ;;  %9503 = vmatmul.mubr.bf16.gmra.mrb[52].mxu0 %v3994_v58 }
 0xbff   : > { %10213 = vmatpush3.bf16.xpose.msk.msra.mxu0 %vm18309_vm5, %v10208_v16  ;;  %v3922_v54 = vpop.xlane.xlu1 %3921 }
 0xc00   : > { %v11044_v55 = vpop.eup %11043  ;;  %10216 = vmatprep.subr.msk.bf16.mxu0 %vm18309_vm5, %v10214_v53  ;;  %v3940_v51 = vmax.f32 %v3922_v54, 1e-30 }
 0xc01   : > { %v3983_v7 = vmul.f32 %v11044_v55, %v14947_v56 }
 0xc02   : > { %11049 = vrcp.f32 %v3940_v51 }
 0xc03   : > { %v3995_v36 = vpack.c.bf16 %v3984_v8, %v3983_v7  ;;  %v10692_v31 = vpop.permute.xlu1 %10691 }
 0xc04   : > { %v11046_v5 = vpop.eup %11045  ;;  %v10694_v10 = vunpack.i.h.bf16 %v10692_v31  ;;  %v10693_v57 = vunpack.i.l.bf16 %v10692_v31 }
 0xc05   : > { %9506 = vmatprep.mubr.bf16.mxu0 %v3995_v36  ;;  %v3986_v60 = vmul.f32 %v11046_v5, %v14954_v34 }
 0xc06   : > { %v10232_v33 = vpack.c.bf16 %v10694_v10, %v10693_v57 }
 0xc07   : > { %10219 = vmatpush3.bf16.xpose.msk.msra.mxu0 %vm18309_vm5, %v10214_v53  ;;  %v4121_v1 = vpop.permute.xlu1 %4120 }
 0xc08   : > { %v11048_v16 = vpop.eup %11047  ;;  %10222 = vmatprep.subr.msk.bf16.mxu0 %vm18309_vm5, %v10220_v18 }
 0xc09   : > { %v3985_v56 = vmul.f32 %v11048_v16, %v14961_v41  ;;  %v10697_v41 = vpop.permute.xlu0 %10696 }
 0xc0a   : > { %v10699_v34 = vunpack.i.h.bf16 %v10697_v41  ;;  %v10698_v38 = vunpack.i.l.bf16 %v10697_v41 }
 0xc0b   : > { %v3996_v27 = vpack.c.bf16 %v3986_v60, %v3985_v56  ;;  %v4125_v53 = vpop.permute.xlu1 %4124 }
 0xc0c   : > { %v10238_v6 = vpack.c.bf16 %v10699_v34, %v10698_v38  ;;  %v11050_v8 = vpop.eup %11049 }
 0xc0d   : > { %9507 = vmatmul.mubr.bf16.gmra.mrb[56].mxu0 %v3996_v27  ;;  %v3988_v54 = vmul.f32 %v11050_v8, %v14968_v23 }
 0xc0f   : > { %10225 = vmatpush3.bf16.xpose.msk.msra.mxu0 %vm18309_vm5, %v10220_v18  ;;  %v4129_v18 = vpop.permute.xlu1 %4128 }
 0xc10   : > { %10228 = vmatprep.subr.msk.bf16.mxu0 %vm18309_vm5, %v10226_v14 }
 0xc13   : > { %v4133_v27 = vpop.permute.xlu1 %4132 }
 0xc17   : > { %10231 = vmatpush3.bf16.xpose.msk.msra.mxu0 %vm18309_vm5, %v10226_v14 }
 0xc18   : > { %10234 = vmatprep.subr.msk.bf16.mxu0 %vm18309_vm5, %v10232_v33 }
 0xc1f   : > { %10237 = vmatpush3.bf16.xpose.msk.msra.mxu0 %vm18309_vm5, %v10232_v33  ;;  %v4137_v33 = vpop.permute.xlu1 %4136 }
 0xc20   : > { %10240 = vmatprep.subr.msk.bf16.mxu0 %vm18309_vm5, %v10238_v6  ;;  %v3920_v19 = vpop.xlane.xlu0 %3919 }
 0xc21   : > { %v3939_v62 = vmax.f32 %v3920_v19, 1e-30 }
 0xc23   : > { %11051 = vrcp.f32 %v3939_v62  ;;  %v4141_v34 = vpop.permute.xlu1 %4140 }
 0xc24   : > { %v3926_v58 = vpop.xlane.xlu0 %3925 }
 0xc25   : > { %v3942_v45 = vmax.f32 %v3926_v58, 1e-30 }
 0xc27   : > { %10243 = vmatpush3.bf16.xpose.msk.msra.mxu0 %vm18309_vm5, %v10238_v6  ;;  %11053 = vrcp.f32 %v3942_v45  ;;  %v4145_v6 = vpop.permute.xlu1 %4144 }
 0xc28   : > { %v3924_v55 = vpop.xlane.xlu0 %3923 }
 0xc29   : > { %v3941_v7 = vmax.f32 %v3924_v55, 1e-30 }
 0xc2b   : > { %11055 = vrcp.f32 %v3941_v7 }
 0xc2c   : > { %v10702_v0 = vpop.permute.xlu0 %10701 }
 0xc2d   : > { %v11052_v63 = vpop.eup %11051  ;;  %v10704_v36 = vunpack.i.h.bf16 %v10702_v0  ;;  %v10703_v5 = vunpack.i.l.bf16 %v10702_v0 }
 0xc2e   : > { %v3987_v16 = vmul.f32 %v11052_v63, %v14988_v24 }
 0xc2f   : > { %v10244_v56 = vpack.c.bf16 %v10704_v36, %v10703_v5 }
 0xc30   : > { %v4123_v60 = vpop.permute.xlu0 %4122  ;;  %v3997_v50 = vpack.c.bf16 %v3988_v54, %v3987_v16 }
 0xc31   : > { %10246 = vmatprep.subr.msk.bf16.mxu0 %vm18309_vm5, %v10244_v56  ;;  %v11054_v40 = vpop.eup %11053 }
 0xc32   : > { %9510 = vmatprep.mubr.bf16.mxu0 %v3997_v50  ;;  %10249 = vmatpush3.bf16.xpose.msk.msra.mxu0 %vm18309_vm5, %v10244_v56  ;;  %v3990_v24 = vmul.f32 %v11054_v40, %v14997_v46  ;;  %vm18338_vm5 = vmmov %vm18336_vm1 }
 0xc34   : > { %v4127_v14 = vpop.permute.xlu0 %4126 }
 0xc35   : > { %v11056_v31 = vpop.eup %11055 }
 0xc36   : > { %v3989_v10 = vmul.f32 %v11056_v31, %v15006_v42  ;;  %v4149_v42 = vpop.permute.xlu1 %4148 }
 0xc38   : > { %v4131_v57 = vpop.permute.xlu0 %4130  ;;  %v3998_v23 = vpack.c.bf16 %v3990_v24, %v3989_v10 }
 0xc3a   : > { %9511 = vmatmul.mubr.bf16.gmra.mrb[60].mxu0 %v3998_v23 }
 0xc3b   : > { %9546 = vmatprep.mubr.msk.f32.mxu0 %vm18336_vm1, %v4121_v1  ;;  %v4612_v1 = vpop.permute.xlu1 %4611 }
 0xc3c   : > { %v4135_v41 = vpop.permute.xlu0 %4134 }
 0xc3f   : > { %v4616_v45 = vpop.permute.xlu1 %4615 }
 0xc40   : > { %v4139_v38 = vpop.permute.xlu0 %4138 }
 0xc42   : > { %9547 = vmatmul.mubr.msk.f32.vlgmr.msra.gmra.mrb[64].mxu0 %vm18337_vm6, %v4123_v60  ;;  %vm18344_vm6 = vmmov %vm18343_vm0 }
 0xc43   : > { %9549 = vmatprep.mubr.msk.f32.mxu0 %vm18338_vm5, %v4125_v53  ;;  %v4618_v53 = vpop.permute.xlu1 %4617  ;;  %vm18349_vm5 = vmmov %vm18343_vm0 }
 0xc44   : > { %v4143_v51 = vpop.permute.xlu0 %4142 }
 0xc46   : > { %9550 = vmatmul.mubr.msk.f32.gmra.mrb[66].mxu0 %vm18339_vm4, %v4127_v14  ;;  %vm18345_vm4 = vmmov %vm18343_vm0 }
 0xc47   : > { %9552 = vmatprep.mubr.msk.f32.mxu0 %vm18340_vm14, %v4129_v18  ;;  %vm18346_vm14 = vmmov %vm18343_vm0  ;;  %v4622_v7 = vpop.permute.xlu1 %4621 }
 0xc48   : > { %v4147_v46 = vpop.permute.xlu0 %4146 }
 0xc4a   : > { %9553 = vmatmul.mubr.msk.f32.gmra.mrb[68].mxu0 %vm18341_vm2, %v4131_v57  ;;  %vm18348_vm2 = vmmov %vm18343_vm0 }
 0xc4b   : > { %9555 = vmatprep.mubr.msk.f32.mxu0 %vm18342_vm11, %v4133_v27  ;;  %vm18347_vm11 = vmmov %vm18343_vm0 }
 0xc4c   : > { %v4151_v19 = vpop.permute.xlu0 %4150 }
 0xc4e   : > { %9556 = vmatmul.mubr.msk.f32.gmra.mrb[70].mxu0 %vm18336_vm1, %v4135_v41  ;;  %vm18366_vm1 = vnez %v18298_v35 }
 0xc4f   : > { %9558 = vmatprep.mubr.msk.f32.mxu0 %vm18343_vm0, %v4137_v33 }
 0xc50   : > { %v4610_v62 = vpop.permute.xlu0 %4609 }
 0xc51   : > { %9570 = vmatprep.subr.bf16.mxu1 %v4610_v62 }
 0xc52   : > { %9559 = vmatmul.mubr.msk.f32.gmra.mrb[72].mxu0 %vm18344_vm6, %v4139_v38  ;;  %9571 = vmatpush3.bf16.msra.mxu1 %v4610_v62  ;;  %vm18367_vm6 = vnez %v18300_v59 }
 0xc53   : > { %9561 = vmatprep.mubr.msk.f32.mxu0 %vm18345_vm4, %v4141_v34  ;;  %9572 = vmatprep.subr.bf16.mxu1 %v4612_v1  ;;  %vm18368_vm4 = vnez %v18302_v48 }
 0xc54   : > { %v4614_v58 = vpop.permute.xlu0 %4613 }
 0xc56   : > { %9562 = vmatmul.mubr.msk.f32.gmra.mrb[74].mxu0 %vm18346_vm14, %v4143_v51  ;;  %9573 = vmatpush3.bf16.msra.mxu1 %v4612_v1  ;;  %vm18369_vm14 = vnez %v18304_v37 }
 0xc57   : > { %9564 = vmatprep.mubr.msk.f32.mxu0 %vm18347_vm11, %v4145_v6  ;;  %9574 = vmatprep.subr.bf16.mxu1 %v4614_v58  ;;  %vm18370_vm11 = vnez %v18305_v4 }
 0xc58   : > { %v4620_v55 = vpop.permute.xlu0 %4619 }
 0xc5a   : > { %9565 = vmatmul.mubr.msk.f32.gmra.mrb[76].mxu0 %vm18348_vm2, %v4147_v46  ;;  %9575 = vmatpush3.bf16.msra.mxu1 %v4614_v58  ;;  %vm18371_vm2 = vnez %v18306_v39 }
 0xc5b   : > { %9567 = vmatprep.mubr.msk.f32.mxu0 %vm18343_vm0, %v4149_v42  ;;  %9576 = vmatprep.subr.bf16.mxu1 %v4616_v45 }
 0xc5c   : > { %v4624_v8 = vpop.permute.xlu0 %4623 }
 0xc5e   : > { %9568 = vmatmul.mubr.msk.f32.gmra.mrb[78].mxu0 %vm18349_vm5, %v4151_v19  ;;  %9577 = vmatpush3.bf16.msra.mxu1 %v4616_v45 }
 0xc5f   : > { %9578 = vmatprep.subr.bf16.mxu1 %v4618_v53 }
 0xc62   : > { %9579 = vmatpush3.bf16.msra.mxu1 %v4618_v53 }
 0xc63   : > { %9580 = vmatprep.subr.bf16.mxu1 %v4620_v55 }
 0xc66   : > { %9581 = vmatpush3.bf16.msra.mxu1 %v4620_v55 }
 0xc67   : > { %9582 = vmatprep.subr.bf16.mxu1 %v4622_v7 }
 0xc6a   : > { %9583 = vmatpush3.bf16.msra.mxu1 %v4622_v7 }
 0xc6b   : > { %9584 = vmatprep.subr.bf16.mxu1 %v4624_v8 }
 0xc6e   : > { %9585 = vmatpush3.bf16.msra.mxu1 %v4624_v8 }
 0xcc8   : > { %v15124_v0 = vpop.f32.mrb[48].mxu0 }
 0xcc9   : > { %18350 = vst [vmem:[#allocation245_spill] sm:$0xff] %v15124_v0  ;;  %v15126_v63 = vpop.f32.mrb[49].mxu0 }
 0xcca   : > { %18351 = vst [vmem:[#allocation158_spill] sm:$0xff] %v15126_v63  ;;  %v15128_v36 = vpop.f32.mrb[50].mxu0 }
 0xccb   : > { %18352 = vst [vmem:[#allocation216_spill] sm:$0xff] %v15128_v36  ;;  %v15130_v5 = vpop.f32.mrb[51].mxu0 }
 0xccc   : > { %18353 = vst [vmem:[#allocation194_spill] sm:$0xff] %v15130_v5 }
 0xcd1   : > { %v15132_v18 = vpop.f32.mrb[52].mxu0 }
 0xcd2   : > { %18354 = vst [vmem:[#allocation197_spill] sm:$0xff] %v15132_v18  ;;  %v15134_v16 = vpop.f32.mrb[53].mxu0 }
 0xcd3   : > { %18355 = vst [vmem:[#allocation248_spill] sm:$0xff] %v15134_v16  ;;  %v15136_v54 = vpop.f32.mrb[54].mxu0 }
 0xcd4   : > { %18356 = vst [vmem:[#allocation183_spill] sm:$0xff] %v15136_v54  ;;  %v15138_v56 = vpop.f32.mrb[55].mxu0 }
 0xcd5   : > { %18357 = vst [vmem:[#allocation219_spill] sm:$0xff] %v15138_v56 }
 0xce0   : > { %v15140_v60 = vpop.f32.mrb[56].mxu0 }
 0xce1   : > { %18358 = vst [vmem:[#allocation159_spill] sm:$0xff] %v15140_v60  ;;  %v15142_v50 = vpop.f32.mrb[57].mxu0 }
 0xce2   : > { %18359 = vst [vmem:[#allocation198_spill] sm:$0xff] %v15142_v50  ;;  %v15144_v40 = vpop.f32.mrb[58].mxu0 }
 0xce3   : > { %18360 = vst [vmem:[#allocation162_spill] sm:$0xff] %v15144_v40  ;;  %v15146_v27 = vpop.f32.mrb[59].mxu0 }
 0xce4   : > { %18361 = vst [vmem:[#allocation201_spill] sm:$0xff] %v15146_v27 }
 0xd0d   : > { %v15148_v14 = vpop.f32.mrb[60].mxu0 }
 0xd0e   : > { %18362 = vst [vmem:[#allocation215_spill] sm:$0xff] %v15148_v14  ;;  %v15150_v31 = vpop.f32.mrb[61].mxu0 }
 0xd0f   : > { %18363 = vst [vmem:[#allocation249_spill] sm:$0xff] %v15150_v31  ;;  %v15152_v10 = vpop.f32.mrb[62].mxu0 }
 0xd10   : > { %18364 = vst [vmem:[#allocation184_spill] sm:$0xff] %v15152_v10  ;;  %v15154_v24 = vpop.f32.mrb[63].mxu0 }
 0xd11   : > { %18365 = vst [vmem:[#allocation163_spill] sm:$0xff] %v15154_v24 }
 0xd15   : > { %v9548_v57 = vpop.f32.mrb[64].mxu0 }
 0xd16   : > { %v4394_v23 = vsel %vm13765_vm3, %v9548_v57, -9e+15  ;;  %v4314_v33 = vpop.f32.mrb[65].mxu0 }
 0xd17   : > { %v4393_v41 = vsel %vm13829_vm15, %v4314_v33, -9e+15  ;;  %4411 = vmax.xlane.f32.xlu0 %v4394_v23 }
 0xd18   : > { %4409 = vmax.xlane.f32.xlu1 %v4393_v41 }
 0xd19   : > { %v9551_v34 = vpop.f32.mrb[66].mxu0 }
 0xd1a   : > { %v4396_v38 = vsel %vm13859_vm10, %v9551_v34, -9e+15  ;;  %v4324_v51 = vpop.f32.mrb[67].mxu0 }
 0xd1b   : > { %v4395_v57 = vsel %vm13923_vm12, %v4324_v51, -9e+15 }
 0xd1c   : > { %4415 = vmax.xlane.f32.xlu1 %v4396_v38 }
 0xd1d   : > { %v9554_v6 = vpop.f32.mrb[68].mxu0 }
 0xd1e   : > { %v4334_v46 = vpop.f32.mrb[69].mxu0  ;;  %v4398_v33 = vsel %vm13957_vm7, %v9554_v6, -9e+15 }
 0xd1f   : > { %v15174_v34 = vsel %vm13991_vm9, %v4334_v46, -9e+15 }
 0xd21   : > { %v9557_v42 = vpop.f32.mrb[70].mxu0 }
 0xd22   : > { %v4344_v19 = vpop.f32.mrb[71].mxu0  ;;  %v15178_v10 = vsel %vm18295_vm13, %v9557_v42, -9e+15 }
 0xd23   : > { %v15184_v51 = vsel %vm18297_vm8, %v4344_v19, -9e+15 }
 0xd25   : > { %v9560_v62 = vpop.f32.mrb[72].mxu0 }
 0xd26   : > { %v4354_v1 = vpop.f32.mrb[73].mxu0  ;;  %v15188_v6 = vsel %vm18366_vm1, %v9560_v62, -9e+15 }
 0xd27   : > { %v15194_v46 = vsel %vm18367_vm6, %v4354_v1, -9e+15 }
 0xd29   : > { %v9563_v58 = vpop.f32.mrb[74].mxu0 }
 0xd2a   : > { %v4364_v45 = vpop.f32.mrb[75].mxu0  ;;  %v15198_v42 = vsel %vm18368_vm4, %v9563_v58, -9e+15  ;;  %v18372_v58 = vld [vmem:[#allocation113_spill] sm:$0xff] }
 0xd2b   : > { %v15204_v19 = vsel %vm18369_vm14, %v4364_v45, -9e+15  ;;  %vm18373_vm0 = vnez %v18372_v58  ;;  %v18374_v45 = vld [vmem:[#allocation141_spill] sm:$0xff] }
 0xd2c   : > { %vm18375_vm5 = vnez %v18374_v45 }
 0xd2d   : > { %10711 = vrot.lane.b32.xlu0 %v18289_v12, %s11710_s8  ;;  %10706 = vrot.lane.b32.xlu1 %v18290_v49, %s11710_s8  ;;  %v9566_v53 = vpop.f32.mrb[76].mxu0 }
 0xd2e   : > { %v4374_v55 = vpop.f32.mrb[77].mxu0  ;;  %v15208_v62 = vsel %vm18370_vm11, %v9566_v53, -9e+15 }
 0xd2f   : > { %v15214_v1 = vsel %vm18371_vm2, %v4374_v55, -9e+15 }
 0xd31   : > { %10716 = vrot.lane.b32.xlu0 %v18198_v21, %s11710_s8  ;;  %v9569_v7 = vpop.f32.mrb[78].mxu0 }
 0xd32   : > { %v4384_v8 = vpop.f32.mrb[79].mxu0  ;;  %v15218_v14 = vsel %vm18373_vm0, %v9569_v7, -9e+15  ;;  %vm18411_vm0 = vcmask 130048  }
 0xd33   : > { %v15224_v53 = vsel %vm18375_vm5, %v4384_v8, -9e+15  ;;  %vm18376_vm5 = vnez %v18228_v28  ;;  %vm18412_vm2 = vmmov %vm18411_vm0 }
 0xd34   : > { %vm18414_vm11 = vmmov %vm18411_vm0 }
 0xd35   : > { %vm18415_vm14 = vmmov %vm18411_vm0 }
 0xd36   : > { %vm18416_vm4 = vmmov %vm18411_vm0 }
 0xd37   : > { %vm18417_vm6 = vmmov %vm18411_vm0 }
 0xd38   : > { %vm18418_vm1 = vmmov %vm18411_vm0 }
 0xd50   : > { %4413 = vmax.xlane.f32.xlu0 %v4395_v57 }
 0xd51   : > { %4419 = vmax.xlane.f32.xlu1 %v4398_v33 }
 0xd54   : > { %4417 = vmax.xlane.f32.xlu0 %v15174_v34 }
 0xd55   : > { %4423 = vmax.xlane.f32.xlu1 %v15178_v10 }
 0xd58   : > { %4421 = vmax.xlane.f32.xlu0 %v15184_v51 }
 0xd59   : > { %4427 = vmax.xlane.f32.xlu1 %v15188_v6 }
 0xd5c   : > { %4425 = vmax.xlane.f32.xlu0 %v15194_v46 }
 0xd5d   : > { %4431 = vmax.xlane.f32.xlu1 %v15198_v42 }
 0xd60   : > { %4429 = vmax.xlane.f32.xlu0 %v15204_v19 }
 0xd61   : > { %4435 = vmax.xlane.f32.xlu1 %v15208_v62 }
 0xd64   : > { %4433 = vmax.xlane.f32.xlu0 %v15214_v1 }
 0xd65   : > { %4439 = vmax.xlane.f32.xlu1 %v15218_v14 }
 0xd68   : > { %4437 = vmax.xlane.f32.xlu0 %v15224_v53 }
 0xda4   : > { %v4412_v24 = vpop.xlane.xlu0 %4411 }
 0xda5   : > { %v4442_v31 = vsub.f32 %v4394_v23, %v4412_v24  ;;  %v4410_v40 = vpop.xlane.xlu1 %4409 }
 0xda6   : > { %v4441_v60 = vsub.f32 %v4393_v41, %v4410_v40  ;;  %v18377_v40 = vld [vmem:[#allocation186_spill] sm:$0xff] }
 0xda7   : > { %v4459_v55 = vmul.f32 1.442695, %v4442_v31 }
 0xda8   : > { %v4457_v27 = vmul.f32 1.442695, %v4441_v60  ;;  %v18378_v60 = vld [vmem:[#allocation189_spill] sm:$0xff] }
 0xda9   : > { %11057 = vpow2.f32 %v4459_v55  ;;  %v4416_v50 = vpop.xlane.xlu1 %4415 }
 0xdaa   : > { %11059 = vpow2.f32 %v4457_v27  ;;  %v4444_v7 = vsub.f32 %v4396_v38, %v4416_v50  ;;  %v18381_v50 = vld [vmem:[#allocation41_spill] sm:$0xff]  ;;  %v15248_v27 = vpop.permute.xlu0 %10711 }
 0xdac   : > { %v4463_v54 = vmul.f32 1.442695, %v4444_v7 }
 0xdad   : > { %v10707_v18 = vpop.permute.xlu1 %10706 }
 0xdae   : > { %11061 = vpow2.f32 %v4463_v54  ;;  %v10709_v56 = vunpack.i.h.bf16 %v10707_v18  ;;  %v10708_v16 = vunpack.i.l.bf16 %v10707_v18  ;;  %v18379_v18 = vld [vmem:[#allocation190_spill] sm:$0xff]  ;;  %v15250_v38 = vpop.permute.xlu0 %10716 }
 0xdb0   : > { %v15227_v36 = vpack.c.bf16 %v10709_v56, %v10708_v16  ;;  %v18380_v56 = vld [vmem:[#allocation37_spill] sm:$0xff] }
 0xdb2   : > { %10252 = vmatprep.subr.msk.bf16.mxu1 %vm18376_vm5, %v15227_v36 }
 0xdb3   : > { %v11058_v24 = vpop.eup %11057 }
 0xdb4   : > { %v11060_v23 = vpop.eup %11059  ;;  %v15233_v31 = vmul.f32 %v18377_v40, %v11058_v24 }
 0xdb5   : > { %v15236_v41 = vmul.f32 %v18378_v60, %v11060_v23 }
 0xdb6   : > { %4507 = vadd.xlane.f32.xlu0 %v15233_v31 }
 0xdb7   : > { %4505 = vadd.xlane.f32.xlu1 %v15236_v41 }
 0xdb8   : > { %v11062_v54 = vpop.eup %11061 }
 0xdb9   : > { %v15241_v16 = vmul.f32 %v18379_v18, %v11062_v54 }
 0xdbb   : > { %4511 = vadd.xlane.f32.xlu1 %v15241_v16 }
 0xdcc   : > { %10721 = vrot.lane.b32.xlu1 %v18380_v56, %s11710_s8  ;;  %10726 = vrot.lane.b32.xlu0 %v18381_v50, %s11710_s8 }
 0xddd   : > { %v4414_v8 = vpop.xlane.xlu0 %4413 }
 0xdde   : > { %v4443_v55 = vsub.f32 %v4395_v57, %v4414_v8  ;;  %v4420_v7 = vpop.xlane.xlu1 %4419 }
 0xddf   : > { %v4446_v24 = vsub.f32 %v4398_v33, %v4420_v7 }
 0xde0   : > { %v4461_v23 = vmul.f32 1.442695, %v4443_v55 }
 0xde1   : > { %v4467_v40 = vmul.f32 1.442695, %v4446_v24  ;;  %v4418_v60 = vpop.xlane.xlu0 %4417 }
 0xde2   : > { %11063 = vpow2.f32 %v4461_v23  ;;  %v4445_v54 = vsub.f32 %v15174_v34, %v4418_v60  ;;  %v4424_v18 = vpop.xlane.xlu1 %4423 }
 0xde3   : > { %v4448_v0 = vsub.f32 %v15178_v10, %v4424_v18  ;;  %11065 = vpow2.f32 %v4467_v40 }
 0xde4   : > { %v4465_v5 = vmul.f32 1.442695, %v4445_v54  ;;  %v18382_v54 = vld [vmem:[#allocation181_spill] sm:$0xff] }
 0xde5   : > { %v4471_v63 = vmul.f32 1.442695, %v4448_v0  ;;  %v4422_v50 = vpop.xlane.xlu0 %4421 }
 0xde6   : > { %11067 = vpow2.f32 %v4465_v5  ;;  %v4447_v56 = vsub.f32 %v15184_v51, %v4422_v50  ;;  %v4428_v45 = vpop.xlane.xlu1 %4427 }
 0xde7   : > { %v4450_v57 = vsub.f32 %v15188_v6, %v4428_v45  ;;  %11069 = vpow2.f32 %v4471_v63 }
 0xde8   : > { %v4469_v33 = vmul.f32 1.442695, %v4447_v56 }
 0xde9   : > { %v4475_v8 = vmul.f32 1.442695, %v4450_v57  ;;  %v4426_v55 = vpop.xlane.xlu0 %4425 }
 0xdea   : > { %11071 = vpow2.f32 %v4469_v33  ;;  %v4449_v34 = vsub.f32 %v15194_v46, %v4426_v55  ;;  %v4432_v7 = vpop.xlane.xlu1 %4431  ;;  %v18384_v33 = vld [vmem:[#allocation176_spill] sm:$0xff] }
 0xdeb   : > { %11073 = vpow2.f32 %v4475_v8  ;;  %v4452_v0 = vsub.f32 %v15198_v42, %v4432_v7 }
 0xdec   : > { %v11064_v24 = vpop.eup %11063  ;;  %v4473_v10 = vmul.f32 1.442695, %v4449_v34 }
 0xded   : > { %v4430_v23 = vpop.xlane.xlu0 %4429  ;;  %v15259_v5 = vmul.f32 %v14900_v3, %v11064_v24  ;;  %v11066_v51 = vpop.eup %11065  ;;  %v4479_v6 = vmul.f32 1.442695, %v4452_v0  ;;  %v18386_v24 = vld [vmem:[#allocation193_spill] sm:$0xff] }
 0xdee   : > { %11075 = vpow2.f32 %v4473_v10  ;;  %v4451_v45 = vsub.f32 %v15204_v19, %v4430_v23  ;;  %v4436_v56 = vpop.xlane.xlu1 %4435  ;;  %v15267_v50 = vmul.f32 %v14914_v44, %v11066_v51  ;;  %v18383_v19 = vld [vmem:[#allocation139_spill] sm:$0xff]  ;;  %v18387_v23 = vld [vmem:[#allocation212_spill] sm:$0xff] }
 0xdef   : > { %4509 = vadd.xlane.f32.xlu0 %v15259_v5  ;;  %11077 = vpow2.f32 %v4479_v6  ;;  %v4454_v60 = vsub.f32 %v15208_v62, %v4436_v56  ;;  %v18385_v62 = vld [vmem:[#allocation150_spill] sm:$0xff]  ;;  %v18388_v6 = vld [vmem:[#allocation151_spill] sm:$0xff] }
 0xdf0   : > { %v11068_v63 = vpop.eup %11067  ;;  %v4477_v40 = vmul.f32 1.442695, %v4451_v45 }
 0xdf1   : > { %v15264_v46 = vmul.f32 %v14908_v29, %v11068_v63  ;;  %v11070_v42 = vpop.eup %11069  ;;  %v4483_v44 = vmul.f32 1.442695, %v4454_v60  ;;  %v4434_v56 = vpop.xlane.xlu0 %4433 }
 0xdf2   : > { %v15273_v18 = vmul.f32 %v18382_v54, %v11070_v42  ;;  %11079 = vpow2.f32 %v4477_v40  ;;  %v4453_v42 = vsub.f32 %v15214_v1, %v4434_v56 }
 0xdf3   : > { %4513 = vadd.xlane.f32.xlu1 %v15264_v46  ;;  %4515 = vadd.xlane.f32.xlu0 %v15267_v50  ;;  %11081 = vpow2.f32 %v4483_v44 }
 0xdf4   : > { %v11072_v3 = vpop.eup %11071  ;;  %v4481_v40 = vmul.f32 1.442695, %v4453_v42  ;;  %v18396_v42 = vld [vmem:[#allocation43_spill] sm:$0xff] }
 0xdf5   : > { %v15276_v57 = vmul.f32 %v18383_v19, %v11072_v3  ;;  %v11074_v29 = vpop.eup %11073  ;;  %v4440_v3 = vpop.xlane.xlu1 %4439 }
 0xdf6   : > { %v15281_v8 = vmul.f32 %v18384_v33, %v11074_v29  ;;  %v4456_v60 = vsub.f32 %v15218_v14, %v4440_v3  ;;  %v4438_v54 = vpop.xlane.xlu0 %4437  ;;  %11083 = vpow2.f32 %v4481_v40  ;;  %v18389_v33 = vld [vmem:[#allocation27_spill] sm:$0xff]  ;;  %v18398_v40 = vld [vmem:[#allocation28_spill] sm:$0xff] }
 0xdf7   : > { %4519 = vadd.xlane.f32.xlu1 %v15273_v18  ;;  %4517 = vadd.xlane.f32.xlu0 %v15276_v57  ;;  %v4455_v29 = vsub.f32 %v15224_v53, %v4438_v54  ;;  %v18390_v14 = vld [vmem:[#allocation31_spill] sm:$0xff] }
 0xdf8   : > { %v11076_v55 = vpop.eup %11075  ;;  %v4487_v19 = vmul.f32 1.442695, %v4456_v60  ;;  %v18393_v53 = vld [vmem:[#allocation155_spill] sm:$0xff] }
 0xdf9   : > { %v15285_v34 = vmul.f32 %v18385_v62, %v11076_v55  ;;  %v11078_v7 = vpop.eup %11077  ;;  %v4485_v44 = vmul.f32 1.442695, %v4455_v29  ;;  %v18391_v55 = vld [vmem:[#allocation154_spill] sm:$0xff]  ;;  %v18397_v3 = vld [vmem:[#allocation51_spill] sm:$0xff] }
 0xdfa   : > { %v15289_v10 = vmul.f32 %v18386_v24, %v11078_v7  ;;  %11085 = vpow2.f32 %v4487_v19  ;;  %v18392_v24 = vld [vmem:[#allocation35_spill] sm:$0xff]  ;;  %v18399_v19 = vld [vmem:[#allocation36_spill] sm:$0xff] }
 0xdfb   : > { %4523 = vadd.xlane.f32.xlu1 %v15281_v8  ;;  %11087 = vpow2.f32 %v4485_v44 }
 0xdfc   : > { %v11080_v0 = vpop.eup %11079 }
 0xdfd   : > { %v15293_v51 = vmul.f32 %v18387_v23, %v11080_v0  ;;  %v11082_v63 = vpop.eup %11081 }
 0xdfe   : > { %v15297_v45 = vmul.f32 %v18388_v6, %v11082_v63  ;;  %v18394_v63 = vld [vmem:[#allocation39_spill] sm:$0xff]  ;;  %v18395_v6 = vld [vmem:[#allocation142_spill] sm:$0xff] }
 0xdff   : > { %4521 = vadd.xlane.f32.xlu1 %v15285_v34 }
 0xe00   : > { %v11084_v1 = vpop.eup %11083 }
 0xe01   : > { %v15314_v62 = vmul.f32 %v18391_v55, %v11084_v1 }
 0xe03   : > { %4527 = vadd.xlane.f32.xlu1 %v15289_v10 }
 0xe04   : > { %v11086_v7 = vpop.eup %11085 }
 0xe05   : > { %v15320_v0 = vmul.f32 %v18393_v53, %v11086_v7  ;;  %v11088_v23 = vpop.eup %11087  ;;  %v18400_v53 = vld [vmem:[#allocation26_spill] sm:$0xff] }
 0xe06   : > { %v15326_v56 = vmul.f32 %v18395_v6, %v11088_v23 }
 0xe07   : > { %4525 = vadd.xlane.f32.xlu1 %v15293_v51 }
 0xe0b   : > { %4531 = vadd.xlane.f32.xlu1 %v15297_v45 }
 0xe0d   : > { %10736 = vrot.lane.b32.xlu0 %v18206_v9, %s11710_s8 }
 0xe1c   : > { %10731 = vrot.lane.b32.xlu1 %v18320_v26, %s11710_s8 }
 0xe20   : > { %4730 = vrot.lane.b32.xlu1 %v18321_v20, %s11710_s8 }
 0xe24   : > { %4734 = vrot.lane.b32.xlu1 %v18389_v33, %s11710_s8 }
 0xe28   : > { %4738 = vrot.lane.b32.xlu1 %v18390_v14, %s11710_s8 }
 0xe2c   : > { %4742 = vrot.lane.b32.xlu1 %v18392_v24, %s11710_s8  ;;  %4529 = vadd.xlane.f32.xlu0 %v15314_v62 }
 0xe30   : > { %4746 = vrot.lane.b32.xlu1 %v18394_v63, %s11710_s8  ;;  %4535 = vadd.xlane.f32.xlu0 %v15320_v0 }
 0xe34   : > { %4750 = vrot.lane.b32.xlu1 %v18396_v42, %s11710_s8  ;;  %4533 = vadd.xlane.f32.xlu0 %v15326_v56 }
 0xe38   : > { %4754 = vrot.lane.b32.xlu1 %v18330_v11, %s11710_s8 }
 0xe3c   : > { %4758 = vrot.lane.b32.xlu1 %v18397_v3, %s11710_s8 }
 0xe40   : > { %5221 = vrot.lane.b32.xlu1 %v18398_v40, %s11710_s8 }
 0xe43   : > { %v4508_v60 = vpop.xlane.xlu0 %4507 }
 0xe44   : > { %v4538_v54 = vmax.f32 %v4508_v60, 1e-30  ;;  %5225 = vrot.lane.b32.xlu1 %v18399_v19, %s11710_s8  ;;  %v4506_v29 = vpop.xlane.xlu1 %4505  ;;  %v18401_v60 = vld [vmem:[#allocation30_spill] sm:$0xff] }
 0xe45   : > { %v4537_v44 = vmax.f32 %v4506_v29, 1e-30  ;;  %v18403_v29 = vld [vmem:[#allocation38_spill] sm:$0xff] }
 0xe46   : > { %11089 = vrcp.f32 %v4538_v54  ;;  %v18402_v54 = vld [vmem:[#allocation34_spill] sm:$0xff] }
 0xe47   : > { %11091 = vrcp.f32 %v4537_v44  ;;  %v18404_v44 = vld [vmem:[#allocation42_spill] sm:$0xff] }
 0xe48   : > { %5227 = vrot.lane.b32.xlu1 %v18333_v47, %s11710_s8 }
 0xe4a   : > { %10741 = vrot.lane.b32.xlu0 %v18223_v32, %s11710_s8 }
 0xe4c   : > { %5231 = vrot.lane.b32.xlu1 %v18334_v43, %s11710_s8 }
 0xe4e   : > { %4732 = vrot.lane.b32.xlu0 %v18225_v13, %s11710_s8 }
 0xe50   : > { %v11090_v1 = vpop.eup %11089 }
 0xe51   : > { %v11092_v55 = vpop.eup %11091  ;;  %v4586_v7 = vmul.f32 %v11090_v1, %v15233_v31  ;;  %v18405_v31 = vld [vmem:[#allocation46_spill] sm:$0xff] }
 0xe52   : > { %4736 = vrot.lane.b32.xlu0 %v18400_v53, %s11710_s8  ;;  %v4585_v23 = vmul.f32 %v11092_v55, %v15236_v41  ;;  %v18406_v1 = vld [vmem:[#allocation50_spill] sm:$0xff]  ;;  %v18407_v41 = vld [vmem:[#allocation23_spill] sm:$0xff]  ;;  %v18408_v55 = vld [vmem:[#allocation32_spill] sm:$0xff] }
 0xe54   : > { %v4601_v6 = vpack.c.bf16 %v4586_v7, %v4585_v23  ;;  %v4512_v7 = vpop.xlane.xlu1 %4511  ;;  %v18409_v23 = vld [vmem:[#allocation44_spill] sm:$0xff] }
 0xe56   : > { %4740 = vrot.lane.b32.xlu0 %v18401_v60, %s11710_s8  ;;  %9586 = vmatprep.mubr.bf16.mxu1 %v4601_v6  ;;  %v15369_v6 = vpop.permute.xlu0 %10726 }
 0xe5a   : > { %4744 = vrot.lane.b32.xlu0 %v18402_v54, %s11710_s8 }
 0xe5e   : > { %4748 = vrot.lane.b32.xlu0 %v18403_v29, %s11710_s8  ;;  %v4540_v29 = vmax.f32 %v4512_v7, 1e-30 }
 0xe60   : > { %11093 = vrcp.f32 %v4540_v29  ;;  %v10714_v29 = vunpack.i.h.bf16 %v15248_v27 }
 0xe62   : > { %4752 = vrot.lane.b32.xlu0 %v18404_v44, %s11710_s8  ;;  %v18410_v44 = vld [vmem:[#allocation52_spill] sm:$0xff] }
 0xe66   : > { %4756 = vrot.lane.b32.xlu0 %v18405_v31, %s11710_s8  ;;  %v15373_v31 = vpop.permute.xlu1 %10721 }
 0xe6a   : > { %4760 = vrot.lane.b32.xlu0 %v18406_v1, %s11710_s8  ;;  %v11094_v7 = vpop.eup %11093 }
 0xe6e   : > { %5219 = vrot.lane.b32.xlu0 %v18407_v41, %s11710_s8 }
 0xe72   : > { %5223 = vrot.lane.b32.xlu0 %v18408_v55, %s11710_s8 }
 0xe76   : > { %5229 = vrot.lane.b32.xlu0 %v18409_v23, %s11710_s8 }
 0xe7a   : > { %5233 = vrot.lane.b32.xlu0 %v18410_v44, %s11710_s8 }
 0xe7c   : > { %v4510_v54 = vpop.xlane.xlu0 %4509 }
 0xe7d   : > { %v4539_v1 = vmax.f32 %v4510_v54, 1e-30  ;;  %v10713_v54 = vunpack.i.l.bf16 %v15248_v27 }
 0xe7f   : > { %11095 = vrcp.f32 %v4539_v1  ;;  %v4588_v1 = vmul.f32 %v11094_v7, %v15241_v16  ;;  %v10256_v40 = vpack.c.bf16 %v10714_v29, %v10713_v54  ;;  %v10719_v7 = vunpack.i.h.bf16 %v15250_v38 }
 0xe80   : > { %v4514_v41 = vpop.xlane.xlu1 %4513  ;;  %v4516_v60 = vpop.xlane.xlu0 %4515 }
 0xe81   : > { %v4541_v53 = vmax.f32 %v4514_v41, 1e-30  ;;  %v4542_v55 = vmax.f32 %v4516_v60, 1e-30 }
 0xe83   : > { %11097 = vrcp.f32 %v4541_v53 }
 0xe84   : > { %11099 = vrcp.f32 %v4542_v55  ;;  %v4520_v13 = vpop.xlane.xlu1 %4519  ;;  %v4518_v23 = vpop.xlane.xlu0 %4517 }
 0xe85   : > { %v4544_v43 = vmax.f32 %v4520_v13, 1e-30  ;;  %v4543_v32 = vmax.f32 %v4518_v23, 1e-30 }
 0xe87   : > { %11101 = vrcp.f32 %v4544_v43 }
 0xe88   : > { %11103 = vrcp.f32 %v4543_v32  ;;  %v4524_v44 = vpop.xlane.xlu1 %4523 }
 0xe89   : > { %v11096_v47 = vpop.eup %11095  ;;  %v4546_v19 = vmax.f32 %v4524_v44, 1e-30 }
 0xe8a   : > { %v4587_v60 = vmul.f32 %v11096_v47, %v15259_v5 }
 0xe8b   : > { %11105 = vrcp.f32 %v4546_v19 }
 0xe8c   : > { %v4522_v53 = vpop.xlane.xlu1 %4521  ;;  %v4602_v41 = vpack.c.bf16 %v4588_v1, %v4587_v60 }
 0xe8d   : > { %v11098_v55 = vpop.eup %11097  ;;  %v4545_v13 = vmax.f32 %v4522_v53, 1e-30 }
 0xe8e   : > { %v11100_v23 = vpop.eup %11099  ;;  %9587 = vmatmul.mubr.bf16.vlgmr.msra.gmra.mrb[64].mxu1 %v4602_v41  ;;  %v4589_v32 = vmul.f32 %v11098_v55, %v15264_v46  ;;  %v10718_v46 = vunpack.i.l.bf16 %v15250_v38  ;;  %v10723_v41 = vunpack.i.l.bf16 %v15373_v31 }
 0xe8f   : > { %11107 = vrcp.f32 %v4545_v13  ;;  %10255 = vmatpush3.bf16.xpose.msk.msra.mxu1 %vm18376_vm5, %v15227_v36  ;;  %v4590_v43 = vmul.f32 %v11100_v23, %v15267_v50 }
 0xe90   : > { %10258 = vmatprep.subr.msk.bf16.mxu1 %vm18376_vm5, %v10256_v40  ;;  %v4528_v47 = vpop.xlane.xlu1 %4527  ;;  %v10262_v60 = vpack.c.bf16 %v10719_v7, %v10718_v46 }
 0xe91   : > { %v11102_v16 = vpop.eup %11101  ;;  %v4548_v27 = vmax.f32 %v4528_v47, 1e-30  ;;  %v4603_v5 = vpack.c.bf16 %v4590_v43, %v4589_v32  ;;  %v10729_v43 = vunpack.i.h.bf16 %v15369_v6 }
 0xe92   : > { %v11104_v19 = vpop.eup %11103  ;;  %v4592_v44 = vmul.f32 %v11102_v16, %v15273_v18 }
 0xe93   : > { %9590 = vmatprep.mubr.bf16.mxu1 %v4603_v5  ;;  %v4591_v29 = vmul.f32 %v11104_v19, %v15276_v57  ;;  %11109 = vrcp.f32 %v4548_v27  ;;  %v10724_v57 = vunpack.i.h.bf16 %v15373_v31  ;;  %v10728_v31 = vunpack.i.l.bf16 %v15369_v6 }
 0xe94   : > { %v4526_v36 = vpop.xlane.xlu1 %4525 }
 0xe95   : > { %v4547_v50 = vmax.f32 %v4526_v36, 1e-30  ;;  %v4604_v54 = vpack.c.bf16 %v4592_v44, %v4591_v29  ;;  %v11106_v1 = vpop.eup %11105  ;;  %v10268_v23 = vpack.c.bf16 %v10724_v57, %v10723_v41  ;;  %v10274_v16 = vpack.c.bf16 %v10729_v43, %v10728_v31 }
 0xe96   : > { %v4594_v18 = vmul.f32 %v11106_v1, %v15281_v8 }
 0xe97   : > { %11111 = vrcp.f32 %v4547_v50  ;;  %9591 = vmatmul.mubr.bf16.gmra.mrb[68].mxu1 %v4604_v54 }
 0xe98   : > { %10261 = vmatpush3.bf16.xpose.msk.msra.mxu1 %vm18376_vm5, %v10256_v40  ;;  %v4532_v32 = vpop.xlane.xlu1 %4531 }
 0xe99   : > { %v11108_v53 = vpop.eup %11107  ;;  %10264 = vmatprep.subr.msk.bf16.mxu1 %vm18376_vm5, %v10262_v60  ;;  %v4550_v7 = vmax.f32 %v4532_v32, 1e-30 }
 0xe9a   : > { %v4593_v38 = vmul.f32 %v11108_v53, %v15285_v34 }
 0xe9b   : > { %11113 = vrcp.f32 %v4550_v7 }
 0xe9c   : > { %v4605_v55 = vpack.c.bf16 %v4594_v18, %v4593_v38  ;;  %v10732_v27 = vpop.permute.xlu1 %10731 }
 0xe9d   : > { %v11110_v13 = vpop.eup %11109  ;;  %v10734_v5 = vunpack.i.h.bf16 %v10732_v27  ;;  %v10733_v19 = vunpack.i.l.bf16 %v10732_v27 }
 0xe9e   : > { %9594 = vmatprep.mubr.bf16.mxu1 %v4605_v55  ;;  %v4596_v8 = vmul.f32 %v11110_v13, %v15289_v10 }
 0xe9f   : > { %v10280_v44 = vpack.c.bf16 %v10734_v5, %v10733_v19 }
 0xea0   : > { %10267 = vmatpush3.bf16.xpose.msk.msra.mxu1 %vm18376_vm5, %v10262_v60  ;;  %v4731_v50 = vpop.permute.xlu1 %4730 }
 0xea1   : > { %v11112_v40 = vpop.eup %11111  ;;  %10270 = vmatprep.subr.msk.bf16.mxu1 %vm18376_vm5, %v10268_v23 }
 0xea2   : > { %v4595_v34 = vmul.f32 %v11112_v40, %v15293_v51  ;;  %v10737_v51 = vpop.permute.xlu0 %10736 }
 0xea3   : > { %v10739_v10 = vunpack.i.h.bf16 %v10737_v51  ;;  %v10738_v6 = vunpack.i.l.bf16 %v10737_v51 }
 0xea4   : > { %v4606_v47 = vpack.c.bf16 %v4596_v8, %v4595_v34  ;;  %v4735_v60 = vpop.permute.xlu1 %4734 }
 0xea5   : > { %v10286_v46 = vpack.c.bf16 %v10739_v10, %v10738_v6  ;;  %v11114_v18 = vpop.eup %11113 }
 0xea6   : > { %9595 = vmatmul.mubr.bf16.gmra.mrb[72].mxu1 %v4606_v47  ;;  %v4598_v32 = vmul.f32 %v11114_v18, %v15297_v45 }
 0xea8   : > { %10273 = vmatpush3.bf16.xpose.msk.msra.mxu1 %vm18376_vm5, %v10268_v23  ;;  %v4739_v23 = vpop.permute.xlu1 %4738 }
 0xea9   : > { %10276 = vmatprep.subr.msk.bf16.mxu1 %vm18376_vm5, %v10274_v16 }
 0xeac   : > { %v4743_v47 = vpop.permute.xlu1 %4742 }
 0xeb0   : > { %10279 = vmatpush3.bf16.xpose.msk.msra.mxu1 %vm18376_vm5, %v10274_v16 }
 0xeb1   : > { %10282 = vmatprep.subr.msk.bf16.mxu1 %vm18376_vm5, %v10280_v44 }
 0xeb8   : > { %10285 = vmatpush3.bf16.xpose.msk.msra.mxu1 %vm18376_vm5, %v10280_v44  ;;  %v4747_v44 = vpop.permute.xlu1 %4746 }
 0xeb9   : > { %10288 = vmatprep.subr.msk.bf16.mxu1 %vm18376_vm5, %v10286_v46  ;;  %v4530_v29 = vpop.xlane.xlu0 %4529 }
 0xeba   : > { %v4549_v36 = vmax.f32 %v4530_v29, 1e-30 }
 0xebc   : > { %11115 = vrcp.f32 %v4549_v36  ;;  %v4751_v10 = vpop.permute.xlu1 %4750 }
 0xebd   : > { %v4536_v54 = vpop.xlane.xlu0 %4535 }
 0xebe   : > { %v4552_v1 = vmax.f32 %v4536_v54, 1e-30 }
 0xec0   : > { %10291 = vmatpush3.bf16.xpose.msk.msra.mxu1 %vm18376_vm5, %v10286_v46  ;;  %11117 = vrcp.f32 %v4552_v1  ;;  %v4755_v46 = vpop.permute.xlu1 %4754 }
 0xec1   : > { %v4534_v53 = vpop.xlane.xlu0 %4533 }
 0xec2   : > { %v4551_v38 = vmax.f32 %v4534_v53, 1e-30 }
 0xec4   : > { %11119 = vrcp.f32 %v4551_v38 }
 0xec5   : > { %v10742_v57 = vpop.permute.xlu0 %10741 }
 0xec6   : > { %v11116_v41 = vpop.eup %11115  ;;  %v10744_v55 = vunpack.i.h.bf16 %v10742_v57  ;;  %v10743_v13 = vunpack.i.l.bf16 %v10742_v57 }
 0xec7   : > { %v4597_v40 = vmul.f32 %v11116_v41, %v15314_v62 }
 0xec8   : > { %v10292_v34 = vpack.c.bf16 %v10744_v55, %v10743_v13 }
 0xec9   : > { %v4733_v8 = vpop.permute.xlu0 %4732  ;;  %v4607_v43 = vpack.c.bf16 %v4598_v32, %v4597_v40 }
 0xeca   : > { %10294 = vmatprep.subr.msk.bf16.mxu1 %vm18376_vm5, %v10292_v34  ;;  %v11118_v31 = vpop.eup %11117 }
 0xecb   : > { %9598 = vmatprep.mubr.bf16.mxu1 %v4607_v43  ;;  %10297 = vmatpush3.bf16.xpose.msk.msra.mxu1 %vm18376_vm5, %v10292_v34  ;;  %v4600_v62 = vmul.f32 %v11118_v31, %v15320_v0  ;;  %vm18413_vm5 = vmmov %vm18411_vm0 }
 0xecd   : > { %v4737_v16 = vpop.permute.xlu0 %4736 }
 0xece   : > { %v11120_v27 = vpop.eup %11119 }
 0xecf   : > { %v4599_v5 = vmul.f32 %v11120_v27, %v15326_v56  ;;  %v4759_v56 = vpop.permute.xlu1 %4758 }
 0xed1   : > { %v4741_v19 = vpop.permute.xlu0 %4740  ;;  %v4608_v45 = vpack.c.bf16 %v4600_v62, %v4599_v5 }
 0xed3   : > { %9599 = vmatmul.mubr.bf16.gmra.mrb[76].mxu1 %v4608_v45 }
 0xed4   : > { %9634 = vmatprep.mubr.msk.f32.mxu1 %vm18411_vm0, %v4731_v50  ;;  %v5222_v50 = vpop.permute.xlu1 %5221 }
 0xed5   : > { %v4745_v51 = vpop.permute.xlu0 %4744 }
 0xed8   : > { %v5226_v1 = vpop.permute.xlu1 %5225 }
 0xed9   : > { %v4749_v6 = vpop.permute.xlu0 %4748 }
 0xedb   : > { %9635 = vmatmul.mubr.msk.f32.vlgmr.msra.gmra.mrb[80].mxu1 %vm18412_vm2, %v4733_v8  ;;  %vm18419_vm2 = vmmov %vm18411_vm0 }
 0xedc   : > { %9637 = vmatprep.mubr.msk.f32.mxu1 %vm18413_vm5, %v4735_v60  ;;  %v5228_v60 = vpop.permute.xlu1 %5227  ;;  %vm18425_vm5 = vmmov %vm18411_vm0 }
 0xedd   : > { %v4753_v7 = vpop.permute.xlu0 %4752 }
 0xedf   : > { %9638 = vmatmul.mubr.msk.f32.gmra.mrb[82].mxu1 %vm18414_vm11, %v4737_v16  ;;  %vm18420_vm11 = vmmov %vm18411_vm0 }
 0xee0   : > { %9640 = vmatprep.mubr.msk.f32.mxu1 %vm18415_vm14, %v4739_v23  ;;  %vm18421_vm14 = vmmov %vm18411_vm0  ;;  %v5232_v38 = vpop.permute.xlu1 %5231 }
 0xee1   : > { %v4757_v0 = vpop.permute.xlu0 %4756 }
 0xee3   : > { %9641 = vmatmul.mubr.msk.f32.gmra.mrb[84].mxu1 %vm18416_vm4, %v4741_v19  ;;  %vm18423_vm4 = vmmov %vm18411_vm0 }
 0xee4   : > { %9643 = vmatprep.mubr.msk.f32.mxu1 %vm18417_vm6, %v4743_v47  ;;  %vm18422_vm6 = vmmov %vm18411_vm0 }
 0xee5   : > { %v4761_v29 = vpop.permute.xlu0 %4760 }
 0xee7   : > { %9644 = vmatmul.mubr.msk.f32.gmra.mrb[86].mxu1 %vm18411_vm0, %v4745_v51 }
 0xee8   : > { %9646 = vmatprep.mubr.msk.f32.mxu1 %vm18418_vm1, %v4747_v44  ;;  %vm18424_vm1 = vmmov %vm18411_vm0  ;;  %vm18442_vm0 = vnez %v18298_v35 }
 0xee9   : > { %v5220_v36 = vpop.permute.xlu0 %5219 }
 0xeea   : > { %9658 = vmatprep.subr.bf16.mxu0 %v5220_v36 }
 0xeeb   : > { %9647 = vmatmul.mubr.msk.f32.gmra.mrb[88].mxu1 %vm18419_vm2, %v4749_v6  ;;  %9659 = vmatpush3.bf16.msra.mxu0 %v5220_v36  ;;  %vm18443_vm2 = vnez %v18300_v59 }
 0xeec   : > { %9649 = vmatprep.mubr.msk.f32.mxu1 %vm18420_vm11, %v4751_v10  ;;  %9660 = vmatprep.subr.bf16.mxu0 %v5222_v50  ;;  %vm18444_vm11 = vnez %v18302_v48 }
 0xeed   : > { %v5224_v54 = vpop.permute.xlu0 %5223 }
 0xeef   : > { %9650 = vmatmul.mubr.msk.f32.gmra.mrb[90].mxu1 %vm18421_vm14, %v4753_v7  ;;  %9661 = vmatpush3.bf16.msra.mxu0 %v5222_v50  ;;  %vm18445_vm14 = vnez %v18304_v37 }
 0xef0   : > { %9652 = vmatprep.mubr.msk.f32.mxu1 %vm18422_vm6, %v4755_v46  ;;  %9662 = vmatprep.subr.bf16.mxu0 %v5224_v54  ;;  %vm18446_vm6 = vnez %v18305_v4 }
 0xef1   : > { %v5230_v53 = vpop.permute.xlu0 %5229 }
 0xef3   : > { %9653 = vmatmul.mubr.msk.f32.gmra.mrb[92].mxu1 %vm18423_vm4, %v4757_v0  ;;  %9663 = vmatpush3.bf16.msra.mxu0 %v5224_v54  ;;  %vm18447_vm4 = vnez %v18306_v39 }
 0xef4   : > { %9655 = vmatprep.mubr.msk.f32.mxu1 %vm18424_vm1, %v4759_v56  ;;  %9664 = vmatprep.subr.bf16.mxu0 %v5226_v1  ;;  %vm18448_vm1 = vnez %v18372_v58 }
 0xef5   : > { %v5234_v18 = vpop.permute.xlu0 %5233 }
 0xef7   : > { %9656 = vmatmul.mubr.msk.f32.gmra.mrb[94].mxu1 %vm18425_vm5, %v4761_v29  ;;  %9665 = vmatpush3.bf16.msra.mxu0 %v5226_v1 }
 0xef8   : > { %9666 = vmatprep.subr.bf16.mxu0 %v5228_v60 }
 0xefb   : > { %9667 = vmatpush3.bf16.msra.mxu0 %v5228_v60 }
 0xefc   : > { %9668 = vmatprep.subr.bf16.mxu0 %v5230_v53 }
 0xeff   : > { %9669 = vmatpush3.bf16.msra.mxu0 %v5230_v53 }
 0xf00   : > { %9670 = vmatprep.subr.bf16.mxu0 %v5232_v38 }
 0xf03   : > { %9671 = vmatpush3.bf16.msra.mxu0 %v5232_v38 }
 0xf04   : > { %9672 = vmatprep.subr.bf16.mxu0 %v5234_v18 }
 0xf07   : > { %9673 = vmatpush3.bf16.msra.mxu0 %v5234_v18 }
 0xf61   : > { %v15444_v57 = vpop.f32.mrb[64].mxu1 }
 0xf62   : > { %18426 = vst [vmem:[#allocation246_spill] sm:$0xff] %v15444_v57  ;;  %v15446_v41 = vpop.f32.mrb[65].mxu1 }
 0xf63   : > { %18427 = vst [vmem:[#allocation166_spill] sm:$0xff] %v15446_v41  ;;  %v15448_v55 = vpop.f32.mrb[66].mxu1 }
 0xf64   : > { %18428 = vst [vmem:[#allocation217_spill] sm:$0xff] %v15448_v55  ;;  %v15450_v13 = vpop.f32.mrb[67].mxu1 }
 0xf65   : > { %18429 = vst [vmem:[#allocation202_spill] sm:$0xff] %v15450_v13 }
 0xf6a   : > { %v15452_v23 = vpop.f32.mrb[68].mxu1 }
 0xf6b   : > { %18430 = vst [vmem:[#allocation218_spill] sm:$0xff] %v15452_v23  ;;  %v15454_v40 = vpop.f32.mrb[69].mxu1 }
 0xf6c   : > { %18431 = vst [vmem:[#allocation247_spill] sm:$0xff] %v15454_v40  ;;  %v15456_v32 = vpop.f32.mrb[70].mxu1 }
 0xf6d   : > { %18432 = vst [vmem:[#allocation58_spill] sm:$0xff] %v15456_v32  ;;  %v15458_v34 = vpop.f32.mrb[71].mxu1 }
 0xf6e   : > { %18433 = vst [vmem:[#allocation167_spill] sm:$0xff] %v15458_v34 }
 0xf79   : > { %v15460_v8 = vpop.f32.mrb[72].mxu1 }
 0xf7a   : > { %18434 = vst [vmem:[#allocation205_spill] sm:$0xff] %v15460_v8  ;;  %v15462_v43 = vpop.f32.mrb[73].mxu1 }
 0xf7b   : > { %18435 = vst [vmem:[#allocation187_spill] sm:$0xff] %v15462_v43  ;;  %v15464_v31 = vpop.f32.mrb[74].mxu1 }
 0xf7c   : > { %18436 = vst [vmem:[#allocation224_spill] sm:$0xff] %v15464_v31  ;;  %v15466_v47 = vpop.f32.mrb[75].mxu1 }
 0xf7d   : > { %18437 = vst [vmem:[#allocation252_spill] sm:$0xff] %v15466_v47 }
 0xfa6   : > { %v15468_v16 = vpop.f32.mrb[76].mxu1 }
 0xfa7   : > { %18438 = vst [vmem:[#allocation87_spill] sm:$0xff] %v15468_v16  ;;  %v15470_v27 = vpop.f32.mrb[77].mxu1 }
 0xfa8   : > { %18439 = vst [vmem:[#allocation170_spill] sm:$0xff] %v15470_v27  ;;  %v15472_v5 = vpop.f32.mrb[78].mxu1 }
 0xfa9   : > { %18440 = vst [vmem:[#allocation276_spill] sm:$0xff] %v15472_v5  ;;  %v15474_v62 = vpop.f32.mrb[79].mxu1 }
 0xfaa   : > { %18441 = vst [vmem:[#allocation223_spill] sm:$0xff] %v15474_v62 }
 0xfae   : > { %v9636_v19 = vpop.f32.mrb[80].mxu1 }
 0xfaf   : > { %v5004_v45 = vsel %vm13765_vm3, %v9636_v19, -9e+15  ;;  %v4924_v44 = vpop.f32.mrb[81].mxu1 }
 0xfb0   : > { %v5003_v51 = vsel %vm13829_vm15, %v4924_v44, -9e+15  ;;  %5021 = vmax.xlane.f32.xlu0 %v5004_v45 }
 0xfb1   : > { %5019 = vmax.xlane.f32.xlu1 %v5003_v51 }
 0xfb2   : > { %v9639_v10 = vpop.f32.mrb[82].mxu1 }
 0xfb3   : > { %v5006_v6 = vsel %vm13859_vm10, %v9639_v10, -9e+15  ;;  %v4934_v7 = vpop.f32.mrb[83].mxu1 }
 0xfb4   : > { %v15490_v19 = vsel %vm13923_vm12, %v4934_v7, -9e+15 }
 0xfb5   : > { %5025 = vmax.xlane.f32.xlu1 %v5006_v6 }
 0xfb6   : > { %v9642_v46 = vpop.f32.mrb[84].mxu1 }
 0xfb7   : > { %v4944_v0 = vpop.f32.mrb[85].mxu1  ;;  %v15494_v44 = vsel %vm13957_vm7, %v9642_v46, -9e+15 }
 0xfb8   : > { %v15500_v10 = vsel %vm13991_vm9, %v4944_v0, -9e+15 }
 0xfba   : > { %v9645_v56 = vpop.f32.mrb[86].mxu1 }
 0xfbb   : > { %v4954_v29 = vpop.f32.mrb[87].mxu1  ;;  %v15504_v5 = vsel %vm18295_vm13, %v9645_v56, -9e+15 }
 0xfbc   : > { %v15510_v7 = vsel %vm18297_vm8, %v4954_v29, -9e+15 }
 0xfbe   : > { %v9648_v36 = vpop.f32.mrb[88].mxu1 }
 0xfbf   : > { %v4964_v50 = vpop.f32.mrb[89].mxu1  ;;  %v15514_v46 = vsel %vm18442_vm0, %v9648_v36, -9e+15 }
 0xfc0   : > { %v15520_v0 = vsel %vm18443_vm2, %v4964_v50, -9e+15 }
 0xfc2   : > { %v9651_v54 = vpop.f32.mrb[90].mxu1 }
 0xfc3   : > { %v4974_v1 = vpop.f32.mrb[91].mxu1  ;;  %v15524_v56 = vsel %vm18444_vm11, %v9651_v54, -9e+15 }
 0xfc4   : > { %v15530_v29 = vsel %vm18445_vm14, %v4974_v1, -9e+15  ;;  %v18449_v1 = vld [vmem:[#allocation141_spill] sm:$0xff] }
 0xfc5   : > { %vm18450_vm5 = vnez %v18449_v1 }
 0xfc6   : > { %10751 = vrot.lane.b32.xlu0 %v18289_v12, %s11711_s22  ;;  %10746 = vrot.lane.b32.xlu1 %v18290_v49, %s11711_s22  ;;  %v9654_v60 = vpop.f32.mrb[92].mxu1 }
 0xfc7   : > { %v4984_v53 = vpop.f32.mrb[93].mxu1  ;;  %v15534_v36 = vsel %vm18446_vm6, %v9654_v60, -9e+15 }
 0xfc8   : > { %v15540_v50 = vsel %vm18447_vm4, %v4984_v53, -9e+15 }
 0xfca   : > { %10756 = vrot.lane.b32.xlu0 %v18198_v21, %s11711_s22  ;;  %v9657_v38 = vpop.f32.mrb[94].mxu1 }
 0xfcb   : > { %v4994_v18 = vpop.f32.mrb[95].mxu1  ;;  %v15544_v54 = vsel %vm18448_vm1, %v9657_v38, -9e+15  ;;  %vm18480_vm1 = vcmask 130048  }
 0xfcc   : > { %v15550_v60 = vsel %vm18450_vm5, %v4994_v18, -9e+15  ;;  %vm18451_vm5 = vnez %v18228_v28  ;;  %vm18481_vm4 = vmmov %vm18480_vm1 }
 0xfcd   : > { %vm18483_vm6 = vmmov %vm18480_vm1 }
 0xfce   : > { %vm18484_vm14 = vmmov %vm18480_vm1 }
 0xfcf   : > { %vm18485_vm11 = vmmov %vm18480_vm1 }
 0xfd0   : > { %vm18486_vm2 = vmmov %vm18480_vm1 }
 0xfd1   : > { %vm18487_vm0 = vmmov %vm18480_vm1 }
 0xfe9   : > { %5023 = vmax.xlane.f32.xlu0 %v15490_v19 }
 0xfea   : > { %5029 = vmax.xlane.f32.xlu1 %v15494_v44 }
 0xfed   : > { %5027 = vmax.xlane.f32.xlu0 %v15500_v10 }
 0xfee   : > { %5033 = vmax.xlane.f32.xlu1 %v15504_v5 }
 0xff1   : > { %5031 = vmax.xlane.f32.xlu0 %v15510_v7 }
 0xff2   : > { %5037 = vmax.xlane.f32.xlu1 %v15514_v46 }
 0xff5   : > { %5035 = vmax.xlane.f32.xlu0 %v15520_v0 }
 0xff6   : > { %5041 = vmax.xlane.f32.xlu1 %v15524_v56 }
 0xff9   : > { %5039 = vmax.xlane.f32.xlu0 %v15530_v29 }
 0xffa   : > { %5045 = vmax.xlane.f32.xlu1 %v15534_v36 }
 0xffd   : > { %5043 = vmax.xlane.f32.xlu0 %v15540_v50 }
 0xffe   : > { %5049 = vmax.xlane.f32.xlu1 %v15544_v54 }
0x1001   : > { %5047 = vmax.xlane.f32.xlu0 %v15550_v60 }
0x103d   : > { %v5022_v16 = vpop.xlane.xlu0 %5021 }
0x103e   : > { %v5052_v62 = vsub.f32 %v5004_v45, %v5022_v16  ;;  %v5020_v27 = vpop.xlane.xlu1 %5019  ;;  %v18453_v45 = vld [vmem:[#allocation37_spill] sm:$0xff] }
0x103f   : > { %v5051_v31 = vsub.f32 %v5003_v51, %v5020_v27  ;;  %v18454_v51 = vld [vmem:[#allocation41_spill] sm:$0xff] }
0x1040   : > { %v5069_v53 = vmul.f32 1.442695, %v5052_v62 }
0x1041   : > { %v5067_v8 = vmul.f32 1.442695, %v5051_v31  ;;  %v15559_v31 = vld [vmem:[%s11959_s13 + $0x8] sm:$0xff] }
0x1042   : > { %11121 = vpow2.f32 %v5069_v53  ;;  %v5026_v38 = vpop.xlane.xlu1 %5025 }
0x1043   : > { %11123 = vpow2.f32 %v5067_v8  ;;  %v5054_v47 = vsub.f32 %v5006_v6, %v5026_v38  ;;  %v15565_v8 = vld [vmem:[%s11959_s13] sm:$0xff]  ;;  %v15583_v6 = vpop.permute.xlu0 %10751 }
0x1045   : > { %v5073_v43 = vmul.f32 1.442695, %v5054_v47 }
0x1046   : > { %v10747_v32 = vpop.permute.xlu1 %10746 }
0x1047   : > { %11125 = vpow2.f32 %v5073_v43  ;;  %v10749_v18 = vunpack.i.h.bf16 %v10747_v32  ;;  %v10748_v23 = vunpack.i.l.bf16 %v10747_v32  ;;  %v15573_v32 = vld [vmem:[%s11959_s13 + $0x18] sm:$0xff]  ;;  %v15585_v53 = vpop.permute.xlu0 %10756 }
0x1048   : > { %18452 = vst [vmem:[#allocation220_spill] sm:$0xff] %v15573_v32 }
0x1049   : > { %v15553_v34 = vpack.c.bf16 %v10749_v18, %v10748_v23 }
0x104b   : > { %10300 = vmatprep.subr.msk.bf16.mxu0 %vm18451_vm5, %v15553_v34 }
0x104c   : > { %v11122_v16 = vpop.eup %11121 }
0x104d   : > { %v11124_v27 = vpop.eup %11123  ;;  %v15562_v62 = vmul.f32 %v15559_v31, %v11122_v16 }
0x104e   : > { %v15568_v47 = vmul.f32 %v15565_v8, %v11124_v27 }
0x104f   : > { %5117 = vadd.xlane.f32.xlu0 %v15562_v62 }
0x1050   : > { %5115 = vadd.xlane.f32.xlu1 %v15568_v47 }
0x1051   : > { %v11126_v23 = vpop.eup %11125 }
0x1052   : > { %v15576_v43 = vmul.f32 %v15573_v32, %v11126_v23 }
0x1054   : > { %5121 = vadd.xlane.f32.xlu1 %v15576_v43 }
0x1065   : > { %10761 = vrot.lane.b32.xlu1 %v18453_v45, %s11711_s22  ;;  %10766 = vrot.lane.b32.xlu0 %v18454_v51, %s11711_s22 }
0x1076   : > { %v5024_v38 = vpop.xlane.xlu0 %5023 }
0x1077   : > { %v5053_v18 = vsub.f32 %v15490_v19, %v5024_v38  ;;  %v5030_v16 = vpop.xlane.xlu1 %5029 }
0x1078   : > { %v5056_v27 = vsub.f32 %v15494_v44, %v5030_v16 }
0x1079   : > { %v5071_v23 = vmul.f32 1.442695, %v5053_v18 }
0x107a   : > { %v5077_v40 = vmul.f32 1.442695, %v5056_v27  ;;  %v5028_v55 = vpop.xlane.xlu0 %5027 }
0x107b   : > { %11127 = vpow2.f32 %v5071_v23  ;;  %v5055_v57 = vsub.f32 %v15500_v10, %v5028_v55  ;;  %v5034_v41 = vpop.xlane.xlu1 %5033  ;;  %v15596_v10 = vld [vmem:[%s11959_s13 + $0x10] sm:$0xff]  ;;  %v15604_v23 = vld [vmem:[%s11959_s13 + $0x20] sm:$0xff] }
0x107c   : > { %v5058_v13 = vsub.f32 %v15504_v5, %v5034_v41  ;;  %11129 = vpow2.f32 %v5077_v40 }
0x107d   : > { %v5075_v51 = vmul.f32 1.442695, %v5055_v57 }
0x107e   : > { %v5081_v45 = vmul.f32 1.442695, %v5058_v13  ;;  %v5032_v32 = vpop.xlane.xlu0 %5031 }
0x107f   : > { %11131 = vpow2.f32 %v5075_v51  ;;  %v5057_v19 = vsub.f32 %v15510_v7, %v5032_v32  ;;  %v5038_v38 = vpop.xlane.xlu1 %5037 }
0x1080   : > { %v5060_v44 = vsub.f32 %v15514_v46, %v5038_v38  ;;  %11133 = vpow2.f32 %v5081_v45 }
0x1081   : > { %v5079_v18 = vmul.f32 1.442695, %v5057_v19  ;;  %v15610_v19 = vld [vmem:[%s11959_s13 + $0x28] sm:$0xff] }
0x1082   : > { %v5085_v16 = vmul.f32 1.442695, %v5060_v44  ;;  %v5036_v27 = vpop.xlane.xlu0 %5035 }
0x1083   : > { %11135 = vpow2.f32 %v5079_v18  ;;  %v5059_v55 = vsub.f32 %v15520_v0, %v5036_v27  ;;  %v5042_v41 = vpop.xlane.xlu1 %5041  ;;  %v15619_v27 = vld [vmem:[%s11959_s13 + $0x38] sm:$0xff] }
0x1084   : > { %11137 = vpow2.f32 %v5085_v16  ;;  %v5062_v13 = vsub.f32 %v15524_v56, %v5042_v41  ;;  %v15625_v41 = vld [vmem:[%s11959_s13 + $0x30] sm:$0xff] }
0x1085   : > { %v11128_v40 = vpop.eup %11127  ;;  %v5083_v57 = vmul.f32 1.442695, %v5059_v55 }
0x1086   : > { %v5040_v5 = vpop.xlane.xlu0 %5039  ;;  %v15599_v7 = vmul.f32 %v15596_v10, %v11128_v40  ;;  %v11130_v46 = vpop.eup %11129  ;;  %v5089_v0 = vmul.f32 1.442695, %v5062_v13 }
0x1087   : > { %11139 = vpow2.f32 %v5083_v57  ;;  %v5061_v45 = vsub.f32 %v15530_v29, %v5040_v5  ;;  %v5046_v51 = vpop.xlane.xlu1 %5045  ;;  %v15613_v38 = vmul.f32 %v15610_v19, %v11130_v46 }
0x1088   : > { %5119 = vadd.xlane.f32.xlu0 %v15599_v7  ;;  %11141 = vpow2.f32 %v5089_v0  ;;  %v5064_v16 = vsub.f32 %v15534_v36, %v5046_v51  ;;  %v15633_v36 = vld [vmem:[%s11959_s13 + $0x48] sm:$0xff]  ;;  %v15647_v51 = vld [vmem:[%s11959_s13 + $0x58] sm:$0xff] }
0x1089   : > { %v11132_v32 = vpop.eup %11131  ;;  %v5087_v29 = vmul.f32 1.442695, %v5061_v45  ;;  %18455 = vst [vmem:[#allocation61_spill] sm:$0xff] %v15633_v36  ;;  %18457 = vst [vmem:[#allocation226_spill] sm:$0xff] %v15647_v51 }
0x108a   : > { %v15607_v56 = vmul.f32 %v15604_v23, %v11132_v32  ;;  %v11134_v44 = vpop.eup %11133  ;;  %v5093_v13 = vmul.f32 1.442695, %v5064_v16  ;;  %v15640_v32 = vld [vmem:[%s11959_s13 + $0x40] sm:$0xff] }
0x108b   : > { %v15622_v55 = vmul.f32 %v15619_v27, %v11134_v44  ;;  %11143 = vpow2.f32 %v5087_v29  ;;  %18456 = vst [vmem:[#allocation188_spill] sm:$0xff] %v15640_v32  ;;  %v15654_v29 = vld [vmem:[%s11959_s13 + $0x50] sm:$0xff] }
0x108c   : > { %5123 = vadd.xlane.f32.xlu1 %v15607_v56  ;;  %5125 = vadd.xlane.f32.xlu0 %v15613_v38  ;;  %11145 = vpow2.f32 %v5093_v13  ;;  %18458 = vst [vmem:[#allocation253_spill] sm:$0xff] %v15654_v29  ;;  %v15661_v13 = vld [vmem:[%s11959_s13 + $0x68] sm:$0xff] }
0x108d   : > { %v11136_v18 = vpop.eup %11135  ;;  %18459 = vst [vmem:[#allocation250_spill] sm:$0xff] %v15661_v13 }
0x108e   : > { %v15628_v40 = vmul.f32 %v15625_v41, %v11136_v18  ;;  %v11138_v57 = vpop.eup %11137 }
0x108f   : > { %v15636_v5 = vmul.f32 %v15633_v36, %v11138_v57 }
0x1090   : > { %5129 = vadd.xlane.f32.xlu1 %v15622_v55  ;;  %5127 = vadd.xlane.f32.xlu0 %v15628_v40 }
0x1091   : > { %v11140_v46 = vpop.eup %11139 }
0x1092   : > { %v15643_v0 = vmul.f32 %v15640_v32, %v11140_v46  ;;  %v11142_v45 = vpop.eup %11141  ;;  %v5050_v32 = vpop.xlane.xlu1 %5049 }
0x1093   : > { %v15650_v44 = vmul.f32 %v15647_v51, %v11142_v45  ;;  %v5044_v45 = vpop.xlane.xlu0 %5043 }
0x1094   : > { %5133 = vadd.xlane.f32.xlu1 %v15636_v5  ;;  %v5063_v51 = vsub.f32 %v15540_v50, %v5044_v45  ;;  %v15699_v45 = vld [vmem:[%s11959_s13 + $0x70] sm:$0xff] }
0x1095   : > { %v11144_v18 = vpop.eup %11143  ;;  %18462 = vst [vmem:[#allocation191_spill] sm:$0xff] %v15699_v45 }
0x1096   : > { %v15657_v16 = vmul.f32 %v15654_v29, %v11144_v18  ;;  %v11146_v57 = vpop.eup %11145  ;;  %v5091_v18 = vmul.f32 1.442695, %v5063_v51  ;;  %v5066_v29 = vsub.f32 %v15544_v54, %v5050_v32  ;;  %v15681_v32 = vld [vmem:[%s11959_s13 + $0x60] sm:$0xff] }
0x1097   : > { %v15664_v46 = vmul.f32 %v15661_v13, %v11146_v57  ;;  %v5048_v36 = vpop.xlane.xlu0 %5047  ;;  %18460 = vst [vmem:[#allocation59_spill] sm:$0xff] %v15681_v32 }
0x1098   : > { %5131 = vadd.xlane.f32.xlu1 %v15643_v0  ;;  %11147 = vpow2.f32 %v5091_v18  ;;  %v5097_v57 = vmul.f32 1.442695, %v5066_v29  ;;  %v5065_v13 = vsub.f32 %v15550_v60, %v5048_v36  ;;  %v15690_v36 = vld [vmem:[%s11959_s13 + $0x78] sm:$0xff] }
0x1099   : > { %18461 = vst [vmem:[#allocation208_spill] sm:$0xff] %v15690_v36 }
0x109a   : > { %11149 = vpow2.f32 %v5097_v57  ;;  %v5095_v50 = vmul.f32 1.442695, %v5065_v13  ;;  %v18463_v57 = vld [vmem:[#allocation28_spill] sm:$0xff] }
0x109c   : > { %5137 = vadd.xlane.f32.xlu1 %v15650_v44  ;;  %11151 = vpow2.f32 %v5095_v50 }
0x10a0   : > { %5135 = vadd.xlane.f32.xlu1 %v15657_v16 }
0x10a2   : > { %v11148_v54 = vpop.eup %11147 }
0x10a3   : > { %v15684_v51 = vmul.f32 %v15681_v32, %v11148_v54 }
0x10a4   : > { %5141 = vadd.xlane.f32.xlu1 %v15664_v46  ;;  %v11150_v60 = vpop.eup %11149 }
0x10a5   : > { %v15693_v29 = vmul.f32 %v15690_v36, %v11150_v60  ;;  %v18464_v60 = vld [vmem:[#allocation36_spill] sm:$0xff] }
0x10a6   : > { %10776 = vrot.lane.b32.xlu0 %v18206_v9, %s11711_s22  ;;  %v11152_v13 = vpop.eup %11151 }
0x10a7   : > { %v15702_v18 = vmul.f32 %v15699_v45, %v11152_v13 }
0x10b5   : > { %10771 = vrot.lane.b32.xlu1 %v18320_v26, %s11711_s22 }
0x10b9   : > { %5340 = vrot.lane.b32.xlu1 %v18321_v20, %s11711_s22 }
0x10bd   : > { %5344 = vrot.lane.b32.xlu1 %v18389_v33, %s11711_s22 }
0x10c1   : > { %5348 = vrot.lane.b32.xlu1 %v18390_v14, %s11711_s22 }
0x10c5   : > { %5352 = vrot.lane.b32.xlu1 %v18392_v24, %s11711_s22  ;;  %5139 = vadd.xlane.f32.xlu0 %v15684_v51 }
0x10c9   : > { %5356 = vrot.lane.b32.xlu1 %v18394_v63, %s11711_s22  ;;  %5145 = vadd.xlane.f32.xlu0 %v15693_v29 }
0x10cd   : > { %5360 = vrot.lane.b32.xlu1 %v18396_v42, %s11711_s22  ;;  %5143 = vadd.xlane.f32.xlu0 %v15702_v18  ;;  %v18465_v42 = vld [vmem:[#allocation40_spill] sm:$0xff] }
0x10d1   : > { %5364 = vrot.lane.b32.xlu1 %v18330_v11, %s11711_s22  ;;  %v18466_v11 = vld [vmem:[#allocation53_spill] sm:$0xff] }
0x10d5   : > { %5368 = vrot.lane.b32.xlu1 %v18397_v3, %s11711_s22  ;;  %v18467_v3 = vld [vmem:[#allocation48_spill] sm:$0xff] }
0x10d9   : > { %5831 = vrot.lane.b32.xlu1 %v18463_v57, %s11711_s22  ;;  %v18468_v57 = vld [vmem:[#allocation21_spill] sm:$0xff] }
0x10dc   : > { %v5118_v50 = vpop.xlane.xlu0 %5117 }
0x10dd   : > { %v5148_v54 = vmax.f32 %v5118_v50, 1e-30  ;;  %5835 = vrot.lane.b32.xlu1 %v18464_v60, %s11711_s22  ;;  %v5116_v13 = vpop.xlane.xlu1 %5115 }
0x10de   : > { %v5147_v45 = vmax.f32 %v5116_v13, 1e-30  ;;  %v18469_v13 = vld [vmem:[#allocation26_spill] sm:$0xff] }
0x10df   : > { %11153 = vrcp.f32 %v5148_v54 }
0x10e0   : > { %11155 = vrcp.f32 %v5147_v45 }
0x10e1   : > { %5837 = vrot.lane.b32.xlu1 %v18465_v42, %s11711_s22  ;;  %v18470_v42 = vld [vmem:[#allocation30_spill] sm:$0xff] }
0x10e3   : > { %10781 = vrot.lane.b32.xlu0 %v18466_v11, %s11711_s22  ;;  %v18471_v11 = vld [vmem:[#allocation34_spill] sm:$0xff] }
0x10e5   : > { %5841 = vrot.lane.b32.xlu1 %v18467_v3, %s11711_s22  ;;  %v18472_v3 = vld [vmem:[#allocation38_spill] sm:$0xff] }
0x10e7   : > { %5342 = vrot.lane.b32.xlu0 %v18468_v57, %s11711_s22  ;;  %v18473_v57 = vld [vmem:[#allocation42_spill] sm:$0xff] }
0x10e9   : > { %v11154_v50 = vpop.eup %11153 }
0x10ea   : > { %v11156_v63 = vpop.eup %11155  ;;  %v5196_v60 = vmul.f32 %v11154_v50, %v15562_v62  ;;  %v18474_v62 = vld [vmem:[#allocation46_spill] sm:$0xff] }
0x10eb   : > { %5346 = vrot.lane.b32.xlu0 %v18469_v13, %s11711_s22  ;;  %v5195_v45 = vmul.f32 %v11156_v63, %v15568_v47  ;;  %v18475_v50 = vld [vmem:[#allocation50_spill] sm:$0xff]  ;;  %v18476_v63 = vld [vmem:[#allocation23_spill] sm:$0xff]  ;;  %v18477_v47 = vld [vmem:[#allocation32_spill] sm:$0xff] }
0x10ed   : > { %v5211_v54 = vpack.c.bf16 %v5196_v60, %v5195_v45  ;;  %v5122_v60 = vpop.xlane.xlu1 %5121  ;;  %v18478_v45 = vld [vmem:[#allocation44_spill] sm:$0xff] }
0x10ef   : > { %5350 = vrot.lane.b32.xlu0 %v18470_v42, %s11711_s22  ;;  %9674 = vmatprep.mubr.bf16.mxu0 %v5211_v54  ;;  %v15745_v54 = vpop.permute.xlu0 %10766 }
0x10f3   : > { %5354 = vrot.lane.b32.xlu0 %v18471_v11, %s11711_s22 }
0x10f7   : > { %5358 = vrot.lane.b32.xlu0 %v18472_v3, %s11711_s22  ;;  %v5150_v3 = vmax.f32 %v5122_v60, 1e-30 }
0x10f9   : > { %11157 = vrcp.f32 %v5150_v3  ;;  %v10754_v3 = vunpack.i.h.bf16 %v15583_v6 }
0x10fb   : > { %5362 = vrot.lane.b32.xlu0 %v18473_v57, %s11711_s22  ;;  %v18479_v57 = vld [vmem:[#allocation52_spill] sm:$0xff] }
0x10ff   : > { %5366 = vrot.lane.b32.xlu0 %v18474_v62, %s11711_s22  ;;  %v15749_v62 = vpop.permute.xlu1 %10761 }
0x1103   : > { %5370 = vrot.lane.b32.xlu0 %v18475_v50, %s11711_s22  ;;  %v11158_v60 = vpop.eup %11157 }
0x1107   : > { %5829 = vrot.lane.b32.xlu0 %v18476_v63, %s11711_s22 }
0x110b   : > { %5833 = vrot.lane.b32.xlu0 %v18477_v47, %s11711_s22 }
0x110f   : > { %5839 = vrot.lane.b32.xlu0 %v18478_v45, %s11711_s22 }
0x1113   : > { %5843 = vrot.lane.b32.xlu0 %v18479_v57, %s11711_s22 }
0x1115   : > { %v5120_v11 = vpop.xlane.xlu0 %5119 }
0x1116   : > { %v5149_v50 = vmax.f32 %v5120_v11, 1e-30  ;;  %v10753_v11 = vunpack.i.l.bf16 %v15583_v6 }
0x1118   : > { %11159 = vrcp.f32 %v5149_v50  ;;  %v5198_v50 = vmul.f32 %v11158_v60, %v15576_v43  ;;  %v10304_v20 = vpack.c.bf16 %v10754_v3, %v10753_v11  ;;  %v10759_v60 = vunpack.i.h.bf16 %v15585_v53 }
0x1119   : > { %v5124_v63 = vpop.xlane.xlu1 %5123  ;;  %v5126_v42 = vpop.xlane.xlu0 %5125 }
0x111a   : > { %v5151_v13 = vmax.f32 %v5124_v63, 1e-30  ;;  %v5152_v47 = vmax.f32 %v5126_v42, 1e-30 }
0x111c   : > { %11161 = vrcp.f32 %v5151_v13 }
0x111d   : > { %11163 = vrcp.f32 %v5152_v47  ;;  %v5130_v36 = vpop.xlane.xlu1 %5129  ;;  %v5128_v45 = vpop.xlane.xlu0 %5127 }
0x111e   : > { %v5154_v24 = vmax.f32 %v5130_v36, 1e-30  ;;  %v5153_v32 = vmax.f32 %v5128_v45, 1e-30 }
0x1120   : > { %11165 = vrcp.f32 %v5154_v24 }
0x1121   : > { %11167 = vrcp.f32 %v5153_v32  ;;  %v5134_v57 = vpop.xlane.xlu1 %5133 }
0x1122   : > { %v11160_v14 = vpop.eup %11159  ;;  %v5156_v33 = vmax.f32 %v5134_v57, 1e-30 }
0x1123   : > { %v5197_v42 = vmul.f32 %v11160_v14, %v15599_v7 }
0x1124   : > { %11169 = vrcp.f32 %v5156_v33 }
0x1125   : > { %v5132_v13 = vpop.xlane.xlu1 %5131  ;;  %v5212_v63 = vpack.c.bf16 %v5198_v50, %v5197_v42 }
0x1126   : > { %v11162_v47 = vpop.eup %11161  ;;  %v5155_v36 = vmax.f32 %v5132_v13, 1e-30 }
0x1127   : > { %v11164_v45 = vpop.eup %11163  ;;  %9675 = vmatmul.mubr.bf16.vlgmr.msra.gmra.mrb[80].mxu0 %v5212_v63  ;;  %v5199_v24 = vmul.f32 %v11162_v47, %v15607_v56  ;;  %v10758_v56 = vunpack.i.l.bf16 %v15585_v53  ;;  %v10763_v63 = vunpack.i.l.bf16 %v15749_v62 }
0x1128   : > { %11171 = vrcp.f32 %v5155_v36  ;;  %10303 = vmatpush3.bf16.xpose.msk.msra.mxu0 %vm18451_vm5, %v15553_v34  ;;  %v5200_v6 = vmul.f32 %v11164_v45, %v15613_v38 }
0x1129   : > { %10306 = vmatprep.subr.msk.bf16.mxu0 %vm18451_vm5, %v10304_v20  ;;  %v5138_v14 = vpop.xlane.xlu1 %5137  ;;  %v10310_v42 = vpack.c.bf16 %v10759_v60, %v10758_v56 }
0x112a   : > { %v11166_v43 = vpop.eup %11165  ;;  %v5158_v7 = vmax.f32 %v5138_v14, 1e-30  ;;  %v5213_v33 = vpack.c.bf16 %v5200_v6, %v5199_v24  ;;  %v10769_v6 = vunpack.i.h.bf16 %v15745_v54 }
0x112b   : > { %v11168_v32 = vpop.eup %11167  ;;  %v5202_v57 = vmul.f32 %v11166_v43, %v15622_v55 }
0x112c   : > { %9678 = vmatprep.mubr.bf16.mxu0 %v5213_v33  ;;  %v5201_v3 = vmul.f32 %v11168_v32, %v15628_v40  ;;  %11173 = vrcp.f32 %v5158_v7  ;;  %v10764_v40 = vunpack.i.h.bf16 %v15749_v62  ;;  %v10768_v62 = vunpack.i.l.bf16 %v15745_v54 }
0x112d   : > { %v5136_v34 = vpop.xlane.xlu1 %5135 }
0x112e   : > { %v5157_v38 = vmax.f32 %v5136_v34, 1e-30  ;;  %v5214_v11 = vpack.c.bf16 %v5202_v57, %v5201_v3  ;;  %v11170_v50 = vpop.eup %11169  ;;  %v10316_v45 = vpack.c.bf16 %v10764_v40, %v10763_v63  ;;  %v10322_v43 = vpack.c.bf16 %v10769_v6, %v10768_v62 }
0x112f   : > { %v5204_v55 = vmul.f32 %v11170_v50, %v15636_v5 }
0x1130   : > { %11175 = vrcp.f32 %v5157_v38  ;;  %9679 = vmatmul.mubr.bf16.gmra.mrb[84].mxu0 %v5214_v11 }
0x1131   : > { %10309 = vmatpush3.bf16.xpose.msk.msra.mxu0 %vm18451_vm5, %v10304_v20  ;;  %v5142_v24 = vpop.xlane.xlu1 %5141 }
0x1132   : > { %v11172_v13 = vpop.eup %11171  ;;  %10312 = vmatprep.subr.msk.bf16.mxu0 %vm18451_vm5, %v10310_v42  ;;  %v5160_v60 = vmax.f32 %v5142_v24, 1e-30 }
0x1133   : > { %v5203_v53 = vmul.f32 %v11172_v13, %v15643_v0 }
0x1134   : > { %11177 = vrcp.f32 %v5160_v60 }
0x1135   : > { %v5215_v47 = vpack.c.bf16 %v5204_v55, %v5203_v53  ;;  %v10772_v7 = vpop.permute.xlu1 %10771 }
0x1136   : > { %v11174_v36 = vpop.eup %11173  ;;  %v10774_v33 = vunpack.i.h.bf16 %v10772_v7  ;;  %v10773_v32 = vunpack.i.l.bf16 %v10772_v7 }
0x1137   : > { %9682 = vmatprep.mubr.bf16.mxu0 %v5215_v47  ;;  %v5206_v5 = vmul.f32 %v11174_v36, %v15650_v44 }
0x1138   : > { %v10328_v57 = vpack.c.bf16 %v10774_v33, %v10773_v32 }
0x1139   : > { %10315 = vmatpush3.bf16.xpose.msk.msra.mxu0 %vm18451_vm5, %v10310_v42  ;;  %v5341_v38 = vpop.permute.xlu1 %5340 }
0x113a   : > { %v11176_v20 = vpop.eup %11175  ;;  %10318 = vmatprep.subr.msk.bf16.mxu0 %vm18451_vm5, %v10316_v45 }
0x113b   : > { %v5205_v0 = vmul.f32 %v11176_v20, %v15657_v16  ;;  %v10777_v16 = vpop.permute.xlu0 %10776 }
0x113c   : > { %v10779_v44 = vunpack.i.h.bf16 %v10777_v16  ;;  %v10778_v54 = vunpack.i.l.bf16 %v10777_v16 }
0x113d   : > { %v5216_v14 = vpack.c.bf16 %v5206_v5, %v5205_v0  ;;  %v5345_v42 = vpop.permute.xlu1 %5344 }
0x113e   : > { %v10334_v56 = vpack.c.bf16 %v10779_v44, %v10778_v54  ;;  %v11178_v55 = vpop.eup %11177 }
0x113f   : > { %9683 = vmatmul.mubr.bf16.gmra.mrb[88].mxu0 %v5216_v14  ;;  %v5208_v24 = vmul.f32 %v11178_v55, %v15664_v46 }
0x1141   : > { %10321 = vmatpush3.bf16.xpose.msk.msra.mxu0 %vm18451_vm5, %v10316_v45  ;;  %v5349_v45 = vpop.permute.xlu1 %5348 }
0x1142   : > { %10324 = vmatprep.subr.msk.bf16.mxu0 %vm18451_vm5, %v10322_v43 }
0x1145   : > { %v5353_v14 = vpop.permute.xlu1 %5352 }
0x1149   : > { %10327 = vmatpush3.bf16.xpose.msk.msra.mxu0 %vm18451_vm5, %v10322_v43 }
0x114a   : > { %10330 = vmatprep.subr.msk.bf16.mxu0 %vm18451_vm5, %v10328_v57 }
0x1151   : > { %10333 = vmatpush3.bf16.xpose.msk.msra.mxu0 %vm18451_vm5, %v10328_v57  ;;  %v5357_v57 = vpop.permute.xlu1 %5356 }
0x1152   : > { %10336 = vmatprep.subr.msk.bf16.mxu0 %vm18451_vm5, %v10334_v56  ;;  %v5140_v3 = vpop.xlane.xlu0 %5139 }
0x1153   : > { %v5159_v34 = vmax.f32 %v5140_v3, 1e-30 }
0x1155   : > { %11179 = vrcp.f32 %v5159_v34  ;;  %v5361_v44 = vpop.permute.xlu1 %5360 }
0x1156   : > { %v5146_v11 = vpop.xlane.xlu0 %5145 }
0x1157   : > { %v5162_v50 = vmax.f32 %v5146_v11, 1e-30 }
0x1159   : > { %10339 = vmatpush3.bf16.xpose.msk.msra.mxu0 %vm18451_vm5, %v10334_v56  ;;  %11181 = vrcp.f32 %v5162_v50  ;;  %v5365_v56 = vpop.permute.xlu1 %5364 }
0x115a   : > { %v5144_v13 = vpop.xlane.xlu0 %5143 }
0x115b   : > { %v5161_v53 = vmax.f32 %v5144_v13, 1e-30 }
0x115d   : > { %11183 = vrcp.f32 %v5161_v53 }
0x115e   : > { %v10782_v40 = vpop.permute.xlu0 %10781 }
0x115f   : > { %v11180_v63 = vpop.eup %11179  ;;  %v10784_v47 = vunpack.i.h.bf16 %v10782_v40  ;;  %v10783_v36 = vunpack.i.l.bf16 %v10782_v40 }
0x1160   : > { %v5207_v20 = vmul.f32 %v11180_v63, %v15684_v51 }
0x1161   : > { %v10340_v0 = vpack.c.bf16 %v10784_v47, %v10783_v36 }
0x1162   : > { %v5343_v5 = vpop.permute.xlu0 %5342  ;;  %v5217_v6 = vpack.c.bf16 %v5208_v24, %v5207_v20 }
0x1163   : > { %10342 = vmatprep.subr.msk.bf16.mxu0 %vm18451_vm5, %v10340_v0  ;;  %v11182_v62 = vpop.eup %11181 }
0x1164   : > { %9686 = vmatprep.mubr.bf16.mxu0 %v5217_v6  ;;  %10345 = vmatpush3.bf16.xpose.msk.msra.mxu0 %vm18451_vm5, %v10340_v0  ;;  %v5210_v51 = vmul.f32 %v11182_v62, %v15693_v29  ;;  %vm18482_vm5 = vmmov %vm18480_vm1 }
0x1166   : > { %v5347_v43 = vpop.permute.xlu0 %5346 }
0x1167   : > { %v11184_v7 = vpop.eup %11183 }
0x1168   : > { %v5209_v33 = vmul.f32 %v11184_v7, %v15702_v18  ;;  %v5369_v18 = vpop.permute.xlu1 %5368 }
0x116a   : > { %v5351_v32 = vpop.permute.xlu0 %5350  ;;  %v5218_v46 = vpack.c.bf16 %v5210_v51, %v5209_v33 }
0x116c   : > { %9687 = vmatmul.mubr.bf16.gmra.mrb[92].mxu0 %v5218_v46 }
0x116d   : > { %9722 = vmatprep.mubr.msk.f32.mxu0 %vm18480_vm1, %v5341_v38  ;;  %v5832_v38 = vpop.permute.xlu1 %5831 }
0x116e   : > { %v5355_v16 = vpop.permute.xlu0 %5354 }
0x1171   : > { %v5836_v50 = vpop.permute.xlu1 %5835 }
0x1172   : > { %v5359_v54 = vpop.permute.xlu0 %5358 }
0x1174   : > { %9723 = vmatmul.mubr.msk.f32.vlgmr.msra.gmra.mrb[96].mxu0 %vm18481_vm4, %v5343_v5  ;;  %vm18488_vm4 = vmmov %vm18487_vm0 }
0x1175   : > { %9725 = vmatprep.mubr.msk.f32.mxu0 %vm18482_vm5, %v5345_v42  ;;  %v5838_v42 = vpop.permute.xlu1 %5837  ;;  %vm18493_vm5 = vmmov %vm18487_vm0 }
0x1176   : > { %v5363_v60 = vpop.permute.xlu0 %5362 }
0x1178   : > { %9726 = vmatmul.mubr.msk.f32.gmra.mrb[98].mxu0 %vm18483_vm6, %v5347_v43  ;;  %vm18489_vm6 = vmmov %vm18487_vm0 }
0x1179   : > { %9728 = vmatprep.mubr.msk.f32.mxu0 %vm18484_vm14, %v5349_v45  ;;  %vm18490_vm14 = vmmov %vm18487_vm0  ;;  %v5842_v53 = vpop.permute.xlu1 %5841 }
0x117a   : > { %v5367_v29 = vpop.permute.xlu0 %5366 }
0x117c   : > { %9729 = vmatmul.mubr.msk.f32.gmra.mrb[100].mxu0 %vm18485_vm11, %v5351_v32  ;;  %vm18492_vm11 = vmmov %vm18487_vm0 }
0x117d   : > { %9731 = vmatprep.mubr.msk.f32.mxu0 %vm18486_vm2, %v5353_v14  ;;  %vm18491_vm2 = vmmov %vm18487_vm0 }
0x117e   : > { %v5371_v3 = vpop.permute.xlu0 %5370 }
0x1180   : > { %9732 = vmatmul.mubr.msk.f32.gmra.mrb[102].mxu0 %vm18480_vm1, %v5355_v16  ;;  %vm18510_vm1 = vnez %v18298_v35 }
0x1181   : > { %9734 = vmatprep.mubr.msk.f32.mxu0 %vm18487_vm0, %v5357_v57 }
0x1182   : > { %v5830_v34 = vpop.permute.xlu0 %5829 }
0x1183   : > { %9746 = vmatprep.subr.bf16.mxu1 %v5830_v34 }
0x1184   : > { %9735 = vmatmul.mubr.msk.f32.gmra.mrb[104].mxu0 %vm18488_vm4, %v5359_v54  ;;  %9747 = vmatpush3.bf16.msra.mxu1 %v5830_v34  ;;  %vm18511_vm4 = vnez %v18300_v59 }
0x1185   : > { %9737 = vmatprep.mubr.msk.f32.mxu0 %vm18489_vm6, %v5361_v44  ;;  %9748 = vmatprep.subr.bf16.mxu1 %v5832_v38  ;;  %vm18512_vm6 = vnez %v18302_v48 }
0x1186   : > { %v5834_v11 = vpop.permute.xlu0 %5833 }
0x1188   : > { %9738 = vmatmul.mubr.msk.f32.gmra.mrb[106].mxu0 %vm18490_vm14, %v5363_v60  ;;  %9749 = vmatpush3.bf16.msra.mxu1 %v5832_v38  ;;  %vm18513_vm14 = vnez %v18304_v37 }
0x1189   : > { %9740 = vmatprep.mubr.msk.f32.mxu0 %vm18491_vm2, %v5365_v56  ;;  %9750 = vmatprep.subr.bf16.mxu1 %v5834_v11  ;;  %vm18514_vm2 = vnez %v18305_v4 }
0x118a   : > { %v5840_v13 = vpop.permute.xlu0 %5839 }
0x118c   : > { %9741 = vmatmul.mubr.msk.f32.gmra.mrb[108].mxu0 %vm18492_vm11, %v5367_v29  ;;  %9751 = vmatpush3.bf16.msra.mxu1 %v5834_v11  ;;  %vm18515_vm11 = vnez %v18306_v39 }
0x118d   : > { %9743 = vmatprep.mubr.msk.f32.mxu0 %vm18487_vm0, %v5369_v18  ;;  %9752 = vmatprep.subr.bf16.mxu1 %v5836_v50  ;;  %vm18516_vm0 = vnez %v18372_v58 }
0x118e   : > { %v5844_v55 = vpop.permute.xlu0 %5843 }
0x1190   : > { %9744 = vmatmul.mubr.msk.f32.gmra.mrb[110].mxu0 %vm18493_vm5, %v5371_v3  ;;  %9753 = vmatpush3.bf16.msra.mxu1 %v5836_v50  ;;  %vm18517_vm5 = vnez %v18449_v1 }
0x1191   : > { %9754 = vmatprep.subr.bf16.mxu1 %v5838_v42 }
0x1194   : > { %9755 = vmatpush3.bf16.msra.mxu1 %v5838_v42 }
0x1195   : > { %9756 = vmatprep.subr.bf16.mxu1 %v5840_v13 }
0x1198   : > { %9757 = vmatpush3.bf16.msra.mxu1 %v5840_v13 }
0x1199   : > { %9758 = vmatprep.subr.bf16.mxu1 %v5842_v53 }
0x119c   : > { %9759 = vmatpush3.bf16.msra.mxu1 %v5842_v53 }
0x119d   : > { %9760 = vmatprep.subr.bf16.mxu1 %v5844_v55 }
0x11a0   : > { %9761 = vmatpush3.bf16.msra.mxu1 %v5844_v55 }
0x11fa   : > { %v15820_v40 = vpop.f32.mrb[80].mxu0 }
0x11fb   : > { %18494 = vst [vmem:[#allocation192_spill] sm:$0xff] %v15820_v40  ;;  %v15822_v63 = vpop.f32.mrb[81].mxu0 }
0x11fc   : > { %18495 = vst [vmem:[#allocation222_spill] sm:$0xff] %v15822_v63  ;;  %v15824_v47 = vpop.f32.mrb[82].mxu0  ;;  %v18545_v63 = vld [vmem:[#allocation30_spill] sm:$0xff] }
0x11fd   : > { %18496 = vst [vmem:[#allocation62_spill] sm:$0xff] %v15824_v47  ;;  %v15826_v36 = vpop.f32.mrb[83].mxu0 }
0x11fe   : > { %18497 = vst [vmem:[#allocation229_spill] sm:$0xff] %v15826_v36 }
0x1203   : > { %v15828_v45 = vpop.f32.mrb[84].mxu0 }
0x1204   : > { %18498 = vst [vmem:[#allocation256_spill] sm:$0xff] %v15828_v45  ;;  %v15830_v20 = vpop.f32.mrb[85].mxu0 }
0x1205   : > { %18499 = vst [vmem:[#allocation251_spill] sm:$0xff] %v15830_v20  ;;  %v15832_v24 = vpop.f32.mrb[86].mxu0 }
0x1206   : > { %18500 = vst [vmem:[#allocation60_spill] sm:$0xff] %v15832_v24  ;;  %v15834_v0 = vpop.f32.mrb[87].mxu0 }
0x1207   : > { %18501 = vst [vmem:[#allocation88_spill] sm:$0xff] %v15834_v0 }
0x1212   : > { %v15836_v5 = vpop.f32.mrb[88].mxu0 }
0x1213   : > { %18502 = vst [vmem:[#allocation171_spill] sm:$0xff] %v15836_v5  ;;  %v15838_v6 = vpop.f32.mrb[89].mxu0 }
0x1214   : > { %18503 = vst [vmem:[#allocation277_spill] sm:$0xff] %v15838_v6  ;;  %v15840_v62 = vpop.f32.mrb[90].mxu0 }
0x1215   : > { %18504 = vst [vmem:[#allocation195_spill] sm:$0xff] %v15840_v62  ;;  %v15842_v14 = vpop.f32.mrb[91].mxu0 }
0x1216   : > { %18505 = vst [vmem:[#allocation221_spill] sm:$0xff] %v15842_v14 }
0x123f   : > { %v15844_v43 = vpop.f32.mrb[92].mxu0 }
0x1240   : > { %18506 = vst [vmem:[#allocation257_spill] sm:$0xff] %v15844_v43  ;;  %v15846_v7 = vpop.f32.mrb[93].mxu0 }
0x1241   : > { %18507 = vst [vmem:[#allocation254_spill] sm:$0xff] %v15846_v7  ;;  %v15848_v33 = vpop.f32.mrb[94].mxu0 }
0x1242   : > { %18508 = vst [vmem:[#allocation89_spill] sm:$0xff] %v15848_v33  ;;  %v15850_v51 = vpop.f32.mrb[95].mxu0 }
0x1243   : > { %18509 = vst [vmem:[#allocation230_spill] sm:$0xff] %v15850_v51 }
0x1247   : > { %v9724_v32 = vpop.f32.mrb[96].mxu0 }
0x1248   : > { %v5614_v46 = vsel %vm13765_vm3, %v9724_v32, -9e+15  ;;  %v5534_v57 = vpop.f32.mrb[97].mxu0 }
0x1249   : > { %v5613_v16 = vsel %vm13829_vm15, %v5534_v57, -9e+15  ;;  %5631 = vmax.xlane.f32.xlu0 %v5614_v46 }
0x124a   : > { %5629 = vmax.xlane.f32.xlu1 %v5613_v16 }
0x124b   : > { %v9727_v44 = vpop.f32.mrb[98].mxu0 }
0x124c   : > { %v5616_v54 = vsel %vm13859_vm10, %v9727_v44, -9e+15  ;;  %v5544_v60 = vpop.f32.mrb[99].mxu0 }
0x124d   : > { %v5615_v32 = vsel %vm13923_vm12, %v5544_v60, -9e+15 }
0x124e   : > { %5635 = vmax.xlane.f32.xlu1 %v5616_v54 }
0x124f   : > { %v9730_v56 = vpop.f32.mrb[100].mxu0 }
0x1250   : > { %v5554_v29 = vpop.f32.mrb[101].mxu0  ;;  %v5618_v57 = vsel %vm13957_vm7, %v9730_v56, -9e+15 }
0x1251   : > { %v15870_v44 = vsel %vm13991_vm9, %v5554_v29, -9e+15 }
0x1253   : > { %v9733_v18 = vpop.f32.mrb[102].mxu0 }
0x1254   : > { %v5564_v3 = vpop.f32.mrb[103].mxu0  ;;  %v15874_v33 = vsel %vm18295_vm13, %v9733_v18, -9e+15 }
0x1255   : > { %v15880_v60 = vsel %vm18297_vm8, %v5564_v3, -9e+15 }
0x1257   : > { %v9736_v34 = vpop.f32.mrb[104].mxu0 }
0x1258   : > { %v5574_v38 = vpop.f32.mrb[105].mxu0  ;;  %v15884_v56 = vsel %vm18510_vm1, %v9736_v34, -9e+15 }
0x1259   : > { %v15890_v29 = vsel %vm18511_vm4, %v5574_v38, -9e+15 }
0x125b   : > { %v9739_v11 = vpop.f32.mrb[106].mxu0 }
0x125c   : > { %v5584_v50 = vpop.f32.mrb[107].mxu0  ;;  %v15894_v18 = vsel %vm18512_vm6, %v9739_v11, -9e+15 }
0x125d   : > { %v15900_v3 = vsel %vm18513_vm14, %v5584_v50, -9e+15 }
0x125f   : > { %10791 = vrot.lane.b32.xlu0 %v18289_v12, %s11712_s2  ;;  %10786 = vrot.lane.b32.xlu1 %v18290_v49, %s11712_s2  ;;  %v9742_v42 = vpop.f32.mrb[108].mxu0 }
0x1260   : > { %v5594_v13 = vpop.f32.mrb[109].mxu0  ;;  %v15904_v34 = vsel %vm18514_vm2, %v9742_v42, -9e+15 }
0x1261   : > { %v15910_v38 = vsel %vm18515_vm11, %v5594_v13, -9e+15 }
0x1263   : > { %10796 = vrot.lane.b32.xlu0 %v18198_v21, %s11712_s2  ;;  %v9745_v53 = vpop.f32.mrb[110].mxu0 }
0x1264   : > { %v5604_v55 = vpop.f32.mrb[111].mxu0  ;;  %v15914_v11 = vsel %vm18516_vm0, %v9745_v53, -9e+15  ;;  %vm18555_vm0 = vcmask 130048  }
0x1265   : > { %v15920_v50 = vsel %vm18517_vm5, %v5604_v55, -9e+15  ;;  %vm18518_vm5 = vnez %v18228_v28  ;;  %vm18556_vm11 = vmmov %vm18555_vm0 }
0x1266   : > { %vm18558_vm2 = vmmov %vm18555_vm0 }
0x1267   : > { %vm18559_vm14 = vmmov %vm18555_vm0 }
0x1268   : > { %vm18560_vm6 = vmmov %vm18555_vm0 }
0x1269   : > { %vm18561_vm4 = vmmov %vm18555_vm0 }
0x126a   : > { %vm18562_vm1 = vmmov %vm18555_vm0 }
0x1282   : > { %5633 = vmax.xlane.f32.xlu0 %v5615_v32 }
0x1283   : > { %5639 = vmax.xlane.f32.xlu1 %v5618_v57 }
0x1286   : > { %5637 = vmax.xlane.f32.xlu0 %v15870_v44 }
0x1287   : > { %5643 = vmax.xlane.f32.xlu1 %v15874_v33 }
0x128a   : > { %5641 = vmax.xlane.f32.xlu0 %v15880_v60 }
0x128b   : > { %5647 = vmax.xlane.f32.xlu1 %v15884_v56 }
0x128e   : > { %5645 = vmax.xlane.f32.xlu0 %v15890_v29 }
0x128f   : > { %5651 = vmax.xlane.f32.xlu1 %v15894_v18 }
0x1292   : > { %5649 = vmax.xlane.f32.xlu0 %v15900_v3 }
0x1293   : > { %5655 = vmax.xlane.f32.xlu1 %v15904_v34 }
0x1296   : > { %5653 = vmax.xlane.f32.xlu0 %v15910_v38 }
0x1297   : > { %5659 = vmax.xlane.f32.xlu1 %v15914_v11 }
0x129a   : > { %5657 = vmax.xlane.f32.xlu0 %v15920_v50 }
0x12d6   : > { %v5632_v42 = vpop.xlane.xlu0 %5631 }
0x12d7   : > { %v5662_v43 = vsub.f32 %v5614_v46, %v5632_v42  ;;  %v5630_v51 = vpop.xlane.xlu1 %5629 }
0x12d8   : > { %v5661_v7 = vsub.f32 %v5613_v16, %v5630_v51 }
0x12d9   : > { %v5679_v13 = vmul.f32 1.442695, %v5662_v43 }
0x12da   : > { %v5677_v62 = vmul.f32 1.442695, %v5661_v7 }
0x12db   : > { %11185 = vpow2.f32 %v5679_v13  ;;  %v5636_v5 = vpop.xlane.xlu1 %5635 }
0x12dc   : > { %11187 = vpow2.f32 %v5677_v62  ;;  %v5664_v53 = vsub.f32 %v5616_v54, %v5636_v5  ;;  %v18521_v62 = vld [vmem:[#allocation41_spill] sm:$0xff] }
0x12de   : > { %v5683_v14 = vmul.f32 1.442695, %v5664_v53 }
0x12df   : > { %v10787_v6 = vpop.permute.xlu1 %10786 }
0x12e0   : > { %11189 = vpow2.f32 %v5683_v14  ;;  %v10789_v24 = vunpack.i.h.bf16 %v10787_v6  ;;  %v10788_v45 = vunpack.i.l.bf16 %v10787_v6  ;;  %v18519_v6 = vld [vmem:[#allocation220_spill] sm:$0xff] }
0x12e2   : > { %v15923_v0 = vpack.c.bf16 %v10789_v24, %v10788_v45  ;;  %v18520_v24 = vld [vmem:[#allocation37_spill] sm:$0xff] }
0x12e4   : > { %10348 = vmatprep.subr.msk.bf16.mxu1 %vm18518_vm5, %v15923_v0 }
0x12e5   : > { %v11186_v46 = vpop.eup %11185 }
0x12e6   : > { %v11188_v55 = vpop.eup %11187  ;;  %v15929_v43 = vmul.f32 %v15559_v31, %v11186_v46  ;;  %v15944_v31 = vpop.permute.xlu0 %10791 }
0x12e7   : > { %v15932_v7 = vmul.f32 %v15565_v8, %v11188_v55 }
0x12e8   : > { %5727 = vadd.xlane.f32.xlu0 %v15929_v43 }
0x12e9   : > { %5725 = vadd.xlane.f32.xlu1 %v15932_v7 }
0x12ea   : > { %v11190_v5 = vpop.eup %11189  ;;  %v15946_v8 = vpop.permute.xlu0 %10796 }
0x12eb   : > { %v15937_v45 = vmul.f32 %v18519_v6, %v11190_v5 }
0x12ed   : > { %5731 = vadd.xlane.f32.xlu1 %v15937_v45 }
0x12fe   : > { %10801 = vrot.lane.b32.xlu1 %v18520_v24, %s11712_s2  ;;  %10806 = vrot.lane.b32.xlu0 %v18521_v62, %s11712_s2 }
0x130f   : > { %v5634_v14 = vpop.xlane.xlu0 %5633 }
0x1310   : > { %v5663_v51 = vsub.f32 %v5615_v32, %v5634_v14  ;;  %v5640_v16 = vpop.xlane.xlu1 %5639 }
0x1311   : > { %v5666_v54 = vsub.f32 %v5618_v57, %v5640_v16 }
0x1312   : > { %v5681_v42 = vmul.f32 1.442695, %v5663_v51 }
0x1313   : > { %v5687_v13 = vmul.f32 1.442695, %v5666_v54  ;;  %v5638_v53 = vpop.xlane.xlu0 %5637 }
0x1314   : > { %11191 = vpow2.f32 %v5681_v42  ;;  %v5665_v46 = vsub.f32 %v15870_v44, %v5638_v53  ;;  %v5644_v55 = vpop.xlane.xlu1 %5643 }
0x1315   : > { %v5668_v5 = vsub.f32 %v15874_v33, %v5644_v55  ;;  %11193 = vpow2.f32 %v5687_v13 }
0x1316   : > { %v5685_v6 = vmul.f32 1.442695, %v5665_v46 }
0x1317   : > { %v5691_v20 = vmul.f32 1.442695, %v5668_v5  ;;  %v5642_v47 = vpop.xlane.xlu0 %5641 }
0x1318   : > { %11195 = vpow2.f32 %v5685_v6  ;;  %v5667_v40 = vsub.f32 %v15880_v60, %v5642_v47  ;;  %v5648_v36 = vpop.xlane.xlu1 %5647  ;;  %v18522_v6 = vld [vmem:[#allocation61_spill] sm:$0xff] }
0x1319   : > { %v5670_v32 = vsub.f32 %v15884_v56, %v5648_v36  ;;  %11197 = vpow2.f32 %v5691_v20 }
0x131a   : > { %v5689_v57 = vmul.f32 1.442695, %v5667_v40 }
0x131b   : > { %v5695_v14 = vmul.f32 1.442695, %v5670_v32  ;;  %v5646_v51 = vpop.xlane.xlu0 %5645 }
0x131c   : > { %11199 = vpow2.f32 %v5689_v57  ;;  %v5669_v44 = vsub.f32 %v15890_v29, %v5646_v51  ;;  %v5652_v16 = vpop.xlane.xlu1 %5651 }
0x131d   : > { %11201 = vpow2.f32 %v5695_v14  ;;  %v5672_v42 = vsub.f32 %v15894_v18, %v5652_v16  ;;  %v18525_v16 = vld [vmem:[#allocation253_spill] sm:$0xff] }
0x131e   : > { %v11192_v54 = vpop.eup %11191  ;;  %v5693_v33 = vmul.f32 1.442695, %v5669_v44 }
0x131f   : > { %v5650_v13 = vpop.xlane.xlu0 %5649  ;;  %v15955_v53 = vmul.f32 %v15596_v10, %v11192_v54  ;;  %v11194_v47 = vpop.eup %11193  ;;  %v5699_v40 = vmul.f32 1.442695, %v5672_v42  ;;  %v18526_v42 = vld [vmem:[#allocation250_spill] sm:$0xff] }
0x1320   : > { %11203 = vpow2.f32 %v5693_v33  ;;  %v5671_v20 = vsub.f32 %v15900_v3, %v5650_v13  ;;  %v5656_v60 = vpop.xlane.xlu1 %5655  ;;  %v15963_v29 = vmul.f32 %v15610_v19, %v11194_v47 }
0x1321   : > { %5729 = vadd.xlane.f32.xlu0 %v15955_v53  ;;  %11205 = vpow2.f32 %v5699_v40  ;;  %v5674_v55 = vsub.f32 %v15904_v34, %v5656_v60  ;;  %v18523_v34 = vld [vmem:[#allocation188_spill] sm:$0xff] }
0x1322   : > { %v11196_v36 = vpop.eup %11195  ;;  %v5697_v46 = vmul.f32 1.442695, %v5671_v20 }
0x1323   : > { %v15960_v56 = vmul.f32 %v15604_v23, %v11196_v36  ;;  %v11198_v18 = vpop.eup %11197  ;;  %v5703_v19 = vmul.f32 1.442695, %v5674_v55  ;;  %v5654_v47 = vpop.xlane.xlu0 %5653  ;;  %v18527_v55 = vld [vmem:[#allocation22_spill] sm:$0xff] }
0x1324   : > { %v15969_v5 = vmul.f32 %v15619_v27, %v11198_v18  ;;  %11207 = vpow2.f32 %v5697_v46  ;;  %v5673_v36 = vsub.f32 %v15910_v38, %v5654_v47  ;;  %v5660_v40 = vpop.xlane.xlu1 %5659  ;;  %v18535_v47 = vld [vmem:[#allocation43_spill] sm:$0xff] }
0x1325   : > { %5733 = vadd.xlane.f32.xlu1 %v15960_v56  ;;  %5735 = vadd.xlane.f32.xlu0 %v15963_v29  ;;  %11209 = vpow2.f32 %v5703_v19  ;;  %v5676_v60 = vsub.f32 %v15914_v11, %v5660_v40  ;;  %v18528_v19 = vld [vmem:[#allocation27_spill] sm:$0xff] }
0x1326   : > { %v11200_v10 = vpop.eup %11199  ;;  %v5701_v20 = vmul.f32 1.442695, %v5673_v36  ;;  %v18529_v11 = vld [vmem:[#allocation31_spill] sm:$0xff] }
0x1327   : > { %v15972_v3 = vmul.f32 %v15625_v41, %v11200_v10  ;;  %v11202_v23 = vpop.eup %11201  ;;  %v18524_v41 = vld [vmem:[#allocation226_spill] sm:$0xff]  ;;  %v5658_v18 = vpop.xlane.xlu0 %5657  ;;  %v5707_v10 = vmul.f32 1.442695, %v5676_v60  ;;  %v18536_v36 = vld [vmem:[#allocation47_spill] sm:$0xff] }
0x1328   : > { %v15977_v32 = vmul.f32 %v18522_v6, %v11202_v23  ;;  %11211 = vpow2.f32 %v5701_v20  ;;  %v5675_v46 = vsub.f32 %v15920_v50, %v5658_v18  ;;  %v18530_v6 = vld [vmem:[#allocation59_spill] sm:$0xff]  ;;  %v18532_v50 = vld [vmem:[#allocation208_spill] sm:$0xff] }
0x1329   : > { %5739 = vadd.xlane.f32.xlu1 %v15969_v5  ;;  %5737 = vadd.xlane.f32.xlu0 %v15972_v3  ;;  %11213 = vpow2.f32 %v5707_v10  ;;  %v18537_v40 = vld [vmem:[#allocation51_spill] sm:$0xff]  ;;  %v18538_v20 = vld [vmem:[#allocation28_spill] sm:$0xff] }
0x132a   : > { %v11204_v57 = vpop.eup %11203  ;;  %v5705_v23 = vmul.f32 1.442695, %v5675_v46  ;;  %v18539_v10 = vld [vmem:[#allocation36_spill] sm:$0xff] }
0x132b   : > { %v15981_v27 = vmul.f32 %v18523_v34, %v11204_v57  ;;  %v11206_v14 = vpop.eup %11205 }
0x132c   : > { %v15985_v51 = vmul.f32 %v18524_v41, %v11206_v14  ;;  %11215 = vpow2.f32 %v5705_v23  ;;  %v18531_v14 = vld [vmem:[#allocation35_spill] sm:$0xff] }
0x132d   : > { %5743 = vadd.xlane.f32.xlu1 %v15977_v32 }
0x132e   : > { %v11208_v44 = vpop.eup %11207 }
0x132f   : > { %v15989_v54 = vmul.f32 %v18525_v16, %v11208_v44  ;;  %v11210_v33 = vpop.eup %11209  ;;  %v18533_v16 = vld [vmem:[#allocation39_spill] sm:$0xff] }
0x1330   : > { %v15993_v13 = vmul.f32 %v18526_v42, %v11210_v33  ;;  %v18534_v33 = vld [vmem:[#allocation191_spill] sm:$0xff] }
0x1331   : > { %5741 = vadd.xlane.f32.xlu1 %v15981_v27 }
0x1332   : > { %v11212_v38 = vpop.eup %11211 }
0x1333   : > { %v16010_v57 = vmul.f32 %v18530_v6, %v11212_v38  ;;  %v11214_v34 = vpop.eup %11213  ;;  %v18540_v38 = vld [vmem:[#allocation40_spill] sm:$0xff]  ;;  %v18541_v6 = vld [vmem:[#allocation53_spill] sm:$0xff] }
0x1334   : > { %v16016_v41 = vmul.f32 %v18532_v50, %v11214_v34  ;;  %v18542_v34 = vld [vmem:[#allocation48_spill] sm:$0xff]  ;;  %v18543_v50 = vld [vmem:[#allocation21_spill] sm:$0xff] }
0x1335   : > { %5747 = vadd.xlane.f32.xlu1 %v15985_v51 }
0x1336   : > { %v11216_v44 = vpop.eup %11215 }
0x1337   : > { %v16022_v42 = vmul.f32 %v18534_v33, %v11216_v44 }
0x1339   : > { %5745 = vadd.xlane.f32.xlu1 %v15989_v54 }
0x133d   : > { %5751 = vadd.xlane.f32.xlu1 %v15993_v13 }
0x133f   : > { %10816 = vrot.lane.b32.xlu0 %v18206_v9, %s11712_s2 }
0x134e   : > { %10811 = vrot.lane.b32.xlu1 %v18320_v26, %s11712_s2 }
0x1352   : > { %5950 = vrot.lane.b32.xlu1 %v18527_v55, %s11712_s2 }
0x1356   : > { %5954 = vrot.lane.b32.xlu1 %v18528_v19, %s11712_s2 }
0x135a   : > { %5958 = vrot.lane.b32.xlu1 %v18529_v11, %s11712_s2 }
0x135e   : > { %5962 = vrot.lane.b32.xlu1 %v18531_v14, %s11712_s2  ;;  %5749 = vadd.xlane.f32.xlu0 %v16010_v57 }
0x1362   : > { %5966 = vrot.lane.b32.xlu1 %v18533_v16, %s11712_s2  ;;  %5755 = vadd.xlane.f32.xlu0 %v16016_v41 }
0x1366   : > { %5970 = vrot.lane.b32.xlu1 %v18535_v47, %s11712_s2  ;;  %5753 = vadd.xlane.f32.xlu0 %v16022_v42 }
0x136a   : > { %5974 = vrot.lane.b32.xlu1 %v18536_v36, %s11712_s2 }
0x136e   : > { %5978 = vrot.lane.b32.xlu1 %v18537_v40, %s11712_s2 }
0x1372   : > { %6441 = vrot.lane.b32.xlu1 %v18538_v20, %s11712_s2 }
0x1375   : > { %v5728_v60 = vpop.xlane.xlu0 %5727 }
0x1376   : > { %v5758_v18 = vmax.f32 %v5728_v60, 1e-30  ;;  %6445 = vrot.lane.b32.xlu1 %v18539_v10, %s11712_s2  ;;  %v5726_v46 = vpop.xlane.xlu1 %5725 }
0x1377   : > { %v5757_v23 = vmax.f32 %v5726_v46, 1e-30  ;;  %v18544_v46 = vld [vmem:[#allocation26_spill] sm:$0xff] }
0x1378   : > { %11217 = vrcp.f32 %v5758_v18 }
0x1379   : > { %11219 = vrcp.f32 %v5757_v23 }
0x137a   : > { %6447 = vrot.lane.b32.xlu1 %v18540_v38, %s11712_s2  ;;  %v18546_v38 = vld [vmem:[#allocation34_spill] sm:$0xff] }
0x137c   : > { %10821 = vrot.lane.b32.xlu0 %v18541_v6, %s11712_s2 }
0x137e   : > { %6451 = vrot.lane.b32.xlu1 %v18542_v34, %s11712_s2  ;;  %v18547_v34 = vld [vmem:[#allocation38_spill] sm:$0xff] }
0x1380   : > { %5952 = vrot.lane.b32.xlu0 %v18543_v50, %s11712_s2  ;;  %v18548_v50 = vld [vmem:[#allocation42_spill] sm:$0xff] }
0x1382   : > { %v11218_v44 = vpop.eup %11217 }
0x1383   : > { %v11220_v33 = vpop.eup %11219  ;;  %v5806_v60 = vmul.f32 %v11218_v44, %v15929_v43  ;;  %v18549_v43 = vld [vmem:[#allocation46_spill] sm:$0xff] }
0x1384   : > { %5956 = vrot.lane.b32.xlu0 %v18544_v46, %s11712_s2  ;;  %v5805_v18 = vmul.f32 %v11220_v33, %v15932_v7  ;;  %v18550_v44 = vld [vmem:[#allocation50_spill] sm:$0xff]  ;;  %v18551_v7 = vld [vmem:[#allocation23_spill] sm:$0xff]  ;;  %v18552_v33 = vld [vmem:[#allocation32_spill] sm:$0xff] }
0x1386   : > { %v5821_v23 = vpack.c.bf16 %v5806_v60, %v5805_v18  ;;  %v5732_v60 = vpop.xlane.xlu1 %5731  ;;  %v18553_v18 = vld [vmem:[#allocation44_spill] sm:$0xff] }
0x1388   : > { %5960 = vrot.lane.b32.xlu0 %v18545_v63, %s11712_s2  ;;  %9762 = vmatprep.mubr.bf16.mxu1 %v5821_v23  ;;  %v16065_v23 = vpop.permute.xlu0 %10806 }
0x138c   : > { %5964 = vrot.lane.b32.xlu0 %v18546_v38, %s11712_s2 }
0x1390   : > { %5968 = vrot.lane.b32.xlu0 %v18547_v34, %s11712_s2  ;;  %v5760_v34 = vmax.f32 %v5732_v60, 1e-30 }
0x1392   : > { %11221 = vrcp.f32 %v5760_v34  ;;  %v10794_v34 = vunpack.i.h.bf16 %v15944_v31 }
0x1394   : > { %5972 = vrot.lane.b32.xlu0 %v18548_v50, %s11712_s2  ;;  %v18554_v50 = vld [vmem:[#allocation52_spill] sm:$0xff] }
0x1398   : > { %5976 = vrot.lane.b32.xlu0 %v18549_v43, %s11712_s2  ;;  %v16069_v43 = vpop.permute.xlu1 %10801 }
0x139c   : > { %5980 = vrot.lane.b32.xlu0 %v18550_v44, %s11712_s2  ;;  %v11222_v60 = vpop.eup %11221 }
0x13a0   : > { %6439 = vrot.lane.b32.xlu0 %v18551_v7, %s11712_s2 }
0x13a4   : > { %6443 = vrot.lane.b32.xlu0 %v18552_v33, %s11712_s2 }
0x13a8   : > { %6449 = vrot.lane.b32.xlu0 %v18553_v18, %s11712_s2 }
0x13ac   : > { %6453 = vrot.lane.b32.xlu0 %v18554_v50, %s11712_s2 }
0x13ae   : > { %v5730_v38 = vpop.xlane.xlu0 %5729 }
0x13af   : > { %v5759_v44 = vmax.f32 %v5730_v38, 1e-30  ;;  %v10793_v38 = vunpack.i.l.bf16 %v15944_v31 }
0x13b1   : > { %11223 = vrcp.f32 %v5759_v44  ;;  %v5808_v44 = vmul.f32 %v11222_v60, %v15937_v45  ;;  %v10352_v47 = vpack.c.bf16 %v10794_v34, %v10793_v38  ;;  %v10799_v60 = vunpack.i.h.bf16 %v15946_v8 }
0x13b2   : > { %v5734_v7 = vpop.xlane.xlu1 %5733  ;;  %v5736_v63 = vpop.xlane.xlu0 %5735 }
0x13b3   : > { %v5761_v46 = vmax.f32 %v5734_v7, 1e-30  ;;  %v5762_v33 = vmax.f32 %v5736_v63, 1e-30 }
0x13b5   : > { %11225 = vrcp.f32 %v5761_v46 }
0x13b6   : > { %11227 = vrcp.f32 %v5762_v33  ;;  %v5740_v6 = vpop.xlane.xlu1 %5739  ;;  %v5738_v18 = vpop.xlane.xlu0 %5737 }
0x13b7   : > { %v5764_v10 = vmax.f32 %v5740_v6, 1e-30  ;;  %v5763_v20 = vmax.f32 %v5738_v18, 1e-30 }
0x13b9   : > { %11229 = vrcp.f32 %v5764_v10 }
0x13ba   : > { %11231 = vrcp.f32 %v5763_v20  ;;  %v5744_v50 = vpop.xlane.xlu1 %5743 }
0x13bb   : > { %v11224_v40 = vpop.eup %11223  ;;  %v5766_v36 = vmax.f32 %v5744_v50, 1e-30 }
0x13bc   : > { %v5807_v63 = vmul.f32 %v11224_v40, %v15955_v53 }
0x13bd   : > { %11233 = vrcp.f32 %v5766_v36 }
0x13be   : > { %v5742_v46 = vpop.xlane.xlu1 %5741  ;;  %v5822_v7 = vpack.c.bf16 %v5808_v44, %v5807_v63 }
0x13bf   : > { %v11226_v33 = vpop.eup %11225  ;;  %v5765_v6 = vmax.f32 %v5742_v46, 1e-30 }
0x13c0   : > { %v11228_v18 = vpop.eup %11227  ;;  %9763 = vmatmul.mubr.bf16.vlgmr.msra.gmra.mrb[96].mxu1 %v5822_v7  ;;  %v5809_v20 = vmul.f32 %v11226_v33, %v15960_v56  ;;  %v10798_v56 = vunpack.i.l.bf16 %v15946_v8  ;;  %v10803_v7 = vunpack.i.l.bf16 %v16069_v43 }
0x13c1   : > { %11235 = vrcp.f32 %v5765_v6  ;;  %10351 = vmatpush3.bf16.xpose.msk.msra.mxu1 %vm18518_vm5, %v15923_v0  ;;  %v5810_v31 = vmul.f32 %v11228_v18, %v15963_v29 }
0x13c2   : > { %10354 = vmatprep.subr.msk.bf16.mxu1 %vm18518_vm5, %v10352_v47  ;;  %v5748_v45 = vpop.xlane.xlu1 %5747  ;;  %v10358_v63 = vpack.c.bf16 %v10799_v60, %v10798_v56 }
0x13c3   : > { %v11230_v53 = vpop.eup %11229  ;;  %v5768_v40 = vmax.f32 %v5748_v45, 1e-30  ;;  %v5823_v36 = vpack.c.bf16 %v5810_v31, %v5809_v20  ;;  %v10809_v31 = vunpack.i.h.bf16 %v16065_v23 }
0x13c4   : > { %v11232_v10 = vpop.eup %11231  ;;  %v5812_v50 = vmul.f32 %v11230_v53, %v15969_v5 }
0x13c5   : > { %9766 = vmatprep.mubr.bf16.mxu1 %v5823_v36  ;;  %v5811_v34 = vmul.f32 %v11232_v10, %v15972_v3  ;;  %11237 = vrcp.f32 %v5768_v40  ;;  %v10804_v3 = vunpack.i.h.bf16 %v16069_v43  ;;  %v10808_v43 = vunpack.i.l.bf16 %v16065_v23 }
0x13c6   : > { %v5746_v0 = vpop.xlane.xlu1 %5745 }
0x13c7   : > { %v5767_v29 = vmax.f32 %v5746_v0, 1e-30  ;;  %v5824_v38 = vpack.c.bf16 %v5812_v50, %v5811_v34  ;;  %v11234_v44 = vpop.eup %11233  ;;  %v10364_v18 = vpack.c.bf16 %v10804_v3, %v10803_v7  ;;  %v10370_v53 = vpack.c.bf16 %v10809_v31, %v10808_v43 }
0x13c8   : > { %v5814_v5 = vmul.f32 %v11234_v44, %v15977_v32 }
0x13c9   : > { %11239 = vrcp.f32 %v5767_v29  ;;  %9767 = vmatmul.mubr.bf16.gmra.mrb[100].mxu1 %v5824_v38 }
0x13ca   : > { %10357 = vmatpush3.bf16.xpose.msk.msra.mxu1 %vm18518_vm5, %v10352_v47  ;;  %v5752_v20 = vpop.xlane.xlu1 %5751 }
0x13cb   : > { %v11236_v46 = vpop.eup %11235  ;;  %10360 = vmatprep.subr.msk.bf16.mxu1 %vm18518_vm5, %v10358_v63  ;;  %v5770_v60 = vmax.f32 %v5752_v20, 1e-30 }
0x13cc   : > { %v5813_v8 = vmul.f32 %v11236_v46, %v15981_v27 }
0x13cd   : > { %11241 = vrcp.f32 %v5770_v60 }
0x13ce   : > { %v5825_v33 = vpack.c.bf16 %v5814_v5, %v5813_v8  ;;  %v10812_v40 = vpop.permute.xlu1 %10811 }
0x13cf   : > { %v11238_v6 = vpop.eup %11237  ;;  %v10814_v36 = vunpack.i.h.bf16 %v10812_v40  ;;  %v10813_v10 = vunpack.i.l.bf16 %v10812_v40 }
0x13d0   : > { %9770 = vmatprep.mubr.bf16.mxu1 %v5825_v33  ;;  %v5816_v32 = vmul.f32 %v11238_v6, %v15985_v51 }
0x13d1   : > { %v10376_v50 = vpack.c.bf16 %v10814_v36, %v10813_v10 }
0x13d2   : > { %10363 = vmatpush3.bf16.xpose.msk.msra.mxu1 %vm18518_vm5, %v10358_v63  ;;  %v5951_v29 = vpop.permute.xlu1 %5950 }
0x13d3   : > { %v11240_v47 = vpop.eup %11239  ;;  %10366 = vmatprep.subr.msk.bf16.mxu1 %vm18518_vm5, %v10364_v18 }
0x13d4   : > { %v5815_v27 = vmul.f32 %v11240_v47, %v15989_v54  ;;  %v10817_v54 = vpop.permute.xlu0 %10816 }
0x13d5   : > { %v10819_v51 = vunpack.i.h.bf16 %v10817_v54  ;;  %v10818_v23 = vunpack.i.l.bf16 %v10817_v54 }
0x13d6   : > { %v5826_v45 = vpack.c.bf16 %v5816_v32, %v5815_v27  ;;  %v5955_v63 = vpop.permute.xlu1 %5954 }
0x13d7   : > { %v10382_v56 = vpack.c.bf16 %v10819_v51, %v10818_v23  ;;  %v11242_v5 = vpop.eup %11241 }
0x13d8   : > { %9771 = vmatmul.mubr.bf16.gmra.mrb[104].mxu1 %v5826_v45  ;;  %v5818_v20 = vmul.f32 %v11242_v5, %v15993_v13 }
0x13da   : > { %10369 = vmatpush3.bf16.xpose.msk.msra.mxu1 %vm18518_vm5, %v10364_v18  ;;  %v5959_v18 = vpop.permute.xlu1 %5958 }
0x13db   : > { %10372 = vmatprep.subr.msk.bf16.mxu1 %vm18518_vm5, %v10370_v53 }
0x13de   : > { %v5963_v45 = vpop.permute.xlu1 %5962 }
0x13e2   : > { %10375 = vmatpush3.bf16.xpose.msk.msra.mxu1 %vm18518_vm5, %v10370_v53 }
0x13e3   : > { %10378 = vmatprep.subr.msk.bf16.mxu1 %vm18518_vm5, %v10376_v50 }
0x13ea   : > { %10381 = vmatpush3.bf16.xpose.msk.msra.mxu1 %vm18518_vm5, %v10376_v50  ;;  %v5967_v50 = vpop.permute.xlu1 %5966 }
0x13eb   : > { %10384 = vmatprep.subr.msk.bf16.mxu1 %vm18518_vm5, %v10382_v56  ;;  %v5750_v34 = vpop.xlane.xlu0 %5749 }
0x13ec   : > { %v5769_v0 = vmax.f32 %v5750_v34, 1e-30 }
0x13ee   : > { %11243 = vrcp.f32 %v5769_v0  ;;  %v5971_v51 = vpop.permute.xlu1 %5970 }
0x13ef   : > { %v5756_v38 = vpop.xlane.xlu0 %5755 }
0x13f0   : > { %v5772_v44 = vmax.f32 %v5756_v38, 1e-30 }
0x13f2   : > { %10387 = vmatpush3.bf16.xpose.msk.msra.mxu1 %vm18518_vm5, %v10382_v56  ;;  %11245 = vrcp.f32 %v5772_v44  ;;  %v5975_v56 = vpop.permute.xlu1 %5974 }
0x13f3   : > { %v5754_v46 = vpop.xlane.xlu0 %5753 }
0x13f4   : > { %v5771_v8 = vmax.f32 %v5754_v46, 1e-30 }
0x13f6   : > { %11247 = vrcp.f32 %v5771_v8 }
0x13f7   : > { %v10822_v3 = vpop.permute.xlu0 %10821 }
0x13f8   : > { %v11244_v7 = vpop.eup %11243  ;;  %v10824_v33 = vunpack.i.h.bf16 %v10822_v3  ;;  %v10823_v6 = vunpack.i.l.bf16 %v10822_v3 }
0x13f9   : > { %v5817_v47 = vmul.f32 %v11244_v7, %v16010_v57 }
0x13fa   : > { %v10388_v27 = vpack.c.bf16 %v10824_v33, %v10823_v6 }
0x13fb   : > { %v5953_v32 = vpop.permute.xlu0 %5952  ;;  %v5827_v31 = vpack.c.bf16 %v5818_v20, %v5817_v47 }
0x13fc   : > { %10390 = vmatprep.subr.msk.bf16.mxu1 %vm18518_vm5, %v10388_v27  ;;  %v11246_v43 = vpop.eup %11245 }
0x13fd   : > { %9774 = vmatprep.mubr.bf16.mxu1 %v5827_v31  ;;  %10393 = vmatpush3.bf16.xpose.msk.msra.mxu1 %vm18518_vm5, %v10388_v27  ;;  %v5820_v57 = vmul.f32 %v11246_v43, %v16016_v41  ;;  %vm18557_vm5 = vmmov %vm18555_vm0 }
0x13ff   : > { %v5957_v53 = vpop.permute.xlu0 %5956 }
0x1400   : > { %v11248_v40 = vpop.eup %11247 }
0x1401   : > { %v5819_v36 = vmul.f32 %v11248_v40, %v16022_v42  ;;  %v5979_v42 = vpop.permute.xlu1 %5978 }
0x1403   : > { %v5961_v10 = vpop.permute.xlu0 %5960  ;;  %v5828_v13 = vpack.c.bf16 %v5820_v57, %v5819_v36 }
0x1405   : > { %9775 = vmatmul.mubr.bf16.gmra.mrb[108].mxu1 %v5828_v13 }
0x1406   : > { %9810 = vmatprep.mubr.msk.f32.mxu1 %vm18555_vm0, %v5951_v29  ;;  %v6442_v29 = vpop.permute.xlu1 %6441 }
0x1407   : > { %v5965_v54 = vpop.permute.xlu0 %5964 }
0x140a   : > { %v6446_v44 = vpop.permute.xlu1 %6445 }
0x140b   : > { %v5969_v23 = vpop.permute.xlu0 %5968 }
0x140d   : > { %9811 = vmatmul.mubr.msk.f32.vlgmr.msra.gmra.mrb[112].mxu1 %vm18556_vm11, %v5953_v32  ;;  %vm18563_vm11 = vmmov %vm18555_vm0 }
0x140e   : > { %9813 = vmatprep.mubr.msk.f32.mxu1 %vm18557_vm5, %v5955_v63  ;;  %v6448_v63 = vpop.permute.xlu1 %6447  ;;  %vm18569_vm5 = vmmov %vm18555_vm0 }
0x140f   : > { %v5973_v60 = vpop.permute.xlu0 %5972 }
0x1411   : > { %9814 = vmatmul.mubr.msk.f32.gmra.mrb[114].mxu1 %vm18558_vm2, %v5957_v53  ;;  %vm18564_vm2 = vmmov %vm18555_vm0 }
0x1412   : > { %9816 = vmatprep.mubr.msk.f32.mxu1 %vm18559_vm14, %v5959_v18  ;;  %vm18565_vm14 = vmmov %vm18555_vm0  ;;  %v6452_v8 = vpop.permute.xlu1 %6451 }
0x1413   : > { %v5977_v41 = vpop.permute.xlu0 %5976 }
0x1415   : > { %9817 = vmatmul.mubr.msk.f32.gmra.mrb[116].mxu1 %vm18560_vm6, %v5961_v10  ;;  %vm18567_vm6 = vmmov %vm18555_vm0 }
0x1416   : > { %9819 = vmatprep.mubr.msk.f32.mxu1 %vm18561_vm4, %v5963_v45  ;;  %vm18566_vm4 = vmmov %vm18555_vm0 }
0x1417   : > { %v5981_v34 = vpop.permute.xlu0 %5980 }
0x1419   : > { %9820 = vmatmul.mubr.msk.f32.gmra.mrb[118].mxu1 %vm18555_vm0, %v5965_v54 }
0x141a   : > { %9822 = vmatprep.mubr.msk.f32.mxu1 %vm18562_vm1, %v5967_v50  ;;  %vm18568_vm1 = vmmov %vm18555_vm0  ;;  %vm18586_vm0 = vnez %v18298_v35 }
0x141b   : > { %v6440_v0 = vpop.permute.xlu0 %6439 }
0x141c   : > { %9834 = vmatprep.subr.bf16.mxu0 %v6440_v0 }
0x141d   : > { %9823 = vmatmul.mubr.msk.f32.gmra.mrb[120].mxu1 %vm18563_vm11, %v5969_v23  ;;  %9835 = vmatpush3.bf16.msra.mxu0 %v6440_v0  ;;  %vm18587_vm11 = vnez %v18300_v59 }
0x141e   : > { %9825 = vmatprep.mubr.msk.f32.mxu1 %vm18564_vm2, %v5971_v51  ;;  %9836 = vmatprep.subr.bf16.mxu0 %v6442_v29  ;;  %vm18588_vm2 = vnez %v18302_v48 }
0x141f   : > { %v6444_v38 = vpop.permute.xlu0 %6443 }
0x1421   : > { %9826 = vmatmul.mubr.msk.f32.gmra.mrb[122].mxu1 %vm18565_vm14, %v5973_v60  ;;  %9837 = vmatpush3.bf16.msra.mxu0 %v6442_v29  ;;  %vm18589_vm14 = vnez %v18304_v37 }
0x1422   : > { %9828 = vmatprep.mubr.msk.f32.mxu1 %vm18566_vm4, %v5975_v56  ;;  %9838 = vmatprep.subr.bf16.mxu0 %v6444_v38  ;;  %vm18590_vm4 = vnez %v18305_v4 }
0x1423   : > { %v6450_v46 = vpop.permute.xlu0 %6449 }
0x1425   : > { %9829 = vmatmul.mubr.msk.f32.gmra.mrb[124].mxu1 %vm18567_vm6, %v5977_v41  ;;  %9839 = vmatpush3.bf16.msra.mxu0 %v6444_v38  ;;  %vm18591_vm6 = vnez %v18306_v39 }
0x1426   : > { %9831 = vmatprep.mubr.msk.f32.mxu1 %vm18568_vm1, %v5979_v42  ;;  %9840 = vmatprep.subr.bf16.mxu0 %v6446_v44  ;;  %vm18592_vm1 = vnez %v18372_v58 }
0x1427   : > { %v6454_v5 = vpop.permute.xlu0 %6453 }
0x1429   : > { %9832 = vmatmul.mubr.msk.f32.gmra.mrb[126].mxu1 %vm18569_vm5, %v5981_v34  ;;  %9841 = vmatpush3.bf16.msra.mxu0 %v6446_v44  ;;  %vm18593_vm5 = vnez %v18449_v1 }
0x142a   : > { %9842 = vmatprep.subr.bf16.mxu0 %v6448_v63 }
0x142d   : > { %9843 = vmatpush3.bf16.msra.mxu0 %v6448_v63 }
0x142e   : > { %9844 = vmatprep.subr.bf16.mxu0 %v6450_v46 }
0x1431   : > { %9845 = vmatpush3.bf16.msra.mxu0 %v6450_v46 }
0x1432   : > { %9846 = vmatprep.subr.bf16.mxu0 %v6452_v8 }
0x1435   : > { %9847 = vmatpush3.bf16.msra.mxu0 %v6452_v8 }
0x1436   : > { %9848 = vmatprep.subr.bf16.mxu0 %v6454_v5 }
0x1439   : > { %9849 = vmatpush3.bf16.msra.mxu0 %v6454_v5 }
0x1493   : > { %v16140_v3 = vpop.f32.mrb[96].mxu1 }
0x1494   : > { %18570 = vst [vmem:[#allocation278_spill] sm:$0xff] %v16140_v3  ;;  %v16142_v7 = vpop.f32.mrb[97].mxu1 }
0x1495   : > { %18571 = vst [vmem:[#allocation231_spill] sm:$0xff] %v16142_v7  ;;  %v16144_v33 = vpop.f32.mrb[98].mxu1 }
0x1496   : > { %18572 = vst [vmem:[#allocation225_spill] sm:$0xff] %v16144_v33  ;;  %v16146_v6 = vpop.f32.mrb[99].mxu1 }
0x1497   : > { %18573 = vst [vmem:[#allocation65_spill] sm:$0xff] %v16146_v6 }
0x149c   : > { %v16148_v18 = vpop.f32.mrb[100].mxu1 }
0x149d   : > { %18574 = vst [vmem:[#allocation260_spill] sm:$0xff] %v16148_v18  ;;  %v16150_v47 = vpop.f32.mrb[101].mxu1 }
0x149e   : > { %18575 = vst [vmem:[#allocation255_spill] sm:$0xff] %v16150_v47  ;;  %v16152_v20 = vpop.f32.mrb[102].mxu1 }
0x149f   : > { %18576 = vst [vmem:[#allocation63_spill] sm:$0xff] %v16152_v20  ;;  %v16154_v27 = vpop.f32.mrb[103].mxu1 }
0x14a0   : > { %18577 = vst [vmem:[#allocation196_spill] sm:$0xff] %v16154_v27 }
0x14ab   : > { %v16156_v32 = vpop.f32.mrb[104].mxu1 }
0x14ac   : > { %18578 = vst [vmem:[#allocation199_spill] sm:$0xff] %v16156_v32  ;;  %v16158_v31 = vpop.f32.mrb[105].mxu1 }
0x14ad   : > { %18579 = vst [vmem:[#allocation279_spill] sm:$0xff] %v16158_v31  ;;  %v16160_v43 = vpop.f32.mrb[106].mxu1 }
0x14ae   : > { %18580 = vst [vmem:[#allocation227_spill] sm:$0xff] %v16160_v43  ;;  %v16162_v45 = vpop.f32.mrb[107].mxu1 }
0x14af   : > { %18581 = vst [vmem:[#allocation261_spill] sm:$0xff] %v16162_v45 }
0x14d8   : > { %v16164_v53 = vpop.f32.mrb[108].mxu1 }
0x14d9   : > { %18582 = vst [vmem:[#allocation69_spill] sm:$0xff] %v16164_v53  ;;  %v16166_v40 = vpop.f32.mrb[109].mxu1 }
0x14da   : > { %18583 = vst [vmem:[#allocation258_spill] sm:$0xff] %v16166_v40  ;;  %v16168_v36 = vpop.f32.mrb[110].mxu1 }
0x14db   : > { %18584 = vst [vmem:[#allocation283_spill] sm:$0xff] %v16168_v36  ;;  %v16170_v57 = vpop.f32.mrb[111].mxu1 }
0x14dc   : > { %18585 = vst [vmem:[#allocation64_spill] sm:$0xff] %v16170_v57 }
0x14e0   : > { %v9812_v10 = vpop.f32.mrb[112].mxu1 }
0x14e1   : > { %v6224_v13 = vsel %vm13765_vm3, %v9812_v10, -9e+15  ;;  %v6144_v50 = vpop.f32.mrb[113].mxu1 }
0x14e2   : > { %v6223_v54 = vsel %vm13829_vm15, %v6144_v50, -9e+15  ;;  %6241 = vmax.xlane.f32.xlu0 %v6224_v13 }
0x14e3   : > { %6239 = vmax.xlane.f32.xlu1 %v6223_v54 }
0x14e4   : > { %v9815_v51 = vpop.f32.mrb[114].mxu1 }
0x14e5   : > { %v6226_v23 = vsel %vm13859_vm10, %v9815_v51, -9e+15  ;;  %v6154_v60 = vpop.f32.mrb[115].mxu1 }
0x14e6   : > { %v16186_v10 = vsel %vm13923_vm12, %v6154_v60, -9e+15 }
0x14e7   : > { %6245 = vmax.xlane.f32.xlu1 %v6226_v23 }
0x14e8   : > { %v9818_v56 = vpop.f32.mrb[116].mxu1 }
0x14e9   : > { %v6164_v41 = vpop.f32.mrb[117].mxu1  ;;  %v16190_v50 = vsel %vm13957_vm7, %v9818_v56, -9e+15 }
0x14ec   : > { %v9821_v42 = vpop.f32.mrb[118].mxu1 }
0x14ed   : > { %v6174_v34 = vpop.f32.mrb[119].mxu1 }
0x14f0   : > { %v9824_v0 = vpop.f32.mrb[120].mxu1 }
0x14f1   : > { %v6184_v29 = vpop.f32.mrb[121].mxu1  ;;  %v16210_v51 = vsel %vm18586_vm0, %v9824_v0, -9e+15 }
0x14f2   : > { %v16216_v60 = vsel %vm18587_vm11, %v6184_v29, -9e+15 }
0x14f4   : > { %v9827_v38 = vpop.f32.mrb[122].mxu1 }
0x14f5   : > { %v6194_v44 = vpop.f32.mrb[123].mxu1  ;;  %v16220_v56 = vsel %vm18588_vm2, %v9827_v38, -9e+15 }
0x14f8   : > { %10831 = vrot.lane.b32.xlu0 %v18289_v12, %s11713_s20  ;;  %10826 = vrot.lane.b32.xlu1 %v18290_v49, %s11713_s20  ;;  %v9830_v63 = vpop.f32.mrb[124].mxu1  ;;  %v16196_v12 = vsel %vm13991_vm9, %v6164_v41, -9e+15  ;;  %v16206_v49 = vsel %vm18297_vm8, %v6174_v34, -9e+15 }
0x14f9   : > { %v6204_v46 = vpop.f32.mrb[125].mxu1  ;;  %v16226_v41 = vsel %vm18589_vm14, %v6194_v44, -9e+15 }
0x14fa   : > { %v16236_v34 = vsel %vm18591_vm6, %v6204_v46, -9e+15 }
0x14fc   : > { %10836 = vrot.lane.b32.xlu0 %v18198_v21, %s11713_s20  ;;  %v9833_v8 = vpop.f32.mrb[126].mxu1  ;;  %v16200_v21 = vsel %vm18295_vm13, %v9821_v42, -9e+15  ;;  %v16230_v42 = vsel %vm18590_vm4, %v9830_v63, -9e+15 }
0x14fd   : > { %v6214_v5 = vpop.f32.mrb[127].mxu1  ;;  %v16240_v0 = vsel %vm18592_vm1, %v9833_v8, -9e+15  ;;  %vm18615_vm1 = vcmask 130048  }
0x14fe   : > { %v16246_v29 = vsel %vm18593_vm5, %v6214_v5, -9e+15  ;;  %vm18594_vm5 = vnez %v18228_v28  ;;  %vm18616_vm6 = vmmov %vm18615_vm1 }
0x14ff   : > { %vm18618_vm4 = vmmov %vm18615_vm1 }
0x1500   : > { %vm18619_vm14 = vmmov %vm18615_vm1 }
0x1501   : > { %vm18620_vm2 = vmmov %vm18615_vm1 }
0x1502   : > { %vm18621_vm11 = vmmov %vm18615_vm1 }
0x1503   : > { %vm18622_vm0 = vmmov %vm18615_vm1 }
0x151b   : > { %6243 = vmax.xlane.f32.xlu0 %v16186_v10 }
0x151c   : > { %6249 = vmax.xlane.f32.xlu1 %v16190_v50 }
0x151f   : > { %6247 = vmax.xlane.f32.xlu0 %v16196_v12 }
0x1520   : > { %6253 = vmax.xlane.f32.xlu1 %v16200_v21 }
0x1523   : > { %6251 = vmax.xlane.f32.xlu0 %v16206_v49 }
0x1524   : > { %6257 = vmax.xlane.f32.xlu1 %v16210_v51 }
0x1527   : > { %6255 = vmax.xlane.f32.xlu0 %v16216_v60 }
0x1528   : > { %6261 = vmax.xlane.f32.xlu1 %v16220_v56 }
0x152b   : > { %6259 = vmax.xlane.f32.xlu0 %v16226_v41 }
0x152c   : > { %6265 = vmax.xlane.f32.xlu1 %v16230_v42 }
0x152f   : > { %6263 = vmax.xlane.f32.xlu0 %v16236_v34 }
0x1530   : > { %6269 = vmax.xlane.f32.xlu1 %v16240_v0 }
0x1533   : > { %6267 = vmax.xlane.f32.xlu0 %v16246_v29 }
0x156f   : > { %v6242_v38 = vpop.xlane.xlu0 %6241 }
0x1570   : > { %v6272_v44 = vsub.f32 %v6224_v13, %v6242_v38  ;;  %v6240_v63 = vpop.xlane.xlu1 %6239 }
0x1571   : > { %v6271_v36 = vsub.f32 %v6223_v54, %v6240_v63 }
0x1572   : > { %v6289_v46 = vmul.f32 1.442695, %v6272_v44 }
0x1573   : > { %v6287_v53 = vmul.f32 1.442695, %v6271_v36  ;;  %v16255_v36 = vld [vmem:[%s11959_s13 + $0x8] sm:$0xff] }
0x1574   : > { %11249 = vpow2.f32 %v6289_v46  ;;  %v6246_v8 = vpop.xlane.xlu1 %6245 }
0x1575   : > { %11251 = vpow2.f32 %v6287_v53  ;;  %v6274_v57 = vsub.f32 %v6226_v23, %v6246_v8  ;;  %v16261_v53 = vld [vmem:[%s11959_s13] sm:$0xff]  ;;  %v16279_v23 = vpop.permute.xlu0 %10831 }
0x1577   : > { %v6293_v40 = vmul.f32 1.442695, %v6274_v57 }
0x1578   : > { %v10827_v43 = vpop.permute.xlu1 %10826 }
0x1579   : > { %11253 = vpow2.f32 %v6293_v40  ;;  %v10829_v5 = vunpack.i.h.bf16 %v10827_v43  ;;  %v10828_v32 = vunpack.i.l.bf16 %v10827_v43  ;;  %v16269_v43 = vld [vmem:[%s11959_s13 + $0x18] sm:$0xff]  ;;  %v16281_v44 = vpop.permute.xlu0 %10836 }
0x157b   : > { %v16249_v45 = vpack.c.bf16 %v10829_v5, %v10828_v32 }
0x157d   : > { %10396 = vmatprep.subr.msk.bf16.mxu0 %vm18594_vm5, %v16249_v45 }
0x157e   : > { %v11250_v13 = vpop.eup %11249 }
0x157f   : > { %v11252_v54 = vpop.eup %11251  ;;  %v16258_v38 = vmul.f32 %v16255_v36, %v11250_v13 }
0x1580   : > { %v16264_v57 = vmul.f32 %v16261_v53, %v11252_v54 }
0x1581   : > { %6337 = vadd.xlane.f32.xlu0 %v16258_v38 }
0x1582   : > { %6335 = vadd.xlane.f32.xlu1 %v16264_v57 }
0x1583   : > { %v11254_v32 = vpop.eup %11253 }
0x1584   : > { %v16272_v40 = vmul.f32 %v16269_v43, %v11254_v32 }
0x1586   : > { %6341 = vadd.xlane.f32.xlu1 %v16272_v40 }
0x1597   : > { %10841 = vrot.lane.b32.xlu1 %v18520_v24, %s11713_s20  ;;  %10846 = vrot.lane.b32.xlu0 %v18521_v62, %s11713_s20 }
0x15a8   : > { %v6244_v63 = vpop.xlane.xlu0 %6243 }
0x15a9   : > { %v6273_v46 = vsub.f32 %v16186_v10, %v6244_v63  ;;  %v6250_v8 = vpop.xlane.xlu1 %6249 }
0x15aa   : > { %v6276_v5 = vsub.f32 %v16190_v50, %v6250_v8 }
0x15ab   : > { %v6291_v13 = vmul.f32 1.442695, %v6273_v46 }
0x15ac   : > { %v6297_v54 = vmul.f32 1.442695, %v6276_v5  ;;  %v6248_v32 = vpop.xlane.xlu0 %6247 }
0x15ad   : > { %11255 = vpow2.f32 %v6291_v13  ;;  %v6275_v31 = vsub.f32 %v16196_v12, %v6248_v32  ;;  %v6254_v24 = vpop.xlane.xlu1 %6253 }
0x15ae   : > { %v6278_v20 = vsub.f32 %v16200_v21, %v6254_v24  ;;  %11257 = vpow2.f32 %v6297_v54 }
0x15af   : > { %v6295_v62 = vmul.f32 1.442695, %v6275_v31 }
0x15b0   : > { %v6301_v18 = vmul.f32 1.442695, %v6278_v20  ;;  %v6252_v27 = vpop.xlane.xlu0 %6251 }
0x15b1   : > { %11259 = vpow2.f32 %v6295_v62  ;;  %v6277_v10 = vsub.f32 %v16206_v49, %v6252_v27  ;;  %v6258_v63 = vpop.xlane.xlu1 %6257  ;;  %v16292_v27 = vld [vmem:[%s11959_s13 + $0x10] sm:$0xff]  ;;  %v16300_v62 = vld [vmem:[%s11959_s13 + $0x20] sm:$0xff] }
0x15b2   : > { %v6280_v50 = vsub.f32 %v16210_v51, %v6258_v63  ;;  %11261 = vpow2.f32 %v6301_v18 }
0x15b3   : > { %v6299_v46 = vmul.f32 1.442695, %v6277_v10  ;;  %v16306_v10 = vld [vmem:[%s11959_s13 + $0x28] sm:$0xff] }
0x15b4   : > { %v6305_v8 = vmul.f32 1.442695, %v6280_v50  ;;  %v6256_v5 = vpop.xlane.xlu0 %6255 }
0x15b5   : > { %11263 = vpow2.f32 %v6299_v46  ;;  %v6279_v12 = vsub.f32 %v16216_v60, %v6256_v5  ;;  %v6262_v21 = vpop.xlane.xlu1 %6261  ;;  %v16315_v5 = vld [vmem:[%s11959_s13 + $0x38] sm:$0xff] }
0x15b6   : > { %11265 = vpow2.f32 %v6305_v8  ;;  %v6282_v31 = vsub.f32 %v16220_v56, %v6262_v21  ;;  %v16321_v21 = vld [vmem:[%s11959_s13 + $0x30] sm:$0xff] }
0x15b7   : > { %v11256_v13 = vpop.eup %11255  ;;  %v6303_v20 = vmul.f32 1.442695, %v6279_v12 }
0x15b8   : > { %v6260_v54 = vpop.xlane.xlu0 %6259  ;;  %v16295_v49 = vmul.f32 %v16292_v27, %v11256_v13  ;;  %v11258_v18 = vpop.eup %11257  ;;  %v6309_v60 = vmul.f32 1.442695, %v6282_v31 }
0x15b9   : > { %11267 = vpow2.f32 %v6303_v20  ;;  %v6281_v32 = vsub.f32 %v16226_v41, %v6260_v54  ;;  %v6266_v24 = vpop.xlane.xlu1 %6265  ;;  %v16309_v63 = vmul.f32 %v16306_v10, %v11258_v18 }
0x15ba   : > { %6339 = vadd.xlane.f32.xlu0 %v16295_v49  ;;  %11269 = vpow2.f32 %v6309_v60  ;;  %v6284_v8 = vsub.f32 %v16230_v42, %v6266_v24  ;;  %v16329_v42 = vld [vmem:[%s11959_s13 + $0x48] sm:$0xff]  ;;  %v16343_v24 = vld [vmem:[%s11959_s13 + $0x58] sm:$0xff] }
0x15bb   : > { %v11260_v51 = vpop.eup %11259  ;;  %v6307_v41 = vmul.f32 1.442695, %v6281_v32  ;;  %18596 = vst [vmem:[#allocation236_spill] sm:$0xff] %v16343_v24 }
0x15bc   : > { %v16303_v56 = vmul.f32 %v16300_v62, %v11260_v51  ;;  %v11262_v50 = vpop.eup %11261  ;;  %v6313_v31 = vmul.f32 1.442695, %v6284_v8  ;;  %v16336_v51 = vld [vmem:[%s11959_s13 + $0x40] sm:$0xff] }
0x15bd   : > { %v16318_v12 = vmul.f32 %v16315_v5, %v11262_v50  ;;  %11271 = vpow2.f32 %v6307_v41  ;;  %18595 = vst [vmem:[#allocation90_spill] sm:$0xff] %v16336_v51  ;;  %v16350_v41 = vld [vmem:[%s11959_s13 + $0x50] sm:$0xff]  ;;  %v6270_v33 = vpop.xlane.xlu1 %6269 }
0x15be   : > { %6343 = vadd.xlane.f32.xlu1 %v16303_v56  ;;  %6345 = vadd.xlane.f32.xlu0 %v16309_v63  ;;  %11273 = vpow2.f32 %v6313_v31  ;;  %v16357_v31 = vld [vmem:[%s11959_s13 + $0x68] sm:$0xff]  ;;  %v6286_v3 = vsub.f32 %v16240_v0, %v6270_v33  ;;  %v18601_v0 = vld [vmem:[#allocation51_spill] sm:$0xff] }
0x15bf   : > { %v11264_v46 = vpop.eup %11263  ;;  %18597 = vst [vmem:[#allocation280_spill] sm:$0xff] %v16357_v31 }
0x15c0   : > { %v16324_v13 = vmul.f32 %v16321_v21, %v11264_v46  ;;  %v11266_v20 = vpop.eup %11265 }
0x15c1   : > { %v16332_v54 = vmul.f32 %v16329_v42, %v11266_v20 }
0x15c2   : > { %6349 = vadd.xlane.f32.xlu1 %v16318_v12  ;;  %6347 = vadd.xlane.f32.xlu0 %v16324_v13 }
0x15c3   : > { %v11268_v18 = vpop.eup %11267 }
0x15c4   : > { %v16339_v60 = vmul.f32 %v16336_v51, %v11268_v18  ;;  %v11270_v32 = vpop.eup %11269 }
0x15c5   : > { %v16346_v50 = vmul.f32 %v16343_v24, %v11270_v32  ;;  %v6264_v32 = vpop.xlane.xlu0 %6263 }
0x15c6   : > { %6353 = vadd.xlane.f32.xlu1 %v16332_v54  ;;  %v6283_v47 = vsub.f32 %v16236_v34, %v6264_v32  ;;  %v18600_v34 = vld [vmem:[#allocation47_spill] sm:$0xff] }
0x15c7   : > { %v11272_v46 = vpop.eup %11271 }
0x15c8   : > { %v16353_v8 = vmul.f32 %v16350_v41, %v11272_v46  ;;  %v11274_v20 = vpop.eup %11273  ;;  %v6311_v46 = vmul.f32 1.442695, %v6283_v47 }
0x15c9   : > { %v16360_v18 = vmul.f32 %v16357_v31, %v11274_v20  ;;  %v6268_v6 = vpop.xlane.xlu0 %6267  ;;  %v6317_v20 = vmul.f32 1.442695, %v6286_v3 }
0x15ca   : > { %6351 = vadd.xlane.f32.xlu1 %v16339_v60  ;;  %11275 = vpow2.f32 %v6311_v46  ;;  %v6285_v7 = vsub.f32 %v16246_v29, %v6268_v6  ;;  %v18603_v46 = vld [vmem:[#allocation36_spill] sm:$0xff] }
0x15cb   : > { %11277 = vpow2.f32 %v6317_v20 }
0x15ce   : > { %6357 = vadd.xlane.f32.xlu1 %v16346_v50 }
0x15d2   : > { %6355 = vadd.xlane.f32.xlu1 %v16353_v8 }
0x15d4   : > { %v11276_v33 = vpop.eup %11275 }
0x15d5   : > { %v11278_v6 = vpop.eup %11277 }
0x15d6   : > { %6361 = vadd.xlane.f32.xlu1 %v16360_v18 }
0x15d8   : > { %10856 = vrot.lane.b32.xlu0 %v18206_v9, %s11713_s20  ;;  %v6315_v9 = vmul.f32 1.442695, %v6285_v7 }
0x15da   : > { %11279 = vpow2.f32 %v6315_v9 }
0x15e4   : > { %v11280_v7 = vpop.eup %11279 }
0x15e7   : > { %10851 = vrot.lane.b32.xlu1 %v18320_v26, %s11713_s20  ;;  %v16377_v26 = vld [vmem:[%s11959_s13 + $0x60] sm:$0xff] }
0x15e8   : > { %v16380_v3 = vmul.f32 %v16377_v26, %v11276_v33  ;;  %v18604_v33 = vld [vmem:[#allocation53_spill] sm:$0xff] }
0x15eb   : > { %6560 = vrot.lane.b32.xlu1 %v18527_v55, %s11713_s20  ;;  %v16386_v55 = vld [vmem:[%s11959_s13 + $0x78] sm:$0xff] }
0x15ec   : > { %18598 = vst [vmem:[#allocation228_spill] sm:$0xff] %v16386_v55 }
0x15ef   : > { %6564 = vrot.lane.b32.xlu1 %v18528_v19, %s11713_s20  ;;  %v16389_v19 = vmul.f32 %v16386_v55, %v11278_v6  ;;  %v18605_v6 = vld [vmem:[#allocation21_spill] sm:$0xff] }
0x15f3   : > { %6568 = vrot.lane.b32.xlu1 %v18529_v11, %s11713_s20  ;;  %v16395_v11 = vld [vmem:[%s11959_s13 + $0x70] sm:$0xff]  ;;  %s17100_s13 = scalar_lea.vmem [#allocation9], %s11955_s23  ;;  %s8681_s23 = sshll.u32 %s11691_s27, 11 }
0x15f4   : > { %v16398_v47 = vmul.f32 %v16395_v11, %v11280_v7  ;;  %s17151_s12 = scalar_lea.hbm %s17268_s6, %s8681_s23  ;;  %s8060_s19 = sshll.u32 %s17100_s13, 4  ;;  %s17154_s19 = int_to_ptr.vmem [resolvable:$true] %s8060_s19 }
0x15f5   : > { %s11577_s26 = scalar_lea.vmem %s17154_s19, 2048  ;;  %p11584_p7 = scmp.lt.s32.totalorder %s17154_s19, %s11582_s30 }
0x15f6   : > { %p11578_p9 = scmp.ne.s32.totalorder %s17154_s19, %s11577_s26  ;;  %p11585_p4 = scmp.lt.s32.totalorder %s11583_s9, %s11577_s26 }
0x15f7   : > { %6572 = vrot.lane.b32.xlu1 %v18531_v14, %s11713_s20  ;;  %6359 = vadd.xlane.f32.xlu0 %v16380_v3  ;;  %v18599_v14 = vld [vmem:[#allocation43_spill] sm:$0xff] }
0x15f8   : > { %p11579_p1 = pnand %p11578_p9, %p11853_p10  ;;  %p11586_p8 = por %p11585_p4, %p11584_p7 }
0x15fa   : > { %p11580_p2 = pneg %p11579_p1 }
0x15fb   : > { %6576 = vrot.lane.b32.xlu1 %v18533_v16, %s11713_s20  ;;  %6365 = vadd.xlane.f32.xlu0 %v16389_v19  ;;  %v18602_v16 = vld [vmem:[#allocation28_spill] sm:$0xff] }
0x15fc   : > { %p11587_p12 = pnand %p11586_p8, %p11580_p2 }
0x15ff   : > { %6580 = vrot.lane.b32.xlu1 %v18599_v14, %s11713_s20  ;;  %6363 = vadd.xlane.f32.xlu0 %v16398_v47 }
0x1603   : > { %6584 = vrot.lane.b32.xlu1 %v18600_v34, %s11713_s20 }
0x1607   : > { %6588 = vrot.lane.b32.xlu1 %v18601_v0, %s11713_s20  ;;  %v18606_v0 = vld [vmem:[#allocation26_spill] sm:$0xff] }
0x160b   : > { %7051 = vrot.lane.b32.xlu1 %v18602_v16, %s11713_s20 }
0x160e   : > { %v6338_v29 = vpop.xlane.xlu0 %6337 }
0x160f   : > { %v6368_v32 = vmax.f32 %v6338_v29, 1e-30  ;;  %7055 = vrot.lane.b32.xlu1 %v18603_v46, %s11713_s20  ;;  %v6336_v20 = vpop.xlane.xlu1 %6335  ;;  %v18607_v46 = vld [vmem:[#allocation30_spill] sm:$0xff] }
0x1610   : > { %v6367_v9 = vmax.f32 %v6336_v20, 1e-30  ;;  %v18609_v20 = vld [vmem:[#allocation38_spill] sm:$0xff] }
0x1611   : > { %11281 = vrcp.f32 %v6368_v32  ;;  %v18608_v32 = vld [vmem:[#allocation34_spill] sm:$0xff] }
0x1612   : > { %11283 = vrcp.f32 %v6367_v9  ;;  %v18610_v9 = vld [vmem:[#allocation42_spill] sm:$0xff] }
0x1615   : > { %10861 = vrot.lane.b32.xlu0 %v18604_v33, %s11713_s20  ;;  %v18612_v33 = vld [vmem:[#allocation50_spill] sm:$0xff] }
0x1619   : > { %6562 = vrot.lane.b32.xlu0 %v18605_v6, %s11713_s20  ;;  %v18614_v6 = vld [vmem:[#allocation32_spill] sm:$0xff] }
0x161b   : > { %v11282_v7 = vpop.eup %11281 }
0x161c   : > { %v11284_v14 = vpop.eup %11283  ;;  %v6416_v34 = vmul.f32 %v11282_v7, %v16258_v38  ;;  %v18611_v38 = vld [vmem:[#allocation46_spill] sm:$0xff]  ;;  %v6342_v7 = vpop.xlane.xlu1 %6341 }
0x161d   : > { %6566 = vrot.lane.b32.xlu0 %v18606_v0, %s11713_s20  ;;  %v6415_v16 = vmul.f32 %v11284_v14, %v16264_v57  ;;  %v18613_v57 = vld [vmem:[#allocation23_spill] sm:$0xff]  ;;  %v16435_v14 = vpop.permute.xlu0 %10846 }
0x161f   : > { %v6431_v29 = vpack.c.bf16 %v6416_v34, %v6415_v16  ;;  %v6370_v34 = vmax.f32 %v6342_v7, 1e-30 }
0x1620   : > { %v16437_v0 = vpop.permute.xlu1 %10841 }
0x1621   : > { %6570 = vrot.lane.b32.xlu0 %v18607_v46, %s11713_s20  ;;  %9850 = vmatprep.mubr.bf16.mxu0 %v6431_v29  ;;  %11285 = vrcp.f32 %v6370_v34  ;;  %v10834_v34 = vunpack.i.h.bf16 %v16279_v23 }
0x1625   : > { %6574 = vrot.lane.b32.xlu0 %v18608_v32, %s11713_s20 }
0x1629   : > { %6578 = vrot.lane.b32.xlu0 %v18609_v20, %s11713_s20 }
0x162b   : > { %v11286_v55 = vpop.eup %11285 }
0x162d   : > { %6582 = vrot.lane.b32.xlu0 %v18610_v9, %s11713_s20 }
0x1631   : > { %6586 = vrot.lane.b32.xlu0 %v18611_v38, %s11713_s20 }
0x1635   : > { %6590 = vrot.lane.b32.xlu0 %v18612_v33, %s11713_s20 }
0x1639   : > { %7049 = vrot.lane.b32.xlu0 %v18613_v57, %s11713_s20 }
0x163d   : > { %7053 = vrot.lane.b32.xlu0 %v18614_v6, %s11713_s20 }
0x1647   : > { %v6340_v16 = vpop.xlane.xlu0 %6339 }
0x1648   : > { %v6369_v29 = vmax.f32 %v6340_v16, 1e-30  ;;  %v10833_v16 = vunpack.i.l.bf16 %v16279_v23 }
0x164a   : > { %11287 = vrcp.f32 %v6369_v29  ;;  %v6418_v29 = vmul.f32 %v11286_v55, %v16272_v40  ;;  %v10400_v51 = vpack.c.bf16 %v10834_v34, %v10833_v16 }
0x164b   : > { %v6344_v46 = vpop.xlane.xlu1 %6343  ;;  %v6346_v32 = vpop.xlane.xlu0 %6345 }
0x164c   : > { %v6371_v20 = vmax.f32 %v6344_v46, 1e-30  ;;  %v6372_v9 = vmax.f32 %v6346_v32, 1e-30 }
0x164e   : > { %11289 = vrcp.f32 %v6371_v20 }
0x164f   : > { %11291 = vrcp.f32 %v6372_v9  ;;  %v6350_v38 = vpop.xlane.xlu1 %6349  ;;  %v6348_v33 = vpop.xlane.xlu0 %6347 }
0x1650   : > { %v6374_v57 = vmax.f32 %v6350_v38, 1e-30  ;;  %v6373_v6 = vmax.f32 %v6348_v33, 1e-30 }
0x1652   : > { %11293 = vrcp.f32 %v6374_v57 }
0x1653   : > { %11295 = vrcp.f32 %v6373_v6  ;;  %v6354_v7 = vpop.xlane.xlu1 %6353 }
0x1654   : > { %v11288_v31 = vpop.eup %11287  ;;  %v6376_v24 = vmax.f32 %v6354_v7, 1e-30  ;;  %v10839_v7 = vunpack.i.h.bf16 %v16281_v44 }
0x1655   : > { %v6417_v46 = vmul.f32 %v11288_v31, %v16295_v49 }
0x1656   : > { %11297 = vrcp.f32 %v6376_v24 }
0x1657   : > { %v6352_v32 = vpop.xlane.xlu1 %6351  ;;  %v6432_v20 = vpack.c.bf16 %v6418_v29, %v6417_v46 }
0x1658   : > { %v11290_v9 = vpop.eup %11289  ;;  %v6375_v38 = vmax.f32 %v6352_v32, 1e-30 }
0x1659   : > { %v11292_v33 = vpop.eup %11291  ;;  %9851 = vmatmul.mubr.bf16.vlgmr.msra.gmra.mrb[112].mxu0 %v6432_v20  ;;  %v6419_v57 = vmul.f32 %v11290_v9, %v16303_v56  ;;  %v10838_v56 = vunpack.i.l.bf16 %v16281_v44  ;;  %v10843_v20 = vunpack.i.l.bf16 %v16437_v0 }
0x165a   : > { %11299 = vrcp.f32 %v6375_v38  ;;  %10399 = vmatpush3.bf16.xpose.msk.msra.mxu0 %vm18594_vm5, %v16249_v45  ;;  %v6420_v23 = vmul.f32 %v11292_v33, %v16309_v63 }
0x165b   : > { %10402 = vmatprep.subr.msk.bf16.mxu0 %vm18594_vm5, %v10400_v51  ;;  %v6358_v40 = vpop.xlane.xlu1 %6357  ;;  %v10406_v46 = vpack.c.bf16 %v10839_v7, %v10838_v56 }
0x165c   : > { %v11294_v49 = vpop.eup %11293  ;;  %v6378_v31 = vmax.f32 %v6358_v40, 1e-30  ;;  %v6433_v24 = vpack.c.bf16 %v6420_v23, %v6419_v57  ;;  %v10849_v23 = vunpack.i.h.bf16 %v16435_v14 }
0x165d   : > { %v11296_v55 = vpop.eup %11295  ;;  %v6422_v6 = vmul.f32 %v11294_v49, %v16318_v12 }
0x165e   : > { %9854 = vmatprep.mubr.bf16.mxu0 %v6433_v24  ;;  %v6421_v34 = vmul.f32 %v11296_v55, %v16324_v13  ;;  %11301 = vrcp.f32 %v6378_v31  ;;  %v10844_v13 = vunpack.i.h.bf16 %v16437_v0  ;;  %v10848_v0 = vunpack.i.l.bf16 %v16435_v14 }
0x165f   : > { %v6356_v45 = vpop.xlane.xlu1 %6355 }
0x1660   : > { %v6377_v63 = vmax.f32 %v6356_v45, 1e-30  ;;  %v6434_v16 = vpack.c.bf16 %v6422_v6, %v6421_v34  ;;  %v11298_v29 = vpop.eup %11297  ;;  %v10412_v33 = vpack.c.bf16 %v10844_v13, %v10843_v20  ;;  %v10418_v49 = vpack.c.bf16 %v10849_v23, %v10848_v0 }
0x1661   : > { %v6424_v12 = vmul.f32 %v11298_v29, %v16332_v54 }
0x1662   : > { %11303 = vrcp.f32 %v6377_v63  ;;  %9855 = vmatmul.mubr.bf16.gmra.mrb[116].mxu0 %v6434_v16 }
0x1663   : > { %10405 = vmatpush3.bf16.xpose.msk.msra.mxu0 %vm18594_vm5, %v10400_v51  ;;  %v6362_v57 = vpop.xlane.xlu1 %6361 }
0x1664   : > { %v11300_v32 = vpop.eup %11299  ;;  %10408 = vmatprep.subr.msk.bf16.mxu0 %vm18594_vm5, %v10406_v46  ;;  %v6380_v7 = vmax.f32 %v6362_v57, 1e-30 }
0x1665   : > { %v6423_v44 = vmul.f32 %v11300_v32, %v16339_v60 }
0x1666   : > { %11305 = vrcp.f32 %v6380_v7 }
0x1667   : > { %v6435_v9 = vpack.c.bf16 %v6424_v12, %v6423_v44  ;;  %v10852_v31 = vpop.permute.xlu1 %10851 }
0x1668   : > { %v11302_v38 = vpop.eup %11301  ;;  %v10854_v24 = vunpack.i.h.bf16 %v10852_v31  ;;  %v10853_v55 = vunpack.i.l.bf16 %v10852_v31 }
0x1669   : > { %9858 = vmatprep.mubr.bf16.mxu0 %v6435_v9  ;;  %v6426_v54 = vmul.f32 %v11302_v38, %v16346_v50 }
0x166a   : > { %v10424_v6 = vpack.c.bf16 %v10854_v24, %v10853_v55 }
0x166b   : > { %10411 = vmatpush3.bf16.xpose.msk.msra.mxu0 %vm18594_vm5, %v10406_v46  ;;  %v6561_v63 = vpop.permute.xlu1 %6560 }
0x166c   : > { %v11304_v51 = vpop.eup %11303  ;;  %10414 = vmatprep.subr.msk.bf16.mxu0 %vm18594_vm5, %v10412_v33 }
0x166d   : > { %v6425_v60 = vmul.f32 %v11304_v51, %v16353_v8  ;;  %v10857_v8 = vpop.permute.xlu0 %10856 }
0x166e   : > { %v10859_v50 = vunpack.i.h.bf16 %v10857_v8  ;;  %v10858_v14 = vunpack.i.l.bf16 %v10857_v8 }
0x166f   : > { %v6436_v40 = vpack.c.bf16 %v6426_v54, %v6425_v60  ;;  %v6565_v46 = vpop.permute.xlu1 %6564 }
0x1670   : > { %v10430_v56 = vpack.c.bf16 %v10859_v50, %v10858_v14  ;;  %v11306_v12 = vpop.eup %11305 }
0x1671   : > { %9859 = vmatmul.mubr.bf16.gmra.mrb[120].mxu0 %v6436_v40  ;;  %v6428_v57 = vmul.f32 %v11306_v12, %v16360_v18 }
0x1673   : > { %10417 = vmatpush3.bf16.xpose.msk.msra.mxu0 %vm18594_vm5, %v10412_v33  ;;  %v6569_v33 = vpop.permute.xlu1 %6568 }
0x1674   : > { %10420 = vmatprep.subr.msk.bf16.mxu0 %vm18594_vm5, %v10418_v49 }
0x1677   : > { %v6573_v40 = vpop.permute.xlu1 %6572 }
0x167b   : > { %10423 = vmatpush3.bf16.xpose.msk.msra.mxu0 %vm18594_vm5, %v10418_v49 }
0x167c   : > { %10426 = vmatprep.subr.msk.bf16.mxu0 %vm18594_vm5, %v10424_v6 }
0x1683   : > { %10429 = vmatpush3.bf16.xpose.msk.msra.mxu0 %vm18594_vm5, %v10424_v6  ;;  %v6577_v6 = vpop.permute.xlu1 %6576 }
0x1684   : > { %10432 = vmatprep.subr.msk.bf16.mxu0 %vm18594_vm5, %v10430_v56  ;;  %v6360_v34 = vpop.xlane.xlu0 %6359 }
0x1685   : > { %v6379_v45 = vmax.f32 %v6360_v34, 1e-30 }
0x1687   : > { %11307 = vrcp.f32 %v6379_v45  ;;  %v6581_v50 = vpop.permute.xlu1 %6580 }
0x1688   : > { %v6366_v16 = vpop.xlane.xlu0 %6365 }
0x1689   : > { %v6382_v29 = vmax.f32 %v6366_v16, 1e-30 }
0x168b   : > { %10435 = vmatpush3.bf16.xpose.msk.msra.mxu0 %vm18594_vm5, %v10430_v56  ;;  %11309 = vrcp.f32 %v6382_v29  ;;  %v6585_v7 = vpop.permute.xlu1 %6584 }
0x168c   : > { %v6364_v32 = vpop.xlane.xlu0 %6363 }
0x168d   : > { %v6381_v44 = vmax.f32 %v6364_v32, 1e-30 }
0x168f   : > { %11311 = vrcp.f32 %v6381_v44 }
0x1690   : > { %v10862_v13 = vpop.permute.xlu0 %10861 }
0x1691   : > { %v11308_v20 = vpop.eup %11307  ;;  %v10864_v9 = vunpack.i.h.bf16 %v10862_v13  ;;  %v10863_v38 = vunpack.i.l.bf16 %v10862_v13 }
0x1692   : > { %v6427_v51 = vmul.f32 %v11308_v20, %v16380_v3 }
0x1693   : > { %v10436_v60 = vpack.c.bf16 %v10864_v9, %v10863_v38 }
0x1694   : > { %v6563_v54 = vpop.permute.xlu0 %6562  ;;  %v6437_v23 = vpack.c.bf16 %v6428_v57, %v6427_v51 }
0x1695   : > { %10438 = vmatprep.subr.msk.bf16.mxu0 %vm18594_vm5, %v10436_v60  ;;  %v11310_v0 = vpop.eup %11309 }
0x1696   : > { %9862 = vmatprep.mubr.bf16.mxu0 %v6437_v23  ;;  %10441 = vmatpush3.bf16.xpose.msk.msra.mxu0 %vm18594_vm5, %v10436_v60  ;;  %v6430_v3 = vmul.f32 %v11310_v0, %v16389_v19  ;;  %vm18617_vm5 = vmmov %vm18615_vm1 }
0x1698   : > { %v6567_v49 = vpop.permute.xlu0 %6566 }
0x1699   : > { %v11312_v31 = vpop.eup %11311 }
0x169a   : > { %v6429_v24 = vmul.f32 %v11312_v31, %v16398_v47  ;;  %v6589_v47 = vpop.permute.xlu1 %6588 }
0x169c   : > { %v6571_v55 = vpop.permute.xlu0 %6570  ;;  %v6438_v18 = vpack.c.bf16 %v6430_v3, %v6429_v24 }
0x169e   : > { %9863 = vmatmul.mubr.bf16.gmra.mrb[124].mxu0 %v6438_v18  ;;  %v7052_v45 = vpop.permute.xlu1 %7051 }
0x169f   : > { %9898 = vmatprep.mubr.msk.f32.mxu0 %vm18615_vm1, %v6561_v63 }
0x16a0   : > { %v6575_v8 = vpop.permute.xlu0 %6574 }
0x16a2   : > { %v7056_v16 = vpop.permute.xlu1 %7055 }
0x16a4   : > { %v6579_v14 = vpop.permute.xlu0 %6578 }
0x16a6   : > { %9899 = vmatmul.mubr.msk.f32.vlgmr.msra.gmra.mrb[128].mxu0 %vm18616_vm6, %v6563_v54  ;;  %vm18623_vm6 = vmmov %vm18622_vm0 }
0x16a7   : > { %9901 = vmatprep.mubr.msk.f32.mxu0 %vm18617_vm5, %v6565_v46  ;;  %vm18628_vm5 = vmmov %vm18622_vm0 }
0x16a8   : > { %v6583_v28 = vpop.permute.xlu0 %6582 }
0x16aa   : > { %9902 = vmatmul.mubr.msk.f32.gmra.mrb[130].mxu0 %vm18618_vm4, %v6567_v49  ;;  %vm18624_vm4 = vmmov %vm18622_vm0 }
0x16ab   : > { %9904 = vmatprep.mubr.msk.f32.mxu0 %vm18619_vm14, %v6569_v33  ;;  %vm18625_vm14 = vmmov %vm18622_vm0 }
0x16ac   : > { %v6587_v19 = vpop.permute.xlu0 %6586 }
0x16ae   : > { %9905 = vmatmul.mubr.msk.f32.gmra.mrb[132].mxu0 %vm18620_vm2, %v6571_v55  ;;  %vm18627_vm2 = vmmov %vm18622_vm0 }
0x16af   : > { %9907 = vmatprep.mubr.msk.f32.mxu0 %vm18621_vm11, %v6573_v40  ;;  %vm18626_vm11 = vmmov %vm18622_vm0 }
0x16b0   : > { %v6591_v56 = vpop.permute.xlu0 %6590 }
0x16b2   : > { %9908 = vmatmul.mubr.msk.f32.gmra.mrb[134].mxu0 %vm18615_vm1, %v6575_v8  ;;  %vm7634_vm1 = vcmask 261120  }
0x16b3   : > { %9910 = vmatprep.mubr.msk.f32.mxu0 %vm18622_vm0, %v6577_v6 }
0x16b4   : > { %v7050_v34 = vpop.permute.xlu0 %7049 }
0x16b5   : > { %9922 = vmatprep.subr.bf16.mxu1 %v7050_v34 }
0x16b6   : > { %9911 = vmatmul.mubr.msk.f32.gmra.mrb[136].mxu0 %vm18623_vm6, %v6579_v14  ;;  %9923 = vmatpush3.bf16.msra.mxu1 %v7050_v34  ;;  %vm18711_vm6 = vmmov %vm18622_vm0 }
0x16b7   : > { %9913 = vmatprep.mubr.msk.f32.mxu0 %vm18624_vm4, %v6581_v50  ;;  %9924 = vmatprep.subr.bf16.mxu1 %v7052_v45  ;;  %vm7651_vm4 = vcmask 392192  }
0x16b8   : > { %v7054_v63 = vpop.permute.xlu0 %7053 }
0x16ba   : > { %9914 = vmatmul.mubr.msk.f32.gmra.mrb[138].mxu0 %vm18625_vm14, %v6583_v28  ;;  %9925 = vmatpush3.bf16.msra.mxu1 %v7052_v45  ;;  %vm18715_vm14 = vmmov %vm18622_vm0 }
0x16bb   : > { %9916 = vmatprep.mubr.msk.f32.mxu0 %vm18626_vm11, %v6585_v7  ;;  %9926 = vmatprep.subr.bf16.mxu1 %v7054_v63  ;;  %vm18717_vm11 = vmmov %vm18622_vm0 }
0x16be   : > { %9917 = vmatmul.mubr.msk.f32.gmra.mrb[140].mxu0 %vm18627_vm2, %v6587_v19  ;;  %9927 = vmatpush3.bf16.msra.mxu1 %v7054_v63  ;;  %vm18719_vm2 = vcmask 523264  }
0x16bf   : > { %9919 = vmatprep.mubr.msk.f32.mxu0 %vm18622_vm0, %v6589_v47  ;;  %9928 = vmatprep.subr.bf16.mxu1 %v7056_v16  ;;  %vm7685_vm0 = vcmask 654336  }
0x16c2   : > { %9920 = vmatmul.mubr.msk.f32.gmra.mrb[142].mxu0 %vm18628_vm5, %v6591_v56  ;;  %9929 = vmatpush3.bf16.msra.mxu1 %v7056_v16  ;;  %v18638_v16 = vld [vmem:[#allocation40_spill] sm:$0xff]  ;;  %vm18720_vm5 = vmmov %vm18719_vm2 }
0x172c   : > { %v16508_v29 = vpop.f32.mrb[112].mxu0 }
0x172d   : > { %v16510_v46 = vpop.f32.mrb[113].mxu0 }
0x172e   : > { %v16512_v32 = vpop.f32.mrb[114].mxu0 }
0x172f   : > { %v16514_v44 = vpop.f32.mrb[115].mxu0 }
0x1735   : > { %v16516_v12 = vpop.f32.mrb[116].mxu0 }
0x1736   : > { %v16518_v13 = vpop.f32.mrb[117].mxu0 }
0x1737   : > { %v16520_v20 = vpop.f32.mrb[118].mxu0 }
0x1738   : > { %v16522_v9 = vpop.f32.mrb[119].mxu0 }
0x1744   : > { %v16524_v38 = vpop.f32.mrb[120].mxu0 }
0x1745   : > { %v16526_v33 = vpop.f32.mrb[121].mxu0 }
0x1746   : > { %v16528_v51 = vpop.f32.mrb[122].mxu0 }
0x1747   : > { %v16530_v57 = vpop.f32.mrb[123].mxu0 }
0x1771   : > { %v16532_v60 = vpop.f32.mrb[124].mxu0 }
0x1772   : > { %v16534_v54 = vpop.f32.mrb[125].mxu0 }
0x1773   : > { %v16536_v23 = vpop.f32.mrb[126].mxu0 }
0x1774   : > { %v16538_v0 = vpop.f32.mrb[127].mxu0 }
0x1779   : > { %v9900_v40 = vpop.f32.mrb[128].mxu0 }
0x177a   : > { %v6834_v49 = vsel %vm13765_vm3, %v9900_v40, -9e+15  ;;  %v6754_v31 = vpop.f32.mrb[129].mxu0  ;;  %vm18629_vm3 = vnez %v18298_v35 }
0x177b   : > { %v6833_v24 = vsel %vm13829_vm15, %v6754_v31, -9e+15  ;;  %6851 = vmax.xlane.f32.xlu0 %v6834_v49  ;;  %vm18630_vm15 = vnez %v18300_v59 }
0x177c   : > { %6849 = vmax.xlane.f32.xlu1 %v6833_v24 }
0x177d   : > { %v9903_v3 = vpop.f32.mrb[130].mxu0 }
0x177e   : > { %v6836_v55 = vsel %vm13859_vm10, %v9903_v3, -9e+15  ;;  %v6764_v18 = vpop.f32.mrb[131].mxu0  ;;  %vm18631_vm10 = vnez %v18302_v48 }
0x177f   : > { %v6835_v6 = vsel %vm13923_vm12, %v6764_v18, -9e+15  ;;  %vm18632_vm12 = vnez %v18304_v37 }
0x1780   : > { %6855 = vmax.xlane.f32.xlu1 %v6836_v55  ;;  %6853 = vmax.xlane.f32.xlu0 %v6835_v6 }
0x1781   : > { %v9906_v8 = vpop.f32.mrb[132].mxu0 }
0x1782   : > { %v6838_v52 = vsel %vm13957_vm7, %v9906_v8, -9e+15  ;;  %v6774_v50 = vpop.f32.mrb[133].mxu0  ;;  %vm18633_vm7 = vnez %v18305_v4 }
0x1783   : > { %v6837_v30 = vsel %vm13991_vm9, %v6774_v50, -9e+15  ;;  %vm18634_vm9 = vnez %v18306_v39  ;;  %v18637_v39 = vld [vmem:[#allocation44_spill] sm:$0xff] }
0x1784   : > { %6859 = vmax.xlane.f32.xlu1 %v6838_v52  ;;  %6857 = vmax.xlane.f32.xlu0 %v6837_v30 }
0x1785   : > { %v9909_v14 = vpop.f32.mrb[134].mxu0 }
0x1786   : > { %v6840_v61 = vsel %vm18295_vm13, %v9909_v14, -9e+15  ;;  %v6784_v28 = vpop.f32.mrb[135].mxu0  ;;  %vm18635_vm13 = vnez %v18372_v58 }
0x1787   : > { %v16556_v2 = vsel %vm18297_vm8, %v6784_v28, -9e+15  ;;  %vm18636_vm8 = vnez %v18449_v1 }
0x1788   : > { %6863 = vmax.xlane.f32.xlu1 %v6840_v61  ;;  %6861 = vmax.xlane.f32.xlu0 %v16556_v2 }
0x1789   : > { %v9912_v22 = vpop.f32.mrb[136].mxu0 }
0x178a   : > { %v16561_v7 = vsel %vm18629_vm3, %v9912_v22, -9e+15  ;;  %v6794_v25 = vpop.f32.mrb[137].mxu0  ;;  %vm7702_vm3 = vcmask 785408  }
0x178b   : > { %v16565_v19 = vsel %vm18630_vm15, %v6794_v25, -9e+15  ;;  %vm18724_vm15 = vmmov %vm18711_vm6 }
0x178c   : > { %6867 = vmax.xlane.f32.xlu1 %v16561_v7  ;;  %6865 = vmax.xlane.f32.xlu0 %v16565_v19 }
0x178d   : > { %v9915_v17 = vpop.f32.mrb[138].mxu0 }
0x178e   : > { %v16571_v15 = vsel %vm18631_vm10, %v9915_v17, -9e+15  ;;  %v6804_v47 = vpop.f32.mrb[139].mxu0  ;;  %vm18726_vm10 = vmmov %vm18719_vm2 }
0x178f   : > { %v16575_v35 = vsel %vm18632_vm12, %v6804_v47, -9e+15  ;;  %vm18730_vm12 = vmmov %vm18711_vm6 }
0x1790   : > { %6871 = vmax.xlane.f32.xlu1 %v16571_v15  ;;  %6869 = vmax.xlane.f32.xlu0 %v16575_v35 }
0x1791   : > { %v9918_v59 = vpop.f32.mrb[140].mxu0 }
0x1792   : > { %v16581_v56 = vsel %vm18633_vm7, %v9918_v59, -9e+15  ;;  %v6814_v34 = vpop.f32.mrb[141].mxu0  ;;  %vm18735_vm7 = vmmov %vm18719_vm2 }
0x1793   : > { %v16585_v48 = vsel %vm18634_vm9, %v6814_v34, -9e+15  ;;  %vm18738_vm9 = vmmov %vm18711_vm6 }
0x1794   : > { %6875 = vmax.xlane.f32.xlu1 %v16581_v56  ;;  %6873 = vmax.xlane.f32.xlu0 %v16585_v48 }
0x1795   : > { %v9921_v37 = vpop.f32.mrb[142].mxu0 }
0x1796   : > { %v16591_v45 = vsel %vm18635_vm13, %v9921_v37, -9e+15  ;;  %v6824_v63 = vpop.f32.mrb[143].mxu0  ;;  %vm18740_vm13 = vmmov %vm18719_vm2 }
0x1797   : > { %v16595_v4 = vsel %vm18636_vm8, %v6824_v63, -9e+15  ;;  %vm18742_vm8 = vmmov %vm18711_vm6 }
0x1798   : > { %6879 = vmax.xlane.f32.xlu1 %v16591_v45  ;;  %6877 = vmax.xlane.f32.xlu0 %v16595_v4 }
0x17a9   : > { %7059 = vrot.lane.b32.xlu1 %v18637_v39, %s11713_s20 }
0x17ae   : > { %7057 = vrot.lane.b32.xlu0 %v18638_v16, %s11713_s20 }
0x1808   : > { %v6852_v40 = vpop.xlane.xlu0 %6851 }
0x1809   : > { %v6882_v31 = vsub.f32 %v6834_v49, %v6852_v40  ;;  %v6850_v58 = vpop.xlane.xlu1 %6849 }
0x180a   : > { %v6881_v3 = vsub.f32 %v6833_v24, %v6850_v58 }
0x180b   : > { %v6899_v18 = vmul.f32 1.442695, %v6882_v31 }
0x180c   : > { %v6897_v8 = vmul.f32 1.442695, %v6881_v3 }
0x180d   : > { %11313 = vpow2.f32 %v6899_v18  ;;  %v6856_v1 = vpop.xlane.xlu1 %6855  ;;  %v6854_v50 = vpop.xlane.xlu0 %6853 }
0x180e   : > { %11315 = vpow2.f32 %v6897_v8  ;;  %v6884_v14 = vsub.f32 %v6836_v55, %v6856_v1  ;;  %v6883_v28 = vsub.f32 %v6835_v6, %v6854_v50 }
0x1810   : > { %v6903_v22 = vmul.f32 1.442695, %v6884_v14  ;;  %v6901_v25 = vmul.f32 1.442695, %v6883_v28 }
0x1811   : > { %v6860_v17 = vpop.xlane.xlu1 %6859  ;;  %v6858_v47 = vpop.xlane.xlu0 %6857 }
0x1812   : > { %11317 = vpow2.f32 %v6903_v22  ;;  %v6886_v59 = vsub.f32 %v6838_v52, %v6860_v17  ;;  %v6885_v34 = vsub.f32 %v6837_v30, %v6858_v47 }
0x1813   : > { %11319 = vpow2.f32 %v6901_v25 }
0x1814   : > { %v6907_v37 = vmul.f32 1.442695, %v6886_v59  ;;  %v6905_v49 = vmul.f32 1.442695, %v6885_v34 }
0x1815   : > { %v6864_v63 = vpop.xlane.xlu1 %6863  ;;  %v6862_v24 = vpop.xlane.xlu0 %6861 }
0x1816   : > { %v6888_v39 = vsub.f32 %v6840_v61, %v6864_v63  ;;  %11321 = vpow2.f32 %v6905_v49  ;;  %v6887_v55 = vsub.f32 %v16556_v2, %v6862_v24 }
0x1817   : > { %v11314_v16 = vpop.eup %11313  ;;  %11323 = vpow2.f32 %v6907_v37 }
0x1818   : > { %v11316_v40 = vpop.eup %11315  ;;  %v6911_v31 = vmul.f32 1.442695, %v6888_v39  ;;  %v16605_v6 = vmul.f32 %v16255_v36, %v11314_v16  ;;  %v6909_v61 = vmul.f32 1.442695, %v6887_v55 }
0x1819   : > { %v6868_v58 = vpop.xlane.xlu1 %6867  ;;  %v16607_v3 = vpop.xlane.xlu0 %6865  ;;  %v16610_v52 = vmul.f32 %v16261_v53, %v11316_v40 }
0x181a   : > { %6947 = vadd.xlane.f32.xlu1 %v16605_v6  ;;  %11325 = vpow2.f32 %v6911_v31  ;;  %v6890_v18 = vsub.f32 %v16561_v7, %v6868_v58  ;;  %v18639_v58 = vld [vmem:[#allocation48_spill] sm:$0xff] }
0x181b   : > { %6945 = vadd.xlane.f32.xlu0 %v16610_v52  ;;  %11327 = vpow2.f32 %v6909_v61 }
0x181c   : > { %v11318_v30 = vpop.eup %11317  ;;  %v6915_v53 = vmul.f32 1.442695, %v6890_v18 }
0x181d   : > { %v6872_v8 = vpop.xlane.xlu1 %6871  ;;  %v6870_v2 = vpop.xlane.xlu0 %6869  ;;  %v16616_v36 = vmul.f32 %v16269_v43, %v11318_v30 }
0x181e   : > { %v11320_v1 = vpop.eup %11319  ;;  %v6891_v50 = vsub.f32 %v16575_v35, %v6870_v2  ;;  %11329 = vpow2.f32 %v6915_v53  ;;  %v6892_v61 = vsub.f32 %v16571_v15, %v6872_v8  ;;  %v18640_v53 = vld [vmem:[#allocation52_spill] sm:$0xff] }
0x181f   : > { %6951 = vadd.xlane.f32.xlu1 %v16616_v36  ;;  %v16621_v25 = vmul.f32 %v16292_v27, %v11320_v1 }
0x1820   : > { %v11322_v14 = vpop.eup %11321  ;;  %v6917_v43 = vmul.f32 1.442695, %v6891_v50 }
0x1821   : > { %v6876_v28 = vpop.xlane.xlu1 %6875  ;;  %v6874_v22 = vpop.xlane.xlu0 %6873  ;;  %v16624_v7 = vmul.f32 %v16300_v62, %v11322_v14  ;;  %v18641_v14 = vld [vmem:[#allocation124_spill] sm:$0xff] }
0x1822   : > { %v11324_v17 = vpop.eup %11323  ;;  %v6893_v47 = vsub.f32 %v16585_v48, %v6874_v22  ;;  %11331 = vpow2.f32 %v6917_v43  ;;  %v6894_v18 = vsub.f32 %v16581_v56, %v6876_v28  ;;  %v18643_v56 = vld [vmem:[#allocation127_spill] sm:$0xff]  ;;  %v18645_v22 = vld [vmem:[#allocation158_spill] sm:$0xff] }
0x1823   : > { %6949 = vadd.xlane.f32.xlu1 %v16621_v25  ;;  %6953 = vadd.xlane.f32.xlu0 %v16624_v7  ;;  %v16630_v34 = vmul.f32 %v16306_v10, %v11324_v17  ;;  %v18646_v17 = vld [vmem:[#allocation280_spill] sm:$0xff] }
0x1824   : > { %v11326_v37 = vpop.eup %11325  ;;  %v6921_v27 = vmul.f32 1.442695, %v6893_v47  ;;  %v6923_v2 = vmul.f32 1.442695, %v6894_v18  ;;  %v18665_v18 = vld [vmem:[#allocation62_spill] sm:$0xff] }
0x1825   : > { %v6880_v59 = vpop.xlane.xlu1 %6879  ;;  %v6878_v35 = vpop.xlane.xlu0 %6877  ;;  %v16635_v63 = vmul.f32 %v16315_v5, %v11326_v37 }
0x1826   : > { %v6895_v62 = vsub.f32 %v16595_v4, %v6878_v35  ;;  %v11328_v24 = vpop.eup %11327  ;;  %11333 = vpow2.f32 %v6921_v27  ;;  %v6896_v1 = vsub.f32 %v16591_v45, %v6880_v59  ;;  %v18644_v45 = vld [vmem:[#allocation236_spill] sm:$0xff]  ;;  %v18647_v59 = vld [vmem:[#allocation194_spill] sm:$0xff] }
0x1827   : > { %6955 = vadd.xlane.f32.xlu1 %v16630_v34  ;;  %v16639_v39 = vmul.f32 %v16321_v21, %v11328_v24  ;;  %v18648_v35 = vld [vmem:[#allocation228_spill] sm:$0xff]  ;;  %v18649_v27 = vld [vmem:[#allocation202_spill] sm:$0xff]  ;;  %v18652_v24 = vld [vmem:[#allocation229_spill] sm:$0xff] }
0x1828   : > { %v6925_v10 = vmul.f32 1.442695, %v6895_v62  ;;  %v11330_v16 = vpop.eup %11329  ;;  %v18650_v62 = vld [vmem:[#allocation222_spill] sm:$0xff] }
0x1829   : > { %v7058_v49 = vpop.permute.xlu0 %7057  ;;  %v7060_v48 = vpop.permute.xlu1 %7059  ;;  %v16643_v5 = vmul.f32 %v16329_v42, %v11330_v16  ;;  %v18655_v16 = vld [vmem:[#allocation166_spill] sm:$0xff] }
0x182a   : > { %9930 = vmatprep.subr.bf16.mxu1 %v7058_v49  ;;  %11335 = vpow2.f32 %v6925_v10  ;;  %v18654_v10 = vld [vmem:[#allocation245_spill] sm:$0xff] }
0x182b   : > { %6959 = vadd.xlane.f32.xlu1 %v16635_v63  ;;  %9931 = vmatpush3.bf16.msra.mxu1 %v7058_v49  ;;  %v18651_v49 = vld [vmem:[#allocation123_spill] sm:$0xff] }
0x182c   : > { %9932 = vmatprep.subr.bf16.mxu1 %v7060_v48  ;;  %v11332_v4 = vpop.eup %11331 }
0x182d   : > { %v16647_v40 = vmul.f32 %v16350_v41, %v11332_v4  ;;  %v6889_v41 = vsub.f32 %v16565_v19, %v16607_v3  ;;  %v18642_v19 = vld [vmem:[#allocation90_spill] sm:$0xff] }
0x182e   : > { %v18656_v4 = vld [vmem:[#allocation126_spill] sm:$0xff] }
0x182f   : > { %6957 = vadd.xlane.f32.xlu1 %v16639_v39  ;;  %9933 = vmatpush3.bf16.msra.mxu1 %v7060_v48  ;;  %v6913_v30 = vmul.f32 1.442695, %v6889_v41  ;;  %v18653_v48 = vld [vmem:[#allocation231_spill] sm:$0xff]  ;;  %v18660_v41 = vld [vmem:[#allocation216_spill] sm:$0xff] }
0x1830   : > { %v11334_v31 = vpop.eup %11333 }
0x1831   : > { %v16651_v21 = vmul.f32 %v16377_v26, %v11334_v31  ;;  %11337 = vpow2.f32 %v6913_v30  ;;  %v6919_v26 = vmul.f32 1.442695, %v6892_v61  ;;  %v18657_v31 = vld [vmem:[#allocation246_spill] sm:$0xff]  ;;  %v18661_v30 = vld [vmem:[#allocation131_spill] sm:$0xff]  ;;  %v18663_v61 = vld [vmem:[#allocation217_spill] sm:$0xff] }
0x1833   : > { %6963 = vadd.xlane.f32.xlu1 %v16643_v5  ;;  %11339 = vpow2.f32 %v6919_v26  ;;  %v18664_v26 = vld [vmem:[#allocation248_spill] sm:$0xff] }
0x1834   : > { %v11336_v55 = vpop.eup %11335  ;;  %11341 = vpow2.f32 %v6923_v2  ;;  %v18666_v2 = vld [vmem:[#allocation182_spill] sm:$0xff] }
0x1835   : > { %v16657_v42 = vmul.f32 %v16395_v11, %v11336_v55  ;;  %v6927_v11 = vmul.f32 1.442695, %v6896_v1  ;;  %v18658_v55 = vld [vmem:[#allocation65_spill] sm:$0xff] }
0x1836   : > { %v18668_v1 = vld [vmem:[#allocation225_spill] sm:$0xff] }
0x1837   : > { %6965 = vadd.xlane.f32.xlu1 %v16647_v40  ;;  %11343 = vpow2.f32 %v6927_v11  ;;  %v18670_v11 = vld [vmem:[#allocation219_spill] sm:$0xff] }
0x1839   : > { %7061 = vrot.lane.b32.xlu0 %v18639_v58, %s11713_s20  ;;  %v18659_v58 = vld [vmem:[#allocation192_spill] sm:$0xff] }
0x183b   : > { %6969 = vadd.xlane.f32.xlu1 %v16651_v21  ;;  %v11338_v50 = vpop.eup %11337 }
0x183c   : > { %v16670_v15 = vmul.f32 %v18642_v19, %v11338_v50  ;;  %v18671_v50 = vld [vmem:[#allocation130_spill] sm:$0xff] }
0x183d   : > { %v11340_v3 = vpop.eup %11339 }
0x183e   : > { %v16676_v8 = vmul.f32 %v18644_v45, %v11340_v3  ;;  %v11342_v28 = vpop.eup %11341 }
0x183f   : > { %6973 = vadd.xlane.f32.xlu1 %v16657_v42  ;;  %v16682_v43 = vmul.f32 %v18646_v17, %v11342_v28 }
0x1841   : > { %v11344_v47 = vpop.eup %11343 }
0x1842   : > { %v16688_v37 = vmul.f32 %v18648_v35, %v11344_v47 }
0x1850   : > { %7063 = vrot.lane.b32.xlu1 %v18640_v53, %s11713_s20  ;;  %v18669_v53 = vld [vmem:[#allocation251_spill] sm:$0xff] }
0x1854   : > { %7186 = vrot.lane.b32.xlu1 %v18641_v14, %s11713_s20  ;;  %v18673_v14 = vld [vmem:[#allocation167_spill] sm:$0xff] }
0x1858   : > { %7188 = vrot.lane.b32.xlu1 %v18643_v56, %s11713_s20  ;;  %6961 = vadd.xlane.f32.xlu0 %v16670_v15  ;;  %v18674_v56 = vld [vmem:[#allocation197_spill] sm:$0xff] }
0x185c   : > { %7250 = vrot.lane.b32.xlu1 %v18645_v22, %s11712_s2  ;;  %6967 = vadd.xlane.f32.xlu0 %v16676_v8  ;;  %v18675_v22 = vld [vmem:[#allocation88_spill] sm:$0xff] }
0x1860   : > { %7252 = vrot.lane.b32.xlu1 %v18647_v59, %s11712_s2  ;;  %6971 = vadd.xlane.f32.xlu0 %v16682_v43  ;;  %v18677_v59 = vld [vmem:[#allocation218_spill] sm:$0xff] }
0x1864   : > { %7316 = vrot.lane.b32.xlu1 %v18649_v27, %s11711_s22  ;;  %6975 = vadd.xlane.f32.xlu0 %v16688_v37  ;;  %v18678_v27 = vld [vmem:[#allocation196_spill] sm:$0xff] }
0x1868   : > { %7378 = vrot.lane.b32.xlu1 %v18650_v62, %s11710_s8 }
0x186c   : > { %7190 = vrot.lane.b32.xlu1 %v18651_v49, %s11713_s20 }
0x1870   : > { %7380 = vrot.lane.b32.xlu1 %v18652_v24, %s11710_s8  ;;  %v18679_v24 = vld [vmem:[#allocation256_spill] sm:$0xff] }
0x1874   : > { %7442 = vrot.lane.b32.xlu1 %v18653_v48, %s11709_s4 }
0x1878   : > { %7254 = vrot.lane.b32.xlu1 %v18654_v10, %s11712_s2 }
0x187a   : > { %7314 = vrot.lane.b32.xlu0 %v18655_v16, %s11711_s22 }
0x187c   : > { %7506 = vrot.lane.b32.xlu1 %v16510_v46, %s11708_s16  ;;  %v18662_v46 = vld [vmem:[#allocation278_spill] sm:$0xff] }
0x187e   : > { %7192 = vrot.lane.b32.xlu0 %v18656_v4, %s11713_s20  ;;  %v18680_v4 = vld [vmem:[#allocation183_spill] sm:$0xff] }
0x1880   : > { %7318 = vrot.lane.b32.xlu1 %v18657_v31, %s11711_s22 }
0x1882   : > { %7444 = vrot.lane.b32.xlu0 %v18658_v55, %s11709_s4  ;;  %v18681_v55 = vld [vmem:[#allocation172_spill] sm:$0xff] }
0x1884   : > { %7382 = vrot.lane.b32.xlu1 %v18659_v58, %s11710_s8 }
0x1886   : > { %7256 = vrot.lane.b32.xlu0 %v18660_v41, %s11712_s2 }
0x1888   : > { %7194 = vrot.lane.b32.xlu1 %v18661_v30, %s11713_s20  ;;  %v18682_v30 = vld [vmem:[#allocation260_spill] sm:$0xff] }
0x188a   : > { %7508 = vrot.lane.b32.xlu0 %v16514_v44, %s11708_s16  ;;  %v18667_v44 = vld [vmem:[#allocation247_spill] sm:$0xff] }
0x188c   : > { %7446 = vrot.lane.b32.xlu1 %v18662_v46, %s11709_s4 }
0x188e   : > { %7320 = vrot.lane.b32.xlu0 %v18663_v61, %s11711_s22 }
0x1890   : > { %7258 = vrot.lane.b32.xlu1 %v18664_v26, %s11712_s2 }
0x1892   : > { %7384 = vrot.lane.b32.xlu0 %v18665_v18, %s11710_s8  ;;  %v18684_v18 = vld [vmem:[#allocation198_spill] sm:$0xff] }
0x1894   : > { %7510 = vrot.lane.b32.xlu1 %v16508_v29, %s11708_s16  ;;  %v18672_v29 = vld [vmem:[#allocation255_spill] sm:$0xff] }
0x1896   : > { %7196 = vrot.lane.b32.xlu0 %v18666_v2, %s11713_s20 }
0x1898   : > { %7322 = vrot.lane.b32.xlu1 %v18667_v44, %s11711_s22  ;;  %v18685_v44 = vld [vmem:[#allocation60_spill] sm:$0xff] }
0x189a   : > { %7448 = vrot.lane.b32.xlu0 %v18668_v1, %s11709_s4 }
0x189c   : > { %7386 = vrot.lane.b32.xlu1 %v18669_v53, %s11710_s8  ;;  %v18686_v53 = vld [vmem:[#allocation173_spill] sm:$0xff] }
0x189e   : > { %7260 = vrot.lane.b32.xlu0 %v18670_v11, %s11712_s2 }
0x18a0   : > { %7198 = vrot.lane.b32.xlu1 %v18671_v50, %s11713_s20 }
0x18a2   : > { %7512 = vrot.lane.b32.xlu0 %v16512_v32, %s11708_s16  ;;  %v18676_v32 = vld [vmem:[#allocation134_spill] sm:$0xff] }
0x18a4   : > { %7450 = vrot.lane.b32.xlu1 %v18672_v29, %s11709_s4  ;;  %v18687_v29 = vld [vmem:[#allocation187_spill] sm:$0xff] }
0x18a6   : > { %7324 = vrot.lane.b32.xlu0 %v18673_v14, %s11711_s22  ;;  %v18688_v14 = vld [vmem:[#allocation63_spill] sm:$0xff] }
0x18a7   : > { %v6948_v19 = vpop.xlane.xlu1 %6947 }
0x18a8   : > { %v6978_v3 = vmax.f32 %v6948_v19, 1e-30  ;;  %7262 = vrot.lane.b32.xlu1 %v18674_v56, %s11712_s2  ;;  %v6946_v45 = vpop.xlane.xlu0 %6945 }
0x18a9   : > { %v6977_v28 = vmax.f32 %v6946_v45, 1e-30 }
0x18aa   : > { %11345 = vrcp.f32 %v6978_v3  ;;  %7388 = vrot.lane.b32.xlu0 %v18675_v22, %s11710_s8  ;;  %v18689_v3 = vld [vmem:[#allocation277_spill] sm:$0xff] }
0x18ab   : > { %11347 = vrcp.f32 %v6977_v28 }
0x18ac   : > { %v6952_v17 = vpop.xlane.xlu1 %6951  ;;  %7514 = vrot.lane.b32.xlu1 %v16518_v13, %s11708_s16 }
0x18ad   : > { %v6980_v61 = vmax.f32 %v6952_v17, 1e-30  ;;  %v18690_v17 = vld [vmem:[#allocation201_spill] sm:$0xff] }
0x18ae   : > { %7200 = vrot.lane.b32.xlu0 %v18676_v32, %s11713_s20  ;;  %v18691_v32 = vld [vmem:[#allocation169_spill] sm:$0xff] }
0x18b0   : > { %v6950_v47 = vpop.xlane.xlu1 %6949  ;;  %7326 = vrot.lane.b32.xlu1 %v18677_v59, %s11711_s22  ;;  %v6954_v35 = vpop.xlane.xlu0 %6953 }
0x18b1   : > { %v6981_v2 = vmax.f32 %v6954_v35, 1e-30 }
0x18b2   : > { %7452 = vrot.lane.b32.xlu0 %v18678_v27, %s11709_s4 }
0x18b4   : > { %v11346_v62 = vpop.eup %11345  ;;  %v6956_v49 = vpop.xlane.xlu1 %6955  ;;  %7390 = vrot.lane.b32.xlu1 %v18679_v24, %s11710_s8 }
0x18b5   : > { %v11348_v48 = vpop.eup %11347  ;;  %v7062_v10 = vpop.permute.xlu0 %7061  ;;  %v7026_v13 = vmul.f32 %v11346_v62, %v16605_v6  ;;  %v6979_v6 = vmax.f32 %v6950_v47, 1e-30  ;;  %v6982_v46 = vmax.f32 %v6956_v49, 1e-30  ;;  %v18692_v49 = vld [vmem:[#allocation279_spill] sm:$0xff] }
0x18b6   : > { %9934 = vmatprep.subr.bf16.mxu1 %v7062_v10  ;;  %v7025_v16 = vmul.f32 %v11348_v48, %v16610_v52  ;;  %7264 = vrot.lane.b32.xlu0 %v18680_v4, %s11712_s2  ;;  %v18683_v52 = vld [vmem:[#allocation58_spill] sm:$0xff] }
0x18b7   : > { %9935 = vmatpush3.bf16.msra.mxu1 %v7062_v10  ;;  %11349 = vrcp.f32 %v6979_v6 }
0x18b8   : > { %v6960_v31 = vpop.xlane.xlu1 %6959  ;;  %7202 = vrot.lane.b32.xlu1 %v18681_v55, %s11713_s20  ;;  %v7041_v58 = vpack.c.bf16 %v7026_v13, %v7025_v16  ;;  %11351 = vrcp.f32 %v6982_v46  ;;  %v18695_v16 = vld [vmem:[#allocation221_spill] sm:$0xff] }
0x18b9   : > { %11353 = vrcp.f32 %v6980_v61  ;;  %v6984_v11 = vmax.f32 %v6960_v31, 1e-30  ;;  %v18696_v55 = vld [vmem:[#allocation213_spill] sm:$0xff]  ;;  %v18700_v61 = vld [vmem:[#allocation162_spill] sm:$0xff] }
0x18ba   : > { %9938 = vmatprep.mubr.bf16.mxu1 %v7041_v58  ;;  %7516 = vrot.lane.b32.xlu0 %v16522_v9, %s11708_s16  ;;  %11355 = vrcp.f32 %v6981_v2 }
0x18bc   : > { %v6958_v41 = vpop.xlane.xlu1 %6957  ;;  %7454 = vrot.lane.b32.xlu1 %v18682_v30, %s11709_s4  ;;  %v18699_v30 = vld [vmem:[#allocation171_spill] sm:$0xff] }
0x18bd   : > { %v6983_v1 = vmax.f32 %v6958_v41, 1e-30 }
0x18be   : > { %7328 = vrot.lane.b32.xlu0 %v18683_v52, %s11711_s22 }
0x18bf   : > { %11357 = vrcp.f32 %v6983_v1 }
0x18c0   : > { %v6964_v26 = vpop.xlane.xlu1 %6963  ;;  %7266 = vrot.lane.b32.xlu1 %v18684_v18, %s11712_s2  ;;  %11359 = vrcp.f32 %v6984_v11  ;;  %v18701_v18 = vld [vmem:[#allocation135_spill] sm:$0xff] }
0x18c1   : > { %v11350_v19 = vpop.eup %11349  ;;  %v6986_v41 = vmax.f32 %v6964_v26, 1e-30 }
0x18c2   : > { %7392 = vrot.lane.b32.xlu0 %v18685_v44, %s11710_s8  ;;  %v11352_v56 = vpop.eup %11351  ;;  %v7027_v22 = vmul.f32 %v11350_v19, %v16621_v25  ;;  %v18703_v19 = vld [vmem:[#allocation224_spill] sm:$0xff] }
0x18c3   : > { %v11354_v45 = vpop.eup %11353  ;;  %v7030_v59 = vmul.f32 %v11352_v56, %v16630_v34  ;;  %11361 = vrcp.f32 %v6986_v41  ;;  %v18710_v41 = vld [vmem:[#allocation144_spill] sm:$0xff] }
0x18c4   : > { %v6966_v9 = vpop.xlane.xlu1 %6965  ;;  %7518 = vrot.lane.b32.xlu1 %v16516_v12, %s11708_s16  ;;  %v11356_v28 = vpop.eup %11355  ;;  %v7028_v35 = vmul.f32 %v11354_v45, %v16616_v36  ;;  %v18693_v36 = vld [vmem:[#allocation252_spill] sm:$0xff] }
0x18c5   : > { %v7029_v27 = vmul.f32 %v11356_v28, %v16624_v7  ;;  %v18694_v7 = vld [vmem:[#allocation159_spill] sm:$0xff]  ;;  %v6987_v46 = vmax.f32 %v6966_v9, 1e-30 }
0x18c6   : > { %7204 = vrot.lane.b32.xlu0 %v18686_v53, %s11713_s20  ;;  %v7042_v62 = vpack.c.bf16 %v7028_v35, %v7027_v22  ;;  %v18702_v9 = vld [vmem:[#allocation199_spill] sm:$0xff] }
0x18c7   : > { %v7043_v48 = vpack.c.bf16 %v7030_v59, %v7029_v27  ;;  %v18705_v22 = vld [vmem:[#allocation195_spill] sm:$0xff] }
0x18c8   : > { %v16783_v50 = vpop.xlane.xlu1 %6969  ;;  %7330 = vrot.lane.b32.xlu1 %v18687_v29, %s11711_s22 }
0x18c9   : > { %v11358_v25 = vpop.eup %11357  ;;  %v6989_v44 = vmax.f32 %v16783_v50, 1e-30 }
0x18ca   : > { %7456 = vrot.lane.b32.xlu0 %v18688_v14, %s11709_s4  ;;  %v11360_v10 = vpop.eup %11359  ;;  %v7031_v34 = vmul.f32 %v11358_v25, %v16639_v39  ;;  %v18697_v39 = vld [vmem:[#allocation205_spill] sm:$0xff]  ;;  %v18707_v25 = vld [vmem:[#allocation170_spill] sm:$0xff] }
0x18cb   : > { %v7032_v13 = vmul.f32 %v11360_v10, %v16635_v63  ;;  %v18698_v63 = vld [vmem:[#allocation261_spill] sm:$0xff] }
0x18cc   : > { %7394 = vrot.lane.b32.xlu1 %v18689_v3, %s11710_s8  ;;  %v16791_v12 = vpop.xlane.xlu1 %6973  ;;  %v18704_v3 = vld [vmem:[#allocation249_spill] sm:$0xff] }
0x18cd   : > { %v7044_v4 = vpack.c.bf16 %v7032_v13, %v7031_v34  ;;  %v6991_v29 = vmax.f32 %v16791_v12, 1e-30  ;;  %v11362_v56 = vpop.eup %11361  ;;  %v18708_v34 = vld [vmem:[#allocation227_spill] sm:$0xff] }
0x18ce   : > { %7268 = vrot.lane.b32.xlu0 %v18690_v17, %s11712_s2 }
0x18d0   : > { %7206 = vrot.lane.b32.xlu1 %v18691_v32, %s11713_s20  ;;  %v7064_v47 = vpop.permute.xlu1 %7063  ;;  %v7034_v32 = vmul.f32 %v11362_v56, %v16643_v5 }
0x18d1   : > { %9936 = vmatprep.subr.bf16.mxu1 %v7064_v47 }
0x18d2   : > { %9937 = vmatpush3.bf16.msra.mxu1 %v7064_v47  ;;  %7520 = vrot.lane.b32.xlu0 %v16520_v20, %s11708_s16 }
0x18d4   : > { %7458 = vrot.lane.b32.xlu1 %v18692_v49, %s11709_s4  ;;  %v16805_v24 = vpop.permute.xlu1 %7186 }
0x18d5   : > { %9939 = vmatmul.mubr.bf16.vlgmr.msra.gmra.mrb[128].mxu1 %v7042_v62  ;;  %v18706_v62 = vld [vmem:[#allocation185_spill] sm:$0xff] }
0x18d6   : > { %9942 = vmatprep.mubr.bf16.mxu1 %v7043_v48  ;;  %7332 = vrot.lane.b32.xlu0 %v18693_v36, %s11711_s22 }
0x18d8   : > { %7270 = vrot.lane.b32.xlu1 %v18694_v7, %s11712_s2  ;;  %v16812_v20 = vpop.permute.xlu1 %7188  ;;  %v18709_v7 = vld [vmem:[#allocation254_spill] sm:$0xff] }
0x18da   : > { %7396 = vrot.lane.b32.xlu0 %v18695_v16, %s11710_s8 }
0x18dc   : > { %7522 = vrot.lane.b32.xlu1 %v16526_v33, %s11708_s16  ;;  %v16819_v31 = vpop.permute.xlu1 %7250 }
0x18dd   : > { %9943 = vmatmul.mubr.bf16.gmra.mrb[132].mxu1 %v7044_v4 }
0x18de   : > { %7208 = vrot.lane.b32.xlu0 %v18696_v55, %s11713_s20 }
0x18e0   : > { %7334 = vrot.lane.b32.xlu1 %v18697_v39, %s11711_s22  ;;  %v16825_v58 = vpop.permute.xlu1 %7252 }
0x18e2   : > { %7460 = vrot.lane.b32.xlu0 %v18698_v63, %s11709_s4 }
0x18e4   : > { %7398 = vrot.lane.b32.xlu1 %v18699_v30, %s11710_s8  ;;  %v16831_v6 = vpop.permute.xlu1 %7316  ;;  %v18712_v30 = vld [vmem:[#allocation163_spill] sm:$0xff] }
0x18e5   : > { %v6962_v33 = vpop.xlane.xlu0 %6961 }
0x18e6   : > { %v6985_v52 = vmax.f32 %v6962_v33, 1e-30  ;;  %7272 = vrot.lane.b32.xlu0 %v18700_v61, %s11712_s2 }
0x18e8   : > { %7210 = vrot.lane.b32.xlu1 %v18701_v18, %s11713_s20  ;;  %v16837_v2 = vpop.permute.xlu1 %7378  ;;  %11363 = vrcp.f32 %v6985_v52  ;;  %v18714_v18 = vld [vmem:[#allocation114_spill] sm:$0xff] }
0x18e9   : > { %v6968_v26 = vpop.xlane.xlu0 %6967  ;;  %11365 = vrcp.f32 %v6987_v46  ;;  %v18713_v46 = vld [vmem:[#allocation148_spill] sm:$0xff] }
0x18ea   : > { %v6988_v1 = vmax.f32 %v6968_v26, 1e-30  ;;  %7524 = vrot.lane.b32.xlu0 %v16530_v57, %s11708_s16  ;;  %v7619_v26 = vsel %vm18715_vm14, %v18714_v18, %v16812_v20  ;;  %vm18745_vm14 = vmmov %vm18742_vm8 }
0x18ec   : > { %7462 = vrot.lane.b32.xlu1 %v18702_v9, %s11709_s4  ;;  %v7191_v53 = vpop.permute.xlu1 %7190  ;;  %11367 = vrcp.f32 %v6988_v1 }
0x18ed   : > { %v6972_v11 = vpop.xlane.xlu0 %6971  ;;  %11369 = vrcp.f32 %v6989_v44  ;;  %v7620_v63 = vsel %vm18711_vm6, %v18710_v41, %v7191_v53  ;;  %v18716_v44 = vld [vmem:[#allocation152_spill] sm:$0xff]  ;;  %vm18743_vm6 = vmmov %vm18719_vm2 }
0x18ee   : > { %v6990_v14 = vmax.f32 %v6972_v11, 1e-30  ;;  %7336 = vrot.lane.b32.xlu0 %v18703_v19, %s11711_s22  ;;  %v7636_v11 = vsel %vm7634_vm1, %v7619_v26, %v16825_v58 }
0x18f0   : > { %7274 = vrot.lane.b32.xlu1 %v18704_v3, %s11712_s2  ;;  %v7381_v50 = vpop.permute.xlu1 %7380  ;;  %11371 = vrcp.f32 %v6990_v14 }
0x18f1   : > { %v6976_v57 = vpop.xlane.xlu0 %6975  ;;  %11373 = vrcp.f32 %v6991_v29 }
0x18f2   : > { %v11364_v45 = vpop.eup %11363  ;;  %v6992_v28 = vmax.f32 %v6976_v57, 1e-30  ;;  %7400 = vrot.lane.b32.xlu0 %v18705_v22, %s11710_s8 }
0x18f3   : > { %v7033_v17 = vmul.f32 %v11364_v45, %v16670_v15  ;;  %v11366_v47 = vpop.eup %11365  ;;  %v18723_v45 = vld [vmem:[#allocation115_spill] sm:$0xff] }
0x18f4   : > { %7526 = vrot.lane.b32.xlu1 %v16524_v38, %s11708_s16  ;;  %v16853_v12 = vpop.permute.xlu1 %7442  ;;  %11375 = vrcp.f32 %v6992_v28  ;;  %v7035_v49 = vmul.f32 %v11366_v47, %v16647_v40 }
0x18f5   : > { %v16857_v59 = vpop.permute.xlu0 %7314  ;;  %v7045_v35 = vpack.c.bf16 %v7034_v32, %v7033_v17  ;;  %v18725_v17 = vld [vmem:[#allocation230_spill] sm:$0xff] }
0x18f6   : > { %v11368_v27 = vpop.eup %11367  ;;  %7212 = vrot.lane.b32.xlu0 %v18706_v62, %s11713_s20  ;;  %v18727_v62 = vld [vmem:[#allocation138_spill] sm:$0xff] }
0x18f7   : > { %9946 = vmatprep.mubr.bf16.mxu1 %v7045_v35  ;;  %v7036_v15 = vmul.f32 %v11368_v27, %v16676_v8  ;;  %v11370_v48 = vpop.eup %11369 }
0x18f8   : > { %7338 = vrot.lane.b32.xlu1 %v18707_v25, %s11711_s22  ;;  %v7255_v38 = vpop.permute.xlu1 %7254  ;;  %v7037_v16 = vmul.f32 %v11370_v48, %v16651_v21  ;;  %v18728_v25 = vld [vmem:[#allocation87_spill] sm:$0xff]  ;;  %v18729_v48 = vld [vmem:[#allocation156_spill] sm:$0xff] }
0x18f9   : > { %v7193_v5 = vpop.permute.xlu0 %7192  ;;  %v7046_v10 = vpack.c.bf16 %v7036_v15, %v7035_v49  ;;  %v7637_v33 = vsel %vm7634_vm1, %v7620_v63, %v7255_v38 }
0x18fa   : > { %v11372_v36 = vpop.eup %11371  ;;  %7464 = vrot.lane.b32.xlu0 %v18708_v34, %s11709_s4  ;;  %v7621_v1 = vsel %vm18717_vm11, %v18716_v44, %v7193_v5  ;;  %v18739_v44 = vld [vmem:[#allocation69_spill] sm:$0xff]  ;;  %vm18746_vm11 = vmmov %vm18719_vm2 }
0x18fb   : > { %9947 = vmatmul.mubr.bf16.gmra.mrb[136].mxu1 %v7046_v10  ;;  %v7038_v4 = vmul.f32 %v11372_v36, %v16682_v43  ;;  %v11374_v40 = vpop.eup %11373  ;;  %v18732_v10 = vld [vmem:[#allocation257_spill] sm:$0xff] }
0x18fc   : > { %7402 = vrot.lane.b32.xlu1 %v18709_v7, %s11710_s8  ;;  %v16869_v13 = vpop.permute.xlu1 %7506  ;;  %v7039_v43 = vmul.f32 %v11374_v40, %v16657_v42  ;;  %v7653_v42 = vsel %vm7651_vm4, %v7636_v11, %v16831_v6  ;;  %v18722_v6 = vld [vmem:[#allocation215_spill] sm:$0xff]  ;;  %v18734_v40 = vld [vmem:[#allocation89_spill] sm:$0xff] }
0x18fd   : > { %v7445_v55 = vpop.permute.xlu0 %7444  ;;  %v7047_v8 = vpack.c.bf16 %v7038_v4, %v7037_v16  ;;  %v7670_v14 = vsel %vm18719_vm2, %v7653_v42, %v7381_v50  ;;  %v18733_v4 = vld [vmem:[#allocation184_spill] sm:$0xff]  ;;  %vm18748_vm2 = vmmov %vm18742_vm8 }
0x18fe   : > { %v11376_v39 = vpop.eup %11375  ;;  %7276 = vrot.lane.b32.xlu0 %v18712_v30, %s11712_s2  ;;  %v7687_v58 = vsel %vm7685_vm0, %v7670_v14, %v7445_v55 }
0x18ff   : > { %9950 = vmatprep.mubr.bf16.mxu1 %v7047_v8  ;;  %v7040_v52 = vmul.f32 %v11376_v39, %v16688_v37  ;;  %v18718_v37 = vld [vmem:[#allocation258_spill] sm:$0xff] }
0x1900   : > { %7214 = vrot.lane.b32.xlu1 %v18713_v46, %s11713_s20  ;;  %v7319_v21 = vpop.permute.xlu1 %7318 }
0x1901   : > { %v7654_v61 = vsel %vm7651_vm4, %v7637_v33, %v7319_v21  ;;  %v7257_v9 = vpop.permute.xlu0 %7256  ;;  %v7048_v53 = vpack.c.bf16 %v7040_v52, %v7039_v43  ;;  %v18736_v21 = vld [vmem:[#allocation276_spill] sm:$0xff]  ;;  %v18737_v52 = vld [vmem:[#allocation153_spill] sm:$0xff] }
0x1902   : > { %v7638_v29 = vsel %vm7634_vm1, %v7621_v1, %v7257_v9  ;;  %7528 = vrot.lane.b32.xlu0 %v16528_v51, %s11708_s16  ;;  %v18721_v51 = vld [vmem:[#allocation223_spill] sm:$0xff] }
0x1903   : > { %9951 = vmatmul.mubr.bf16.gmra.mrb[140].mxu1 %v7048_v53 }
0x1904   : > { %7466 = vrot.lane.b32.xlu1 %v18718_v37, %s11709_s4  ;;  %v7383_v20 = vpop.permute.xlu1 %7382  ;;  %v18741_v37 = vld [vmem:[#allocation120_spill] sm:$0xff] }
0x1905   : > { %v7671_v19 = vsel %vm18720_vm5, %v7654_v61, %v7383_v20  ;;  %v7509_v3 = vpop.permute.xlu0 %7508 }
0x1906   : > { %v16901_v56 = vsel %vm7702_vm3, %v7687_v58, %v7509_v3  ;;  %7340 = vrot.lane.b32.xlu0 %v18721_v51, %s11711_s22 }
0x1908   : > { %7278 = vrot.lane.b32.xlu1 %v18722_v6, %s11712_s2  ;;  %v7195_v57 = vpop.permute.xlu1 %7194 }
0x1909   : > { %v7622_v50 = vsel %vm18724_vm15, %v18723_v45, %v7195_v57  ;;  %v7321_v28 = vpop.permute.xlu0 %7320  ;;  %vm18750_vm15 = vmmov %vm18748_vm2 }
0x190a   : > { %v7655_v22 = vsel %vm7651_vm4, %v7638_v29, %v7321_v28  ;;  %7404 = vrot.lane.b32.xlu0 %v18725_v17, %s11710_s8 }
0x190c   : > { %7530 = vrot.lane.b32.xlu1 %v16534_v54, %s11708_s16  ;;  %v7447_v32 = vpop.permute.xlu1 %7446  ;;  %v18731_v54 = vld [vmem:[#allocation64_spill] sm:$0xff] }
0x190d   : > { %v7688_v47 = vsel %vm7685_vm0, %v7671_v19, %v7447_v32  ;;  %v7385_v35 = vpop.permute.xlu0 %7384 }
0x190e   : > { %v7672_v27 = vsel %vm18726_vm10, %v7655_v22, %v7385_v35  ;;  %7216 = vrot.lane.b32.xlu0 %v18727_v62, %s11713_s20  ;;  %vm18751_vm10 = vmmov %vm18720_vm5 }
0x1910   : > { %7342 = vrot.lane.b32.xlu1 %v18728_v25, %s11711_s22  ;;  %v7259_v38 = vpop.permute.xlu1 %7258 }
0x1911   : > { %v7639_v49 = vsel %vm7634_vm1, %v7622_v50, %v7259_v38  ;;  %v7197_v15 = vpop.permute.xlu0 %7196 }
0x1912   : > { %v7623_v5 = vsel %vm18730_vm12, %v18729_v48, %v7197_v15  ;;  %7468 = vrot.lane.b32.xlu0 %v18731_v54, %s11709_s4  ;;  %vm18753_vm12 = vmmov %vm18748_vm2 }
0x1914   : > { %7406 = vrot.lane.b32.xlu1 %v18732_v10, %s11710_s8  ;;  %v7511_v36 = vpop.permute.xlu1 %7510  ;;  %v18747_v10 = vld [vmem:[#allocation161_spill] sm:$0xff] }
0x1915   : > { %v16928_v34 = vsel %vm7702_vm3, %v7688_v47, %v7511_v36  ;;  %v7449_v7 = vpop.permute.xlu0 %7448  ;;  %v18744_v47 = vld [vmem:[#allocation121_spill] sm:$0xff] }
0x1916   : > { %v7689_v16 = vsel %vm7685_vm0, %v7672_v27, %v7449_v7  ;;  %7280 = vrot.lane.b32.xlu0 %v18733_v4, %s11712_s2 }
0x1918   : > { %7408 = vrot.lane.b32.xlu1 %v18734_v40, %s11710_s8  ;;  %v7323_v55 = vpop.permute.xlu1 %7322 }
0x1919   : > { %v7656_v8 = vsel %vm7651_vm4, %v7639_v49, %v7323_v55  ;;  %v7261_v39 = vpop.permute.xlu0 %7260 }
0x191a   : > { %v7640_v41 = vsel %vm7634_vm1, %v7623_v5, %v7261_v39  ;;  %7532 = vrot.lane.b32.xlu0 %v16538_v0, %s11708_s16 }
0x191c   : > { %v7387_v63 = vpop.permute.xlu1 %7386 }
0x191d   : > { %v7673_v30 = vsel %vm18735_vm7, %v7656_v8, %v7387_v63  ;;  %v7513_v33 = vpop.permute.xlu0 %7512  ;;  %vm18754_vm7 = vmmov %vm18720_vm5 }
0x191e   : > { %v16941_v46 = vsel %vm7702_vm3, %v7689_v16, %v7513_v33  ;;  %7344 = vrot.lane.b32.xlu0 %v18736_v21, %s11711_s22 }
0x1920   : > { %v7199_v43 = vpop.permute.xlu1 %7198 }
0x1921   : > { %v7624_v61 = vsel %vm18738_vm9, %v18737_v52, %v7199_v43  ;;  %v7325_v18 = vpop.permute.xlu0 %7324  ;;  %v18749_v52 = vld [vmem:[#allocation157_spill] sm:$0xff]  ;;  %vm18756_vm9 = vmmov %vm18748_vm2 }
0x1922   : > { %v7657_v26 = vsel %vm7651_vm4, %v7640_v41, %v7325_v18  ;;  %7470 = vrot.lane.b32.xlu0 %v18739_v44, %s11709_s4 }
0x1924   : > { %v7451_v0 = vpop.permute.xlu1 %7450 }
0x1925   : > { %v7690_v1 = vsel %vm7685_vm0, %v7673_v30, %v7451_v0  ;;  %v7389_v9 = vpop.permute.xlu0 %7388 }
0x1926   : > { %v7674_v53 = vsel %vm18740_vm13, %v7657_v26, %v7389_v9  ;;  %vm18757_vm13 = vmmov %vm18720_vm5 }
0x1928   : > { %v7263_v11 = vpop.permute.xlu1 %7262 }
0x1929   : > { %v7641_v29 = vsel %vm7634_vm1, %v7624_v61, %v7263_v11  ;;  %v7201_v42 = vpop.permute.xlu0 %7200 }
0x192a   : > { %v7625_v20 = vsel %vm18742_vm8, %v18741_v37, %v7201_v42  ;;  %v18752_v42 = vld [vmem:[#allocation160_spill] sm:$0xff]  ;;  %vm18759_vm8 = vmmov %vm18748_vm2 }
0x192c   : > { %v7515_v14 = vpop.permute.xlu1 %7514 }
0x192d   : > { %v16956_v19 = vsel %vm7702_vm3, %v7690_v1, %v7515_v14  ;;  %v7453_v58 = vpop.permute.xlu0 %7452 }
0x192e   : > { %v7691_v3 = vsel %vm7685_vm0, %v7674_v53, %v7453_v58 }
0x1930   : > { %v7327_v51 = vpop.permute.xlu1 %7326 }
0x1931   : > { %v7658_v6 = vsel %vm7651_vm4, %v7641_v29, %v7327_v51  ;;  %v7265_v57 = vpop.permute.xlu0 %7264 }
0x1932   : > { %v7642_v45 = vsel %vm7634_vm1, %v7625_v20, %v7265_v57 }
0x1934   : > { %v7391_v50 = vpop.permute.xlu1 %7390 }
0x1935   : > { %v7675_v28 = vsel %vm18743_vm6, %v7658_v6, %v7391_v50  ;;  %v7517_v22 = vpop.permute.xlu0 %7516  ;;  %vm18760_vm6 = vmmov %vm18720_vm5 }
0x1936   : > { %v16963_v17 = vsel %vm7702_vm3, %v7691_v3, %v7517_v22  ;;  %v7833_v22 = vld [vmem:[#allocation8 + $0x8] sm:$0xff] }
0x1938   : > { %v7203_v32 = vpop.permute.xlu1 %7202 }
0x1939   : > { %v7626_v35 = vsel %vm18745_vm14, %v18744_v47, %v7203_v32  ;;  %v7329_v27 = vpop.permute.xlu0 %7328  ;;  %v7834_v32 = vld [vmem:[#allocation8 + $0x10] sm:$0xff]  ;;  %vm18762_vm14 = vmmov %vm18748_vm2 }
0x193a   : > { %v7659_v62 = vsel %vm7651_vm4, %v7642_v45, %v7329_v27  ;;  %v7835_v27 = vld [vmem:[#allocation8 + $0x18] sm:$0xff] }
0x193c   : > { %v7455_v25 = vpop.permute.xlu1 %7454 }
0x193d   : > { %v7692_v38 = vsel %vm7685_vm0, %v7675_v28, %v7455_v25  ;;  %v7393_v49 = vpop.permute.xlu0 %7392  ;;  %v7832_v28 = vld [vmem:[#allocation8] sm:$0xff]  ;;  %v10446_v25 = vpack.c.bf16 %v7835_v27, %v7834_v32 }
0x193e   : > { %v7676_v15 = vsel %vm18746_vm11, %v7659_v62, %v7393_v49  ;;  %v7837_v49 = vld [vmem:[#allocation8 + $0x28] sm:$0xff]  ;;  %vm18763_vm11 = vmmov %vm18720_vm5 }
0x193f   : > { %v18764_v32 = vld [vmem:[#allocation165_spill] sm:$0xff] }
0x1940   : > { %v7267_v48 = vpop.permute.xlu1 %7266 }
0x1941   : > { %v7643_v5 = vsel %vm7634_vm1, %v7626_v35, %v7267_v48  ;;  %v7205_v54 = vpop.permute.xlu0 %7204  ;;  %v10442_v35 = vpack.c.bf16 %v7833_v22, %v7832_v28 }
0x1942   : > { %v7627_v36 = vsel %vm18748_vm2, %v18747_v10, %v7205_v54 }
0x1943   : > { %10443 = vmatprep.subr.bf16.mxu0 %v10442_v35  ;;  %10474 = vmatprep.subr.bf16.mxu1 %v10442_v35 }
0x1944   : > { %v7519_v7 = vpop.permute.xlu1 %7518  ;;  %10445 = vmatpush3.bf16.msra.mxu0 %v10442_v35  ;;  %10482 = vmatpush3.bf16.msra.mxu1 %v10442_v35 }
0x1945   : > { %v16974_v16 = vsel %vm7702_vm3, %v7692_v38, %v7519_v7  ;;  %v7457_v4 = vpop.permute.xlu0 %7456  ;;  %v7836_v38 = vld [vmem:[#allocation8 + $0x20] sm:$0xff]  ;;  %10447 = vmatprep.subr.bf16.mxu0 %v10446_v25  ;;  %10475 = vmatprep.subr.bf16.mxu1 %v10446_v25 }
0x1946   : > { %v7693_v40 = vsel %vm7685_vm0, %v7676_v15, %v7457_v4  ;;  %v10450_v10 = vpack.c.bf16 %v7837_v49, %v7836_v38 }
0x1948   : > { %v7331_v55 = vpop.permute.xlu1 %7330  ;;  %10449 = vmatpush3.bf16.msra.mxu0 %v10446_v25  ;;  %10483 = vmatpush3.bf16.msra.mxu1 %v10446_v25 }
0x1949   : > { %v7660_v8 = vsel %vm7651_vm4, %v7643_v5, %v7331_v55  ;;  %v7269_v39 = vpop.permute.xlu0 %7268  ;;  %v18755_v5 = vld [vmem:[#allocation122_spill] sm:$0xff]  ;;  %10451 = vmatprep.subr.bf16.mxu0 %v10450_v10  ;;  %10476 = vmatprep.subr.bf16.mxu1 %v10450_v10 }
0x194a   : > { %v7644_v41 = vsel %vm7634_vm1, %v7627_v36, %v7269_v39 }
0x194c   : > { %v7395_v63 = vpop.permute.xlu1 %7394  ;;  %10453 = vmatpush3.bf16.msra.mxu0 %v10450_v10  ;;  %10484 = vmatpush3.bf16.msra.mxu1 %v10450_v10  ;;  %v7839_v10 = vld [vmem:[#allocation8 + $0x38] sm:$0xff] }
0x194d   : > { %v7677_v30 = vsel %vm18720_vm5, %v7660_v8, %v7395_v63  ;;  %v7521_v33 = vpop.permute.xlu0 %7520  ;;  %vm18767_vm5 = vmmov %vm18748_vm2 }
0x194e   : > { %v16981_v21 = vsel %vm7702_vm3, %v7693_v40, %v7521_v33 }
0x1950   : > { %v7207_v43 = vpop.permute.xlu1 %7206 }
0x1951   : > { %v7628_v61 = vsel %vm18750_vm15, %v18749_v52, %v7207_v43  ;;  %v7333_v18 = vpop.permute.xlu0 %7332  ;;  %vm7719_vm15 = vcmask 916480  }
0x1952   : > { %v7661_v26 = vsel %vm7651_vm4, %v7644_v41, %v7333_v18 }
0x1954   : > { %v7459_v44 = vpop.permute.xlu1 %7458 }
0x1955   : > { %v7694_v0 = vsel %vm7685_vm0, %v7677_v30, %v7459_v44  ;;  %v7397_v1 = vpop.permute.xlu0 %7396  ;;  %v18758_v30 = vld [vmem:[#allocation168_spill] sm:$0xff] }
0x1956   : > { %v7678_v9 = vsel %vm18751_vm10, %v7661_v26, %v7397_v1  ;;  %vm18768_vm10 = vmmov %vm18760_vm6 }
0x1958   : > { %v7271_v53 = vpop.permute.xlu1 %7270 }
0x1959   : > { %v7645_v11 = vsel %vm7634_vm1, %v7628_v61, %v7271_v53  ;;  %v7209_v29 = vpop.permute.xlu0 %7208 }
0x195a   : > { %v7629_v37 = vsel %vm18753_vm12, %v18752_v42, %v7209_v29 }
0x195c   : > { %v7523_v20 = vpop.permute.xlu1 %7522 }
0x195d   : > { %v16992_v14 = vsel %vm7702_vm3, %v7694_v0, %v7523_v20  ;;  %v7461_v58 = vpop.permute.xlu0 %7460 }
0x195e   : > { %v7695_v3 = vsel %vm7685_vm0, %v7678_v9, %v7461_v58 }
0x1960   : > { %v7335_v51 = vpop.permute.xlu1 %7334 }
0x1961   : > { %v7662_v6 = vsel %vm7651_vm4, %v7645_v11, %v7335_v51  ;;  %v7273_v57 = vpop.permute.xlu0 %7272 }
0x1962   : > { %v7646_v45 = vsel %vm7634_vm1, %v7629_v37, %v7273_v57  ;;  %v18761_v37 = vld [vmem:[#allocation164_spill] sm:$0xff] }
0x1964   : > { %v7399_v50 = vpop.permute.xlu1 %7398 }
0x1965   : > { %v7679_v47 = vsel %vm18754_vm7, %v7662_v6, %v7399_v50  ;;  %v7525_v62 = vpop.permute.xlu0 %7524 }
0x1966   : > { %v16999_v15 = vsel %vm7702_vm3, %v7695_v3, %v7525_v62 }
0x1968   : > { %v7211_v48 = vpop.permute.xlu1 %7210 }
0x1969   : > { %v7630_v54 = vsel %vm18756_vm9, %v18755_v5, %v7211_v48  ;;  %v7337_v36 = vpop.permute.xlu0 %7336 }
0x196a   : > { %v7663_v7 = vsel %vm7651_vm4, %v7646_v45, %v7337_v36 }
0x196c   : > { %v7463_v4 = vpop.permute.xlu1 %7462 }
0x196d   : > { %v7696_v40 = vsel %vm7685_vm0, %v7679_v47, %v7463_v4  ;;  %v7401_v55 = vpop.permute.xlu0 %7400  ;;  %v7841_v4 = vld [vmem:[#allocation8 + $0x48] sm:$0xff] }
0x196e   : > { %v7680_v8 = vsel %vm18757_vm13, %v7663_v7, %v7401_v55  ;;  %v7840_v7 = vld [vmem:[#allocation8 + $0x40] sm:$0xff]  ;;  %v7842_v55 = vld [vmem:[#allocation8 + $0x50] sm:$0xff] }
0x1970   : > { %v7275_v39 = vpop.permute.xlu1 %7274 }
0x1971   : > { %v7647_v41 = vsel %vm7634_vm1, %v7630_v54, %v7275_v39  ;;  %v7213_v63 = vpop.permute.xlu0 %7212  ;;  %v7838_v54 = vld [vmem:[#allocation8 + $0x30] sm:$0xff] }
0x1972   : > { %v7631_v33 = vsel %vm18759_vm8, %v18758_v30, %v7213_v63  ;;  %v10454_v36 = vpack.c.bf16 %v7839_v10, %v7838_v54 }
0x1974   : > { %v7527_v43 = vpop.permute.xlu1 %7526  ;;  %10455 = vmatprep.subr.bf16.mxu0 %v10454_v36  ;;  %10477 = vmatprep.subr.bf16.mxu1 %v10454_v36 }
0x1975   : > { %v17010_v52 = vsel %vm7702_vm3, %v7696_v40, %v7527_v43  ;;  %v7465_v61 = vpop.permute.xlu0 %7464  ;;  %10457 = vmatpush3.bf16.msra.mxu0 %v10454_v36  ;;  %10485 = vmatpush3.bf16.msra.mxu1 %v10454_v36  ;;  %v10458_v40 = vpack.c.bf16 %v7841_v4, %v7840_v7  ;;  %v7845_v43 = vld [vmem:[#allocation8 + $0x68] sm:$0xff] }
0x1976   : > { %v7697_v18 = vsel %vm7685_vm0, %v7680_v8, %v7465_v61  ;;  %v7843_v8 = vld [vmem:[#allocation8 + $0x58] sm:$0xff] }
0x1977   : > { %10459 = vmatprep.subr.bf16.mxu0 %v10458_v40  ;;  %10478 = vmatprep.subr.bf16.mxu1 %v10458_v40  ;;  %v10462_v39 = vpack.c.bf16 %v7843_v8, %v7842_v55 }
0x1978   : > { %v7339_v26 = vpop.permute.xlu1 %7338 }
0x1979   : > { %v7664_v44 = vsel %vm7651_vm4, %v7647_v41, %v7339_v26  ;;  %v7277_v0 = vpop.permute.xlu0 %7276  ;;  %10461 = vmatpush3.bf16.msra.mxu0 %v10458_v40  ;;  %10486 = vmatpush3.bf16.msra.mxu1 %v10458_v40  ;;  %v7846_v26 = vld [vmem:[#allocation8 + $0x70] sm:$0xff] }
0x197a   : > { %v7648_v1 = vsel %vm7634_vm1, %v7631_v33, %v7277_v0  ;;  %10463 = vmatprep.subr.bf16.mxu0 %v10462_v39  ;;  %v7844_v33 = vld [vmem:[#allocation8 + $0x60] sm:$0xff]  ;;  %10479 = vmatprep.subr.bf16.mxu1 %v10462_v39 }
0x197c   : > { %v7403_v9 = vpop.permute.xlu1 %7402 }
0x197d   : > { %v7681_v53 = vsel %vm18760_vm6, %v7664_v44, %v7403_v9  ;;  %v7529_v11 = vpop.permute.xlu0 %7528  ;;  %10465 = vmatpush3.bf16.msra.mxu0 %v10462_v39  ;;  %10487 = vmatpush3.bf16.msra.mxu1 %v10462_v39  ;;  %v7847_v44 = vld [vmem:[#allocation8 + $0x78] sm:$0xff] }
0x197e   : > { %v17017_v29 = vsel %vm7702_vm3, %v7697_v18, %v7529_v11  ;;  %v10466_v18 = vpack.c.bf16 %v7845_v43, %v7844_v33  ;;  %v10470_v0 = vpack.c.bf16 %v7847_v44, %v7846_v26 }
0x1980   : > { %v7215_v42 = vpop.permute.xlu1 %7214  ;;  %10467 = vmatprep.subr.bf16.mxu0 %v10466_v18  ;;  %10480 = vmatprep.subr.bf16.mxu1 %v10466_v18 }
0x1981   : > { %v7632_v20 = vsel %vm18762_vm14, %v18761_v37, %v7215_v42  ;;  %v7341_v58 = vpop.permute.xlu0 %7340  ;;  %10469 = vmatpush3.bf16.msra.mxu0 %v10466_v18  ;;  %10488 = vmatpush3.bf16.msra.mxu1 %v10466_v18 }
0x1982   : > { %v7665_v3 = vsel %vm7651_vm4, %v7648_v1, %v7341_v58  ;;  %10471 = vmatprep.subr.bf16.mxu0 %v10470_v0  ;;  %10481 = vmatprep.subr.bf16.mxu1 %v10470_v0 }
0x1984   : > { %v7467_v51 = vpop.permute.xlu1 %7466 }
0x1985   : > { %v7698_v6 = vsel %vm7685_vm0, %v7681_v53, %v7467_v51  ;;  %v7405_v57 = vpop.permute.xlu0 %7404  ;;  %10473 = vmatpush3.bf16.msra.mxu0 %v10470_v0  ;;  %10489 = vmatpush3.bf16.msra.mxu1 %v10470_v0  ;;  %v18765_v51 = vld [vmem:[#allocation283_spill] sm:$0xff] }
0x1986   : > { %v7682_v45 = vsel %vm18763_vm11, %v7665_v3, %v7405_v57  ;;  %vm18769_vm11 = vmmov %vm18768_vm10 }
0x1988   : > { %v7279_v50 = vpop.permute.xlu1 %7278 }
0x1989   : > { %v7649_v28 = vsel %vm7634_vm1, %v7632_v20, %v7279_v50  ;;  %v7217_v22 = vpop.permute.xlu0 %7216 }
0x198a   : > { %v7633_v47 = vsel %vm18748_vm2, %v18764_v32, %v7217_v22  ;;  %v18766_v32 = vld [vmem:[#allocation149_spill] sm:$0xff] }
0x198c   : > { %v7531_v35 = vpop.permute.xlu1 %7530 }
0x198d   : > { %v17028_v27 = vsel %vm7702_vm3, %v7698_v6, %v7531_v35  ;;  %v7469_v62 = vpop.permute.xlu0 %7468 }
0x198e   : > { %v17031_v25 = vsel %vm7685_vm0, %v7682_v45, %v7469_v62 }
0x1990   : > { %v7343_v38 = vpop.permute.xlu1 %7342 }
0x1991   : > { %v17034_v49 = vsel %vm7651_vm4, %v7649_v28, %v7343_v38  ;;  %v7281_v48 = vpop.permute.xlu0 %7280 }
0x1992   : > { %v17037_v5 = vsel %vm7634_vm1, %v7633_v47, %v7281_v48 }
0x1994   : > { %v17063_v28 = vpop.permute.xlu1 %7406 }
0x1995   : > { %v17061_v50 = vpop.permute.xlu0 %7532 }
0x1998   : > { %v17072_v35 = vpop.permute.xlu1 %7408 }
0x1999   : > { %v17065_v22 = vpop.permute.xlu0 %7344 }
0x199d   : > { %v17076_v62 = vpop.permute.xlu0 %7470 }
0x19a8   : > { %v9940_v41 = vpop.f32.mrb[128].mxu1 }
0x19a9   : > { %7574 = vrot.lane.b32.xlu1 %v9940_v41, %s11706_s17  ;;  %v7107_v63 = vpop.f32.mrb[129].mxu1 }
0x19aa   : > { %v9941_v30 = vpop.f32.mrb[130].mxu1 }
0x19ab   : > { %7576 = vrot.lane.b32.xlu0 %v9941_v30, %s11706_s17  ;;  %v7110_v61 = vpop.f32.mrb[131].mxu1 }
0x19ad   : > { %7570 = vrot.lane.b32.xlu1 %v7107_v63, %s11706_s17 }
0x19af   : > { %7572 = vrot.lane.b32.xlu0 %v7110_v61, %s11706_s17 }
0x19b0   : > { %v9944_v1 = vpop.f32.mrb[132].mxu1 }
0x19b1   : > { %7582 = vrot.lane.b32.xlu1 %v9944_v1, %s11706_s17  ;;  %v7123_v9 = vpop.f32.mrb[133].mxu1 }
0x19b2   : > { %v9945_v53 = vpop.f32.mrb[134].mxu1 }
0x19b3   : > { %v7126_v11 = vpop.f32.mrb[135].mxu1  ;;  %7584 = vrot.lane.b32.xlu0 %v9945_v53, %s11706_s17 }
0x19b5   : > { %7578 = vrot.lane.b32.xlu1 %v7123_v9, %s11706_s17 }
0x19b7   : > { %7580 = vrot.lane.b32.xlu0 %v7126_v11, %s11706_s17 }
0x19ce   : > { %v9948_v42 = vpop.f32.mrb[136].mxu1 }
0x19cf   : > { %7590 = vrot.lane.b32.xlu1 %v9948_v42, %s11706_s17  ;;  %v7139_v37 = vpop.f32.mrb[137].mxu1 }
0x19d0   : > { %v9949_v20 = vpop.f32.mrb[138].mxu1 }
0x19d1   : > { %v7142_v58 = vpop.f32.mrb[139].mxu1  ;;  %7592 = vrot.lane.b32.xlu0 %v9949_v20, %s11706_s17 }
0x19d3   : > { %7586 = vrot.lane.b32.xlu1 %v7139_v37, %s11706_s17 }
0x19d5   : > { %7588 = vrot.lane.b32.xlu0 %v7142_v58, %s11706_s17 }
0x19d6   : > { %v9952_v3 = vpop.f32.mrb[140].mxu1 }
0x19d7   : > { %7472 = vrot.lane.b32.xlu1 %v18765_v51, %s11709_s4  ;;  %v7155_v6 = vpop.f32.mrb[141].mxu1 }
0x19d8   : > { %v9953_v57 = vpop.f32.mrb[142].mxu1 }
0x19d9   : > { %v7158_v45 = vpop.f32.mrb[143].mxu1  ;;  %7534 = vrot.lane.b32.xlu0 %v16532_v60, %s11708_s16  ;;  %v7618_v60 = vsel %vm18767_vm5, %v18766_v32, %v16805_v24 }
0x19da   : > { %v7635_v47 = vsel %vm7634_vm1, %v7618_v60, %v16819_v31 }
0x19db   : > { %7594 = vrot.lane.b32.xlu1 %v7155_v6, %s11706_s17 }
0x19dd   : > { %7596 = vrot.lane.b32.xlu0 %v7158_v45, %s11706_s17 }
0x19df   : > { %7536 = vrot.lane.b32.xlu1 %v16536_v23, %s11708_s16  ;;  %v7652_v23 = vsel %vm7651_vm4, %v7635_v47, %v16857_v59 }
0x19e0   : > { %v7669_v38 = vsel %vm18768_vm10, %v7652_v23, %v16837_v2 }
0x19e1   : > { %7598 = vrot.lane.b32.xlu0 %v9952_v3, %s11706_s17  ;;  %v7686_v31 = vsel %vm7685_vm0, %v7669_v38, %v16853_v12 }
0x19e2   : > { %v7703_v59 = vsel %vm7702_vm3, %v7686_v31, %v16869_v13 }
0x19e3   : > { %7600 = vrot.lane.b32.xlu1 %v9953_v57, %s11706_s17 }
0x1a1b   : > { %v7575_v48 = vpop.permute.xlu1 %7574 }
0x1a1c   : > { %v7722_v54 = vsel %vm7719_vm15, %v16928_v34, %v7575_v48 }
0x1a1d   : > { %v7756_v10 = vmul.f32 1.442695, %v7722_v54  ;;  %v7577_v24 = vpop.permute.xlu0 %7576  ;;  %vm7738_vm1 = vcmp.gt.f32.partialorder %v7722_v54, 0.0 }
0x1a1e   : > { %v7723_v36 = vsel %vm7719_vm15, %v16941_v46, %v7577_v24 }
0x1a1f   : > { %11377 = vpow2.f32 %v7756_v10  ;;  %v7758_v7 = vmul.f32 1.442695, %v7723_v36  ;;  %v7571_v4 = vpop.permute.xlu1 %7570  ;;  %vm7739_vm12 = vcmp.gt.f32.partialorder %v7723_v36, 0.0 }
0x1a20   : > { %v7720_v2 = vsel %vm7719_vm15, %v7703_v59, %v7571_v4 }
0x1a21   : > { %11379 = vpow2.f32 %v7758_v7  ;;  %v7752_v40 = vmul.f32 1.442695, %v7720_v2  ;;  %v7573_v55 = vpop.permute.xlu0 %7572  ;;  %vm7736_vm7 = vcmp.gt.f32.partialorder %v7720_v2, 0.0 }
0x1a22   : > { %v7721_v34 = vsel %vm7719_vm15, %v16901_v56, %v7573_v55 }
0x1a23   : > { %11381 = vpow2.f32 %v7752_v40  ;;  %v7754_v8 = vmul.f32 1.442695, %v7721_v34  ;;  %v7583_v12 = vpop.permute.xlu1 %7582  ;;  %vm7737_vm9 = vcmp.gt.f32.partialorder %v7721_v34, 0.0 }
0x1a24   : > { %v7726_v46 = vsel %vm7719_vm15, %v16974_v16, %v7583_v12 }
0x1a25   : > { %11383 = vpow2.f32 %v7754_v8  ;;  %v7764_v39 = vmul.f32 1.442695, %v7726_v46  ;;  %v7585_v13 = vpop.permute.xlu0 %7584  ;;  %vm7742_vm13 = vcmp.gt.f32.partialorder %v7726_v46, 0.0 }
0x1a26   : > { %v7727_v41 = vsel %vm7719_vm15, %v16981_v21, %v7585_v13 }
0x1a27   : > { %11385 = vpow2.f32 %v7764_v39  ;;  %v7766_v63 = vmul.f32 1.442695, %v7727_v41  ;;  %v7579_v30 = vpop.permute.xlu1 %7578  ;;  %vm7743_vm8 = vcmp.gt.f32.partialorder %v7727_v41, 0.0 }
0x1a28   : > { %v7724_v33 = vsel %vm7719_vm15, %v16956_v19, %v7579_v30 }
0x1a29   : > { %v11378_v56 = vpop.eup %11377  ;;  %11387 = vpow2.f32 %v7766_v63  ;;  %v7760_v43 = vmul.f32 1.442695, %v7724_v33  ;;  %v7581_v61 = vpop.permute.xlu0 %7580  ;;  %vm7740_vm6 = vcmp.gt.f32.partialorder %v7724_v33, 0.0 }
0x1a2a   : > { %v7725_v16 = vsel %vm7719_vm15, %v16963_v17, %v7581_v61  ;;  %v8657_v18 = vadd.f32 -1.0, %v11378_v56 }
0x1a2b   : > { %v11380_v26 = vpop.eup %11379  ;;  %11389 = vpow2.f32 %v7760_v43  ;;  %v7762_v44 = vmul.f32 1.442695, %v7725_v16  ;;  %vm7741_vm14 = vcmp.gt.f32.partialorder %v7725_v16, 0.0 }
0x1a2c   : > { %v7802_v21 = vsel %vm7738_vm1, %v7722_v54, %v8657_v18  ;;  %v8658_v0 = vadd.f32 -1.0, %v11380_v26 }
0x1a2d   : > { %v11382_v1 = vpop.eup %11381  ;;  %11391 = vpow2.f32 %v7762_v44  ;;  %7818 = vst [vmem:[%s17100_s13 + $0x10] sm:$0xff] %v7802_v21 }
0x1a2e   : > { %v8655_v19 = vadd.f32 -1.0, %v11382_v1  ;;  %v7803_v9 = vsel %vm7739_vm12, %v7723_v36, %v8658_v0 }
0x1a2f   : > { %v11384_v17 = vpop.eup %11383  ;;  %7819 = vst [vmem:[%s17100_s13 + $0x18] sm:$0xff] %v7803_v9 }
0x1a30   : > { %v8656_v53 = vadd.f32 -1.0, %v11384_v17  ;;  %v7800_v11 = vsel %vm7736_vm7, %v7720_v2, %v8655_v19 }
0x1a31   : > { %v11386_v42 = vpop.eup %11385  ;;  %7816 = vst [vmem:[%s17100_s13] sm:$0xff] %v7800_v11  ;;  %9986 = vmatprep.mubr.f32.mxu0 %v7800_v11 }
0x1a32   : > { %v7801_v37 = vsel %vm7737_vm9, %v7721_v34, %v8656_v53  ;;  %v8661_v20 = vadd.f32 -1.0, %v11386_v42 }
0x1a33   : > { %v11388_v58 = vpop.eup %11387  ;;  %7817 = vst [vmem:[%s17100_s13 + $0x8] sm:$0xff] %v7801_v37  ;;  %9987 = vmatmul.mubr.f32.vlgmr.msra.gmra.mrb[144].mxu0 %v7801_v37 }
0x1a34   : > { %9989 = vmatprep.mubr.f32.mxu0 %v7802_v21  ;;  %v7806_v3 = vsel %vm7742_vm13, %v7726_v46, %v8661_v20  ;;  %v8662_v51 = vadd.f32 -1.0, %v11388_v58 }
0x1a35   : > { %v11390_v6 = vpop.eup %11389  ;;  %7822 = vst [vmem:[%s17100_s13 + $0x30] sm:$0xff] %v7806_v3 }
0x1a36   : > { %v8659_v57 = vadd.f32 -1.0, %v11390_v6  ;;  %v7807_v45 = vsel %vm7743_vm8, %v7727_v41, %v8662_v51 }
0x1a37   : > { %v11392_v32 = vpop.eup %11391  ;;  %9990 = vmatmul.mubr.f32.gmra.mrb[146].mxu0 %v7803_v9  ;;  %7823 = vst [vmem:[%s17100_s13 + $0x38] sm:$0xff] %v7807_v45 }
0x1a38   : > { %v8660_v60 = vadd.f32 -1.0, %v11392_v32  ;;  %v7804_v47 = vsel %vm7740_vm6, %v7724_v33, %v8659_v57 }
0x1a39   : > { %7820 = vst [vmem:[%s17100_s13 + $0x20] sm:$0xff] %v7804_v47  ;;  %9992 = vmatprep.mubr.f32.mxu1 %v7804_v47 }
0x1a3a   : > { %v7805_v23 = vsel %vm7741_vm14, %v7725_v16, %v8660_v60 }
0x1a3b   : > { %7821 = vst [vmem:[%s17100_s13 + $0x28] sm:$0xff] %v7805_v23  ;;  %9993 = vmatmul.mubr.f32.vlgmr.msra.gmra.mrb[144].mxu1 %v7805_v23 }
0x1a3c   : > { %9995 = vmatprep.mubr.f32.mxu1 %v7806_v3 }
0x1a3f   : > { %9996 = vmatmul.mubr.f32.gmra.mrb[146].mxu1 %v7807_v45 }
0x1a41   : > { %v7591_v38 = vpop.permute.xlu1 %7590 }
0x1a42   : > { %v7730_v48 = vsel %vm7719_vm15, %v17010_v52, %v7591_v38 }
0x1a43   : > { %v7772_v54 = vmul.f32 1.442695, %v7730_v48  ;;  %v7593_v10 = vpop.permute.xlu0 %7592  ;;  %vm7746_vm2 = vcmp.gt.f32.partialorder %v7730_v48, 0.0 }
0x1a44   : > { %v7731_v24 = vsel %vm7719_vm15, %v17017_v29, %v7593_v10 }
0x1a45   : > { %11393 = vpow2.f32 %v7772_v54  ;;  %v7774_v31 = vmul.f32 1.442695, %v7731_v24  ;;  %v7587_v36 = vpop.permute.xlu1 %7586  ;;  %vm7747_vm5 = vcmp.gt.f32.partialorder %v7731_v24, 0.0 }
0x1a46   : > { %v7728_v59 = vsel %vm7719_vm15, %v16992_v14, %v7587_v36  ;;  %v7716_v14 = vsel %vm7702_vm3, %v17031_v25, %v17061_v50 }
0x1a47   : > { %11395 = vpow2.f32 %v7774_v31  ;;  %v7768_v7 = vmul.f32 1.442695, %v7728_v59  ;;  %v7589_v4 = vpop.permute.xlu0 %7588 }
0x1a48   : > { %v7729_v2 = vsel %vm7719_vm15, %v16999_v15, %v7589_v4  ;;  %v7667_v15 = vsel %vm7651_vm4, %v17037_v5, %v17065_v22  ;;  %vm18770_vm4 = vmmov %vm18768_vm10  ;;  %vm7744_vm10 = vcmp.gt.f32.partialorder %v7728_v59, 0.0 }
0x1a49   : > { %11397 = vpow2.f32 %v7768_v7  ;;  %v7770_v40 = vmul.f32 1.442695, %v7729_v2  ;;  %v7473_v52 = vpop.permute.xlu1 %7472  ;;  %v7684_v5 = vsel %vm18770_vm4, %v7667_v15, %v17072_v35 }
0x1a4b   : > { %11399 = vpow2.f32 %v7770_v40  ;;  %v7535_v55 = vpop.permute.xlu0 %7534 }
0x1a4d   : > { %v7595_v34 = vpop.permute.xlu1 %7594 }
0x1a4e   : > { %v7732_v29 = vsel %vm7719_vm15, %v17028_v27, %v7595_v34  ;;  %v7683_v27 = vsel %vm18769_vm11, %v17034_v49, %v17063_v28  ;;  %v7701_v49 = vsel %vm7685_vm0, %v7684_v5, %v7473_v52 }
0x1a4f   : > { %v11394_v8 = vpop.eup %11393  ;;  %v7776_v12 = vmul.f32 1.442695, %v7732_v29  ;;  %v7597_v46 = vpop.permute.xlu0 %7596  ;;  %v7700_v25 = vsel %vm7685_vm0, %v7683_v27, %v17076_v62  ;;  %vm7745_vm0 = vcmp.gt.f32.partialorder %v7729_v2, 0.0 }
0x1a50   : > { %v7733_v39 = vsel %vm7719_vm15, %v7716_v14, %v7597_v46  ;;  %v8665_v13 = vadd.f32 -1.0, %v11394_v8  ;;  %v7717_v22 = vsel %vm7702_vm3, %v7700_v25, %v7535_v55 }
0x1a51   : > { %v11396_v41 = vpop.eup %11395  ;;  %11401 = vpow2.f32 %v7776_v12  ;;  %v7778_v63 = vmul.f32 1.442695, %v7733_v39  ;;  %v7537_v30 = vpop.permute.xlu1 %7536 }
0x1a52   : > { %v7810_v50 = vsel %vm7746_vm2, %v7730_v48, %v8665_v13  ;;  %v8666_v33 = vadd.f32 -1.0, %v11396_v41  ;;  %v7718_v18 = vsel %vm7702_vm3, %v7701_v49, %v7537_v30  ;;  %vm7748_vm3 = vcmp.gt.f32.partialorder %v7732_v29, 0.0 }
0x1a53   : > { %v11398_v56 = vpop.eup %11397  ;;  %11403 = vpow2.f32 %v7778_v63  ;;  %v7599_v43 = vpop.permute.xlu0 %7598  ;;  %7826 = vst [vmem:[%s17100_s13 + $0x50] sm:$0xff] %v7810_v50 }
0x1a54   : > { %v7734_v28 = vsel %vm7719_vm15, %v7717_v22, %v7599_v43  ;;  %v8663_v61 = vadd.f32 -1.0, %v11398_v56  ;;  %v7811_v62 = vsel %vm7747_vm5, %v7731_v24, %v8666_v33 }
0x1a55   : > { %v11400_v16 = vpop.eup %11399  ;;  %v7780_v26 = vmul.f32 1.442695, %v7734_v28  ;;  %v7601_v44 = vpop.permute.xlu1 %7600  ;;  %7827 = vst [vmem:[%s17100_s13 + $0x58] sm:$0xff] %v7811_v62  ;;  %vm7750_vm1 = vcmp.gt.f32.partialorder %v7734_v28, 0.0 }
0x1a56   : > { %v7735_v35 = vsel %vm7719_vm15, %v7718_v18, %v7601_v44  ;;  %v7808_v21 = vsel %vm7744_vm10, %v7728_v59, %v8663_v61  ;;  %v8664_v0 = vadd.f32 -1.0, %v11400_v16  ;;  %vm7749_vm15 = vcmp.gt.f32.partialorder %v7733_v39, 0.0 }
0x1a57   : > { %11405 = vpow2.f32 %v7780_v26  ;;  %v7782_v1 = vmul.f32 1.442695, %v7735_v35  ;;  %7824 = vst [vmem:[%s17100_s13 + $0x40] sm:$0xff] %v7808_v21  ;;  %9998 = vmatprep.mubr.f32.mxu1 %v7808_v21  ;;  %vm7751_vm12 = vcmp.gt.f32.partialorder %v7735_v35, 0.0 }
0x1a58   : > { %v7809_v19 = vsel %vm7745_vm0, %v7729_v2, %v8664_v0 }
0x1a59   : > { %11407 = vpow2.f32 %v7782_v1  ;;  %7825 = vst [vmem:[%s17100_s13 + $0x48] sm:$0xff] %v7809_v19  ;;  %9999 = vmatmul.mubr.f32.gmra.mrb[148].mxu1 %v7809_v19 }
0x1a5a   : > { %10001 = vmatprep.mubr.f32.mxu1 %v7810_v50 }
0x1a5b   : > { %v11402_v9 = vpop.eup %11401 }
0x1a5c   : > { %v8667_v17 = vadd.f32 -1.0, %v11402_v9 }
0x1a5d   : > { %v11404_v53 = vpop.eup %11403  ;;  %10002 = vmatmul.mubr.f32.gmra.mrb[150].mxu1 %v7811_v62 }
0x1a5e   : > { %v7812_v11 = vsel %vm7748_vm3, %v7732_v29, %v8667_v17  ;;  %v8668_v42 = vadd.f32 -1.0, %v11404_v53 }
0x1a5f   : > { %7828 = vst [vmem:[%s17100_s13 + $0x60] sm:$0xff] %v7812_v11  ;;  %10004 = vmatprep.mubr.f32.mxu1 %v7812_v11 }
0x1a60   : > { %v7813_v37 = vsel %vm7749_vm15, %v7733_v39, %v8668_v42 }
0x1a61   : > { %v11406_v20 = vpop.eup %11405  ;;  %7829 = vst [vmem:[%s17100_s13 + $0x68] sm:$0xff] %v7813_v37  ;;  %10005 = vmatmul.mubr.f32.gmra.mrb[152].mxu1 %v7813_v37 }
0x1a62   : > { %v8669_v58 = vadd.f32 -1.0, %v11406_v20 }
0x1a63   : > { %v11408_v3 = vpop.eup %11407 }
0x1a64   : > { %v7814_v51 = vsel %vm7750_vm1, %v7734_v28, %v8669_v58  ;;  %v8670_v6 = vadd.f32 -1.0, %v11408_v3 }
0x1a65   : > { %7830 = vst [vmem:[%s17100_s13 + $0x70] sm:$0xff] %v7814_v51  ;;  %10007 = vmatprep.mubr.f32.mxu1 %v7814_v51 }
0x1a66   : > { %v7815_v57 = vsel %vm7751_vm12, %v7735_v35, %v8670_v6 }
0x1a67   : > { %7831 = vst [vmem:[%s17100_s13 + $0x78] sm:$0xff] %v7815_v57  ;;  %10008 = vmatmul.mubr.f32.gmra.mrb[154].mxu1 %v7815_v57 }
0x1a68   : > { %11590 = shalt.err (!%p11587_p12)
}
0x1a69   : > { %s11591_s17 = scalar_lea.hbm %s17151_s12, 2048  ;;  %s11595_s8 = scalar_lea.hbm %s17268_s6, 4096 }
0x1a6a   : > { %p11592_p11 = scmp.ne.s32.totalorder %s17151_s12, %s11591_s17  ;;  %p11596_p13 = scmp.lt.u32.totalorder %s17151_s12, %s17268_s6 }
0x1a6b   : > { %p11597_p0 = scmp.lt.u32.totalorder %s11595_s8, %s11591_s17  ;;  %p11599_p9 = scmp.lt.u32.totalorder %s11591_s17, %s17151_s12 }
0x1a6c   : > { %p11593_p3 = pnand %p11592_p11, %p11853_p10 }
0x1a6d   : > { %p11598_p5 = por %p11597_p0, %p11596_p13 }
0x1a6e   : > { %p11594_p6 = pneg %p11593_p3 }
0x1a6f   : > { %p11600_p1 = por %p11599_p9, %p11598_p5 }
0x1a71   : > { %p11601_p2 = pnand %p11600_p1, %p11594_p6 }
0x1a73   : > { %11604 = shalt.err (!%p11601_p2)
}
0x1a74   : > { %s11715_s20 = smov 128   ;;  %s11716_s13 = smov 8   ;;  %v18771_v45 = vmov 0.0   ;;  %v17188_v32 = vld [vmem:[%s17267_s5] ss:$0 sm:$0xff] }
0x1a75   : > { %10498 = dma.vmem_to_hbm [thread:$0]  (%p11853_p10), %s17154_s19, 2048, %s17151_s12, %s8041_s18, %s11715_s20, %s11715_s20, %s11716_s13  }
0x1a76   : > { %s17181_s23 = scalar_lea.vmem [#allocation10], %s11952_s15  ;;  %s8675_s12 = sshll.u32 %s11691_s27, 4 }
0x1a77   : > { %645 = vst [vmem:[%s17181_s23] sm:$0x1] %v18771_v45  ;;  %s8076_s19 = sshll.u32 %s17181_s23, 4  ;;  %s17212_s21 = scalar_lea.hbm %s17269_s7, %s8675_s12  ;;  %s17214_s19 = int_to_ptr.vmem [resolvable:$true] %s8076_s19 }
0x1a78   : > { %s8046_s30 = scalar_lea.sflag [#allocation11], %s11952_s15  ;;  %s11605_s9 = scalar_lea.vmem %s17214_s19, 16 }
0x1a79   : > { %p11606_p7 = scmp.ne.s32.totalorder %s17214_s19, %s11605_s9  ;;  %s11717_s27 = smov [#allocation10]  }
0x1a7a   : > { %s11609_s17 = sshll.u32 %s11717_s27, 4  ;;  %s11610_s17 = int_to_ptr.vmem [resolvable:$false] %s11609_s17 }
0x1a7b   : > { %p11607_p4 = pnand %p11606_p7, %p11853_p10  ;;  %s11611_s16 = scalar_lea.vmem %s11610_s17, 32 }
0x1a7c   : > { %p11612_p12 = scmp.lt.s32.totalorder %s17214_s19, %s11610_s17  ;;  %p11613_p11 = scmp.lt.s32.totalorder %s11611_s16, %s11605_s9 }
0x1a7d   : > { %p11608_p8 = pneg %p11607_p4 }
0x1a7e   : > { %p11614_p3 = por %p11613_p11, %p11612_p12 }
0x1a80   : > { %p11615_p6 = pnand %p11614_p3, %p11608_p8 }
0x1b06   : > { %v9988_v60 = vpop.f32.mrb[144].mxu0 }
0x1b07   : > { %v7927_v47 = vadd.f32 %v9988_v60, %v17188_v32  ;;  %v7921_v23 = vpop.f32.mrb[145].mxu0 }
0x1b08   : > { %v7922_v38 = vadd.f32 %v17188_v32, %v7921_v23 }
0x1b09   : > { %11409 = vtanh.f32 %v7927_v47 }
0x1b0a   : > { %11411 = vtanh.f32 %v7922_v38  ;;  %v9991_v48 = vpop.f32.mrb[146].mxu0 }
0x1b0b   : > { %v7931_v54 = vpop.f32.mrb[147].mxu0  ;;  %v7937_v10 = vadd.f32 %v9991_v48, %v17188_v32  ;;  %v8037_v48 = vld [vmem:[%s17181_s23] sm:$0x1] }
0x1b0c   : > { %v7932_v24 = vadd.f32 %v17188_v32, %v7931_v54 }
0x1b0e   : > { %11413 = vtanh.f32 %v7932_v24  ;;  %v9994_v31 = vpop.f32.mrb[144].mxu1 }
0x1b0f   : > { %v7941_v36 = vpop.f32.mrb[145].mxu1  ;;  %11415 = vtanh.f32 %v7937_v10  ;;  %v7947_v59 = vadd.f32 %v9994_v31, %v17188_v32 }
0x1b10   : > { %v7942_v7 = vadd.f32 %v17188_v32, %v7941_v36 }
0x1b12   : > { %11417 = vtanh.f32 %v7942_v7  ;;  %v9997_v4 = vpop.f32.mrb[146].mxu1 }
0x1b13   : > { %v11410_v2 = vpop.eup %11409  ;;  %v7951_v40 = vpop.f32.mrb[147].mxu1  ;;  %11419 = vtanh.f32 %v7947_v59  ;;  %v7957_v55 = vadd.f32 %v9997_v4, %v17188_v32 }
0x1b14   : > { %v11412_v52 = vpop.eup %11411  ;;  %v7952_v34 = vadd.f32 %v17188_v32, %v7951_v40 }
0x1b15   : > { %v8016_v29 = vadd.f32 %v11412_v52, %v11410_v2 }
0x1b16   : > { %11421 = vtanh.f32 %v7952_v34 }
0x1b17   : > { %11423 = vtanh.f32 %v7957_v55 }
0x1b18   : > { %v11414_v8 = vpop.eup %11413 }
0x1b19   : > { %v8017_v14 = vadd.f32 %v11414_v8, %v8016_v29  ;;  %v11416_v12 = vpop.eup %11415 }
0x1b1b   : > { %v8018_v46 = vadd.f32 %v11416_v12, %v8017_v14 }
0x1b1c   : > { %v11418_v15 = vpop.eup %11417 }
0x1b1d   : > { %v8019_v39 = vadd.f32 %v11418_v15, %v8018_v46  ;;  %v11420_v13 = vpop.eup %11419 }
0x1b1f   : > { %v8020_v41 = vadd.f32 %v11420_v13, %v8019_v39 }
0x1b20   : > { %v11422_v27 = vpop.eup %11421 }
0x1b21   : > { %v8021_v63 = vadd.f32 %v11422_v27, %v8020_v41  ;;  %v11424_v30 = vpop.eup %11423 }
0x1b23   : > { %v8022_v25 = vadd.f32 %v11424_v30, %v8021_v63 }
0x1b2c   : > { %v10000_v50 = vpop.f32.mrb[148].mxu1 }
0x1b2d   : > { %v7961_v33 = vpop.f32.mrb[149].mxu1  ;;  %v7967_v56 = vadd.f32 %v10000_v50, %v17188_v32 }
0x1b2e   : > { %v7962_v5 = vadd.f32 %v17188_v32, %v7961_v33 }
0x1b30   : > { %11425 = vtanh.f32 %v7962_v5  ;;  %v10003_v22 = vpop.f32.mrb[150].mxu1 }
0x1b31   : > { %v7971_v43 = vpop.f32.mrb[151].mxu1  ;;  %11427 = vtanh.f32 %v7967_v56  ;;  %v7977_v49 = vadd.f32 %v10003_v22, %v17188_v32 }
0x1b32   : > { %v7972_v28 = vadd.f32 %v17188_v32, %v7971_v43 }
0x1b34   : > { %11429 = vtanh.f32 %v7972_v28  ;;  %v10006_v61 = vpop.f32.mrb[152].mxu1 }
0x1b35   : > { %v7981_v62 = vpop.f32.mrb[153].mxu1  ;;  %11431 = vtanh.f32 %v7977_v49  ;;  %v7987_v16 = vadd.f32 %v10006_v61, %v17188_v32 }
0x1b36   : > { %v7982_v18 = vadd.f32 %v17188_v32, %v7981_v62 }
0x1b38   : > { %11433 = vtanh.f32 %v7982_v18 }
0x1b39   : > { %11435 = vtanh.f32 %v7987_v16 }
0x1b3a   : > { %v11426_v26 = vpop.eup %11425  ;;  %v10009_v44 = vpop.f32.mrb[154].mxu1 }
0x1b3b   : > { %v8023_v35 = vadd.f32 %v11426_v26, %v8022_v25  ;;  %v7991_v21 = vpop.f32.mrb[155].mxu1  ;;  %v11428_v0 = vpop.eup %11427  ;;  %v7997_v1 = vadd.f32 %v10009_v44, %v17188_v32 }
0x1b3c   : > { %v7992_v19 = vadd.f32 %v17188_v32, %v7991_v21 }
0x1b3d   : > { %v8024_v9 = vadd.f32 %v11428_v0, %v8023_v35 }
0x1b3e   : > { %v11430_v17 = vpop.eup %11429  ;;  %11437 = vtanh.f32 %v7992_v19 }
0x1b3f   : > { %v8025_v53 = vadd.f32 %v11430_v17, %v8024_v9  ;;  %v11432_v11 = vpop.eup %11431  ;;  %11439 = vtanh.f32 %v7997_v1 }
0x1b41   : > { %v8026_v42 = vadd.f32 %v11432_v11, %v8025_v53 }
0x1b42   : > { %v11434_v37 = vpop.eup %11433 }
0x1b43   : > { %v8027_v20 = vadd.f32 %v11434_v37, %v8026_v42  ;;  %v11436_v58 = vpop.eup %11435 }
0x1b45   : > { %v8028_v3 = vadd.f32 %v11436_v58, %v8027_v20 }
0x1b48   : > { %v11438_v51 = vpop.eup %11437 }
0x1b49   : > { %v8029_v6 = vadd.f32 %v11438_v51, %v8028_v3  ;;  %v11440_v57 = vpop.eup %11439 }
0x1b4b   : > { %v8030_v45 = vadd.f32 %v11440_v57, %v8029_v6 }
0x1b4d   : > { %v8031_v32 = vrot.slane %v8030_v45, 4 }
0x1b4f   : > { %v8032_v60 = vadd.f32 %v8031_v32, %v8030_v45 }
0x1b51   : > { %v8033_v47 = vrot.slane %v8032_v60, 2 }
0x1b53   : > { %v8034_v23 = vadd.f32 %v8033_v47, %v8032_v60 }
0x1b55   : > { %v8035_v38 = vrot.slane %v8034_v23, 1 }
0x1b57   : > { %v8036_v54 = vadd.f32 %v8035_v38, %v8034_v23 }
0x1b59   : > { %v8038_v10 = vadd.f32 %v8037_v48, %v8036_v54 }
0x1b5b   : > { %8039 = vst [vmem:[%s17181_s23] sm:$0x1] %v8038_v10 }
0x1b5c   : > { %11618 = shalt.err (!%p11615_p6)
}
0x1b5d   : > { %s11619_s15 = scalar_lea.hbm %s17212_s21, 16  ;;  %s11623_s22 = scalar_lea.hbm %s17269_s7, 32 }
0x1b5e   : > { %p11620_p13 = scmp.ne.s32.totalorder %s17212_s21, %s11619_s15  ;;  %p11624_p9 = scmp.lt.u32.totalorder %s17212_s21, %s17269_s7 }
0x1b5f   : > { %p11625_p1 = scmp.lt.u32.totalorder %s11623_s22, %s11619_s15  ;;  %p11627_p7 = scmp.lt.u32.totalorder %s11619_s15, %s17212_s21 }
0x1b60   : > { %p11621_p0 = pnand %p11620_p13, %p11853_p10 }
0x1b61   : > { %p11626_p2 = por %p11625_p1, %p11624_p9 }
0x1b62   : > { %p11622_p5 = pneg %p11621_p0 }
0x1b63   : > { %p11628_p4 = por %p11627_p7, %p11626_p2 }
0x1b65   : > { %p11629_p8 = pnand %p11628_p4, %p11622_p5 }
0x1b67   : > { %11632 = shalt.err (!%p11629_p8)
}
0x1b68   : > { %10499 = dma.vmem_to_hbm [thread:$0]  (%p11853_p10), %s17214_s19, 16, %s17212_s21, %s8046_s30  }
0x1b69 PF: > { %s8088_s13 = sand.u32 1, %s11679_s24   ;;  %p18772_p12 = scmp.ne.s32.totalorder %s17617_s10, 0 }
0x1b6a   : > { %p18773_p11 = scmp.ge.s32.totalorder %s11699_s29, 2  ;;  %s8089_s23 = scalar_lea.sflag [#allocation5], %s8088_s13 }
0x1b6c   : > { %p10514_p3 = pnand %p18773_p11, %p18772_p12 }
0x1b6e   : > { %11670 = dma.done.wait (!%p10514_p3), %s8089_s23, 2048  }
0x1b6f   : > { %11672 = vsyncadd (!%p10514_p3), %s8089_s23, 4294965248  ;;  %s8098_s28 = scalar_lea.sflag [#allocation11], %s8088_s13 }
0x1b70   : > { %11674 = dma.done.wait (!%p10514_p3), %s8098_s28, 16  }
0x1b71   : > { %11676 = vsyncadd (!%p10514_p3), %s8098_s28, 4294967280  ;;  %s30_s29 = sadd.s32 1, %s11699_s29   ;;  %s18774_s14 = sld [smem:[#allocation17_spill]] }
0x1b72   : > { %p27_p6 = scmp.ge.s32.totalorder %s30_s29, 4   ;;  %s18775_s26 = sld [smem:[#allocation20_spill]] }
0x1b73   : > { %s18776_s27 = sld [smem:[#allocation18_spill]]  ;;  %s18777_s28 = sld [smem:[#allocation19_spill]] }
0x1b74   : > { %s18778_s24 = smov %s11683_s25  ;;  %29 = sbr.rel (!%p27_p6) target bundleno = 13 (0xd), region = 131 }
0x1b77   : > { %s18779_s25 = smov %s18774_s14 }
0x1b7b   :  { %8102 = vsyncpa [#allocation4], 1 }
0x1b7c   :  { %8104 = vsyncpa [#allocation4 + $0x1], 1 }
0x1b7d   :  { %8105 = vsyncpa [#allocation7], 1 }
0x1b7e   :  { %8107 = vsyncpa [#allocation7 + $0x1], 1 }
0x1b7f   :  { %8108 = vsyncpa [#allocation5], 1 }
0x1b80   :  { %8110 = vsyncpa [#allocation5 + $0x1], 1 }
0x1b81   :  { %8111 = vsyncpa [#allocation11], 1 }
0x1b82   :  { %8113 = vsyncpa [#allocation11 + $0x1], 1 }

</bundles_post_ra>
